<compile_context>
chip_gen: v5e
topology: v5e:2x2
jax: 0.10.0
libtpu: 0.0.40
codegen_flags: <defaults>
</compile_context>

<pallas_src>
import jax
import jax.numpy as jnp
import numpy as np
from jax import lax
from jax.experimental import pallas as pl
from jax.experimental.pallas import tpu as pltpu

_VMEM_LIMIT = 32 * 1024 * 1024

# --- static model geometry ---------------------------------------------------
_PAD = 228                      # 224 + 1 (conv pad) + 3 extra (never read)
_RPH = 76                       # stride-3 row phases: 228 / 3
_OH1, _OW1, _C1 = 72, 72, 3     # conv1 output
_PH1, _PW1 = 34, 34             # pool1 output
_OH2, _OW2, _C2 = 32, 32, 6     # conv2 output
_PH2, _PW2 = 14, 14             # pool2 output
_FLAT = _C2 * _PH2 * _PW2       # 1176


# -----------------------------------------------------------------------------
# In-kernel helpers
# -----------------------------------------------------------------------------

def _stride2_rowsel(n_out, n_in):
    # (n_out, n_in) with 1.0 at [i, 2i]  ->  (S @ M)[i, :] = M[2i, :]
    r = lax.broadcasted_iota(jnp.int32, (n_out, n_in), 0)
    c = lax.broadcasted_iota(jnp.int32, (n_out, n_in), 1)
    return jnp.where(c == 2 * r, jnp.float32(1.0), jnp.float32(0.0))


def _stride2_colsel(n_in, n_out):
    # (n_in, n_out) with 1.0 at [2j, j]  ->  (M @ S)[:, j] = M[:, 2j]
    r = lax.broadcasted_iota(jnp.int32, (n_in, n_out), 0)
    c = lax.broadcasted_iota(jnp.int32, (n_in, n_out), 1)
    return jnp.where(r == 2 * c, jnp.float32(1.0), jnp.float32(0.0))


def _maxpool_5x5_s2(x, sel_rows, sel_cols):
    # PyTorch MaxPool2d(5, stride=2) on a 2D map: unrolled VPU maximum chain
    # over the 25 taps followed by a stride-2 subsample via 0/1 selection
    # matmuls (keeps the lane axis dense, no strided lane access).
    h, w = x.shape
    wh, ww = h - 4, w - 4
    r = x[0:wh, :]
    for dy in range(1, 5):
        r = jnp.maximum(r, x[dy:dy + wh, :])
    m = r[:, 0:ww]
    for dx in range(1, 5):
        m = jnp.maximum(m, r[:, dx:dx + ww])
    m = jnp.dot(m, sel_cols, preferred_element_type=jnp.float32)
    return jnp.dot(sel_rows, m, preferred_element_type=jnp.float32)


# -----------------------------------------------------------------------------
# Pallas kernels
# -----------------------------------------------------------------------------

def _fused_cnn_kernel(rph_ref, w1s_ref, b1_ref, a1_ref,
                      w2s_ref, b2_ref, a2_ref, out_ref):
    # rph_ref : (1, 3, 76, 228)  row-phase image, rph[0,r,u,j] = xpad[3u+r, j]
    # w1s_ref : (11, 228, 216)   conv1 scatter weights (per ky)
    # b1_ref  : (1, 216), a1_ref: (1, 1)
    # w2s_ref : (3, 3, 34, 192)  conv2 scatter weights (per ic, jy)
    # b2_ref  : (1, 192), a2_ref: (1, 1)
    # out_ref : (1, 6, 14, 14)   pooled features in NCHW (c, h, w) order
    def dot(a, b):
        return jnp.dot(a, b, preferred_element_type=jnp.float32)

    # ---- Conv1 (1->3, 11x11, stride 3, pad 1): 11 lane-dense GEMMs ----------
    g = dot(rph_ref[0, 0, 0:_OH1, :], w1s_ref[0])
    for ky in range(1, 11):
        r, q = ky % 3, ky // 3
        g = g + dot(rph_ref[0, r, q:q + _OH1, :], w1s_ref[ky])
    g = g + b1_ref[...]                                 # (72, 216) + (1, 216)
    g = jnp.where(g > 0.0, g, g * a1_ref[...])          # PReLU (shared alpha)

    # ---- MaxPool2d(5, stride 2) per channel -> (34, 34) ---------------------
    sr1 = _stride2_rowsel(_PH1, _OH1 - 4)
    sc1 = _stride2_colsel(_OW1 - 4, _PW1)
    m1 = [_maxpool_5x5_s2(g[:, c * _OW1:(c + 1) * _OW1], sr1, sc1)
          for c in range(_C1)]

    # ---- Conv2 (3->6, 3x3, stride 1): 9 lane-dense GEMMs --------------------
    g2 = None
    for ic in range(_C1):
        for jy in range(3):
            part = dot(m1[ic][jy:jy + _OH2, :], w2s_ref[ic, jy])
            g2 = part if g2 is None else g2 + part
    g2 = g2 + b2_ref[...]                               # (32, 192) + (1, 192)
    g2 = jnp.where(g2 > 0.0, g2, g2 * a2_ref[...])      # PReLU

    # ---- MaxPool2d(5, stride 2) per channel -> (14, 14), store NCHW ---------
    sr2 = _stride2_rowsel(_PH2, _OH2 - 4)
    sc2 = _stride2_colsel(_OW2 - 4, _PW2)
    for oc in range(_C2):
        out_ref[0, oc] = _maxpool_5x5_s2(
            g2[:, oc * _OW2:(oc + 1) * _OW2], sr2, sc2)


def _dense_tail_kernel(cf_ref, st_ref,
                       wl1_ref, bl1_ref, al1_ref,
                       wl2_ref, bl2_ref, al2_ref,
                       wm_ref, bm_ref, am_ref,
                       wh_ref, bh_ref,
                       o_ref):
    def dot(a, b):
        return jnp.dot(a, b, preferred_element_type=jnp.float32)

    def prelu(x, a_ref):
        return jnp.where(x > 0.0, x, x * a_ref[...])

    # CNN.l1 : Linear(5, 1176) + PReLU, add conv features
    h1 = prelu(dot(st_ref[...], wl1_ref[...]) + bl1_ref[...], al1_ref)
    x = cf_ref[...] + h1
    # CNN.l2 : Linear(1176, 100) + PReLU
    h2 = prelu(dot(x, wl2_ref[...]) + bl2_ref[...], al2_ref)
    # Agent.model : Linear(100, 50) + PReLU
    h3 = prelu(dot(h2, wm_ref[...]) + bm_ref[...], am_ref)
    # merged lv/av heads: one (50, 10) matmul, then segmented softmax
    z = dot(h3, wh_ref[...]) + bh_ref[...]              # (B, 10) = [lv | av]

    def softmax(t):
        m = jnp.max(t, axis=-1, keepdims=True)
        e = jnp.exp(t - m)
        return e / jnp.sum(e, axis=-1, keepdims=True)

    o_ref[:, 0:5] = softmax(z[:, 0:5])
    o_ref[:, 5:10] = softmax(z[:, 5:10])


# -----------------------------------------------------------------------------
# Pallas wrappers
# -----------------------------------------------------------------------------

def fused_cnn(rph, w1s, b1v, a1, w2s, b2v, a2):
    B = rph.shape[0]
    return pl.pallas_call(
        _fused_cnn_kernel,
        out_shape=jax.ShapeDtypeStruct((B, _C2, _PH2, _PW2), jnp.float32),
        grid=(B,),
        in_specs=[
            pl.BlockSpec((1, 3, _RPH, _PAD), lambda i: (i, 0, 0, 0)),
            pl.BlockSpec((11, _PAD, _C1 * _OW1), lambda i: (0, 0, 0)),
            pl.BlockSpec((1, _C1 * _OW1), lambda i: (0, 0)),
            pl.BlockSpec((1, 1), lambda i: (0, 0)),
            pl.BlockSpec((3, 3, _PW1, _C2 * _OW2), lambda i: (0, 0, 0, 0)),
            pl.BlockSpec((1, _C2 * _OW2), lambda i: (0, 0)),
            pl.BlockSpec((1, 1), lambda i: (0, 0)),
        ],
        out_specs=pl.BlockSpec((1, _C2, _PH2, _PW2), lambda i: (i, 0, 0, 0)),
        compiler_params=pltpu.CompilerParams(
            dimension_semantics=("parallel",),
            vmem_limit_bytes=_VMEM_LIMIT),
    )(rph, w1s, b1v, a1, w2s, b2v, a2)


def dense_tail(conv_flat, state, prep):
    B = conv_flat.shape[0]
    return pl.pallas_call(
        _dense_tail_kernel,
        out_shape=jax.ShapeDtypeStruct((B, 10), jnp.float32),
        compiler_params=pltpu.CompilerParams(vmem_limit_bytes=_VMEM_LIMIT),
    )(conv_flat, state,
      prep["w_l1T"], prep["b_l1"], prep["a_l1"],
      prep["w_l2T"], prep["b_l2"], prep["a_l2"],
      prep["w_mT"], prep["b_m"], prep["a_m"],
      prep["w_hT"], prep["b_h"])


# -----------------------------------------------------------------------------
# One-time parameter preparation (scatter weights, transposed dense weights)
# -----------------------------------------------------------------------------

def _image_row_phases(image):
    # (B, 1, 224, 224) NCHW -> (B, 3, 76, 228): rph[b, r, u, j] = xpad[b, 3u+r, j]
    b = image.shape[0]
    x = image[:, 0]
    xp = jnp.pad(x, ((0, 0), (1, 3), (1, 3)))             # (B, 228, 228)
    return jnp.transpose(xp.reshape(b, _RPH, 3, _PAD), (0, 2, 1, 3))


def _conv1_scatter(w_conv1):
    # (3, 1, 11, 11) -> (11, 228, 3*72): M[ky][j, c*72+ox] = w1[c,ky,j-3*ox]
    w = w_conv1.reshape(_C1, 11, 11)
    j = jnp.arange(_PAD)[:, None]
    ox = jnp.arange(_OW1)[None, :]
    kx = j - 3 * ox
    valid = (kx >= 0) & (kx < 11)
    kxc = jnp.clip(kx, 0, 10)
    blocks = []
    for c in range(_C1):
        g = w[c][:, kxc]                                   # (11, 228, 72)
        blocks.append(jnp.where(valid[None, :, :], g, 0.0))
    return jnp.concatenate(blocks, axis=-1)                # (11, 228, 216)


def _conv2_scatter(w_conv2):
    # (6, 3, 3, 3) -> (3, 3, 34, 6*32): M[ic,jy][j, oc*32+vx] = w2[oc,ic,jy,j-vx]
    j = jnp.arange(_PW1)[:, None]
    vx = jnp.arange(_OW2)[None, :]
    jx = j - vx
    valid = (jx >= 0) & (jx < 3)
    jxc = jnp.clip(jx, 0, 2)
    blocks = []
    for oc in range(_C2):
        g = w_conv2[oc][:, :, jxc]                         # (3, 3, 34, 32)
        blocks.append(jnp.where(valid[None, None, :, :], g, 0.0))
    return jnp.concatenate(blocks, axis=-1)                # (3, 3, 34, 192)


def prepare_params(p):
    return {
        # fused conv trunk
        "w1s": _conv1_scatter(p["w_conv1"]),
        "b1v": jnp.repeat(p["b_conv1"], _OW1).reshape(1, -1),      # (1, 216)
        "a1": p["a_conv1"].reshape(1, 1),
        "w2s": _conv2_scatter(p["w_conv2"]),
        "b2v": jnp.repeat(p["b_conv2"], _OW2).reshape(1, -1),      # (1, 192)
        "a2": p["a_conv2"].reshape(1, 1),
        # dense tail (pre-transposed once; lv/av heads merged)
        "w_l1T": p["w_l1"].T,                                      # (5, 1176)
        "b_l1": p["b_l1"].reshape(1, -1),
        "a_l1": p["a_l1"].reshape(1, 1),
        "w_l2T": p["w_l2"].T,                                      # (1176, 100)
        "b_l2": p["b_l2"].reshape(1, -1),
        "a_l2": p["a_l2"].reshape(1, 1),
        "w_mT": p["w_m"].T,                                        # (100, 50)
        "b_m": p["b_m"].reshape(1, -1),
        "a_m": p["a_m"].reshape(1, 1),
        "w_hT": jnp.concatenate([p["w_lv"].T, p["w_av"].T], axis=1),   # (50, 10)
        "b_h": jnp.concatenate([p["b_lv"], p["b_av"]]).reshape(1, -1),  # (1, 10)
    }


# -----------------------------------------------------------------------------
# Forward passes
# -----------------------------------------------------------------------------

@jax.jit
def agent_forward(prep, image, state):
    """image: (B, 1, 224, 224) NCHW float32; state: (B, 5). Returns (B, 10)."""
    b = image.shape[0]
    rph = _image_row_phases(image)                         # plain-JAX glue, ~200 KB/elt
    feat = fused_cnn(rph, prep["w1s"], prep["b1v"], prep["a1"],
                     prep["w2s"], prep["b2v"], prep["a2"])  # (B, 6, 14, 14)
    conv_flat = feat.reshape(b, _FLAT)                      # NCHW flatten order
    return dense_tail(conv_flat, state, prep)


@jax.jit
def reference_forward(params, image, state):
    """Independent pure-JAX reference (lax.conv / reduce_window) for checking."""
    def prelu(x, a):
        return jnp.where(x > 0.0, x, x * a)

    y = lax.conv_general_dilated(image, params["w_conv1"], (3, 3),
                                 [(1, 1), (1, 1)],
                                 dimension_numbers=("NCHW", "OIHW", "NCHW"))
    y = prelu(y + params["b_conv1"].reshape(1, -1, 1, 1), params["a_conv1"][0, 0])
    y = lax.reduce_window(y, -jnp.inf, lax.max, (1, 1, 5, 5), (1, 1, 2, 2), "VALID")
    y = lax.conv_general_dilated(y, params["w_conv2"], (1, 1),
                                 [(0, 0), (0, 0)],
                                 dimension_numbers=("NCHW", "OIHW", "NCHW"))
    y = prelu(y + params["b_conv2"].reshape(1, -1, 1, 1), params["a_conv2"][0, 0])
    y = lax.reduce_window(y, -jnp.inf, lax.max, (1, 1, 5, 5), (1, 1, 2, 2), "VALID")
    flat = y.reshape(y.shape[0], -1)

    h1 = prelu(state @ params["w_l1"].T + params["b_l1"], params["a_l1"][0, 0])
    x = flat + h1
    h2 = prelu(x @ params["w_l2"].T + params["b_l2"], params["a_l2"][0, 0])
    h3 = prelu(h2 @ params["w_m"].T + params["b_m"], params["a_m"][0, 0])
    lv = jax.nn.softmax(h3 @ params["w_lv"].T + params["b_lv"], axis=-1)
    av = jax.nn.softmax(h3 @ params["w_av"].T + params["b_av"], axis=-1)
    return jnp.concatenate([lv, av], axis=1)


# -----------------------------------------------------------------------------
# Deterministic parameter initialization (PyTorch-layout shapes)
# -----------------------------------------------------------------------------

def init_params(key):
    ks = jax.random.split(key, 14)
    n = lambda k, shape, s: (s * jax.random.normal(k, shape)).astype(jnp.float32)
    alpha = lambda: jnp.full((1, 1), 0.25, jnp.float32)    # nn.PReLU() default
    return {
        "w_conv1": n(ks[0], (3, 1, 11, 11), 0.05), "b_conv1": n(ks[1], (3,), 0.05),
        "a_conv1": alpha(),
        "w_conv2": n(ks[2], (6, 3, 3, 3), 0.10),   "b_conv2": n(ks[3], (6,), 0.05),
        "a_conv2": alpha(),
        "w_l1": n(ks[4], (1176, 5), 0.10),         "b_l1": n(ks[5], (1176,), 0.05),
        "a_l1": alpha(),
        "w_l2": n(ks[6], (100, 1176), 0.02),       "b_l2": n(ks[7], (100,), 0.05),
        "a_l2": alpha(),
        "w_m": n(ks[8], (50, 100), 0.10),          "b_m": n(ks[9], (50,), 0.05),
        "a_m": alpha(),
        "w_lv": n(ks[10], (5, 50), 0.10),          "b_lv": n(ks[11], (5,), 0.05),
        "w_av": n(ks[12], (5, 50), 0.10),          "b_av": n(ks[13], (5,), 0.05),
    }


# -----------------------------------------------------------------------------

if __name__ == "__main__":
    key = jax.random.PRNGKey(0)
    kp, ki, ks = jax.random.split(key, 3)

    params = init_params(kp)
    prep = prepare_params(params)

    B = 2
    image_state = jax.random.normal(ki, (B, 1, 224, 224), dtype=jnp.float32)
    env_state = jax.random.normal(ks, (B, 5), dtype=jnp.float32)

    out = agent_forward(prep, image_state, env_state)
    out = jax.block_until_ready(out)
    assert out.shape == (B, 10), out.shape

    ref = reference_forward(params, image_state, env_state)
    ref = jax.block_until_ready(ref)

    np.testing.assert_allclose(np.asarray(out), np.asarray(ref),
                               rtol=3e-3, atol=3e-3)
    # Each of the two softmax halves must sum to 1 per row.
    np.testing.assert_allclose(np.asarray(out[:, :5]).sum(-1), 1.0, atol=1e-4)
    np.testing.assert_allclose(np.asarray(out[:, 5:]).sum(-1), 1.0, atol=1e-4)

    print("KERNEL_OK")
</pallas_src>

<mosaic_0001>
module attributes {stable_mosaic.version = 11 : i64} {
  func.func @_fused_cnn_kernel(%arg0: i32, %arg1: memref<1x3x76x228xf32, #tpu.memory_space<vmem>>, %arg2: memref<11x228x216xf32, #tpu.memory_space<vmem>>, %arg3: memref<1x216xf32, #tpu.memory_space<vmem>>, %arg4: memref<1x1xf32, #tpu.memory_space<vmem>>, %arg5: memref<3x3x34x192xf32, #tpu.memory_space<vmem>>, %arg6: memref<1x192xf32, #tpu.memory_space<vmem>>, %arg7: memref<1x1xf32, #tpu.memory_space<vmem>>, %arg8: memref<1x6x14x14xf32, #tpu.memory_space<vmem>>) attributes {dimension_semantics = [#tpu.dimension_semantics<parallel>], iteration_bounds = array<i64: 2>, scalar_prefetch = 0 : i64, scratch_operands = 0 : i64, tpu.core_type = #tpu.core_type<tc>, window_params = [{transform_indices = @transform_0, window_bounds = array<i64: 1, 3, 76, 228>}, {pipeline_mode = #tpu.pipeline_mode<synchronous>, transform_indices = @transform_1, window_bounds = array<i64: 11, 228, 216>}, {pipeline_mode = #tpu.pipeline_mode<synchronous>, transform_indices = @transform_2, window_bounds = array<i64: 1, 216>}, {pipeline_mode = #tpu.pipeline_mode<synchronous>, transform_indices = @transform_3, window_bounds = array<i64: 1, 1>}, {pipeline_mode = #tpu.pipeline_mode<synchronous>, transform_indices = @transform_4, window_bounds = array<i64: 3, 3, 34, 192>}, {pipeline_mode = #tpu.pipeline_mode<synchronous>, transform_indices = @transform_5, window_bounds = array<i64: 1, 192>}, {pipeline_mode = #tpu.pipeline_mode<synchronous>, transform_indices = @transform_6, window_bounds = array<i64: 1, 1>}, {transform_indices = @transform_7, window_bounds = array<i64: 1, 6, 14, 14>}]} {
    %c0 = arith.constant 0 : index
    %c0_0 = arith.constant 0 : index
    %c0_1 = arith.constant 0 : index
    %c0_2 = arith.constant 0 : index
    %0 = vector.load %arg1[%c0, %c0_0, %c0_1, %c0_2] : memref<1x3x76x228xf32, #tpu.memory_space<vmem>>, vector<1x1x72x228xf32>
    %1 = vector.shape_cast %0 : vector<1x1x72x228xf32> to vector<72x228xf32>
    %c0_3 = arith.constant 0 : index
    %c0_4 = arith.constant 0 : index
    %c0_5 = arith.constant 0 : index
    %2 = vector.load %arg2[%c0_3, %c0_4, %c0_5] : memref<11x228x216xf32, #tpu.memory_space<vmem>>, vector<1x228x216xf32>
    %3 = vector.shape_cast %2 : vector<1x228x216xf32> to vector<228x216xf32>
    %cst = arith.constant dense<0.000000e+00> : vector<72x216xf32>
    %4 = tpu.matmul %1, %3, %cst {dimension_numbers = #tpu.dot_dimension_numbers<[1], [0], [0], [1], [0, 0, 1, 1], [], []>} : vector<72x228xf32>, vector<228x216xf32>, vector<72x216xf32> -> vector<72x216xf32>
    %c0_6 = arith.constant 0 : index
    %c1 = arith.constant 1 : index
    %c0_7 = arith.constant 0 : index
    %c0_8 = arith.constant 0 : index
    %5 = vector.load %arg1[%c0_6, %c1, %c0_7, %c0_8] : memref<1x3x76x228xf32, #tpu.memory_space<vmem>>, vector<1x1x72x228xf32>
    %6 = vector.shape_cast %5 : vector<1x1x72x228xf32> to vector<72x228xf32>
    %c1_9 = arith.constant 1 : index
    %c0_10 = arith.constant 0 : index
    %c0_11 = arith.constant 0 : index
    %7 = vector.load %arg2[%c1_9, %c0_10, %c0_11] : memref<11x228x216xf32, #tpu.memory_space<vmem>>, vector<1x228x216xf32>
    %8 = vector.shape_cast %7 : vector<1x228x216xf32> to vector<228x216xf32>
    %cst_12 = arith.constant dense<0.000000e+00> : vector<72x216xf32>
    %9 = tpu.matmul %6, %8, %cst_12 {dimension_numbers = #tpu.dot_dimension_numbers<[1], [0], [0], [1], [0, 0, 1, 1], [], []>} : vector<72x228xf32>, vector<228x216xf32>, vector<72x216xf32> -> vector<72x216xf32>
    %10 = arith.addf %4, %9 : vector<72x216xf32>
    %c0_13 = arith.constant 0 : index
    %c2 = arith.constant 2 : index
    %c0_14 = arith.constant 0 : index
    %c0_15 = arith.constant 0 : index
    %11 = vector.load %arg1[%c0_13, %c2, %c0_14, %c0_15] : memref<1x3x76x228xf32, #tpu.memory_space<vmem>>, vector<1x1x72x228xf32>
    %12 = vector.shape_cast %11 : vector<1x1x72x228xf32> to vector<72x228xf32>
    %c2_16 = arith.constant 2 : index
    %c0_17 = arith.constant 0 : index
    %c0_18 = arith.constant 0 : index
    %13 = vector.load %arg2[%c2_16, %c0_17, %c0_18] : memref<11x228x216xf32, #tpu.memory_space<vmem>>, vector<1x228x216xf32>
    %14 = vector.shape_cast %13 : vector<1x228x216xf32> to vector<228x216xf32>
    %cst_19 = arith.constant dense<0.000000e+00> : vector<72x216xf32>
    %15 = tpu.matmul %12, %14, %cst_19 {dimension_numbers = #tpu.dot_dimension_numbers<[1], [0], [0], [1], [0, 0, 1, 1], [], []>} : vector<72x228xf32>, vector<228x216xf32>, vector<72x216xf32> -> vector<72x216xf32>
    %16 = arith.addf %10, %15 : vector<72x216xf32>
    %c0_20 = arith.constant 0 : index
    %c0_21 = arith.constant 0 : index
    %c1_22 = arith.constant 1 : index
    %c0_23 = arith.constant 0 : index
    %17 = vector.load %arg1[%c0_20, %c0_21, %c1_22, %c0_23] : memref<1x3x76x228xf32, #tpu.memory_space<vmem>>, vector<1x1x72x228xf32>
    %18 = vector.shape_cast %17 : vector<1x1x72x228xf32> to vector<72x228xf32>
    %c3 = arith.constant 3 : index
    %c0_24 = arith.constant 0 : index
    %c0_25 = arith.constant 0 : index
    %19 = vector.load %arg2[%c3, %c0_24, %c0_25] : memref<11x228x216xf32, #tpu.memory_space<vmem>>, vector<1x228x216xf32>
    %20 = vector.shape_cast %19 : vector<1x228x216xf32> to vector<228x216xf32>
    %cst_26 = arith.constant dense<0.000000e+00> : vector<72x216xf32>
    %21 = tpu.matmul %18, %20, %cst_26 {dimension_numbers = #tpu.dot_dimension_numbers<[1], [0], [0], [1], [0, 0, 1, 1], [], []>} : vector<72x228xf32>, vector<228x216xf32>, vector<72x216xf32> -> vector<72x216xf32>
    %22 = arith.addf %16, %21 : vector<72x216xf32>
    %c0_27 = arith.constant 0 : index
    %c1_28 = arith.constant 1 : index
    %c1_29 = arith.constant 1 : index
    %c0_30 = arith.constant 0 : index
    %23 = vector.load %arg1[%c0_27, %c1_28, %c1_29, %c0_30] : memref<1x3x76x228xf32, #tpu.memory_space<vmem>>, vector<1x1x72x228xf32>
    %24 = vector.shape_cast %23 : vector<1x1x72x228xf32> to vector<72x228xf32>
    %c4 = arith.constant 4 : index
    %c0_31 = arith.constant 0 : index
    %c0_32 = arith.constant 0 : index
    %25 = vector.load %arg2[%c4, %c0_31, %c0_32] : memref<11x228x216xf32, #tpu.memory_space<vmem>>, vector<1x228x216xf32>
    %26 = vector.shape_cast %25 : vector<1x228x216xf32> to vector<228x216xf32>
    %cst_33 = arith.constant dense<0.000000e+00> : vector<72x216xf32>
    %27 = tpu.matmul %24, %26, %cst_33 {dimension_numbers = #tpu.dot_dimension_numbers<[1], [0], [0], [1], [0, 0, 1, 1], [], []>} : vector<72x228xf32>, vector<228x216xf32>, vector<72x216xf32> -> vector<72x216xf32>
    %28 = arith.addf %22, %27 : vector<72x216xf32>
    %c0_34 = arith.constant 0 : index
    %c2_35 = arith.constant 2 : index
    %c1_36 = arith.constant 1 : index
    %c0_37 = arith.constant 0 : index
    %29 = vector.load %arg1[%c0_34, %c2_35, %c1_36, %c0_37] : memref<1x3x76x228xf32, #tpu.memory_space<vmem>>, vector<1x1x72x228xf32>
    %30 = vector.shape_cast %29 : vector<1x1x72x228xf32> to vector<72x228xf32>
    %c5 = arith.constant 5 : index
    %c0_38 = arith.constant 0 : index
    %c0_39 = arith.constant 0 : index
    %31 = vector.load %arg2[%c5, %c0_38, %c0_39] : memref<11x228x216xf32, #tpu.memory_space<vmem>>, vector<1x228x216xf32>
    %32 = vector.shape_cast %31 : vector<1x228x216xf32> to vector<228x216xf32>
    %cst_40 = arith.constant dense<0.000000e+00> : vector<72x216xf32>
    %33 = tpu.matmul %30, %32, %cst_40 {dimension_numbers = #tpu.dot_dimension_numbers<[1], [0], [0], [1], [0, 0, 1, 1], [], []>} : vector<72x228xf32>, vector<228x216xf32>, vector<72x216xf32> -> vector<72x216xf32>
    %34 = arith.addf %28, %33 : vector<72x216xf32>
    %c0_41 = arith.constant 0 : index
    %c0_42 = arith.constant 0 : index
    %c2_43 = arith.constant 2 : index
    %c0_44 = arith.constant 0 : index
    %35 = vector.load %arg1[%c0_41, %c0_42, %c2_43, %c0_44] : memref<1x3x76x228xf32, #tpu.memory_space<vmem>>, vector<1x1x72x228xf32>
    %36 = vector.shape_cast %35 : vector<1x1x72x228xf32> to vector<72x228xf32>
    %c6 = arith.constant 6 : index
    %c0_45 = arith.constant 0 : index
    %c0_46 = arith.constant 0 : index
    %37 = vector.load %arg2[%c6, %c0_45, %c0_46] : memref<11x228x216xf32, #tpu.memory_space<vmem>>, vector<1x228x216xf32>
    %38 = vector.shape_cast %37 : vector<1x228x216xf32> to vector<228x216xf32>
    %cst_47 = arith.constant dense<0.000000e+00> : vector<72x216xf32>
    %39 = tpu.matmul %36, %38, %cst_47 {dimension_numbers = #tpu.dot_dimension_numbers<[1], [0], [0], [1], [0, 0, 1, 1], [], []>} : vector<72x228xf32>, vector<228x216xf32>, vector<72x216xf32> -> vector<72x216xf32>
    %40 = arith.addf %34, %39 : vector<72x216xf32>
    %c0_48 = arith.constant 0 : index
    %c1_49 = arith.constant 1 : index
    %c2_50 = arith.constant 2 : index
    %c0_51 = arith.constant 0 : index
    %41 = vector.load %arg1[%c0_48, %c1_49, %c2_50, %c0_51] : memref<1x3x76x228xf32, #tpu.memory_space<vmem>>, vector<1x1x72x228xf32>
    %42 = vector.shape_cast %41 : vector<1x1x72x228xf32> to vector<72x228xf32>
    %c7 = arith.constant 7 : index
    %c0_52 = arith.constant 0 : index
    %c0_53 = arith.constant 0 : index
    %43 = vector.load %arg2[%c7, %c0_52, %c0_53] : memref<11x228x216xf32, #tpu.memory_space<vmem>>, vector<1x228x216xf32>
    %44 = vector.shape_cast %43 : vector<1x228x216xf32> to vector<228x216xf32>
    %cst_54 = arith.constant dense<0.000000e+00> : vector<72x216xf32>
    %45 = tpu.matmul %42, %44, %cst_54 {dimension_numbers = #tpu.dot_dimension_numbers<[1], [0], [0], [1], [0, 0, 1, 1], [], []>} : vector<72x228xf32>, vector<228x216xf32>, vector<72x216xf32> -> vector<72x216xf32>
    %46 = arith.addf %40, %45 : vector<72x216xf32>
    %c0_55 = arith.constant 0 : index
    %c2_56 = arith.constant 2 : index
    %c2_57 = arith.constant 2 : index
    %c0_58 = arith.constant 0 : index
    %47 = vector.load %arg1[%c0_55, %c2_56, %c2_57, %c0_58] : memref<1x3x76x228xf32, #tpu.memory_space<vmem>>, vector<1x1x72x228xf32>
    %48 = vector.shape_cast %47 : vector<1x1x72x228xf32> to vector<72x228xf32>
    %c8 = arith.constant 8 : index
    %c0_59 = arith.constant 0 : index
    %c0_60 = arith.constant 0 : index
    %49 = vector.load %arg2[%c8, %c0_59, %c0_60] : memref<11x228x216xf32, #tpu.memory_space<vmem>>, vector<1x228x216xf32>
    %50 = vector.shape_cast %49 : vector<1x228x216xf32> to vector<228x216xf32>
    %cst_61 = arith.constant dense<0.000000e+00> : vector<72x216xf32>
    %51 = tpu.matmul %48, %50, %cst_61 {dimension_numbers = #tpu.dot_dimension_numbers<[1], [0], [0], [1], [0, 0, 1, 1], [], []>} : vector<72x228xf32>, vector<228x216xf32>, vector<72x216xf32> -> vector<72x216xf32>
    %52 = arith.addf %46, %51 : vector<72x216xf32>
    %c0_62 = arith.constant 0 : index
    %c0_63 = arith.constant 0 : index
    %c3_64 = arith.constant 3 : index
    %c0_65 = arith.constant 0 : index
    %53 = vector.load %arg1[%c0_62, %c0_63, %c3_64, %c0_65] : memref<1x3x76x228xf32, #tpu.memory_space<vmem>>, vector<1x1x72x228xf32>
    %54 = vector.shape_cast %53 : vector<1x1x72x228xf32> to vector<72x228xf32>
    %c9 = arith.constant 9 : index
    %c0_66 = arith.constant 0 : index
    %c0_67 = arith.constant 0 : index
    %55 = vector.load %arg2[%c9, %c0_66, %c0_67] : memref<11x228x216xf32, #tpu.memory_space<vmem>>, vector<1x228x216xf32>
    %56 = vector.shape_cast %55 : vector<1x228x216xf32> to vector<228x216xf32>
    %cst_68 = arith.constant dense<0.000000e+00> : vector<72x216xf32>
    %57 = tpu.matmul %54, %56, %cst_68 {dimension_numbers = #tpu.dot_dimension_numbers<[1], [0], [0], [1], [0, 0, 1, 1], [], []>} : vector<72x228xf32>, vector<228x216xf32>, vector<72x216xf32> -> vector<72x216xf32>
    %58 = arith.addf %52, %57 : vector<72x216xf32>
    %c0_69 = arith.constant 0 : index
    %c1_70 = arith.constant 1 : index
    %c3_71 = arith.constant 3 : index
    %c0_72 = arith.constant 0 : index
    %59 = vector.load %arg1[%c0_69, %c1_70, %c3_71, %c0_72] : memref<1x3x76x228xf32, #tpu.memory_space<vmem>>, vector<1x1x72x228xf32>
    %60 = vector.shape_cast %59 : vector<1x1x72x228xf32> to vector<72x228xf32>
    %c10 = arith.constant 10 : index
    %c0_73 = arith.constant 0 : index
    %c0_74 = arith.constant 0 : index
    %61 = vector.load %arg2[%c10, %c0_73, %c0_74] : memref<11x228x216xf32, #tpu.memory_space<vmem>>, vector<1x228x216xf32>
    %62 = vector.shape_cast %61 : vector<1x228x216xf32> to vector<228x216xf32>
    %cst_75 = arith.constant dense<0.000000e+00> : vector<72x216xf32>
    %63 = tpu.matmul %60, %62, %cst_75 {dimension_numbers = #tpu.dot_dimension_numbers<[1], [0], [0], [1], [0, 0, 1, 1], [], []>} : vector<72x228xf32>, vector<228x216xf32>, vector<72x216xf32> -> vector<72x216xf32>
    %64 = arith.addf %58, %63 : vector<72x216xf32>
    %c0_76 = arith.constant 0 : index
    %c0_77 = arith.constant 0 : index
    %65 = vector.load %arg3[%c0_76, %c0_77] : memref<1x216xf32, #tpu.memory_space<vmem>>, vector<1x216xf32>
    %66 = vector.broadcast %65 : vector<1x216xf32> to vector<72x216xf32>
    %67 = arith.addf %64, %66 : vector<72x216xf32>
    %cst_78 = arith.constant 0.000000e+00 : f32
    %68 = vector.broadcast %cst_78 : f32 to vector<72x216xf32>
    %69 = arith.cmpf ogt, %67, %68 : vector<72x216xf32>
    %c0_79 = arith.constant 0 : index
    %c0_80 = arith.constant 0 : index
    %70 = vector.load %arg4[%c0_79, %c0_80] : memref<1x1xf32, #tpu.memory_space<vmem>>, vector<1x1xf32>
    %71 = vector.broadcast %70 : vector<1x1xf32> to vector<72x216xf32>
    %72 = arith.mulf %67, %71 : vector<72x216xf32>
    %73 = arith.select %69, %67, %72 : vector<72x216xi1>, vector<72x216xf32>
    %74 = tpu.iota {dimensions = array<i32: 0>} : vector<34x68xi32>
    %75 = tpu.iota {dimensions = array<i32: 1>} : vector<34x68xi32>
    %c2_i32 = arith.constant 2 : i32
    %76 = vector.broadcast %c2_i32 : i32 to vector<34x68xi32>
    %77 = arith.muli %76, %74 : vector<34x68xi32>
    %78 = arith.cmpi eq, %75, %77 : vector<34x68xi32>
    %cst_81 = arith.constant 1.000000e+00 : f32
    %cst_82 = arith.constant 0.000000e+00 : f32
    %79 = vector.broadcast %cst_81 : f32 to vector<34x68xf32>
    %80 = vector.broadcast %cst_82 : f32 to vector<34x68xf32>
    %81 = arith.select %78, %79, %80 : vector<34x68xi1>, vector<34x68xf32>
    %82 = tpu.iota {dimensions = array<i32: 0>} : vector<68x34xi32>
    %83 = tpu.iota {dimensions = array<i32: 1>} : vector<68x34xi32>
    %c2_i32_83 = arith.constant 2 : i32
    %84 = vector.broadcast %c2_i32_83 : i32 to vector<68x34xi32>
    %85 = arith.muli %84, %83 : vector<68x34xi32>
    %86 = arith.cmpi eq, %82, %85 : vector<68x34xi32>
    %cst_84 = arith.constant 1.000000e+00 : f32
    %cst_85 = arith.constant 0.000000e+00 : f32
    %87 = vector.broadcast %cst_84 : f32 to vector<68x34xf32>
    %88 = vector.broadcast %cst_85 : f32 to vector<68x34xf32>
    %89 = arith.select %86, %87, %88 : vector<68x34xi1>, vector<68x34xf32>
    %90 = vector.extract_strided_slice %73 {offsets = [0, 0], sizes = [72, 72], strides = [1, 1]} : vector<72x216xf32> to vector<72x72xf32>
    %91 = vector.extract_strided_slice %90 {offsets = [0, 0], sizes = [68, 72], strides = [1, 1]} : vector<72x72xf32> to vector<68x72xf32>
    %92 = vector.extract_strided_slice %90 {offsets = [1, 0], sizes = [68, 72], strides = [1, 1]} : vector<72x72xf32> to vector<68x72xf32>
    %93 = arith.maximumf %91, %92 : vector<68x72xf32>
    %94 = vector.extract_strided_slice %90 {offsets = [2, 0], sizes = [68, 72], strides = [1, 1]} : vector<72x72xf32> to vector<68x72xf32>
    %95 = arith.maximumf %93, %94 : vector<68x72xf32>
    %96 = vector.extract_strided_slice %90 {offsets = [3, 0], sizes = [68, 72], strides = [1, 1]} : vector<72x72xf32> to vector<68x72xf32>
    %97 = arith.maximumf %95, %96 : vector<68x72xf32>
    %98 = vector.extract_strided_slice %90 {offsets = [4, 0], sizes = [68, 72], strides = [1, 1]} : vector<72x72xf32> to vector<68x72xf32>
    %99 = arith.maximumf %97, %98 : vector<68x72xf32>
    %100 = vector.extract_strided_slice %99 {offsets = [0, 0], sizes = [68, 68], strides = [1, 1]} : vector<68x72xf32> to vector<68x68xf32>
    %101 = vector.extract_strided_slice %99 {offsets = [0, 1], sizes = [68, 68], strides = [1, 1]} : vector<68x72xf32> to vector<68x68xf32>
    %102 = arith.maximumf %100, %101 : vector<68x68xf32>
    %103 = vector.extract_strided_slice %99 {offsets = [0, 2], sizes = [68, 68], strides = [1, 1]} : vector<68x72xf32> to vector<68x68xf32>
    %104 = arith.maximumf %102, %103 : vector<68x68xf32>
    %105 = vector.extract_strided_slice %99 {offsets = [0, 3], sizes = [68, 68], strides = [1, 1]} : vector<68x72xf32> to vector<68x68xf32>
    %106 = arith.maximumf %104, %105 : vector<68x68xf32>
    %107 = vector.extract_strided_slice %99 {offsets = [0, 4], sizes = [68, 68], strides = [1, 1]} : vector<68x72xf32> to vector<68x68xf32>
    %108 = arith.maximumf %106, %107 : vector<68x68xf32>
    %cst_86 = arith.constant dense<0.000000e+00> : vector<68x34xf32>
    %109 = tpu.matmul %108, %89, %cst_86 {dimension_numbers = #tpu.dot_dimension_numbers<[1], [0], [0], [1], [0, 0, 1, 1], [], []>} : vector<68x68xf32>, vector<68x34xf32>, vector<68x34xf32> -> vector<68x34xf32>
    %cst_87 = arith.constant dense<0.000000e+00> : vector<34x34xf32>
    %110 = tpu.matmul %81, %109, %cst_87 {dimension_numbers = #tpu.dot_dimension_numbers<[1], [0], [0], [1], [0, 0, 1, 1], [], []>} : vector<34x68xf32>, vector<68x34xf32>, vector<34x34xf32> -> vector<34x34xf32>
    %111 = vector.extract_strided_slice %73 {offsets = [0, 72], sizes = [72, 72], strides = [1, 1]} : vector<72x216xf32> to vector<72x72xf32>
    %112 = vector.extract_strided_slice %111 {offsets = [0, 0], sizes = [68, 72], strides = [1, 1]} : vector<72x72xf32> to vector<68x72xf32>
    %113 = vector.extract_strided_slice %111 {offsets = [1, 0], sizes = [68, 72], strides = [1, 1]} : vector<72x72xf32> to vector<68x72xf32>
    %114 = arith.maximumf %112, %113 : vector<68x72xf32>
    %115 = vector.extract_strided_slice %111 {offsets = [2, 0], sizes = [68, 72], strides = [1, 1]} : vector<72x72xf32> to vector<68x72xf32>
    %116 = arith.maximumf %114, %115 : vector<68x72xf32>
    %117 = vector.extract_strided_slice %111 {offsets = [3, 0], sizes = [68, 72], strides = [1, 1]} : vector<72x72xf32> to vector<68x72xf32>
    %118 = arith.maximumf %116, %117 : vector<68x72xf32>
    %119 = vector.extract_strided_slice %111 {offsets = [4, 0], sizes = [68, 72], strides = [1, 1]} : vector<72x72xf32> to vector<68x72xf32>
    %120 = arith.maximumf %118, %119 : vector<68x72xf32>
    %121 = vector.extract_strided_slice %120 {offsets = [0, 0], sizes = [68, 68], strides = [1, 1]} : vector<68x72xf32> to vector<68x68xf32>
    %122 = vector.extract_strided_slice %120 {offsets = [0, 1], sizes = [68, 68], strides = [1, 1]} : vector<68x72xf32> to vector<68x68xf32>
    %123 = arith.maximumf %121, %122 : vector<68x68xf32>
    %124 = vector.extract_strided_slice %120 {offsets = [0, 2], sizes = [68, 68], strides = [1, 1]} : vector<68x72xf32> to vector<68x68xf32>
    %125 = arith.maximumf %123, %124 : vector<68x68xf32>
    %126 = vector.extract_strided_slice %120 {offsets = [0, 3], sizes = [68, 68], strides = [1, 1]} : vector<68x72xf32> to vector<68x68xf32>
    %127 = arith.maximumf %125, %126 : vector<68x68xf32>
    %128 = vector.extract_strided_slice %120 {offsets = [0, 4], sizes = [68, 68], strides = [1, 1]} : vector<68x72xf32> to vector<68x68xf32>
    %129 = arith.maximumf %127, %128 : vector<68x68xf32>
    %cst_88 = arith.constant dense<0.000000e+00> : vector<68x34xf32>
    %130 = tpu.matmul %129, %89, %cst_88 {dimension_numbers = #tpu.dot_dimension_numbers<[1], [0], [0], [1], [0, 0, 1, 1], [], []>} : vector<68x68xf32>, vector<68x34xf32>, vector<68x34xf32> -> vector<68x34xf32>
    %cst_89 = arith.constant dense<0.000000e+00> : vector<34x34xf32>
    %131 = tpu.matmul %81, %130, %cst_89 {dimension_numbers = #tpu.dot_dimension_numbers<[1], [0], [0], [1], [0, 0, 1, 1], [], []>} : vector<34x68xf32>, vector<68x34xf32>, vector<34x34xf32> -> vector<34x34xf32>
    %132 = vector.extract_strided_slice %73 {offsets = [0, 144], sizes = [72, 72], strides = [1, 1]} : vector<72x216xf32> to vector<72x72xf32>
    %133 = vector.extract_strided_slice %132 {offsets = [0, 0], sizes = [68, 72], strides = [1, 1]} : vector<72x72xf32> to vector<68x72xf32>
    %134 = vector.extract_strided_slice %132 {offsets = [1, 0], sizes = [68, 72], strides = [1, 1]} : vector<72x72xf32> to vector<68x72xf32>
    %135 = arith.maximumf %133, %134 : vector<68x72xf32>
    %136 = vector.extract_strided_slice %132 {offsets = [2, 0], sizes = [68, 72], strides = [1, 1]} : vector<72x72xf32> to vector<68x72xf32>
    %137 = arith.maximumf %135, %136 : vector<68x72xf32>
    %138 = vector.extract_strided_slice %132 {offsets = [3, 0], sizes = [68, 72], strides = [1, 1]} : vector<72x72xf32> to vector<68x72xf32>
    %139 = arith.maximumf %137, %138 : vector<68x72xf32>
    %140 = vector.extract_strided_slice %132 {offsets = [4, 0], sizes = [68, 72], strides = [1, 1]} : vector<72x72xf32> to vector<68x72xf32>
    %141 = arith.maximumf %139, %140 : vector<68x72xf32>
    %142 = vector.extract_strided_slice %141 {offsets = [0, 0], sizes = [68, 68], strides = [1, 1]} : vector<68x72xf32> to vector<68x68xf32>
    %143 = vector.extract_strided_slice %141 {offsets = [0, 1], sizes = [68, 68], strides = [1, 1]} : vector<68x72xf32> to vector<68x68xf32>
    %144 = arith.maximumf %142, %143 : vector<68x68xf32>
    %145 = vector.extract_strided_slice %141 {offsets = [0, 2], sizes = [68, 68], strides = [1, 1]} : vector<68x72xf32> to vector<68x68xf32>
    %146 = arith.maximumf %144, %145 : vector<68x68xf32>
    %147 = vector.extract_strided_slice %141 {offsets = [0, 3], sizes = [68, 68], strides = [1, 1]} : vector<68x72xf32> to vector<68x68xf32>
    %148 = arith.maximumf %146, %147 : vector<68x68xf32>
    %149 = vector.extract_strided_slice %141 {offsets = [0, 4], sizes = [68, 68], strides = [1, 1]} : vector<68x72xf32> to vector<68x68xf32>
    %150 = arith.maximumf %148, %149 : vector<68x68xf32>
    %cst_90 = arith.constant dense<0.000000e+00> : vector<68x34xf32>
    %151 = tpu.matmul %150, %89, %cst_90 {dimension_numbers = #tpu.dot_dimension_numbers<[1], [0], [0], [1], [0, 0, 1, 1], [], []>} : vector<68x68xf32>, vector<68x34xf32>, vector<68x34xf32> -> vector<68x34xf32>
    %cst_91 = arith.constant dense<0.000000e+00> : vector<34x34xf32>
    %152 = tpu.matmul %81, %151, %cst_91 {dimension_numbers = #tpu.dot_dimension_numbers<[1], [0], [0], [1], [0, 0, 1, 1], [], []>} : vector<34x68xf32>, vector<68x34xf32>, vector<34x34xf32> -> vector<34x34xf32>
    %153 = vector.extract_strided_slice %110 {offsets = [0, 0], sizes = [32, 34], strides = [1, 1]} : vector<34x34xf32> to vector<32x34xf32>
    %c0_92 = arith.constant 0 : index
    %c0_93 = arith.constant 0 : index
    %c0_94 = arith.constant 0 : index
    %c0_95 = arith.constant 0 : index
    %154 = vector.load %arg5[%c0_92, %c0_93, %c0_94, %c0_95] : memref<3x3x34x192xf32, #tpu.memory_space<vmem>>, vector<1x1x34x192xf32>
    %155 = vector.shape_cast %154 : vector<1x1x34x192xf32> to vector<34x192xf32>
    %cst_96 = arith.constant dense<0.000000e+00> : vector<32x192xf32>
    %156 = tpu.matmul %153, %155, %cst_96 {dimension_numbers = #tpu.dot_dimension_numbers<[1], [0], [0], [1], [0, 0, 1, 1], [], []>} : vector<32x34xf32>, vector<34x192xf32>, vector<32x192xf32> -> vector<32x192xf32>
    %157 = vector.extract_strided_slice %110 {offsets = [1, 0], sizes = [32, 34], strides = [1, 1]} : vector<34x34xf32> to vector<32x34xf32>
    %c0_97 = arith.constant 0 : index
    %c1_98 = arith.constant 1 : index
    %c0_99 = arith.constant 0 : index
    %c0_100 = arith.constant 0 : index
    %158 = vector.load %arg5[%c0_97, %c1_98, %c0_99, %c0_100] : memref<3x3x34x192xf32, #tpu.memory_space<vmem>>, vector<1x1x34x192xf32>
    %159 = vector.shape_cast %158 : vector<1x1x34x192xf32> to vector<34x192xf32>
    %cst_101 = arith.constant dense<0.000000e+00> : vector<32x192xf32>
    %160 = tpu.matmul %157, %159, %cst_101 {dimension_numbers = #tpu.dot_dimension_numbers<[1], [0], [0], [1], [0, 0, 1, 1], [], []>} : vector<32x34xf32>, vector<34x192xf32>, vector<32x192xf32> -> vector<32x192xf32>
    %161 = arith.addf %156, %160 : vector<32x192xf32>
    %162 = vector.extract_strided_slice %110 {offsets = [2, 0], sizes = [32, 34], strides = [1, 1]} : vector<34x34xf32> to vector<32x34xf32>
    %c0_102 = arith.constant 0 : index
    %c2_103 = arith.constant 2 : index
    %c0_104 = arith.constant 0 : index
    %c0_105 = arith.constant 0 : index
    %163 = vector.load %arg5[%c0_102, %c2_103, %c0_104, %c0_105] : memref<3x3x34x192xf32, #tpu.memory_space<vmem>>, vector<1x1x34x192xf32>
    %164 = vector.shape_cast %163 : vector<1x1x34x192xf32> to vector<34x192xf32>
    %cst_106 = arith.constant dense<0.000000e+00> : vector<32x192xf32>
    %165 = tpu.matmul %162, %164, %cst_106 {dimension_numbers = #tpu.dot_dimension_numbers<[1], [0], [0], [1], [0, 0, 1, 1], [], []>} : vector<32x34xf32>, vector<34x192xf32>, vector<32x192xf32> -> vector<32x192xf32>
    %166 = arith.addf %161, %165 : vector<32x192xf32>
    %167 = vector.extract_strided_slice %131 {offsets = [0, 0], sizes = [32, 34], strides = [1, 1]} : vector<34x34xf32> to vector<32x34xf32>
    %c1_107 = arith.constant 1 : index
    %c0_108 = arith.constant 0 : index
    %c0_109 = arith.constant 0 : index
    %c0_110 = arith.constant 0 : index
    %168 = vector.load %arg5[%c1_107, %c0_108, %c0_109, %c0_110] : memref<3x3x34x192xf32, #tpu.memory_space<vmem>>, vector<1x1x34x192xf32>
    %169 = vector.shape_cast %168 : vector<1x1x34x192xf32> to vector<34x192xf32>
    %cst_111 = arith.constant dense<0.000000e+00> : vector<32x192xf32>
    %170 = tpu.matmul %167, %169, %cst_111 {dimension_numbers = #tpu.dot_dimension_numbers<[1], [0], [0], [1], [0, 0, 1, 1], [], []>} : vector<32x34xf32>, vector<34x192xf32>, vector<32x192xf32> -> vector<32x192xf32>
    %171 = arith.addf %166, %170 : vector<32x192xf32>
    %172 = vector.extract_strided_slice %131 {offsets = [1, 0], sizes = [32, 34], strides = [1, 1]} : vector<34x34xf32> to vector<32x34xf32>
    %c1_112 = arith.constant 1 : index
    %c1_113 = arith.constant 1 : index
    %c0_114 = arith.constant 0 : index
    %c0_115 = arith.constant 0 : index
    %173 = vector.load %arg5[%c1_112, %c1_113, %c0_114, %c0_115] : memref<3x3x34x192xf32, #tpu.memory_space<vmem>>, vector<1x1x34x192xf32>
    %174 = vector.shape_cast %173 : vector<1x1x34x192xf32> to vector<34x192xf32>
    %cst_116 = arith.constant dense<0.000000e+00> : vector<32x192xf32>
    %175 = tpu.matmul %172, %174, %cst_116 {dimension_numbers = #tpu.dot_dimension_numbers<[1], [0], [0], [1], [0, 0, 1, 1], [], []>} : vector<32x34xf32>, vector<34x192xf32>, vector<32x192xf32> -> vector<32x192xf32>
    %176 = arith.addf %171, %175 : vector<32x192xf32>
    %177 = vector.extract_strided_slice %131 {offsets = [2, 0], sizes = [32, 34], strides = [1, 1]} : vector<34x34xf32> to vector<32x34xf32>
    %c1_117 = arith.constant 1 : index
    %c2_118 = arith.constant 2 : index
    %c0_119 = arith.constant 0 : index
    %c0_120 = arith.constant 0 : index
    %178 = vector.load %arg5[%c1_117, %c2_118, %c0_119, %c0_120] : memref<3x3x34x192xf32, #tpu.memory_space<vmem>>, vector<1x1x34x192xf32>
    %179 = vector.shape_cast %178 : vector<1x1x34x192xf32> to vector<34x192xf32>
    %cst_121 = arith.constant dense<0.000000e+00> : vector<32x192xf32>
    %180 = tpu.matmul %177, %179, %cst_121 {dimension_numbers = #tpu.dot_dimension_numbers<[1], [0], [0], [1], [0, 0, 1, 1], [], []>} : vector<32x34xf32>, vector<34x192xf32>, vector<32x192xf32> -> vector<32x192xf32>
    %181 = arith.addf %176, %180 : vector<32x192xf32>
    %182 = vector.extract_strided_slice %152 {offsets = [0, 0], sizes = [32, 34], strides = [1, 1]} : vector<34x34xf32> to vector<32x34xf32>
    %c2_122 = arith.constant 2 : index
    %c0_123 = arith.constant 0 : index
    %c0_124 = arith.constant 0 : index
    %c0_125 = arith.constant 0 : index
    %183 = vector.load %arg5[%c2_122, %c0_123, %c0_124, %c0_125] : memref<3x3x34x192xf32, #tpu.memory_space<vmem>>, vector<1x1x34x192xf32>
    %184 = vector.shape_cast %183 : vector<1x1x34x192xf32> to vector<34x192xf32>
    %cst_126 = arith.constant dense<0.000000e+00> : vector<32x192xf32>
    %185 = tpu.matmul %182, %184, %cst_126 {dimension_numbers = #tpu.dot_dimension_numbers<[1], [0], [0], [1], [0, 0, 1, 1], [], []>} : vector<32x34xf32>, vector<34x192xf32>, vector<32x192xf32> -> vector<32x192xf32>
    %186 = arith.addf %181, %185 : vector<32x192xf32>
    %187 = vector.extract_strided_slice %152 {offsets = [1, 0], sizes = [32, 34], strides = [1, 1]} : vector<34x34xf32> to vector<32x34xf32>
    %c2_127 = arith.constant 2 : index
    %c1_128 = arith.constant 1 : index
    %c0_129 = arith.constant 0 : index
    %c0_130 = arith.constant 0 : index
    %188 = vector.load %arg5[%c2_127, %c1_128, %c0_129, %c0_130] : memref<3x3x34x192xf32, #tpu.memory_space<vmem>>, vector<1x1x34x192xf32>
    %189 = vector.shape_cast %188 : vector<1x1x34x192xf32> to vector<34x192xf32>
    %cst_131 = arith.constant dense<0.000000e+00> : vector<32x192xf32>
    %190 = tpu.matmul %187, %189, %cst_131 {dimension_numbers = #tpu.dot_dimension_numbers<[1], [0], [0], [1], [0, 0, 1, 1], [], []>} : vector<32x34xf32>, vector<34x192xf32>, vector<32x192xf32> -> vector<32x192xf32>
    %191 = arith.addf %186, %190 : vector<32x192xf32>
    %192 = vector.extract_strided_slice %152 {offsets = [2, 0], sizes = [32, 34], strides = [1, 1]} : vector<34x34xf32> to vector<32x34xf32>
    %c2_132 = arith.constant 2 : index
    %c2_133 = arith.constant 2 : index
    %c0_134 = arith.constant 0 : index
    %c0_135 = arith.constant 0 : index
    %193 = vector.load %arg5[%c2_132, %c2_133, %c0_134, %c0_135] : memref<3x3x34x192xf32, #tpu.memory_space<vmem>>, vector<1x1x34x192xf32>
    %194 = vector.shape_cast %193 : vector<1x1x34x192xf32> to vector<34x192xf32>
    %cst_136 = arith.constant dense<0.000000e+00> : vector<32x192xf32>
    %195 = tpu.matmul %192, %194, %cst_136 {dimension_numbers = #tpu.dot_dimension_numbers<[1], [0], [0], [1], [0, 0, 1, 1], [], []>} : vector<32x34xf32>, vector<34x192xf32>, vector<32x192xf32> -> vector<32x192xf32>
    %196 = arith.addf %191, %195 : vector<32x192xf32>
    %c0_137 = arith.constant 0 : index
    %c0_138 = arith.constant 0 : index
    %197 = vector.load %arg6[%c0_137, %c0_138] : memref<1x192xf32, #tpu.memory_space<vmem>>, vector<1x192xf32>
    %198 = vector.broadcast %197 : vector<1x192xf32> to vector<32x192xf32>
    %199 = arith.addf %196, %198 : vector<32x192xf32>
    %cst_139 = arith.constant 0.000000e+00 : f32
    %200 = vector.broadcast %cst_139 : f32 to vector<32x192xf32>
    %201 = arith.cmpf ogt, %199, %200 : vector<32x192xf32>
    %c0_140 = arith.constant 0 : index
    %c0_141 = arith.constant 0 : index
    %202 = vector.load %arg7[%c0_140, %c0_141] : memref<1x1xf32, #tpu.memory_space<vmem>>, vector<1x1xf32>
    %203 = vector.broadcast %202 : vector<1x1xf32> to vector<32x192xf32>
    %204 = arith.mulf %199, %203 : vector<32x192xf32>
    %205 = arith.select %201, %199, %204 : vector<32x192xi1>, vector<32x192xf32>
    %206 = tpu.iota {dimensions = array<i32: 0>} : vector<14x28xi32>
    %207 = tpu.iota {dimensions = array<i32: 1>} : vector<14x28xi32>
    %c2_i32_142 = arith.constant 2 : i32
    %208 = vector.broadcast %c2_i32_142 : i32 to vector<14x28xi32>
    %209 = arith.muli %208, %206 : vector<14x28xi32>
    %210 = arith.cmpi eq, %207, %209 : vector<14x28xi32>
    %cst_143 = arith.constant 1.000000e+00 : f32
    %cst_144 = arith.constant 0.000000e+00 : f32
    %211 = vector.broadcast %cst_143 : f32 to vector<14x28xf32>
    %212 = vector.broadcast %cst_144 : f32 to vector<14x28xf32>
    %213 = arith.select %210, %211, %212 : vector<14x28xi1>, vector<14x28xf32>
    %214 = tpu.iota {dimensions = array<i32: 0>} : vector<28x14xi32>
    %215 = tpu.iota {dimensions = array<i32: 1>} : vector<28x14xi32>
    %c2_i32_145 = arith.constant 2 : i32
    %216 = vector.broadcast %c2_i32_145 : i32 to vector<28x14xi32>
    %217 = arith.muli %216, %215 : vector<28x14xi32>
    %218 = arith.cmpi eq, %214, %217 : vector<28x14xi32>
    %cst_146 = arith.constant 1.000000e+00 : f32
    %cst_147 = arith.constant 0.000000e+00 : f32
    %219 = vector.broadcast %cst_146 : f32 to vector<28x14xf32>
    %220 = vector.broadcast %cst_147 : f32 to vector<28x14xf32>
    %221 = arith.select %218, %219, %220 : vector<28x14xi1>, vector<28x14xf32>
    %222 = vector.extract_strided_slice %205 {offsets = [0, 0], sizes = [32, 32], strides = [1, 1]} : vector<32x192xf32> to vector<32x32xf32>
    %223 = vector.extract_strided_slice %222 {offsets = [0, 0], sizes = [28, 32], strides = [1, 1]} : vector<32x32xf32> to vector<28x32xf32>
    %224 = vector.extract_strided_slice %222 {offsets = [1, 0], sizes = [28, 32], strides = [1, 1]} : vector<32x32xf32> to vector<28x32xf32>
    %225 = arith.maximumf %223, %224 : vector<28x32xf32>
    %226 = vector.extract_strided_slice %222 {offsets = [2, 0], sizes = [28, 32], strides = [1, 1]} : vector<32x32xf32> to vector<28x32xf32>
    %227 = arith.maximumf %225, %226 : vector<28x32xf32>
    %228 = vector.extract_strided_slice %222 {offsets = [3, 0], sizes = [28, 32], strides = [1, 1]} : vector<32x32xf32> to vector<28x32xf32>
    %229 = arith.maximumf %227, %228 : vector<28x32xf32>
    %230 = vector.extract_strided_slice %222 {offsets = [4, 0], sizes = [28, 32], strides = [1, 1]} : vector<32x32xf32> to vector<28x32xf32>
    %231 = arith.maximumf %229, %230 : vector<28x32xf32>
    %232 = vector.extract_strided_slice %231 {offsets = [0, 0], sizes = [28, 28], strides = [1, 1]} : vector<28x32xf32> to vector<28x28xf32>
    %233 = vector.extract_strided_slice %231 {offsets = [0, 1], sizes = [28, 28], strides = [1, 1]} : vector<28x32xf32> to vector<28x28xf32>
    %234 = arith.maximumf %232, %233 : vector<28x28xf32>
    %235 = vector.extract_strided_slice %231 {offsets = [0, 2], sizes = [28, 28], strides = [1, 1]} : vector<28x32xf32> to vector<28x28xf32>
    %236 = arith.maximumf %234, %235 : vector<28x28xf32>
    %237 = vector.extract_strided_slice %231 {offsets = [0, 3], sizes = [28, 28], strides = [1, 1]} : vector<28x32xf32> to vector<28x28xf32>
    %238 = arith.maximumf %236, %237 : vector<28x28xf32>
    %239 = vector.extract_strided_slice %231 {offsets = [0, 4], sizes = [28, 28], strides = [1, 1]} : vector<28x32xf32> to vector<28x28xf32>
    %240 = arith.maximumf %238, %239 : vector<28x28xf32>
    %cst_148 = arith.constant dense<0.000000e+00> : vector<28x14xf32>
    %241 = tpu.matmul %240, %221, %cst_148 {dimension_numbers = #tpu.dot_dimension_numbers<[1], [0], [0], [1], [0, 0, 1, 1], [], []>} : vector<28x28xf32>, vector<28x14xf32>, vector<28x14xf32> -> vector<28x14xf32>
    %cst_149 = arith.constant dense<0.000000e+00> : vector<14x14xf32>
    %242 = tpu.matmul %213, %241, %cst_149 {dimension_numbers = #tpu.dot_dimension_numbers<[1], [0], [0], [1], [0, 0, 1, 1], [], []>} : vector<14x28xf32>, vector<28x14xf32>, vector<14x14xf32> -> vector<14x14xf32>
    %c0_150 = arith.constant 0 : index
    %c0_151 = arith.constant 0 : index
    %c0_152 = arith.constant 0 : index
    %c0_153 = arith.constant 0 : index
    %243 = vector.load %arg8[%c0_150, %c0_151, %c0_152, %c0_153] : memref<1x6x14x14xf32, #tpu.memory_space<vmem>>, vector<1x1x14x14xf32>
    %244 = vector.shape_cast %243 : vector<1x1x14x14xf32> to vector<14x14xf32>
    %245 = vector.shape_cast %242 : vector<14x14xf32> to vector<1x1x14x14xf32>
    tpu.vector_store %arg8[%c0_150, %c0_151, %c0_152, %c0_153], %245 {strides = array<i32>} : memref<1x6x14x14xf32, #tpu.memory_space<vmem>>, vector<1x1x14x14xf32>,
    %246 = vector.extract_strided_slice %205 {offsets = [0, 32], sizes = [32, 32], strides = [1, 1]} : vector<32x192xf32> to vector<32x32xf32>
    %247 = vector.extract_strided_slice %246 {offsets = [0, 0], sizes = [28, 32], strides = [1, 1]} : vector<32x32xf32> to vector<28x32xf32>
    %248 = vector.extract_strided_slice %246 {offsets = [1, 0], sizes = [28, 32], strides = [1, 1]} : vector<32x32xf32> to vector<28x32xf32>
    %249 = arith.maximumf %247, %248 : vector<28x32xf32>
    %250 = vector.extract_strided_slice %246 {offsets = [2, 0], sizes = [28, 32], strides = [1, 1]} : vector<32x32xf32> to vector<28x32xf32>
    %251 = arith.maximumf %249, %250 : vector<28x32xf32>
    %252 = vector.extract_strided_slice %246 {offsets = [3, 0], sizes = [28, 32], strides = [1, 1]} : vector<32x32xf32> to vector<28x32xf32>
    %253 = arith.maximumf %251, %252 : vector<28x32xf32>
    %254 = vector.extract_strided_slice %246 {offsets = [4, 0], sizes = [28, 32], strides = [1, 1]} : vector<32x32xf32> to vector<28x32xf32>
    %255 = arith.maximumf %253, %254 : vector<28x32xf32>
    %256 = vector.extract_strided_slice %255 {offsets = [0, 0], sizes = [28, 28], strides = [1, 1]} : vector<28x32xf32> to vector<28x28xf32>
    %257 = vector.extract_strided_slice %255 {offsets = [0, 1], sizes = [28, 28], strides = [1, 1]} : vector<28x32xf32> to vector<28x28xf32>
    %258 = arith.maximumf %256, %257 : vector<28x28xf32>
    %259 = vector.extract_strided_slice %255 {offsets = [0, 2], sizes = [28, 28], strides = [1, 1]} : vector<28x32xf32> to vector<28x28xf32>
    %260 = arith.maximumf %258, %259 : vector<28x28xf32>
    %261 = vector.extract_strided_slice %255 {offsets = [0, 3], sizes = [28, 28], strides = [1, 1]} : vector<28x32xf32> to vector<28x28xf32>
    %262 = arith.maximumf %260, %261 : vector<28x28xf32>
    %263 = vector.extract_strided_slice %255 {offsets = [0, 4], sizes = [28, 28], strides = [1, 1]} : vector<28x32xf32> to vector<28x28xf32>
    %264 = arith.maximumf %262, %263 : vector<28x28xf32>
    %cst_154 = arith.constant dense<0.000000e+00> : vector<28x14xf32>
    %265 = tpu.matmul %264, %221, %cst_154 {dimension_numbers = #tpu.dot_dimension_numbers<[1], [0], [0], [1], [0, 0, 1, 1], [], []>} : vector<28x28xf32>, vector<28x14xf32>, vector<28x14xf32> -> vector<28x14xf32>
    %cst_155 = arith.constant dense<0.000000e+00> : vector<14x14xf32>
    %266 = tpu.matmul %213, %265, %cst_155 {dimension_numbers = #tpu.dot_dimension_numbers<[1], [0], [0], [1], [0, 0, 1, 1], [], []>} : vector<14x28xf32>, vector<28x14xf32>, vector<14x14xf32> -> vector<14x14xf32>
    %c0_156 = arith.constant 0 : index
    %c1_157 = arith.constant 1 : index
    %c0_158 = arith.constant 0 : index
    %c0_159 = arith.constant 0 : index
    %267 = vector.load %arg8[%c0_156, %c1_157, %c0_158, %c0_159] : memref<1x6x14x14xf32, #tpu.memory_space<vmem>>, vector<1x1x14x14xf32>
    %268 = vector.shape_cast %267 : vector<1x1x14x14xf32> to vector<14x14xf32>
    %269 = vector.shape_cast %266 : vector<14x14xf32> to vector<1x1x14x14xf32>
    tpu.vector_store %arg8[%c0_156, %c1_157, %c0_158, %c0_159], %269 {strides = array<i32>} : memref<1x6x14x14xf32, #tpu.memory_space<vmem>>, vector<1x1x14x14xf32>,
    %270 = vector.extract_strided_slice %205 {offsets = [0, 64], sizes = [32, 32], strides = [1, 1]} : vector<32x192xf32> to vector<32x32xf32>
    %271 = vector.extract_strided_slice %270 {offsets = [0, 0], sizes = [28, 32], strides = [1, 1]} : vector<32x32xf32> to vector<28x32xf32>
    %272 = vector.extract_strided_slice %270 {offsets = [1, 0], sizes = [28, 32], strides = [1, 1]} : vector<32x32xf32> to vector<28x32xf32>
    %273 = arith.maximumf %271, %272 : vector<28x32xf32>
    %274 = vector.extract_strided_slice %270 {offsets = [2, 0], sizes = [28, 32], strides = [1, 1]} : vector<32x32xf32> to vector<28x32xf32>
    %275 = arith.maximumf %273, %274 : vector<28x32xf32>
    %276 = vector.extract_strided_slice %270 {offsets = [3, 0], sizes = [28, 32], strides = [1, 1]} : vector<32x32xf32> to vector<28x32xf32>
    %277 = arith.maximumf %275, %276 : vector<28x32xf32>
    %278 = vector.extract_strided_slice %270 {offsets = [4, 0], sizes = [28, 32], strides = [1, 1]} : vector<32x32xf32> to vector<28x32xf32>
    %279 = arith.maximumf %277, %278 : vector<28x32xf32>
    %280 = vector.extract_strided_slice %279 {offsets = [0, 0], sizes = [28, 28], strides = [1, 1]} : vector<28x32xf32> to vector<28x28xf32>
    %281 = vector.extract_strided_slice %279 {offsets = [0, 1], sizes = [28, 28], strides = [1, 1]} : vector<28x32xf32> to vector<28x28xf32>
    %282 = arith.maximumf %280, %281 : vector<28x28xf32>
    %283 = vector.extract_strided_slice %279 {offsets = [0, 2], sizes = [28, 28], strides = [1, 1]} : vector<28x32xf32> to vector<28x28xf32>
    %284 = arith.maximumf %282, %283 : vector<28x28xf32>
    %285 = vector.extract_strided_slice %279 {offsets = [0, 3], sizes = [28, 28], strides = [1, 1]} : vector<28x32xf32> to vector<28x28xf32>
    %286 = arith.maximumf %284, %285 : vector<28x28xf32>
    %287 = vector.extract_strided_slice %279 {offsets = [0, 4], sizes = [28, 28], strides = [1, 1]} : vector<28x32xf32> to vector<28x28xf32>
    %288 = arith.maximumf %286, %287 : vector<28x28xf32>
    %cst_160 = arith.constant dense<0.000000e+00> : vector<28x14xf32>
    %289 = tpu.matmul %288, %221, %cst_160 {dimension_numbers = #tpu.dot_dimension_numbers<[1], [0], [0], [1], [0, 0, 1, 1], [], []>} : vector<28x28xf32>, vector<28x14xf32>, vector<28x14xf32> -> vector<28x14xf32>
    %cst_161 = arith.constant dense<0.000000e+00> : vector<14x14xf32>
    %290 = tpu.matmul %213, %289, %cst_161 {dimension_numbers = #tpu.dot_dimension_numbers<[1], [0], [0], [1], [0, 0, 1, 1], [], []>} : vector<14x28xf32>, vector<28x14xf32>, vector<14x14xf32> -> vector<14x14xf32>
    %c0_162 = arith.constant 0 : index
    %c2_163 = arith.constant 2 : index
    %c0_164 = arith.constant 0 : index
    %c0_165 = arith.constant 0 : index
    %291 = vector.load %arg8[%c0_162, %c2_163, %c0_164, %c0_165] : memref<1x6x14x14xf32, #tpu.memory_space<vmem>>, vector<1x1x14x14xf32>
    %292 = vector.shape_cast %291 : vector<1x1x14x14xf32> to vector<14x14xf32>
    %293 = vector.shape_cast %290 : vector<14x14xf32> to vector<1x1x14x14xf32>
    tpu.vector_store %arg8[%c0_162, %c2_163, %c0_164, %c0_165], %293 {strides = array<i32>} : memref<1x6x14x14xf32, #tpu.memory_space<vmem>>, vector<1x1x14x14xf32>,
    %294 = vector.extract_strided_slice %205 {offsets = [0, 96], sizes = [32, 32], strides = [1, 1]} : vector<32x192xf32> to vector<32x32xf32>
    %295 = vector.extract_strided_slice %294 {offsets = [0, 0], sizes = [28, 32], strides = [1, 1]} : vector<32x32xf32> to vector<28x32xf32>
    %296 = vector.extract_strided_slice %294 {offsets = [1, 0], sizes = [28, 32], strides = [1, 1]} : vector<32x32xf32> to vector<28x32xf32>
    %297 = arith.maximumf %295, %296 : vector<28x32xf32>
    %298 = vector.extract_strided_slice %294 {offsets = [2, 0], sizes = [28, 32], strides = [1, 1]} : vector<32x32xf32> to vector<28x32xf32>
    %299 = arith.maximumf %297, %298 : vector<28x32xf32>
    %300 = vector.extract_strided_slice %294 {offsets = [3, 0], sizes = [28, 32], strides = [1, 1]} : vector<32x32xf32> to vector<28x32xf32>
    %301 = arith.maximumf %299, %300 : vector<28x32xf32>
    %302 = vector.extract_strided_slice %294 {offsets = [4, 0], sizes = [28, 32], strides = [1, 1]} : vector<32x32xf32> to vector<28x32xf32>
    %303 = arith.maximumf %301, %302 : vector<28x32xf32>
    %304 = vector.extract_strided_slice %303 {offsets = [0, 0], sizes = [28, 28], strides = [1, 1]} : vector<28x32xf32> to vector<28x28xf32>
    %305 = vector.extract_strided_slice %303 {offsets = [0, 1], sizes = [28, 28], strides = [1, 1]} : vector<28x32xf32> to vector<28x28xf32>
    %306 = arith.maximumf %304, %305 : vector<28x28xf32>
    %307 = vector.extract_strided_slice %303 {offsets = [0, 2], sizes = [28, 28], strides = [1, 1]} : vector<28x32xf32> to vector<28x28xf32>
    %308 = arith.maximumf %306, %307 : vector<28x28xf32>
    %309 = vector.extract_strided_slice %303 {offsets = [0, 3], sizes = [28, 28], strides = [1, 1]} : vector<28x32xf32> to vector<28x28xf32>
    %310 = arith.maximumf %308, %309 : vector<28x28xf32>
    %311 = vector.extract_strided_slice %303 {offsets = [0, 4], sizes = [28, 28], strides = [1, 1]} : vector<28x32xf32> to vector<28x28xf32>
    %312 = arith.maximumf %310, %311 : vector<28x28xf32>
    %cst_166 = arith.constant dense<0.000000e+00> : vector<28x14xf32>
    %313 = tpu.matmul %312, %221, %cst_166 {dimension_numbers = #tpu.dot_dimension_numbers<[1], [0], [0], [1], [0, 0, 1, 1], [], []>} : vector<28x28xf32>, vector<28x14xf32>, vector<28x14xf32> -> vector<28x14xf32>
    %cst_167 = arith.constant dense<0.000000e+00> : vector<14x14xf32>
    %314 = tpu.matmul %213, %313, %cst_167 {dimension_numbers = #tpu.dot_dimension_numbers<[1], [0], [0], [1], [0, 0, 1, 1], [], []>} : vector<14x28xf32>, vector<28x14xf32>, vector<14x14xf32> -> vector<14x14xf32>
    %c0_168 = arith.constant 0 : index
    %c3_169 = arith.constant 3 : index
    %c0_170 = arith.constant 0 : index
    %c0_171 = arith.constant 0 : index
    %315 = vector.load %arg8[%c0_168, %c3_169, %c0_170, %c0_171] : memref<1x6x14x14xf32, #tpu.memory_space<vmem>>, vector<1x1x14x14xf32>
    %316 = vector.shape_cast %315 : vector<1x1x14x14xf32> to vector<14x14xf32>
    %317 = vector.shape_cast %314 : vector<14x14xf32> to vector<1x1x14x14xf32>
    tpu.vector_store %arg8[%c0_168, %c3_169, %c0_170, %c0_171], %317 {strides = array<i32>} : memref<1x6x14x14xf32, #tpu.memory_space<vmem>>, vector<1x1x14x14xf32>,
    %318 = vector.extract_strided_slice %205 {offsets = [0, 128], sizes = [32, 32], strides = [1, 1]} : vector<32x192xf32> to vector<32x32xf32>
    %319 = vector.extract_strided_slice %318 {offsets = [0, 0], sizes = [28, 32], strides = [1, 1]} : vector<32x32xf32> to vector<28x32xf32>
    %320 = vector.extract_strided_slice %318 {offsets = [1, 0], sizes = [28, 32], strides = [1, 1]} : vector<32x32xf32> to vector<28x32xf32>
    %321 = arith.maximumf %319, %320 : vector<28x32xf32>
    %322 = vector.extract_strided_slice %318 {offsets = [2, 0], sizes = [28, 32], strides = [1, 1]} : vector<32x32xf32> to vector<28x32xf32>
    %323 = arith.maximumf %321, %322 : vector<28x32xf32>
    %324 = vector.extract_strided_slice %318 {offsets = [3, 0], sizes = [28, 32], strides = [1, 1]} : vector<32x32xf32> to vector<28x32xf32>
    %325 = arith.maximumf %323, %324 : vector<28x32xf32>
    %326 = vector.extract_strided_slice %318 {offsets = [4, 0], sizes = [28, 32], strides = [1, 1]} : vector<32x32xf32> to vector<28x32xf32>
    %327 = arith.maximumf %325, %326 : vector<28x32xf32>
    %328 = vector.extract_strided_slice %327 {offsets = [0, 0], sizes = [28, 28], strides = [1, 1]} : vector<28x32xf32> to vector<28x28xf32>
    %329 = vector.extract_strided_slice %327 {offsets = [0, 1], sizes = [28, 28], strides = [1, 1]} : vector<28x32xf32> to vector<28x28xf32>
    %330 = arith.maximumf %328, %329 : vector<28x28xf32>
    %331 = vector.extract_strided_slice %327 {offsets = [0, 2], sizes = [28, 28], strides = [1, 1]} : vector<28x32xf32> to vector<28x28xf32>
    %332 = arith.maximumf %330, %331 : vector<28x28xf32>
    %333 = vector.extract_strided_slice %327 {offsets = [0, 3], sizes = [28, 28], strides = [1, 1]} : vector<28x32xf32> to vector<28x28xf32>
    %334 = arith.maximumf %332, %333 : vector<28x28xf32>
    %335 = vector.extract_strided_slice %327 {offsets = [0, 4], sizes = [28, 28], strides = [1, 1]} : vector<28x32xf32> to vector<28x28xf32>
    %336 = arith.maximumf %334, %335 : vector<28x28xf32>
    %cst_172 = arith.constant dense<0.000000e+00> : vector<28x14xf32>
    %337 = tpu.matmul %336, %221, %cst_172 {dimension_numbers = #tpu.dot_dimension_numbers<[1], [0], [0], [1], [0, 0, 1, 1], [], []>} : vector<28x28xf32>, vector<28x14xf32>, vector<28x14xf32> -> vector<28x14xf32>
    %cst_173 = arith.constant dense<0.000000e+00> : vector<14x14xf32>
    %338 = tpu.matmul %213, %337, %cst_173 {dimension_numbers = #tpu.dot_dimension_numbers<[1], [0], [0], [1], [0, 0, 1, 1], [], []>} : vector<14x28xf32>, vector<28x14xf32>, vector<14x14xf32> -> vector<14x14xf32>
    %c0_174 = arith.constant 0 : index
    %c4_175 = arith.constant 4 : index
    %c0_176 = arith.constant 0 : index
    %c0_177 = arith.constant 0 : index
    %339 = vector.load %arg8[%c0_174, %c4_175, %c0_176, %c0_177] : memref<1x6x14x14xf32, #tpu.memory_space<vmem>>, vector<1x1x14x14xf32>
    %340 = vector.shape_cast %339 : vector<1x1x14x14xf32> to vector<14x14xf32>
    %341 = vector.shape_cast %338 : vector<14x14xf32> to vector<1x1x14x14xf32>
    tpu.vector_store %arg8[%c0_174, %c4_175, %c0_176, %c0_177], %341 {strides = array<i32>} : memref<1x6x14x14xf32, #tpu.memory_space<vmem>>, vector<1x1x14x14xf32>,
    %342 = vector.extract_strided_slice %205 {offsets = [0, 160], sizes = [32, 32], strides = [1, 1]} : vector<32x192xf32> to vector<32x32xf32>
    %343 = vector.extract_strided_slice %342 {offsets = [0, 0], sizes = [28, 32], strides = [1, 1]} : vector<32x32xf32> to vector<28x32xf32>
    %344 = vector.extract_strided_slice %342 {offsets = [1, 0], sizes = [28, 32], strides = [1, 1]} : vector<32x32xf32> to vector<28x32xf32>
    %345 = arith.maximumf %343, %344 : vector<28x32xf32>
    %346 = vector.extract_strided_slice %342 {offsets = [2, 0], sizes = [28, 32], strides = [1, 1]} : vector<32x32xf32> to vector<28x32xf32>
    %347 = arith.maximumf %345, %346 : vector<28x32xf32>
    %348 = vector.extract_strided_slice %342 {offsets = [3, 0], sizes = [28, 32], strides = [1, 1]} : vector<32x32xf32> to vector<28x32xf32>
    %349 = arith.maximumf %347, %348 : vector<28x32xf32>
    %350 = vector.extract_strided_slice %342 {offsets = [4, 0], sizes = [28, 32], strides = [1, 1]} : vector<32x32xf32> to vector<28x32xf32>
    %351 = arith.maximumf %349, %350 : vector<28x32xf32>
    %352 = vector.extract_strided_slice %351 {offsets = [0, 0], sizes = [28, 28], strides = [1, 1]} : vector<28x32xf32> to vector<28x28xf32>
    %353 = vector.extract_strided_slice %351 {offsets = [0, 1], sizes = [28, 28], strides = [1, 1]} : vector<28x32xf32> to vector<28x28xf32>
    %354 = arith.maximumf %352, %353 : vector<28x28xf32>
    %355 = vector.extract_strided_slice %351 {offsets = [0, 2], sizes = [28, 28], strides = [1, 1]} : vector<28x32xf32> to vector<28x28xf32>
    %356 = arith.maximumf %354, %355 : vector<28x28xf32>
    %357 = vector.extract_strided_slice %351 {offsets = [0, 3], sizes = [28, 28], strides = [1, 1]} : vector<28x32xf32> to vector<28x28xf32>
    %358 = arith.maximumf %356, %357 : vector<28x28xf32>
    %359 = vector.extract_strided_slice %351 {offsets = [0, 4], sizes = [28, 28], strides = [1, 1]} : vector<28x32xf32> to vector<28x28xf32>
    %360 = arith.maximumf %358, %359 : vector<28x28xf32>
    %cst_178 = arith.constant dense<0.000000e+00> : vector<28x14xf32>
    %361 = tpu.matmul %360, %221, %cst_178 {dimension_numbers = #tpu.dot_dimension_numbers<[1], [0], [0], [1], [0, 0, 1, 1], [], []>} : vector<28x28xf32>, vector<28x14xf32>, vector<28x14xf32> -> vector<28x14xf32>
    %cst_179 = arith.constant dense<0.000000e+00> : vector<14x14xf32>
    %362 = tpu.matmul %213, %361, %cst_179 {dimension_numbers = #tpu.dot_dimension_numbers<[1], [0], [0], [1], [0, 0, 1, 1], [], []>} : vector<14x28xf32>, vector<28x14xf32>, vector<14x14xf32> -> vector<14x14xf32>
    %c0_180 = arith.constant 0 : index
    %c5_181 = arith.constant 5 : index
    %c0_182 = arith.constant 0 : index
    %c0_183 = arith.constant 0 : index
    %363 = vector.load %arg8[%c0_180, %c5_181, %c0_182, %c0_183] : memref<1x6x14x14xf32, #tpu.memory_space<vmem>>, vector<1x1x14x14xf32>
    %364 = vector.shape_cast %363 : vector<1x1x14x14xf32> to vector<14x14xf32>
    %365 = vector.shape_cast %362 : vector<14x14xf32> to vector<1x1x14x14xf32>
    tpu.vector_store %arg8[%c0_180, %c5_181, %c0_182, %c0_183], %365 {strides = array<i32>} : memref<1x6x14x14xf32, #tpu.memory_space<vmem>>, vector<1x1x14x14xf32>,
    return
  }
  func.func @transform_0(%arg0: i32) -> (i32, i32, i32, i32) {
    %c0_i32 = arith.constant 0 : i32
    %c0_i32_0 = arith.constant 0 : i32
    %c0_i32_1 = arith.constant 0 : i32
    %c0_i32_2 = arith.constant 0 : i32
    return %arg0, %c0_i32, %c0_i32_0, %c0_i32_1 : i32, i32, i32, i32
  }
  func.func @transform_1(%arg0: i32) -> (i32, i32, i32) {
    %c0_i32 = arith.constant 0 : i32
    %c0_i32_0 = arith.constant 0 : i32
    %c0_i32_1 = arith.constant 0 : i32
    %c0_i32_2 = arith.constant 0 : i32
    return %c0_i32, %c0_i32_0, %c0_i32_1 : i32, i32, i32
  }
  func.func @transform_2(%arg0: i32) -> (i32, i32) {
    %c0_i32 = arith.constant 0 : i32
    %c0_i32_0 = arith.constant 0 : i32
    %c0_i32_1 = arith.constant 0 : i32
    return %c0_i32, %c0_i32_0 : i32, i32
  }
  func.func @transform_3(%arg0: i32) -> (i32, i32) {
    %c0_i32 = arith.constant 0 : i32
    %c0_i32_0 = arith.constant 0 : i32
    %c0_i32_1 = arith.constant 0 : i32
    return %c0_i32, %c0_i32_0 : i32, i32
  }
  func.func @transform_4(%arg0: i32) -> (i32, i32, i32, i32) {
    %c0_i32 = arith.constant 0 : i32
    %c0_i32_0 = arith.constant 0 : i32
    %c0_i32_1 = arith.constant 0 : i32
    %c0_i32_2 = arith.constant 0 : i32
    %c0_i32_3 = arith.constant 0 : i32
    return %c0_i32, %c0_i32_0, %c0_i32_1, %c0_i32_2 : i32, i32, i32, i32
  }
  func.func @transform_5(%arg0: i32) -> (i32, i32) {
    %c0_i32 = arith.constant 0 : i32
    %c0_i32_0 = arith.constant 0 : i32
    %c0_i32_1 = arith.constant 0 : i32
    return %c0_i32, %c0_i32_0 : i32, i32
  }
  func.func @transform_6(%arg0: i32) -> (i32, i32) {
    %c0_i32 = arith.constant 0 : i32
    %c0_i32_0 = arith.constant 0 : i32
    %c0_i32_1 = arith.constant 0 : i32
    return %c0_i32, %c0_i32_0 : i32, i32
  }
  func.func @transform_7(%arg0: i32) -> (i32, i32, i32, i32) {
    %c0_i32 = arith.constant 0 : i32
    %c0_i32_0 = arith.constant 0 : i32
    %c0_i32_1 = arith.constant 0 : i32
    %c0_i32_2 = arith.constant 0 : i32
    return %arg0, %c0_i32, %c0_i32_0, %c0_i32_1 : i32, i32, i32, i32
  }
}

module attributes {stable_mosaic.version = 11 : i64} {
  func.func @_dense_tail_kernel(%arg0: memref<2x1176xf32, #tpu.memory_space<vmem>>, %arg1: memref<2x5xf32, #tpu.memory_space<vmem>>, %arg2: memref<5x1176xf32, #tpu.memory_space<vmem>>, %arg3: memref<1x1176xf32, #tpu.memory_space<vmem>>, %arg4: memref<1x1xf32, #tpu.memory_space<vmem>>, %arg5: memref<1176x100xf32, #tpu.memory_space<vmem>>, %arg6: memref<1x100xf32, #tpu.memory_space<vmem>>, %arg7: memref<1x1xf32, #tpu.memory_space<vmem>>, %arg8: memref<100x50xf32, #tpu.memory_space<vmem>>, %arg9: memref<1x50xf32, #tpu.memory_space<vmem>>, %arg10: memref<1x1xf32, #tpu.memory_space<vmem>>, %arg11: memref<50x10xf32, #tpu.memory_space<vmem>>, %arg12: memref<1x10xf32, #tpu.memory_space<vmem>>, %arg13: memref<2x10xf32, #tpu.memory_space<vmem>>) attributes {dimension_semantics = [], scalar_prefetch = 0 : i64, scratch_operands = 0 : i64, tpu.core_type = #tpu.core_type<tc>} {
    %c0 = arith.constant 0 : index
    %c0_0 = arith.constant 0 : index
    %0 = vector.load %arg1[%c0, %c0_0] : memref<2x5xf32, #tpu.memory_space<vmem>>, vector<2x5xf32>
    %c0_1 = arith.constant 0 : index
    %c0_2 = arith.constant 0 : index
    %1 = vector.load %arg2[%c0_1, %c0_2] : memref<5x1176xf32, #tpu.memory_space<vmem>>, vector<5x1176xf32>
    %cst = arith.constant dense<0.000000e+00> : vector<2x1176xf32>
    %2 = tpu.matmul %0, %1, %cst {dimension_numbers = #tpu.dot_dimension_numbers<[1], [0], [0], [1], [0, 0, 1, 1], [], []>} : vector<2x5xf32>, vector<5x1176xf32>, vector<2x1176xf32> -> vector<2x1176xf32>
    %c0_3 = arith.constant 0 : index
    %c0_4 = arith.constant 0 : index
    %3 = vector.load %arg3[%c0_3, %c0_4] : memref<1x1176xf32, #tpu.memory_space<vmem>>, vector<1x1176xf32>
    %4 = vector.broadcast %3 : vector<1x1176xf32> to vector<2x1176xf32>
    %5 = arith.addf %2, %4 : vector<2x1176xf32>
    %cst_5 = arith.constant 0.000000e+00 : f32
    %6 = vector.broadcast %cst_5 : f32 to vector<2x1176xf32>
    %7 = arith.cmpf ogt, %5, %6 : vector<2x1176xf32>
    %c0_6 = arith.constant 0 : index
    %c0_7 = arith.constant 0 : index
    %8 = vector.load %arg4[%c0_6, %c0_7] : memref<1x1xf32, #tpu.memory_space<vmem>>, vector<1x1xf32>
    %9 = vector.broadcast %8 : vector<1x1xf32> to vector<2x1176xf32>
    %10 = arith.mulf %5, %9 : vector<2x1176xf32>
    %11 = arith.select %7, %5, %10 : vector<2x1176xi1>, vector<2x1176xf32>
    %c0_8 = arith.constant 0 : index
    %c0_9 = arith.constant 0 : index
    %12 = vector.load %arg0[%c0_8, %c0_9] : memref<2x1176xf32, #tpu.memory_space<vmem>>, vector<2x1176xf32>
    %13 = arith.addf %12, %11 : vector<2x1176xf32>
    %c0_10 = arith.constant 0 : index
    %c0_11 = arith.constant 0 : index
    %14 = vector.load %arg5[%c0_10, %c0_11] : memref<1176x100xf32, #tpu.memory_space<vmem>>, vector<1176x100xf32>
    %cst_12 = arith.constant dense<0.000000e+00> : vector<2x100xf32>
    %15 = tpu.matmul %13, %14, %cst_12 {dimension_numbers = #tpu.dot_dimension_numbers<[1], [0], [0], [1], [0, 0, 1, 1], [], []>} : vector<2x1176xf32>, vector<1176x100xf32>, vector<2x100xf32> -> vector<2x100xf32>
    %c0_13 = arith.constant 0 : index
    %c0_14 = arith.constant 0 : index
    %16 = vector.load %arg6[%c0_13, %c0_14] : memref<1x100xf32, #tpu.memory_space<vmem>>, vector<1x100xf32>
    %17 = vector.broadcast %16 : vector<1x100xf32> to vector<2x100xf32>
    %18 = arith.addf %15, %17 : vector<2x100xf32>
    %cst_15 = arith.constant 0.000000e+00 : f32
    %19 = vector.broadcast %cst_15 : f32 to vector<2x100xf32>
    %20 = arith.cmpf ogt, %18, %19 : vector<2x100xf32>
    %c0_16 = arith.constant 0 : index
    %c0_17 = arith.constant 0 : index
    %21 = vector.load %arg7[%c0_16, %c0_17] : memref<1x1xf32, #tpu.memory_space<vmem>>, vector<1x1xf32>
    %22 = vector.broadcast %21 : vector<1x1xf32> to vector<2x100xf32>
    %23 = arith.mulf %18, %22 : vector<2x100xf32>
    %24 = arith.select %20, %18, %23 : vector<2x100xi1>, vector<2x100xf32>
    %c0_18 = arith.constant 0 : index
    %c0_19 = arith.constant 0 : index
    %25 = vector.load %arg8[%c0_18, %c0_19] : memref<100x50xf32, #tpu.memory_space<vmem>>, vector<100x50xf32>
    %cst_20 = arith.constant dense<0.000000e+00> : vector<2x50xf32>
    %26 = tpu.matmul %24, %25, %cst_20 {dimension_numbers = #tpu.dot_dimension_numbers<[1], [0], [0], [1], [0, 0, 1, 1], [], []>} : vector<2x100xf32>, vector<100x50xf32>, vector<2x50xf32> -> vector<2x50xf32>
    %c0_21 = arith.constant 0 : index
    %c0_22 = arith.constant 0 : index
    %27 = vector.load %arg9[%c0_21, %c0_22] : memref<1x50xf32, #tpu.memory_space<vmem>>, vector<1x50xf32>
    %28 = vector.broadcast %27 : vector<1x50xf32> to vector<2x50xf32>
    %29 = arith.addf %26, %28 : vector<2x50xf32>
    %cst_23 = arith.constant 0.000000e+00 : f32
    %30 = vector.broadcast %cst_23 : f32 to vector<2x50xf32>
    %31 = arith.cmpf ogt, %29, %30 : vector<2x50xf32>
    %c0_24 = arith.constant 0 : index
    %c0_25 = arith.constant 0 : index
    %32 = vector.load %arg10[%c0_24, %c0_25] : memref<1x1xf32, #tpu.memory_space<vmem>>, vector<1x1xf32>
    %33 = vector.broadcast %32 : vector<1x1xf32> to vector<2x50xf32>
    %34 = arith.mulf %29, %33 : vector<2x50xf32>
    %35 = arith.select %31, %29, %34 : vector<2x50xi1>, vector<2x50xf32>
    %c0_26 = arith.constant 0 : index
    %c0_27 = arith.constant 0 : index
    %36 = vector.load %arg11[%c0_26, %c0_27] : memref<50x10xf32, #tpu.memory_space<vmem>>, vector<50x10xf32>
    %cst_28 = arith.constant dense<0.000000e+00> : vector<2x10xf32>
    %37 = tpu.matmul %35, %36, %cst_28 {dimension_numbers = #tpu.dot_dimension_numbers<[1], [0], [0], [1], [0, 0, 1, 1], [], []>} : vector<2x50xf32>, vector<50x10xf32>, vector<2x10xf32> -> vector<2x10xf32>
    %c0_29 = arith.constant 0 : index
    %c0_30 = arith.constant 0 : index
    %38 = vector.load %arg12[%c0_29, %c0_30] : memref<1x10xf32, #tpu.memory_space<vmem>>, vector<1x10xf32>
    %39 = vector.broadcast %38 : vector<1x10xf32> to vector<2x10xf32>
    %40 = arith.addf %37, %39 : vector<2x10xf32>
    %41 = vector.extract_strided_slice %40 {offsets = [0, 0], sizes = [2, 5], strides = [1, 1]} : vector<2x10xf32> to vector<2x5xf32>
    %cst_31 = arith.constant dense<0xFF800000> : vector<2xf32>
    %42 = vector.multi_reduction <maximumf>, %41, %cst_31 [1] : vector<2x5xf32> to vector<2xf32>
    %43 = vector.shape_cast %42 : vector<2xf32> to vector<2x1xf32>
    %44 = vector.broadcast %43 : vector<2x1xf32> to vector<2x5xf32>
    %45 = arith.subf %41, %44 : vector<2x5xf32>
    %46 = math.exp %45 : vector<2x5xf32>
    %cst_32 = arith.constant dense<0.000000e+00> : vector<2xf32>
    %47 = vector.multi_reduction <add>, %46, %cst_32 [1] : vector<2x5xf32> to vector<2xf32>
    %48 = vector.shape_cast %47 : vector<2xf32> to vector<2x1xf32>
    %49 = vector.broadcast %48 : vector<2x1xf32> to vector<2x5xf32>
    %50 = arith.divf %46, %49 : vector<2x5xf32>
    %c0_33 = arith.constant 0 : index
    %c0_34 = arith.constant 0 : index
    %51 = vector.load %arg13[%c0_33, %c0_34] : memref<2x10xf32, #tpu.memory_space<vmem>>, vector<2x5xf32>
    tpu.vector_store %arg13[%c0_33, %c0_34], %50 {strides = array<i32>} : memref<2x10xf32, #tpu.memory_space<vmem>>, vector<2x5xf32>,
    %52 = vector.extract_strided_slice %40 {offsets = [0, 5], sizes = [2, 5], strides = [1, 1]} : vector<2x10xf32> to vector<2x5xf32>
    %cst_35 = arith.constant dense<0xFF800000> : vector<2xf32>
    %53 = vector.multi_reduction <maximumf>, %52, %cst_35 [1] : vector<2x5xf32> to vector<2xf32>
    %54 = vector.shape_cast %53 : vector<2xf32> to vector<2x1xf32>
    %55 = vector.broadcast %54 : vector<2x1xf32> to vector<2x5xf32>
    %56 = arith.subf %52, %55 : vector<2x5xf32>
    %57 = math.exp %56 : vector<2x5xf32>
    %cst_36 = arith.constant dense<0.000000e+00> : vector<2xf32>
    %58 = vector.multi_reduction <add>, %57, %cst_36 [1] : vector<2x5xf32> to vector<2xf32>
    %59 = vector.shape_cast %58 : vector<2xf32> to vector<2x1xf32>
    %60 = vector.broadcast %59 : vector<2x1xf32> to vector<2x5xf32>
    %61 = arith.divf %57, %60 : vector<2x5xf32>
    %c0_37 = arith.constant 0 : index
    %c5 = arith.constant 5 : index
    %62 = vector.load %arg13[%c0_37, %c5] : memref<2x10xf32, #tpu.memory_space<vmem>>, vector<2x5xf32>
    tpu.vector_store %arg13[%c0_37, %c5], %61 {strides = array<i32>} : memref<2x10xf32, #tpu.memory_space<vmem>>, vector<2x5xf32>,
    return
  }
}

</mosaic_0001>

<bundles_post_ra>
// kernel: agent_forward.3
= control target key start
LH: loop header
LB: loop body
LE: loop exit
PB: predicated region body
PF: predicated region fallthrough
CT: control target
= control target key end

     0   :  { %s1730_s0 = inlined_call_operand.vmem [shape: f32[2,1176], index: 0, kind: input, shape index: {}]   ;;  %s1731_s1 = inlined_call_operand.vmem [shape: f32[2,5], index: 1, kind: input, shape index: {}]   ;;  %s1732_s2 = inlined_call_operand.vmem [shape: f32[5,1176], index: 2, kind: input, shape index: {}]   ;;  %s1733_s3 = inlined_call_operand.vmem [shape: f32[1,1176], index: 3, kind: input, shape index: {}]   ;;  %s1734_s4 = inlined_call_operand.<no memory space> [shape: f32[1,1], index: 4, kind: input, shape index: {}]   ;;  %s1735_s5 = inlined_call_operand.vmem [shape: f32[1176,100], index: 5, kind: input, shape index: {}]   ;;  %s1736_s6 = inlined_call_operand.vmem [shape: f32[1,100], index: 6, kind: input, shape index: {}]   ;;  %s1737_s8 = inlined_call_operand.vmem [shape: f32[100,50], index: 8, kind: input, shape index: {}]   ;;  %s1738_s9 = inlined_call_operand.vmem [shape: f32[1,50], index: 9, kind: input, shape index: {}]   ;;  %s1739_s11 = inlined_call_operand.vmem [shape: f32[50,10], index: 11, kind: input, shape index: {}]   ;;  %s1740_s12 = inlined_call_operand.vmem [shape: f32[1,10], index: 12, kind: input, shape index: {}]   ;;  %s1741_s13 = inlined_call_operand.hbm [shape: f32[2,10], index: 13, kind: output, shape index: {}]   ;;  %s1742_s7 = inlined_call_operand.<no memory space> [shape: f32[1,1], index: 7, kind: input, shape index: {}]   ;;  %s1743_s10 = inlined_call_operand.<no memory space> [shape: f32[1,1], index: 10, kind: input, shape index: {}]  }
   0x1   :  { %v18_v0 = vstv %s1734_s4  ;;  %v20_v1 = vstv %s1742_s7  ;;  %v22_v2 = vstv %s1743_s10 }
   0x2   :  { %19 = vst [vmem:[#allocation2] sm:$0x1] %v18_v0 }
   0x3   :  { %21 = vst [vmem:[#allocation3] sm:$0x1] %v20_v1 }
   0x4   :  { %23 = vst [vmem:[#allocation4] sm:$0x1] %v22_v2 }
   0x5   :  { %v52_v3 = vld [vmem:[%s1732_s2] sm:$0x1f]  ;;  %vm90_vm0 = vcmask 1044480   ;;  %vm86_vm1 = vcmask 39936   ;;  %v54_v5 = vld [vmem:[%s1732_s2 + $0x10] sm:$0x1f] }
   0x6   :  { %v1106_v4 = vld [vmem:[%s1731_s1] sm:$0x3]  ;;  %948 = vmatpush.msk.msra.mxu3 %vm90_vm0, %v52_v3  ;;  %v53_v6 = vld [vmem:[%s1732_s2 + $0x8] sm:$0x1f]  ;;  %v55_v7 = vld [vmem:[%s1732_s2 + $0x18] sm:$0x1f] }
   0x7   :  { %949 = vmatmul.msk.f32.vlgmr.msra.gmra.mxu3 %vm86_vm1, %v1106_v4  ;;  %950 = vmatpush.msk.msra.mxu1 %vm90_vm0, %v53_v6  ;;  %v57_v8 = vld [vmem:[%s1732_s2 + $0x28] sm:$0x1f]  ;;  %v56_v9 = vld [vmem:[%s1732_s2 + $0x20] sm:$0x1f]  ;;  %v58_v10 = vld [vmem:[%s1732_s2 + $0x30] sm:$0x1f] }
   0x8   :  { %952 = vmatpush.msk.msrb.mxu3 %vm90_vm0, %v54_v5  ;;  %951 = vmatmul.msk.f32.vlgmr.msra.gmra.mxu1 %vm86_vm1, %v1106_v4  ;;  %v61_v12 = vld [vmem:[%s1732_s2 + $0x48] sm:$0x1f]  ;;  %v60_v13 = vld [vmem:[%s1732_s2 + $0x40] sm:$0x1f]  ;;  %v1018_v14 = vmov 0   ;;  %v409_v15 = vld [vmem:[%s1735_s5 + $0x78] sm:$0xff] }
   0x9   :  { %v978_v11 = vld [vmem:[#allocation2] ss:$0 sm:$0xff]  ;;  %958 = vmatpush.msk.msrb.mxu1 %vm90_vm0, %v57_v8  ;;  %956 = vmatpush.msk.msra.mxu0 %vm90_vm0, %v56_v9  ;;  %v441_v16 = vld [vmem:[%s1735_s5 + $0x178] sm:$0xff]  ;;  %v408_v18 = vld [vmem:[%s1735_s5 + $0x70] sm:$0xff] }
   0xa   :  { %954 = vmatpush.msk.msra.mxu3 %vm90_vm0, %v55_v7  ;;  %960 = vmatpush.msk.msra.mxu2 %vm90_vm0, %v58_v10  ;;  %v59_v17 = vld [vmem:[%s1732_s2 + $0x38] sm:$0x1f]  ;;  %v440_v20 = vld [vmem:[%s1735_s5 + $0x170] sm:$0xff]  ;;  %v979_v21 = vld [vmem:[#allocation3] ss:$0 sm:$0xff] }
   0xb   :  { %957 = vmatmul.msk.f32.vlgmr.msra.gmra.mxu0 %vm86_vm1, %v1106_v4  ;;  %976 = vset.pattern.permute.xlu0 %v1018_v14  ;;  %v457_v19 = vld [vmem:[%s1735_s5 + $0x1f8] sm:$0xff]  ;;  %v407_v22 = vld [vmem:[%s1735_s5 + $0x68] sm:$0xff]  ;;  %v456_v23 = vld [vmem:[%s1735_s5 + $0x1f0] sm:$0xff] }
   0xc   :  { %961 = vmatmul.msk.f32.vlgmr.msra.gmra.mxu2 %vm86_vm1, %v1106_v4  ;;  %335 = vperm.xlu0 %976, %v978_v11   ;;  %v406_v24 = vld [vmem:[%s1735_s5 + $0x60] sm:$0xff]  ;;  %v439_v25 = vld [vmem:[%s1735_s5 + $0x168] sm:$0xff]  ;;  %v405_v27 = vld [vmem:[%s1735_s5 + $0x58] sm:$0xff] }
   0xd   :  { %966 = vmatpush.msk.msra.mxu1 %vm90_vm0, %v61_v12  ;;  %964 = vmatpush.msk.msrb.mxu0 %vm90_vm0, %v60_v13  ;;  %v455_v26 = vld [vmem:[%s1735_s5 + $0x1e8] sm:$0xff]  ;;  %v425_v28 = vld [vmem:[%s1735_s5 + $0xf8] sm:$0xff]  ;;  %v404_v29 = vld [vmem:[%s1735_s5 + $0x50] sm:$0xff] }
   0xe   :  { %574 = vmatpush.msrb.mxu2 %v409_v15  ;;  %977 = vset.pattern.permute.xlu1 %v1018_v14  ;;  %v424_v30 = vld [vmem:[%s1735_s5 + $0xf0] sm:$0xff]  ;;  %v403_v31 = vld [vmem:[%s1735_s5 + $0x48] sm:$0xff]  ;;  %v438_v32 = vld [vmem:[%s1735_s5 + $0x160] sm:$0xff] }
   0xf   :  { %614 = vmatpush.msra.mxu0 %v441_v16  ;;  %953 = vmatmul.msk.f32.vlgmr.msrb.gmra.mxu3 %vm86_vm1, %v1106_v4  ;;  %v454_v33 = vld [vmem:[%s1735_s5 + $0x1e0] sm:$0xff]  ;;  %v437_v34 = vld [vmem:[%s1735_s5 + $0x158] sm:$0xff] }
  0x10   :  { %959 = vmatmul.msk.f32.vlgmr.msrb.gmra.mxu1 %vm86_vm1, %v1106_v4  ;;  %962 = vmatpush.msk.msrb.mxu3 %vm90_vm0, %v59_v17 }
  0x11   :  { %575 = vmatpush.msrb.mxu2 %v408_v18  ;;  %634 = vmatpush.msrb.mxu1 %v457_v19 }
  0x12   :  { %615 = vmatpush.msra.mxu0 %v440_v20 }
  0x13   :  { %965 = vmatmul.msk.f32.vlgmr.msrb.gmra.mxu0 %vm86_vm1, %v1106_v4  ;;  %576 = vmatpush.msrb.mxu2 %v407_v22 }
  0x14   :  { %779 = vperm.xlu0 %976, %v979_v21   ;;  %635 = vmatpush.msrb.mxu1 %v456_v23 }
  0x15   :  { %577 = vmatpush.msrb.mxu2 %v406_v24  ;;  %616 = vmatpush.msra.mxu0 %v439_v25 }
  0x16   :  { %636 = vmatpush.msrb.mxu1 %v455_v26 }
  0x17   :  { %955 = vmatmul.msk.f32.vlgmr.msra.gmra.mxu3 %vm86_vm1, %v1106_v4  ;;  %578 = vmatpush.msrb.mxu2 %v405_v27 }
  0x18   :  { %967 = vmatmul.msk.f32.vlgmr.msra.gmra.mxu1 %vm86_vm1, %v1106_v4  ;;  %594 = vmatpush.msra.mxu3 %v425_v28 }
  0x19   :  { %24 = vsyncpa [#allocation6], 0  ;;  %579 = vmatpush.msrb.mxu2 %v404_v29  ;;  %v423_v35 = vld [vmem:[%s1735_s5 + $0xe8] sm:$0xff]  ;;  %617 = vmatpush.msra.mxu0 %v438_v32  ;;  %v453_v36 = vld [vmem:[%s1735_s5 + $0x1d8] sm:$0xff]  ;;  %vm378_vm3 = vcmask 1041408   ;;  %vm380_vm6 = vcmask 1045508  }
  0x1a   :  { %595 = vmatpush.msra.mxu3 %v424_v30  ;;  %v402_v37 = vld [vmem:[%s1735_s5 + $0x40] sm:$0xff]  ;;  %637 = vmatpush.msrb.mxu1 %v454_v33  ;;  %v436_v38 = vld [vmem:[%s1735_s5 + $0x150] sm:$0xff]  ;;  %v401_v41 = vld [vmem:[%s1735_s5 + $0x38] sm:$0xff]  ;;  %vm382_vm8 = vcmask 1043456   ;;  %vm571_vm15 = vcmask 195584   ;;  %s939_s2 = sshll.u32 %s1741_s13, 4  ;;  %s940_s2 = int_to_ptr.hbm [resolvable:$true] %s939_s2 }
  0x1b   :  { %580 = vmatpush.msrb.mxu2 %v403_v31  ;;  %v422_v39 = vld [vmem:[%s1735_s5 + $0xe0] sm:$0xff]  ;;  %618 = vmatpush.msra.mxu0 %v437_v34  ;;  %v452_v40 = vld [vmem:[%s1735_s5 + $0x1d0] sm:$0xff]  ;;  %v421_v42 = vld [vmem:[%s1735_s5 + $0xd8] sm:$0xff] }
  0x1c   :  { %596 = vmatpush.msra.mxu3 %v423_v35  ;;  %638 = vmatpush.msrb.mxu1 %v453_v36  ;;  %v435_v43 = vld [vmem:[%s1735_s5 + $0x148] sm:$0xff]  ;;  %v400_v44 = vld [vmem:[%s1735_s5 + $0x30] sm:$0xff]  ;;  %v434_v47 = vld [vmem:[%s1735_s5 + $0x140] sm:$0xff] }
  0x1d   :  { %581 = vmatpush.msrb.mxu2 %v402_v37  ;;  %619 = vmatpush.msra.mxu0 %v436_v38  ;;  %v451_v45 = vld [vmem:[%s1735_s5 + $0x1c8] sm:$0xff]  ;;  %v420_v46 = vld [vmem:[%s1735_s5 + $0xd0] sm:$0xff]  ;;  %v450_v49 = vld [vmem:[%s1735_s5 + $0x1c0] sm:$0xff] }
  0x1e   :  { %597 = vmatpush.msra.mxu3 %v422_v39  ;;  %639 = vmatpush.msrb.mxu1 %v452_v40  ;;  %v399_v48 = vld [vmem:[%s1735_s5 + $0x28] sm:$0xff]  ;;  %v398_v51 = vld [vmem:[%s1735_s5 + $0x20] sm:$0xff]  ;;  %v397_v53 = vld [vmem:[%s1735_s5 + $0x18] sm:$0xff] }
  0x1f   :  { %963 = vmatmul.msk.f32.vlgmr.msrb.gmra.mxu3 %vm86_vm1, %v1106_v4  ;;  %582 = vmatpush.msrb.mxu2 %v401_v41  ;;  %v419_v50 = vld [vmem:[%s1735_s5 + $0xc8] sm:$0xff]  ;;  %v418_v52 = vld [vmem:[%s1735_s5 + $0xc0] sm:$0xff]  ;;  %v417_v54 = vld [vmem:[%s1735_s5 + $0xb8] sm:$0xff]  ;;  %vm801_vm1 = vcmask 818176  }
  0x20   :  { %598 = vmatpush.msra.mxu3 %v421_v42  ;;  %620 = vmatpush.msra.mxu0 %v435_v43  ;;  %v433_v55 = vld [vmem:[%s1735_s5 + $0x138] sm:$0xff]  ;;  %v396_v57 = vld [vmem:[%s1735_s5 + $0x10] sm:$0xff]  ;;  %v395_v61 = vld [vmem:[%s1735_s5 + $0x8] sm:$0xff] }
  0x21   :  { %583 = vmatpush.msrb.mxu2 %v400_v44  ;;  %640 = vmatpush.msrb.mxu1 %v451_v45  ;;  %v449_v56 = vld [vmem:[%s1735_s5 + $0x1b8] sm:$0xff]  ;;  %v416_v58 = vld [vmem:[%s1735_s5 + $0xb0] sm:$0xff]  ;;  %v415_v62 = vld [vmem:[%s1735_s5 + $0xa8] sm:$0xff] }
  0x22   :  { %599 = vmatpush.msra.mxu3 %v420_v46  ;;  %621 = vmatpush.msra.mxu0 %v434_v47  ;;  %v432_v59 = vld [vmem:[%s1735_s5 + $0x130] sm:$0xff]  ;;  %v431_v63 = vld [vmem:[%s1735_s5 + $0x128] sm:$0xff]  ;;  %v394_v1 = vld [vmem:[%s1735_s5] sm:$0xff] }
  0x23   :  { %584 = vmatpush.msrb.mxu2 %v399_v48  ;;  %641 = vmatpush.msrb.mxu1 %v450_v49  ;;  %v448_v60 = vld [vmem:[%s1735_s5 + $0x1b0] sm:$0xff]  ;;  %v447_v0 = vld [vmem:[%s1735_s5 + $0x1a8] sm:$0xff]  ;;  %v414_v2 = vld [vmem:[%s1735_s5 + $0xa0] sm:$0xff] }
  0x24   :  { %600 = vmatpush.msra.mxu3 %v419_v50  ;;  %622 = vmatpush.msra.mxu0 %v433_v55  ;;  %v430_v3 = vld [vmem:[%s1735_s5 + $0x120] sm:$0xff]  ;;  %v473_v5 = vld [vmem:[%s1735_s5 + $0x278] sm:$0xff]  ;;  %v472_v9 = vld [vmem:[%s1735_s5 + $0x270] sm:$0xff] }
  0x25   :  { %585 = vmatpush.msrb.mxu2 %v398_v51  ;;  %642 = vmatpush.msrb.mxu1 %v449_v56  ;;  %v446_v4 = vld [vmem:[%s1735_s5 + $0x1a0] sm:$0xff]  ;;  %v413_v6 = vld [vmem:[%s1735_s5 + $0x98] sm:$0xff]  ;;  %v412_v10 = vld [vmem:[%s1735_s5 + $0x90] sm:$0xff] }
  0x26   :  { %601 = vmatpush.msra.mxu3 %v418_v52  ;;  %623 = vmatpush.msra.mxu0 %v432_v59  ;;  %v429_v7 = vld [vmem:[%s1735_s5 + $0x118] sm:$0xff]  ;;  %v428_v11 = vld [vmem:[%s1735_s5 + $0x110] sm:$0xff]  ;;  %v471_v13 = vld [vmem:[%s1735_s5 + $0x268] sm:$0xff] }
  0x27   :  { %586 = vmatpush.msrb.mxu2 %v397_v53  ;;  %643 = vmatpush.msrb.mxu1 %v448_v60  ;;  %v445_v8 = vld [vmem:[%s1735_s5 + $0x198] sm:$0xff]  ;;  %v444_v12 = vld [vmem:[%s1735_s5 + $0x190] sm:$0xff]  ;;  %v411_v14 = vld [vmem:[%s1735_s5 + $0x88] sm:$0xff] }
  0x28   :  { %602 = vmatpush.msra.mxu3 %v417_v54  ;;  %624 = vmatpush.msra.mxu0 %v431_v63  ;;  %v427_v15 = vld [vmem:[%s1735_s5 + $0x108] sm:$0xff]  ;;  %v470_v17 = vld [vmem:[%s1735_s5 + $0x260] sm:$0xff]  ;;  %v469_v21 = vld [vmem:[%s1735_s5 + $0x258] sm:$0xff] }
  0x29   :  { %587 = vmatpush.msrb.mxu2 %v396_v57  ;;  %644 = vmatpush.msrb.mxu1 %v447_v0  ;;  %v443_v16 = vld [vmem:[%s1735_s5 + $0x188] sm:$0xff]  ;;  %v410_v18 = vld [vmem:[%s1735_s5 + $0x80] sm:$0xff]  ;;  %v489_v22 = vld [vmem:[%s1735_s5 + $0x2f8] sm:$0xff] }
  0x2a   :  { %603 = vmatpush.msra.mxu3 %v416_v58  ;;  %625 = vmatpush.msra.mxu0 %v430_v3  ;;  %v426_v19 = vld [vmem:[%s1735_s5 + $0x100] sm:$0xff]  ;;  %v505_v23 = vld [vmem:[%s1735_s5 + $0x378] sm:$0xff]  ;;  %v468_v25 = vld [vmem:[%s1735_s5 + $0x250] sm:$0xff] }
  0x2b   :  { %588 = vmatpush.msrb.mxu2 %v395_v61  ;;  %645 = vmatpush.msrb.mxu1 %v446_v4  ;;  %v442_v20 = vld [vmem:[%s1735_s5 + $0x180] sm:$0xff]  ;;  %v521_v24 = vld [vmem:[%s1735_s5 + $0x3f8] sm:$0xff]  ;;  %v488_v26 = vld [vmem:[%s1735_s5 + $0x2f0] sm:$0xff] }
  0x2c   :  { %604 = vmatpush.msra.mxu3 %v415_v62  ;;  %626 = vmatpush.msra.mxu0 %v429_v7  ;;  %v504_v27 = vld [vmem:[%s1735_s5 + $0x370] sm:$0xff]  ;;  %v467_v29 = vld [vmem:[%s1735_s5 + $0x248] sm:$0xff]  ;;  %v466_v33 = vld [vmem:[%s1735_s5 + $0x240] sm:$0xff] }
  0x2d   :  { %589 = vmatpush.msrb.mxu2 %v394_v1  ;;  %646 = vmatpush.msrb.mxu1 %v445_v8  ;;  %v520_v28 = vld [vmem:[%s1735_s5 + $0x3f0] sm:$0xff]  ;;  %v487_v30 = vld [vmem:[%s1735_s5 + $0x2e8] sm:$0xff]  ;;  %v486_v34 = vld [vmem:[%s1735_s5 + $0x2e0] sm:$0xff] }
  0x2e   :  { %605 = vmatpush.msra.mxu3 %v414_v2  ;;  %627 = vmatpush.msra.mxu0 %v428_v11  ;;  %v503_v31 = vld [vmem:[%s1735_s5 + $0x368] sm:$0xff]  ;;  %v502_v35 = vld [vmem:[%s1735_s5 + $0x360] sm:$0xff]  ;;  %v465_v37 = vld [vmem:[%s1735_s5 + $0x238] sm:$0xff] }
  0x2f   :  { %654 = vmatpush.msra.mxu2 %v473_v5  ;;  %647 = vmatpush.msrb.mxu1 %v444_v12  ;;  %v519_v32 = vld [vmem:[%s1735_s5 + $0x3e8] sm:$0xff]  ;;  %v518_v36 = vld [vmem:[%s1735_s5 + $0x3e0] sm:$0xff]  ;;  %v485_v38 = vld [vmem:[%s1735_s5 + $0x2d8] sm:$0xff] }
  0x30   :  { %606 = vmatpush.msra.mxu3 %v413_v6  ;;  %628 = vmatpush.msra.mxu0 %v427_v15  ;;  %v501_v39 = vld [vmem:[%s1735_s5 + $0x358] sm:$0xff]  ;;  %v464_v41 = vld [vmem:[%s1735_s5 + $0x230] sm:$0xff]  ;;  %v463_v45 = vld [vmem:[%s1735_s5 + $0x228] sm:$0xff] }
  0x31   :  { %655 = vmatpush.msra.mxu2 %v472_v9  ;;  %648 = vmatpush.msrb.mxu1 %v443_v16  ;;  %v517_v40 = vld [vmem:[%s1735_s5 + $0x3d8] sm:$0xff]  ;;  %v484_v42 = vld [vmem:[%s1735_s5 + $0x2d0] sm:$0xff]  ;;  %v483_v46 = vld [vmem:[%s1735_s5 + $0x2c8] sm:$0xff] }
  0x32   :  { %607 = vmatpush.msra.mxu3 %v412_v10  ;;  %629 = vmatpush.msra.mxu0 %v426_v19  ;;  %v500_v43 = vld [vmem:[%s1735_s5 + $0x350] sm:$0xff]  ;;  %v499_v47 = vld [vmem:[%s1735_s5 + $0x348] sm:$0xff]  ;;  %v462_v49 = vld [vmem:[%s1735_s5 + $0x220] sm:$0xff] }
  0x33   :  { %656 = vmatpush.msra.mxu2 %v471_v13  ;;  %649 = vmatpush.msrb.mxu1 %v442_v20  ;;  %v516_v44 = vld [vmem:[%s1735_s5 + $0x3d0] sm:$0xff]  ;;  %v515_v48 = vld [vmem:[%s1735_s5 + $0x3c8] sm:$0xff]  ;;  %v482_v50 = vld [vmem:[%s1735_s5 + $0x2c0] sm:$0xff] }
  0x34   :  { %608 = vmatpush.msra.mxu3 %v411_v14  ;;  %694 = vmatpush.msrb.mxu0 %v505_v23  ;;  %v498_v51 = vld [vmem:[%s1735_s5 + $0x340] sm:$0xff]  ;;  %v461_v54 = vld [vmem:[%s1735_s5 + $0x218] sm:$0xff]  ;;  %v460_v58 = vld [vmem:[%s1735_s5 + $0x210] sm:$0xff] }
  0x35   :  { %657 = vmatpush.msra.mxu2 %v470_v17  ;;  %714 = vmatpush.msra.mxu1 %v521_v24  ;;  %v514_v53 = vld [vmem:[%s1735_s5 + $0x3c0] sm:$0xff]  ;;  %v481_v55 = vld [vmem:[%s1735_s5 + $0x2b8] sm:$0xff]  ;;  %v480_v59 = vld [vmem:[%s1735_s5 + $0x2b0] sm:$0xff] }
  0x36   :  { %609 = vmatpush.msra.mxu3 %v410_v18  ;;  %695 = vmatpush.msrb.mxu0 %v504_v27  ;;  %v497_v56 = vld [vmem:[%s1735_s5 + $0x338] sm:$0xff]  ;;  %v496_v60 = vld [vmem:[%s1735_s5 + $0x330] sm:$0xff]  ;;  %v459_v63 = vld [vmem:[%s1735_s5 + $0x208] sm:$0xff] }
  0x37   :  { %658 = vmatpush.msra.mxu2 %v469_v21  ;;  %715 = vmatpush.msra.mxu1 %v520_v28  ;;  %v513_v57 = vld [vmem:[%s1735_s5 + $0x3b8] sm:$0xff]  ;;  %v512_v61 = vld [vmem:[%s1735_s5 + $0x3b0] sm:$0xff]  ;;  %v479_v0 = vld [vmem:[%s1735_s5 + $0x2a8] sm:$0xff] }
  0x38   :  { %674 = vmatpush.msrb.mxu3 %v489_v22  ;;  %696 = vmatpush.msrb.mxu0 %v503_v31  ;;  %v495_v1 = vld [vmem:[%s1735_s5 + $0x328] sm:$0xff]  ;;  %v1501_v2 = vld [vmem:[%s1733_s3] sm:$0xff]  ;;  %v477_v10 = vld [vmem:[%s1735_s5 + $0x298] sm:$0xff] }
  0x39   :  { %659 = vmatpush.msra.mxu2 %v468_v25  ;;  %716 = vmatpush.msra.mxu1 %v519_v32  ;;  %v511_v3 = vld [vmem:[%s1735_s5 + $0x3a8] sm:$0xff]  ;;  %v458_v4 = vld [vmem:[%s1735_s5 + $0x200] sm:$0xff]  ;;  %v67_v8 = vperm.slane %v1501_v2, 1  ;;  %v493_v11 = vld [vmem:[%s1735_s5 + $0x318] sm:$0xff]  ;;  %v68_v13 = vperm.slane %v1501_v2, 2  ;;  %v66_v19 = vperm.slane %v1501_v2, 0 }
  0x3a   :  { %675 = vmatpush.msrb.mxu3 %v488_v26  ;;  %697 = vmatpush.msrb.mxu0 %v502_v35  ;;  %v478_v5 = vld [vmem:[%s1735_s5 + $0x2a0] sm:$0xff]  ;;  %v509_v12 = vld [vmem:[%s1735_s5 + $0x398] sm:$0xff]  ;;  %v476_v14 = vld [vmem:[%s1735_s5 + $0x290] sm:$0xff]  ;;  %v71_v32 = vperm.slane %v1501_v2, 5 }
  0x3b   :  { %660 = vmatpush.msra.mxu2 %v467_v29  ;;  %717 = vmatpush.msra.mxu1 %v518_v36  ;;  %v494_v6 = vld [vmem:[%s1735_s5 + $0x320] sm:$0xff]  ;;  %v492_v15 = vld [vmem:[%s1735_s5 + $0x310] sm:$0xff]  ;;  %v475_v21 = vld [vmem:[%s1735_s5 + $0x288] sm:$0xff] }
  0x3c   :  { %676 = vmatpush.msrb.mxu3 %v487_v30  ;;  %698 = vmatpush.msrb.mxu0 %v501_v39  ;;  %v510_v7 = vld [vmem:[%s1735_s5 + $0x3a0] sm:$0xff]  ;;  %v508_v17 = vld [vmem:[%s1735_s5 + $0x390] sm:$0xff]  ;;  %v491_v22 = vld [vmem:[%s1735_s5 + $0x308] sm:$0xff] }
  0x3d   :  { %661 = vmatpush.msra.mxu2 %v466_v33  ;;  %718 = vmatpush.msra.mxu1 %v517_v40  ;;  %v507_v23 = vld [vmem:[%s1735_s5 + $0x388] sm:$0xff]  ;;  %v474_v27 = vld [vmem:[%s1735_s5 + $0x280] sm:$0xff]  ;;  %v69_v33 = vperm.slane %v1501_v2, 3 }
  0x3e   :  { %677 = vmatpush.msrb.mxu3 %v486_v34  ;;  %699 = vmatpush.msrb.mxu0 %v500_v43  ;;  %v63_v25 = vld [vmem:[%s1733_s3 + $0x8] sm:$0x3]  ;;  %v490_v28 = vld [vmem:[%s1735_s5 + $0x300] sm:$0xff] }
  0x3f   :  { %662 = vmatpush.msra.mxu2 %v465_v37  ;;  %719 = vmatpush.msra.mxu1 %v516_v44  ;;  %v506_v29 = vld [vmem:[%s1735_s5 + $0x380] sm:$0xff]  ;;  %v75_v34 = vperm.slane %v63_v25, 1  ;;  %v72_v37 = vperm.slane %v1501_v2, 6 }
  0x40   :  { %678 = vmatpush.msrb.mxu3 %v485_v38  ;;  %700 = vmatpush.msrb.mxu0 %v499_v47  ;;  %v70_v38 = vperm.slane %v1501_v2, 4 }
  0x41   :  { %663 = vmatpush.msra.mxu2 %v464_v41  ;;  %720 = vmatpush.msra.mxu1 %v515_v48 }
  0x42   :  { %679 = vmatpush.msrb.mxu3 %v484_v42  ;;  %701 = vmatpush.msrb.mxu0 %v498_v51 }
  0x43   :  { %664 = vmatpush.msra.mxu2 %v463_v45  ;;  %721 = vmatpush.msra.mxu1 %v514_v53  ;;  %v73_v53 = vperm.slane %v1501_v2, 7 }
  0x44   :  { %680 = vmatpush.msrb.mxu3 %v483_v46  ;;  %702 = vmatpush.msrb.mxu0 %v497_v56  ;;  %v74_v46 = vperm.slane %v63_v25, 0  ;;  %v537_v25 = vld [vmem:[%s1735_s5 + $0x478] sm:$0xff] }
  0x45   :  { %665 = vmatpush.msra.mxu2 %v462_v49  ;;  %722 = vmatpush.msra.mxu1 %v513_v57 }
  0x46   :  { %681 = vmatpush.msrb.mxu3 %v482_v50  ;;  %703 = vmatpush.msrb.mxu0 %v496_v60 }
  0x47   :  { %666 = vmatpush.msra.mxu2 %v461_v54  ;;  %723 = vmatpush.msra.mxu1 %v512_v61  ;;  %v358_v61 = vld [vmem:[%s1730_s0] sm:$0xff] }
  0x48   :  { %682 = vmatpush.msrb.mxu3 %v481_v55  ;;  %704 = vmatpush.msrb.mxu0 %v495_v1 }
  0x49   :  { %667 = vmatpush.msra.mxu2 %v460_v58  ;;  %724 = vmatpush.msra.mxu1 %v511_v3 }
  0x4a   :  { %683 = vmatpush.msrb.mxu3 %v480_v59  ;;  %705 = vmatpush.msrb.mxu0 %v494_v6 }
  0x4b   :  { %668 = vmatpush.msra.mxu2 %v459_v63  ;;  %725 = vmatpush.msra.mxu1 %v510_v7 }
  0x4c   :  { %684 = vmatpush.msrb.mxu3 %v479_v0  ;;  %706 = vmatpush.msrb.mxu0 %v493_v11 }
  0x4d   :  { %669 = vmatpush.msra.mxu2 %v458_v4  ;;  %726 = vmatpush.msra.mxu1 %v509_v12 }
  0x4e   :  { %685 = vmatpush.msrb.mxu3 %v478_v5  ;;  %707 = vmatpush.msrb.mxu0 %v492_v15 }
  0x4f   :  { %727 = vmatpush.msra.mxu1 %v508_v17 }
  0x50   :  { %686 = vmatpush.msrb.mxu3 %v477_v10  ;;  %708 = vmatpush.msrb.mxu0 %v491_v22 }
  0x51   :  { %728 = vmatpush.msra.mxu1 %v507_v23 }
  0x52   :  { %687 = vmatpush.msrb.mxu3 %v476_v14  ;;  %709 = vmatpush.msrb.mxu0 %v490_v28 }
  0x53   :  { %729 = vmatpush.msra.mxu1 %v506_v29 }
  0x54   :  { %688 = vmatpush.msrb.mxu3 %v475_v21  ;;  %v360_v21 = vld [vmem:[%s1730_s0 + $0x10] sm:$0xf] }
  0x56   :  { %689 = vmatpush.msrb.mxu3 %v474_v27 }
  0x7e   :  { %v1548_v24 = vpop.permute.xlu0 %335 }
  0x85   :  { %v158_v52 = vpop.f32.mrf.mxu1 }
  0x86   :  { %v159_v18 = vadd.f32 %v158_v52, %v67_v8 }
  0x88   :  { %v218_v20 = vpop.f32.mrf.mxu0  ;;  %v339_v31 = vmul.f32 %v1548_v24, %v159_v18  ;;  %vm322_vm2 = vcmp.gt.f32.partialorder %v159_v18, 0.0 }
  0x89   :  { %v219_v52 = vadd.f32 %v218_v20, %v70_v38  ;;  %v532_v38 = vld [vmem:[%s1735_s5 + $0x450] sm:$0xff] }
  0x8a   :  { %v138_v62 = vpop.f32.mrf.mxu3  ;;  %v349_v42 = vsel %vm322_vm2, %v159_v18, %v339_v31  ;;  %v359_v18 = vld [vmem:[%s1730_s0 + $0x8] sm:$0xff]  ;;  %v536_v31 = vld [vmem:[%s1735_s5 + $0x470] sm:$0xff] }
  0x8b   :  { %v139_v30 = vadd.f32 %v138_v62, %v66_v19  ;;  %v371_v51 = vrot.slane %v349_v42, 6  ;;  %v342_v3 = vmul.f32 %v1548_v24, %v219_v52  ;;  %vm325_vm12 = vcmp.gt.f32.partialorder %v219_v52, 0.0 }
  0x8d   :  { %v238_v9 = vpop.f32.mrf.mxu1  ;;  %v338_v41 = vmul.f32 %v1548_v24, %v139_v30  ;;  %vm321_vm5 = vcmp.gt.f32.partialorder %v139_v30, 0.0  ;;  %v352_v12 = vsel %vm325_vm12, %v219_v52, %v342_v3  ;;  %v523_v52 = vld [vmem:[%s1735_s5 + $0x408] sm:$0xff] }
  0x8e   :  { %v239_v43 = vadd.f32 %v238_v9, %v71_v32 }
  0x8f   :  { %v258_v40 = vpop.f32.mrf.mxu2  ;;  %v348_v54 = vsel %vm321_vm5, %v139_v30, %v338_v41  ;;  %vm876_vm5 = vcmask 33792  }
  0x90   :  { %v259_v49 = vadd.f32 %v258_v40, %v72_v37  ;;  %v298_v50 = vpop.f32.mrf.mxu0  ;;  %vm326_vm9 = vcmp.gt.f32.partialorder %v239_v43, 0.0  ;;  %v343_v55 = vmul.f32 %v1548_v24, %v239_v43  ;;  %v379_v63 = vsel %vm378_vm3, %v348_v54, %v371_v51  ;;  %v533_v37 = vld [vmem:[%s1735_s5 + $0x458] sm:$0xff]  ;;  %v524_v51 = vld [vmem:[%s1735_s5 + $0x410] sm:$0xff] }
  0x91   :  { %v299_v60 = vadd.f32 %v298_v50, %v74_v46  ;;  %v525_v50 = vld [vmem:[%s1735_s5 + $0x418] sm:$0xff] }
  0x92   :  { %v178_v16 = vpop.f32.mrf.mxu3  ;;  %v344_v62 = vmul.f32 %v1548_v24, %v259_v49  ;;  %vm327_vm11 = vcmp.gt.f32.partialorder %v259_v49, 0.0  ;;  %v353_v2 = vsel %vm326_vm9, %v239_v43, %v343_v55  ;;  %v531_v43 = vld [vmem:[%s1735_s5 + $0x448] sm:$0xff]  ;;  %v796_v55 = vld [vmem:[%s1737_s8 + $0x60] sm:$0xf] }
  0x93   :  { %v179_v26 = vadd.f32 %v178_v16, %v68_v13  ;;  %v346_v8 = vmul.f32 %v1548_v24, %v299_v60  ;;  %vm329_vm13 = vcmp.gt.f32.partialorder %v299_v60, 0.0  ;;  %v374_v11 = vrot.slane %v353_v2, 6  ;;  %v787_v2 = vld [vmem:[%s1737_s8 + $0x18] sm:$0xff] }
  0x94   :  { %v354_v9 = vsel %vm327_vm11, %v259_v49, %v344_v62  ;;  %v526_v49 = vld [vmem:[%s1735_s5 + $0x420] sm:$0xff]  ;;  %v789_v62 = vld [vmem:[%s1737_s8 + $0x28] sm:$0xff] }
  0x95   :  { %v340_v35 = vmul.f32 %v1548_v24, %v179_v26  ;;  %v318_v36 = vpop.f32.mrf.mxu1  ;;  %vm323_vm4 = vcmp.gt.f32.partialorder %v179_v26, 0.0  ;;  %v375_v15 = vrot.slane %v354_v9, 4  ;;  %v356_v16 = vsel %vm329_vm13, %v299_v60, %v346_v8  ;;  %v791_v60 = vld [vmem:[%s1737_s8 + $0x38] sm:$0xff]  ;;  %v981_v9 = vld [vmem:[#allocation4] ss:$0 sm:$0xff] }
  0x96   :  { %v319_v45 = vadd.f32 %v318_v36, %v75_v34  ;;  %v384_v19 = vsel %vm378_vm3, %v352_v12, %v374_v11  ;;  %v535_v34 = vld [vmem:[%s1735_s5 + $0x468] sm:$0xff]  ;;  %v534_v36 = vld [vmem:[%s1735_s5 + $0x460] sm:$0xff]  ;;  %833 = vperm.xlu1 %977, %v981_v9  }
  0x97   :  { %v350_v47 = vsel %vm323_vm4, %v179_v26, %v340_v35  ;;  %v540_v26 = vld [vmem:[%s1735_s5 + $0x490] sm:$0xff]  ;;  %v538_v35 = vld [vmem:[%s1735_s5 + $0x480] sm:$0xff]  ;;  %v843_v11 = vld [vmem:[%s1739_s11 + $0x28] sm:$0xff]  ;;  %vm902_vm4 = vcmask 74792  }
  0x98   :  { %v372_v57 = vrot.slane %v350_v47, 4  ;;  %v347_v58 = vmul.f32 %v1548_v24, %v319_v45  ;;  %vm330_vm10 = vcmp.gt.f32.partialorder %v319_v45, 0.0  ;;  %v528_v47 = vld [vmem:[%s1735_s5 + $0x430] sm:$0xff] }
  0x9a   :  { %v198_v39 = vpop.f32.mrf.mxu3  ;;  %v357_v6 = vsel %vm330_vm10, %v319_v45, %v347_v58  ;;  %v529_v45 = vld [vmem:[%s1735_s5 + $0x438] sm:$0xff]  ;;  %v793_v58 = vld [vmem:[%s1737_s8 + $0x48] sm:$0xff] }
  0x9b   :  { %v199_v44 = vadd.f32 %v198_v39, %v69_v33  ;;  %v377_v13 = vrot.slane %v357_v6, 6  ;;  %v539_v33 = vld [vmem:[%s1735_s5 + $0x488] sm:$0xff]  ;;  %v784_v6 = vld [vmem:[%s1737_s8] sm:$0xff] }
  0x9d   :  { %vm324_vm7 = vcmp.gt.f32.partialorder %v199_v44, 0.0  ;;  %v341_v48 = vmul.f32 %v1548_v24, %v199_v44  ;;  %v387_v22 = vsel %vm378_vm3, %v356_v16, %v377_v13  ;;  %v842_v13 = vld [vmem:[%s1739_s11 + $0x20] sm:$0xff] }
  0x9e   :  { %v393_v29 = vadd.f32 %v387_v22, %v360_v21 }
  0x9f   :  { %v351_v56 = vsel %vm324_vm7, %v199_v44, %v341_v48  ;;  %v530_v44 = vld [vmem:[%s1735_s5 + $0x440] sm:$0xff]  ;;  %v527_v48 = vld [vmem:[%s1735_s5 + $0x428] sm:$0xff] }
  0xa0   :  { %v373_v59 = vrot.slane %v351_v56, 2  ;;  %v795_v56 = vld [vmem:[%s1737_s8 + $0x58] sm:$0xff] }
  0xa2   :  { %v381_v0 = vsel %vm380_vm6, %v372_v57, %v373_v59  ;;  %v278_v1 = vpop.f32.mrf.mxu3  ;;  %v794_v57 = vld [vmem:[%s1737_s8 + $0x50] sm:$0xff]  ;;  %v792_v59 = vld [vmem:[%s1737_s8 + $0x40] sm:$0xff] }
  0xa3   :  { %v383_v4 = vsel %vm382_vm8, %v379_v63, %v381_v0  ;;  %v279_v5 = vadd.f32 %v278_v1, %v73_v53  ;;  %v522_v53 = vld [vmem:[%s1735_s5 + $0x400] sm:$0xff] }
  0xa4   :  { %v391_v7 = vadd.f32 %v383_v4, %v358_v61  ;;  %v790_v61 = vld [vmem:[%s1737_s8 + $0x30] sm:$0xff]  ;;  %v788_v63 = vld [vmem:[%s1737_s8 + $0x20] sm:$0xff] }
  0xa5   :  { %vm328_vm14 = vcmp.gt.f32.partialorder %v279_v5, 0.0  ;;  %v345_v10 = vmul.f32 %v1548_v24, %v279_v5  ;;  %v980_v0 = vld [vmem:[%s1736_s6] ss:$0 sm:$0xff]  ;;  %v786_v4 = vld [vmem:[%s1737_s8 + $0x10] sm:$0xff] }
  0xa6   :  { %548 = vst [vmem:[#allocation1] ss:$4 sm:$0xff] %v391_v7 }
  0xa7   :  { %v355_v14 = vsel %vm328_vm14, %v279_v5, %v345_v10  ;;  %v785_v5 = vld [vmem:[%s1737_s8 + $0x8] sm:$0xff]  ;;  %v844_v10 = vld [vmem:[%s1739_s11 + $0x30] sm:$0x3] }
  0xa8   :  { %v376_v17 = vrot.slane %v355_v14, 2 }
  0xaa   :  { %v385_v20 = vsel %vm380_vm6, %v375_v15, %v376_v17  ;;  %v841_v15 = vld [vmem:[%s1739_s11 + $0x18] sm:$0xff] }
  0xab   :  { %v386_v23 = vsel %vm382_vm8, %v384_v19, %v385_v20 }
  0xac   :  { %v392_v24 = vadd.f32 %v386_v23, %v359_v18 }
  0xad   :  { %v551_v27 = vld.sshfl [vmem:[#allocation1] sm:$0xff pattern:$0x73625140]  ;;  %v552_v28 = vld.sshfl [vmem:[#allocation1 + $0x8] sm:$0xff pattern:$0x73625140] }
  0xae   :  { %550 = vst [vmem:[#allocation1 + $0x20] ss:$4 sm:$0xff] %v392_v24  ;;  %590 = vmatmul.f32.vlgmr.msrb.gmra.mxu2 %v551_v27  ;;  %610 = vmatmul.f32.vlgmr.msra.gmra.mxu3 %v552_v28  ;;  %v553_v30 = vld.sshfl [vmem:[#allocation1 + $0x10] sm:$0xff pattern:$0x73625140] }
  0xaf   :  { %630 = vmatmul.f32.vlgmr.msra.gmra.mxu0 %v553_v30  ;;  %v554_v32 = vld.sshfl [vmem:[#allocation1 + $0x18] sm:$0xff pattern:$0x73625140]  ;;  %734 = vmatpush.msrb.mxu2 %v537_v25  ;;  %v780_v30 = vpop.permute.xlu0 %779 }
  0xb0   :  { %559 = vst [vmem:[#allocation1] ss:$4 sm:$0xff] %v393_v29  ;;  %650 = vmatmul.f32.vlgmr.msrb.gmra.mxu1 %v554_v32  ;;  %767 = vmatpush.msra.mxu3 %v540_v26 }
  0xb1   :  { %735 = vmatpush.msrb.mxu2 %v536_v31  ;;  %969 = vmatpush.msk.msra.mxu0 %vm382_vm8, %v796_v55 }
  0xb2   :  { %768 = vmatpush.msra.mxu3 %v539_v33  ;;  %971 = vmatpush.msk.msrb.mxu1 %vm378_vm3, %v844_v10  ;;  %v840_v33 = vld [vmem:[%s1739_s11 + $0x10] sm:$0xff]  ;;  %vm849_vm3 = vcmask 408576  }
  0xb3   :  { %736 = vmatpush.msrb.mxu2 %v535_v34  ;;  %812 = vmatpush.msra.mxu0 %v795_v56  ;;  %v839_v34 = vld [vmem:[%s1739_s11 + $0x8] sm:$0xff] }
  0xb4   :  { %769 = vmatpush.msra.mxu3 %v538_v35  ;;  %866 = vmatpush.msrb.mxu1 %v843_v11  ;;  %v838_v35 = vld [vmem:[%s1739_s11] sm:$0xff]  ;;  %s1020_s11 = smov [#allocation5]  }
  0xb5   :  { %737 = vmatpush.msrb.mxu2 %v534_v36  ;;  %v555_v39 = vld.sshfl [vmem:[#allocation1 + $0x20] sm:$0xff pattern:$0x73625140]  ;;  %v556_v40 = vld.sshfl [vmem:[#allocation1 + $0x28] sm:$0xff pattern:$0x73625140]  ;;  %813 = vmatpush.msra.mxu0 %v794_v57 }
  0xb6   :  { %670 = vmatmul.f32.vlgmr.msra.gmra.mxu2 %v555_v39  ;;  %690 = vmatmul.f32.vlgmr.msrb.gmra.mxu3 %v556_v40  ;;  %v557_v41 = vld.sshfl [vmem:[#allocation1 + $0x30] sm:$0xff pattern:$0x73625140]  ;;  %v558_v42 = vld.sshfl [vmem:[#allocation1 + $0x38] sm:$0xff pattern:$0x73625140] }
  0xb7   :  { %710 = vmatmul.f32.vlgmr.msrb.gmra.mxu0 %v557_v41  ;;  %738 = vmatpush.msrb.mxu2 %v533_v37  ;;  %v561_v46 = vld.sshfl [vmem:[#allocation1 + $0x8] sm:$0xff pattern:$0x73625140]  ;;  %v560_v54 = vld.sshfl [vmem:[#allocation1] sm:$0xff pattern:$0x73625140] }
  0xb8   :  { %730 = vmatmul.f32.vlgmr.msra.gmra.mxu1 %v558_v42  ;;  %814 = vmatpush.msra.mxu0 %v793_v58  ;;  %v982_v36 = vld [vmem:[%s1738_s9] ss:$0 sm:$0xff]  ;;  %s1019_s9 = smov 123  }
  0xb9   :  { %739 = vmatpush.msrb.mxu2 %v532_v38  ;;  %867 = vmatpush.msrb.mxu1 %v842_v13  ;;  %v983_v42 = vld [vmem:[%s1740_s12] ss:$0 sm:$0xff]  ;;  %s937_s12 = sshll.u32 %s1020_s11, 4  ;;  %s938_s12 = int_to_ptr.vmem [resolvable:$true] %s937_s12 }
  0xba   :  { %815 = vmatpush.msra.mxu0 %v792_v59 }
  0xbb   :  { %740 = vmatpush.msrb.mxu2 %v531_v43  ;;  %868 = vmatpush.msrb.mxu1 %v841_v15 }
  0xbc   :  { %816 = vmatpush.msra.mxu0 %v791_v60 }
  0xbd   :  { %741 = vmatpush.msrb.mxu2 %v530_v44  ;;  %869 = vmatpush.msrb.mxu1 %v840_v33 }
  0xbe   :  { %968 = vmatmul.msk.f32.vlgmr.msra.gmra.mxu3 %vm571_vm15, %v561_v46  ;;  %817 = vmatpush.msra.mxu0 %v790_v61 }
  0xbf   :  { %742 = vmatpush.msrb.mxu2 %v529_v45  ;;  %870 = vmatpush.msrb.mxu1 %v839_v34 }
  0xc0   :  { %818 = vmatpush.msra.mxu0 %v789_v62 }
  0xc1   :  { %743 = vmatpush.msrb.mxu2 %v528_v47  ;;  %871 = vmatpush.msrb.mxu1 %v838_v35 }
  0xc2   :  { %819 = vmatpush.msra.mxu0 %v788_v63 }
  0xc3   :  { %744 = vmatpush.msrb.mxu2 %v527_v48 }
  0xc4   :  { %820 = vmatpush.msra.mxu0 %v787_v2 }
  0xc5   :  { %745 = vmatpush.msrb.mxu2 %v526_v49 }
  0xc6   :  { %821 = vmatpush.msra.mxu0 %v786_v4 }
  0xc7   :  { %746 = vmatpush.msrb.mxu2 %v525_v50 }
  0xc8   :  { %822 = vmatpush.msra.mxu0 %v785_v5 }
  0xc9   :  { %747 = vmatpush.msrb.mxu2 %v524_v51 }
  0xca   :  { %823 = vmatpush.msra.mxu0 %v784_v6 }
  0xcb   :  { %748 = vmatpush.msrb.mxu2 %v523_v52 }
  0xcd   :  { %749 = vmatpush.msrb.mxu2 %v522_v53 }
  0xce   :  { %750 = vmatmul.f32.vlgmr.msrb.gmra.mxu2 %v560_v54 }
 0x108   :  { %v834_v38 = vpop.permute.xlu1 %833 }
 0x12c   :  { %v631_v12 = vpop.f32.mrf.mxu0 }
 0x12d   :  { %v651_v16 = vpop.f32.mrf.mxu1 }
 0x131   :  { %v591_v1 = vpop.f32.mrf.mxu2  ;;  %v611_v7 = vpop.f32.mrf.mxu3 }
 0x132   :  { %v592_v3 = vadd.f32 %v980_v0, %v591_v1 }
 0x134   :  { %v612_v8 = vadd.f32 %v611_v7, %v592_v3  ;;  %v711_v22 = vpop.f32.mrf.mxu0 }
 0x135   :  { %v731_v24 = vpop.f32.mrf.mxu1 }
 0x136   :  { %v632_v14 = vadd.f32 %v631_v12, %v612_v8 }
 0x138   :  { %v652_v17 = vadd.f32 %v651_v16, %v632_v14 }
 0x139   :  { %v671_v18 = vpop.f32.mrf.mxu2  ;;  %v691_v20 = vpop.f32.mrf.mxu3 }
 0x13a   :  { %v672_v19 = vadd.f32 %v671_v18, %v652_v17 }
 0x13c   :  { %v692_v21 = vadd.f32 %v691_v20, %v672_v19 }
 0x13e   :  { %v712_v23 = vadd.f32 %v711_v22, %v692_v21 }
 0x140   :  { %v732_v25 = vadd.f32 %v731_v24, %v712_v23 }
 0x141   :  { %v771_v28 = vpop.f32.mrf.mxu3 }
 0x151   :  { %v751_v26 = vpop.f32.mrf.mxu2 }
 0x152   :  { %v752_v27 = vadd.f32 %v751_v26, %v732_v25 }
 0x154   :  { %v772_v29 = vadd.f32 %v771_v28, %v752_v27 }
 0x156   :  { %vm774_vm0 = vcmp.gt.f32.partialorder %v772_v29, 0.0  ;;  %v782_v31 = vmul.f32 %v780_v30, %v772_v29 }
 0x158   :  { %v783_v32 = vsel %vm774_vm0, %v772_v29, %v782_v31 }
 0x159   :  { %970 = vmatmul.msk.f32.vlgmr.msra.gmra.mxu0 %vm801_vm1, %v783_v32 }
 0x1d6   :  { %v825_v37 = vpop.f32.mrf.mxu0 }
 0x1d7   :  { %v826_v39 = vadd.f32 %v982_v36, %v825_v37 }
 0x1d9   :  { %vm828_vm2 = vcmp.gt.f32.partialorder %v826_v39, 0.0  ;;  %v836_v40 = vmul.f32 %v834_v38, %v826_v39 }
 0x1db   :  { %v837_v41 = vsel %vm828_vm2, %v826_v39, %v836_v40 }
 0x1dc   :  { %972 = vmatmul.msk.f32.vlgmr.msrb.gmra.mxu1 %vm849_vm3, %v837_v41 }
 0x259   :  { %v873_v43 = vpop.f32.mrf.mxu1 }
 0x25a   :  { %v874_v44 = vadd.f32 %v983_v42, %v873_v43 }
 0x25c   :  { %v903_v45 = vsel %vm902_vm4, %v874_v44, -inf  ;;  %v877_v46 = vsel %vm876_vm5, %v874_v44, -inf }
 0x25d   :  { %904 = vmax.xlane.f32.xlu1 %v903_v45  ;;  %878 = vmax.xlane.f32.xlu2 %v877_v46 }
 0x2d0   :  { %v905_v47 = vpop.xlane.xlu1 %904  ;;  %v879_v48 = vpop.xlane.xlu2 %878 }
 0x2d1   :  { %v906_v49 = vsub.f32 %v874_v44, %v905_v47  ;;  %v880_v50 = vsub.f32 %v874_v44, %v879_v48 }
 0x2d3   :  { %v907_v51 = vmul.f32 1.442695, %v906_v49  ;;  %v881_v52 = vmul.f32 1.442695, %v880_v50 }
 0x2d5   :  { %984 = vpow2.f32 %v907_v51 }
 0x2d6   :  { %986 = vpow2.f32 %v881_v52 }
 0x2db   :  { %v985_v53 = vpop.eup %984 }
 0x2dc   :  { %v987_v54 = vpop.eup %986  ;;  %910 = vrot.lane.b32.xlu2 %v985_v53, %s1019_s9 }
 0x2dd   :  { %v883_v55 = vsel %vm876_vm5, %v987_v54, 0.0 }
 0x2de   :  { %884 = vadd.xlane.f32.xlu0 %v883_v55 }
 0x336   :  { %v911_v56 = vpop.permute.xlu2 %910 }
 0x337   :  { %v913_v57 = vsel %vm876_vm5, %v911_v56, 0.0 }
 0x338   :  { %914 = vadd.xlane.f32.xlu2 %v913_v57 }
 0x351   :  { %v885_v58 = vpop.xlane.xlu0 %884 }
 0x352   :  { %988 = vrcp.f32 %v885_v58  ;;  %v897_v62 = vand.u32 2147483648, %v885_v58  ;;  %v895_v0 = vand.u32 2147483647, %v885_v58  ;;  %vm891_vm7 = vweird.f32 %v885_v58 }
 0x354   :  { %v898_v2 = vor.u32 1.1754944e-38, %v897_v62  ;;  %vm896_vm9 = vcmp.eq.f32.partialorder %v895_v0, 8.507059e+37 }
 0x358   :  { %v989_v59 = vpop.eup %988 }
 0x359   :  { %v887_v60 = vmul.f32 %v989_v59, %v885_v58  ;;  %vm892_vm6 = vweird.f32 %v989_v59 }
 0x35a   :  { %vm893_vm8 = vmor %vm891_vm7, %vm892_vm6 }
 0x35b   :  { %v888_v61 = vsub.f32 1.0, %v887_v60 }
 0x35d   :  { %v889_v63 = vmul.f32 %v989_v59, %v888_v61 }
 0x35f   :  { %v890_v1 = vadd.f32 %v989_v59, %v889_v63 }
 0x361   :  { %v894_v3 = vsel %vm893_vm8, %v989_v59, %v890_v1 }
 0x362   :  { %v899_v4 = vsel %vm896_vm9, %v898_v2, %v894_v3 }
 0x363   :  { %v900_v5 = vmul.f32 %v987_v54, %v899_v4 }
 0x365   :  { %901 = vst.msk [vmem:[#allocation5] sm:$0x3] %vm876_vm5, %v900_v5 }
 0x3ab   :  { %v915_v6 = vpop.xlane.xlu2 %914 }
 0x3ac   :  { %990 = vrcp.f32 %v915_v6  ;;  %v927_v10 = vand.u32 2147483648, %v915_v6  ;;  %v925_v12 = vand.u32 2147483647, %v915_v6  ;;  %vm921_vm11 = vweird.f32 %v915_v6 }
 0x3ae   :  { %v928_v14 = vor.u32 1.1754944e-38, %v927_v10  ;;  %vm926_vm13 = vcmp.eq.f32.partialorder %v925_v12, 8.507059e+37 }
 0x3b2   :  { %v991_v7 = vpop.eup %990 }
 0x3b3   :  { %v917_v8 = vmul.f32 %v991_v7, %v915_v6  ;;  %vm922_vm10 = vweird.f32 %v991_v7 }
 0x3b4   :  { %vm923_vm12 = vmor %vm921_vm11, %vm922_vm10 }
 0x3b5   :  { %v918_v9 = vsub.f32 1.0, %v917_v8 }
 0x3b7   :  { %v919_v11 = vmul.f32 %v991_v7, %v918_v9 }
 0x3b9   :  { %v920_v13 = vadd.f32 %v991_v7, %v919_v11 }
 0x3bb   :  { %v924_v15 = vsel %vm923_vm12, %v991_v7, %v920_v13 }
 0x3bc   :  { %v929_v16 = vsel %vm926_vm13, %v928_v14, %v924_v15 }
 0x3bd   :  { %v930_v17 = vmul.f32 %v985_v53, %v929_v16 }
 0x3bf   :  { %931 = vst.msk [vmem:[#allocation5] sm:$0x3] %vm902_vm4, %v930_v17 }
 0x3c0   :  { %942 = dma.vmem_to_hbm [thread:$0]  %s938_s12, 32, %s940_s2, [#allocation6]  }
 0x3c1   :  { %1016 = dma.done.wait [#allocation6], 32  }
 0x3c2   :  { %1017 = vsyncadd [#allocation6], 4294967264 }
 0x3c3   :  { %947 = vsyncpa [#allocation6], 1 }

// kernel: agent_forward.2
= control target key start
LH: loop header
LB: loop body
LE: loop exit
PB: predicated region body
PF: predicated region fallthrough
CT: control target
= control target key end

     0   :  { %s8239_s28 = smov 0   ;;  %s13674_s0 = inlined_call_operand.vmem [shape: f32[2,3,76,228], index: 0, kind: input, shape index: {}]   ;;  %s13675_s1 = inlined_call_operand.vmem [shape: f32[11,228,216], index: 1, kind: input, shape index: {}]   ;;  %s13676_s2 = inlined_call_operand.vmem [shape: f32[1,216], index: 2, kind: input, shape index: {}]   ;;  %s13677_s3 = inlined_call_operand.<no memory space> [shape: f32[1,1], index: 3, kind: input, shape index: {}]   ;;  %s13678_s4 = inlined_call_operand.vmem [shape: f32[3,3,34,192], index: 4, kind: input, shape index: {}]   ;;  %s13679_s5 = inlined_call_operand.vmem [shape: f32[1,192], index: 5, kind: input, shape index: {}]   ;;  %s13680_s7 = inlined_call_operand.vmem [shape: f32[2,6,14,14], index: 7, kind: output, shape index: {}]   ;;  %s13681_s6 = inlined_call_operand.<no memory space> [shape: f32[1,1], index: 6, kind: input, shape index: {}]  }
   0x1   :  { %v12_v0 = vstv %s13677_s3  ;;  %v14_v1 = vstv %s13681_s6 }
   0x2   :  { %13 = vst [vmem:[#allocation2] sm:$0x1] %v12_v0 }
   0x3   :  { %15 = vst [vmem:[#allocation3] sm:$0x1] %v14_v1 }
   0x4 LB: > { %s6847_s29 = sadd.s32 4294967295, %s8179_s28   ;;  %p6851_p0 = scmp.ge.s32.totalorder %s8179_s28, 1  ;;  %s8179_s28 = sphi %s8239_s28, %s21_s28  }
   0x5   : > { %p241_p1 = scmp.lt.s32.totalorder %s8179_s28, 3 }
   0x7   : > { %p242_p2 = pnand %p6851_p0, %p241_p1 }
   0x9   : > { %245 = sbr.rel (%p242_p2) target bundleno = 2803 (0xaf3), region = 48 }
   0xe   : > { %v6902_v2 = vld [vmem:[%s13675_s1 + $0x2c0] sm:$0xff]  ;;  %v6928_v3 = vld [vmem:[%s13675_s1 + $0x390] sm:$0xf]  ;;  %vm465_vm0 = vcmask 1043456   ;;  %v6903_v4 = vld [vmem:[%s13675_s1 + $0x2c8] sm:$0xff]  ;;  %p8323_p3 = scmp.lt.s32.totalorder %s6847_s29, 1 }
   0xf   : > { %472 = vmatpush.msra.mxu0 %v6902_v2  ;;  %6930 = vmatpush.msk.msra.mxu1 %vm465_vm0, %v6928_v3  ;;  %v6929_v5 = vld [vmem:[%s13675_s1 + $0x398] sm:$0xf]  ;;  %v6900_v6 = vld [vmem:[%s13675_s1 + $0x2b0] sm:$0xff]  ;;  %v6926_v7 = vld [vmem:[%s13675_s1 + $0x380] sm:$0xff]  ;;  %vm437_vm1 = vcmask 818176   ;;  %vm1261_vm2 = vcmask 1046528  }
  0x10   : > { %560 = vmatpush.msra.mxu2 %v6903_v4  ;;  %6940 = vmatpush.msk.msra.mxu3 %vm465_vm0, %v6929_v5  ;;  %v6901_v8 = vld [vmem:[%s13675_s1 + $0x2b8] sm:$0xff]  ;;  %v6927_v9 = vld [vmem:[%s13675_s1 + $0x388] sm:$0xff]  ;;  %v6898_v10 = vld [vmem:[%s13675_s1 + $0x2a0] sm:$0xff]  ;;  %s13809_s29 = smov (!%p8323_p3, %s6847_s29), 1  ;;  %vm2322_vm3 = vcmask 1045504   ;;  %vm13710_vm4 = vcmask 1044480  }
  0x11   : > { %473 = vmatpush.msra.mxu0 %v6900_v6  ;;  %520 = vmatpush.msra.mxu1 %v6926_v7  ;;  %v6924_v11 = vld [vmem:[%s13675_s1 + $0x370] sm:$0xff]  ;;  %v6899_v12 = vld [vmem:[%s13675_s1 + $0x2a8] sm:$0xff]  ;;  %v6925_v13 = vld [vmem:[%s13675_s1 + $0x378] sm:$0xff]  ;;  %s8067_s17 = smul.u32 480, %s13809_s29  ;;  %s8182_s30 = smov 124  }
  0x12   : > { %561 = vmatpush.msra.mxu2 %v6901_v8  ;;  %608 = vmatpush.msra.mxu3 %v6927_v9  ;;  %v6896_v14 = vld [vmem:[%s13675_s1 + $0x290] sm:$0xff]  ;;  %v6922_v15 = vld [vmem:[%s13675_s1 + $0x360] sm:$0xff]  ;;  %v6897_v16 = vld [vmem:[%s13675_s1 + $0x298] sm:$0xff]  ;;  %s8183_s6 = smov 126   ;;  %s8184_s8 = smov 127  }
  0x13   : > { %474 = vmatpush.msra.mxu0 %v6898_v10  ;;  %521 = vmatpush.msra.mxu1 %v6924_v11  ;;  %v6923_v17 = vld [vmem:[%s13675_s1 + $0x368] sm:$0xff]  ;;  %v6894_v18 = vld [vmem:[%s13675_s1 + $0x280] sm:$0xff]  ;;  %v6920_v19 = vld [vmem:[%s13675_s1 + $0x350] sm:$0xff]  ;;  %s8412_s15 = scalar_lea.vmem %s13674_s0, %s8067_s17  ;;  %s8185_s9 = smov 125  }
  0x14   : > { %562 = vmatpush.msra.mxu2 %v6899_v12  ;;  %609 = vmatpush.msra.mxu3 %v6925_v13  ;;  %v6895_v20 = vld [vmem:[%s13675_s1 + $0x288] sm:$0xff]  ;;  %v6921_v21 = vld [vmem:[%s13675_s1 + $0x358] sm:$0xff]  ;;  %v6892_v22 = vld [vmem:[%s13675_s1 + $0x270] sm:$0xff]  ;;  %s8188_s10 = smov 56   ;;  %s8189_s11 = smov 112  }
  0x15   : > { %475 = vmatpush.msra.mxu0 %v6896_v14  ;;  %522 = vmatpush.msra.mxu1 %v6922_v15  ;;  %v6918_v23 = vld [vmem:[%s13675_s1 + $0x340] sm:$0xff]  ;;  %v6893_v24 = vld [vmem:[%s13675_s1 + $0x278] sm:$0xff]  ;;  %v6919_v25 = vld [vmem:[%s13675_s1 + $0x348] sm:$0xff]  ;;  %s8190_s24 = smov 96   ;;  %s8191_s25 = smov 64  }
  0x16   : > { %563 = vmatpush.msra.mxu2 %v6897_v16  ;;  %610 = vmatpush.msra.mxu3 %v6923_v17  ;;  %v6890_v26 = vld [vmem:[%s13675_s1 + $0x260] sm:$0xff]  ;;  %v6916_v27 = vld [vmem:[%s13675_s1 + $0x330] sm:$0xff]  ;;  %v6891_v28 = vld [vmem:[%s13675_s1 + $0x268] sm:$0xff]  ;;  %s8192_s26 = smov 32  }
  0x17   : > { %476 = vmatpush.msra.mxu0 %v6894_v18  ;;  %523 = vmatpush.msra.mxu1 %v6920_v19  ;;  %v6917_v29 = vld [vmem:[%s13675_s1 + $0x338] sm:$0xff]  ;;  %v6888_v30 = vld [vmem:[%s13675_s1 + $0x250] sm:$0xff]  ;;  %v6914_v31 = vld [vmem:[%s13675_s1 + $0x320] sm:$0xff] }
  0x18   : > { %564 = vmatpush.msra.mxu2 %v6895_v20  ;;  %611 = vmatpush.msra.mxu3 %v6921_v21  ;;  %v6889_v32 = vld [vmem:[%s13675_s1 + $0x258] sm:$0xff]  ;;  %v6915_v33 = vld [vmem:[%s13675_s1 + $0x328] sm:$0xff]  ;;  %v6886_v34 = vld [vmem:[%s13675_s1 + $0x240] sm:$0xff] }
  0x19   : > { %477 = vmatpush.msra.mxu0 %v6892_v22  ;;  %524 = vmatpush.msra.mxu1 %v6918_v23  ;;  %v6912_v35 = vld [vmem:[%s13675_s1 + $0x310] sm:$0xff]  ;;  %v6887_v36 = vld [vmem:[%s13675_s1 + $0x248] sm:$0xff]  ;;  %v6913_v37 = vld [vmem:[%s13675_s1 + $0x318] sm:$0xff] }
  0x1a   : > { %565 = vmatpush.msra.mxu2 %v6893_v24  ;;  %612 = vmatpush.msra.mxu3 %v6919_v25  ;;  %v6884_v38 = vld [vmem:[%s13675_s1 + $0x230] sm:$0xff]  ;;  %v6910_v39 = vld [vmem:[%s13675_s1 + $0x300] sm:$0xff]  ;;  %v6885_v40 = vld [vmem:[%s13675_s1 + $0x238] sm:$0xff] }
  0x1b   : > { %478 = vmatpush.msra.mxu0 %v6890_v26  ;;  %525 = vmatpush.msra.mxu1 %v6916_v27  ;;  %v6911_v41 = vld [vmem:[%s13675_s1 + $0x308] sm:$0xff]  ;;  %v6882_v42 = vld [vmem:[%s13675_s1 + $0x220] sm:$0xff]  ;;  %v6908_v43 = vld [vmem:[%s13675_s1 + $0x2f0] sm:$0xff] }
  0x1c   : > { %566 = vmatpush.msra.mxu2 %v6891_v28  ;;  %613 = vmatpush.msra.mxu3 %v6917_v29  ;;  %v6883_v44 = vld [vmem:[%s13675_s1 + $0x228] sm:$0xff]  ;;  %v6909_v45 = vld [vmem:[%s13675_s1 + $0x2f8] sm:$0xff]  ;;  %v6880_v46 = vld [vmem:[%s13675_s1 + $0x210] sm:$0xff] }
  0x1d   : > { %479 = vmatpush.msra.mxu0 %v6888_v30  ;;  %526 = vmatpush.msra.mxu1 %v6914_v31  ;;  %v6906_v47 = vld [vmem:[%s13675_s1 + $0x2e0] sm:$0xff]  ;;  %v6881_v48 = vld [vmem:[%s13675_s1 + $0x218] sm:$0xff]  ;;  %v6907_v49 = vld [vmem:[%s13675_s1 + $0x2e8] sm:$0xff] }
  0x1e   : > { %567 = vmatpush.msra.mxu2 %v6889_v32  ;;  %614 = vmatpush.msra.mxu3 %v6915_v33  ;;  %v6878_v50 = vld [vmem:[%s13675_s1 + $0x200] sm:$0xff]  ;;  %v6904_v51 = vld [vmem:[%s13675_s1 + $0x2d0] sm:$0xff]  ;;  %v6879_v52 = vld [vmem:[%s13675_s1 + $0x208] sm:$0xff] }
  0x1f   : > { %480 = vmatpush.msra.mxu0 %v6886_v34  ;;  %527 = vmatpush.msra.mxu1 %v6912_v35  ;;  %v6905_v53 = vld [vmem:[%s13675_s1 + $0x2d8] sm:$0xff]  ;;  %v6855_v54 = vld [vmem:[%s8412_s15 + $0xa8] sm:$0xff]  ;;  %v6876_v55 = vld [vmem:[%s13675_s1 + $0x1f0] sm:$0xff] }
  0x20   : > { %568 = vmatpush.msra.mxu2 %v6887_v36  ;;  %615 = vmatpush.msra.mxu3 %v6913_v37  ;;  %v6877_v56 = vld [vmem:[%s13675_s1 + $0x1f8] sm:$0xff]  ;;  %v6874_v57 = vld [vmem:[%s13675_s1 + $0x1e0] sm:$0xff]  ;;  %v6875_v58 = vld [vmem:[%s13675_s1 + $0x1e8] sm:$0xff] }
  0x21   : > { %481 = vmatpush.msra.mxu0 %v6884_v38  ;;  %528 = vmatpush.msra.mxu1 %v6910_v39  ;;  %v6872_v59 = vld [vmem:[%s13675_s1 + $0x1d0] sm:$0xff]  ;;  %v6873_v60 = vld [vmem:[%s13675_s1 + $0x1d8] sm:$0xff]  ;;  %v6854_v61 = vld [vmem:[%s8412_s15 + $0xa0] sm:$0xff] }
  0x22   : > { %569 = vmatpush.msra.mxu2 %v6885_v40  ;;  %616 = vmatpush.msra.mxu3 %v6911_v41  ;;  %v6857_v62 = vld [vmem:[%s8412_s15 + $0xb8] sm:$0xff]  ;;  %v331_v63 = vld [vmem:[%s13675_s1 + $0xf0] sm:$0xff]  ;;  %v329_v0 = vld [vmem:[%s13675_s1 + $0xe0] sm:$0xff] }
  0x23   : > { %482 = vmatpush.msra.mxu0 %v6882_v42  ;;  %529 = vmatpush.msra.mxu1 %v6908_v43  ;;  %v327_v1 = vld [vmem:[%s13675_s1 + $0xd0] sm:$0xff]  ;;  %v6859_v3 = vld [vmem:[%s8412_s15 + $0xc8] sm:$0xff]  ;;  %v325_v4 = vld [vmem:[%s13675_s1 + $0xc0] sm:$0xff] }
  0x24   : > { %570 = vmatpush.msra.mxu2 %v6883_v44  ;;  %617 = vmatpush.msra.mxu3 %v6909_v45  ;;  %v6856_v2 = vld [vmem:[%s8412_s15 + $0xb0] sm:$0xff]  ;;  %v357_v5 = vld [vmem:[%s13675_s1 + $0x1c0] sm:$0xf]  ;;  %v332_v6 = vld [vmem:[%s13675_s1 + $0xf8] sm:$0xff] }
  0x25   : > { %483 = vmatpush.msra.mxu0 %v6880_v46  ;;  %530 = vmatpush.msra.mxu1 %v6906_v47  ;;  %v323_v7 = vld [vmem:[%s13675_s1 + $0xb0] sm:$0xff]  ;;  %v330_v9 = vld [vmem:[%s13675_s1 + $0xe8] sm:$0xff]  ;;  %v321_v10 = vld [vmem:[%s13675_s1 + $0xa0] sm:$0xff] }
  0x26   : > { %571 = vmatpush.msra.mxu2 %v6881_v48  ;;  %618 = vmatpush.msra.mxu3 %v6907_v49  ;;  %v355_v8 = vld [vmem:[%s13675_s1 + $0x1b0] sm:$0xff]  ;;  %v353_v11 = vld [vmem:[%s13675_s1 + $0x1a0] sm:$0xff]  ;;  %v328_v12 = vld [vmem:[%s13675_s1 + $0xd8] sm:$0xff] }
  0x27   : > { %484 = vmatpush.msra.mxu0 %v6878_v50  ;;  %531 = vmatpush.msra.mxu1 %v6904_v51  ;;  %v319_v13 = vld [vmem:[%s13675_s1 + $0x90] sm:$0xff]  ;;  %v6858_v14 = vld [vmem:[%s8412_s15 + $0xc0] sm:$0xff]  ;;  %v358_v15 = vld [vmem:[%s13675_s1 + $0x1c8] sm:$0xf] }
  0x28   : > { %572 = vmatpush.msra.mxu2 %v6879_v52  ;;  %619 = vmatpush.msra.mxu3 %v6905_v53  ;;  %v351_v16 = vld [vmem:[%s13675_s1 + $0x190] sm:$0xff]  ;;  %v326_v17 = vld [vmem:[%s13675_s1 + $0xc8] sm:$0xff]  ;;  %v6861_v18 = vld [vmem:[%s8412_s15 + $0xd8] sm:$0xff] }
  0x29   : > { %6931 = vmatmul.msk.f32.vlgmr.msra.gmra.mxu1 %vm437_vm1, %v6855_v54  ;;  %6941 = vmatmul.msk.f32.vlgmr.msra.gmra.mxu3 %vm437_vm1, %v6855_v54  ;;  %v317_v19 = vld [vmem:[%s13675_s1 + $0x80] sm:$0xff]  ;;  %v324_v21 = vld [vmem:[%s13675_s1 + $0xb8] sm:$0xff]  ;;  %v315_v23 = vld [vmem:[%s13675_s1 + $0x70] sm:$0xff] }
  0x2a   : > { %485 = vmatpush.msra.mxu0 %v6876_v55  ;;  %573 = vmatpush.msra.mxu2 %v6877_v56  ;;  %v349_v20 = vld [vmem:[%s13675_s1 + $0x180] sm:$0xff]  ;;  %v356_v22 = vld [vmem:[%s13675_s1 + $0x1b8] sm:$0xff]  ;;  %v347_v24 = vld [vmem:[%s13675_s1 + $0x170] sm:$0xff] }
  0x2b   : > { %681 = vmatpush.msrb.mxu1 %v331_v63  ;;  %6950 = vmatpush.msk.msrb.mxu3 %vm465_vm0, %v357_v5  ;;  %v322_v25 = vld [vmem:[%s13675_s1 + $0xa8] sm:$0xff]  ;;  %v313_v27 = vld [vmem:[%s13675_s1 + $0x60] sm:$0xff]  ;;  %v6860_v29 = vld [vmem:[%s8412_s15 + $0xd0] sm:$0xff] }
  0x2c   : > { %486 = vmatpush.msra.mxu0 %v6874_v57  ;;  %574 = vmatpush.msra.mxu2 %v6875_v58  ;;  %v354_v26 = vld [vmem:[%s13675_s1 + $0x1a8] sm:$0xff]  ;;  %v345_v28 = vld [vmem:[%s13675_s1 + $0x160] sm:$0xff]  ;;  %v320_v30 = vld [vmem:[%s13675_s1 + $0x98] sm:$0xff] }
  0x2d   : > { %682 = vmatpush.msrb.mxu1 %v329_v0  ;;  %729 = vmatpush.msrb.mxu3 %v355_v8  ;;  %v352_v31 = vld [vmem:[%s13675_s1 + $0x198] sm:$0xff]  ;;  %v6863_v32 = vld [vmem:[%s8412_s15 + $0xe8] sm:$0xff]  ;;  %v311_v33 = vld [vmem:[%s13675_s1 + $0x50] sm:$0xff] }
  0x2e   : > { %487 = vmatpush.msra.mxu0 %v6872_v59  ;;  %575 = vmatpush.msra.mxu2 %v6873_v60  ;;  %v343_v34 = vld [vmem:[%s13675_s1 + $0x150] sm:$0xff]  ;;  %v318_v35 = vld [vmem:[%s13675_s1 + $0x88] sm:$0xff]  ;;  %v309_v37 = vld [vmem:[%s13675_s1 + $0x40] sm:$0xff] }
  0x2f   : > { %488 = vmatmul.f32.vlgmr.msra.gmra.mxu0 %v6854_v61  ;;  %576 = vmatmul.f32.vlgmr.msra.gmra.mxu2 %v6854_v61  ;;  %v350_v36 = vld [vmem:[%s13675_s1 + $0x188] sm:$0xff]  ;;  %v341_v38 = vld [vmem:[%s13675_s1 + $0x140] sm:$0xff]  ;;  %v316_v39 = vld [vmem:[%s13675_s1 + $0x78] sm:$0xff] }
  0x30   : > { %683 = vmatpush.msrb.mxu1 %v327_v1  ;;  %769 = vmatpush.msrb.mxu0 %v332_v6  ;;  %v348_v40 = vld [vmem:[%s13675_s1 + $0x178] sm:$0xff]  ;;  %v307_v41 = vld [vmem:[%s13675_s1 + $0x30] sm:$0xff]  ;;  %v6862_v43 = vld [vmem:[%s8412_s15 + $0xe0] sm:$0xff] }
  0x31   : > { %6932 = vmatmul.msk.f32.gmra.mxu1 %vm437_vm1, %v6857_v62  ;;  %6942 = vmatmul.msk.f32.gmra.mxu3 %vm437_vm1, %v6857_v62  ;;  %v339_v42 = vld [vmem:[%s13675_s1 + $0x130] sm:$0xff]  ;;  %v314_v44 = vld [vmem:[%s13675_s1 + $0x68] sm:$0xff]  ;;  %v6865_v46 = vld [vmem:[%s8412_s15 + $0xf8] sm:$0xff] }
  0x32   : > { %684 = vmatpush.msrb.mxu1 %v325_v4  ;;  %770 = vmatpush.msrb.mxu0 %v330_v9  ;;  %v346_v45 = vld [vmem:[%s13675_s1 + $0x168] sm:$0xff]  ;;  %v305_v47 = vld [vmem:[%s13675_s1 + $0x20] sm:$0xff]  ;;  %v312_v49 = vld [vmem:[%s13675_s1 + $0x58] sm:$0xff] }
  0x33   : > { %730 = vmatpush.msrb.mxu3 %v353_v11  ;;  %6960 = vmatpush.msk.msrb.mxu2 %vm465_vm0, %v358_v15  ;;  %v337_v48 = vld [vmem:[%s13675_s1 + $0x120] sm:$0xff]  ;;  %v344_v50 = vld [vmem:[%s13675_s1 + $0x158] sm:$0xff]  ;;  %v303_v51 = vld [vmem:[%s13675_s1 + $0x10] sm:$0xff] }
  0x34   : > { %685 = vmatpush.msrb.mxu1 %v323_v7  ;;  %771 = vmatpush.msrb.mxu0 %v328_v12  ;;  %v335_v52 = vld [vmem:[%s13675_s1 + $0x110] sm:$0xff]  ;;  %v310_v53 = vld [vmem:[%s13675_s1 + $0x48] sm:$0xff]  ;;  %v301_v55 = vld [vmem:[%s13675_s1] sm:$0xff] }
  0x35   : > { %731 = vmatpush.msrb.mxu3 %v351_v16  ;;  %817 = vmatpush.msrb.mxu2 %v356_v22  ;;  %v342_v54 = vld [vmem:[%s13675_s1 + $0x148] sm:$0xff]  ;;  %v333_v56 = vld [vmem:[%s13675_s1 + $0x100] sm:$0xff]  ;;  %v6864_v57 = vld [vmem:[%s8412_s15 + $0xf0] sm:$0xff] }
  0x36   : > { %686 = vmatpush.msrb.mxu1 %v321_v10  ;;  %772 = vmatpush.msrb.mxu0 %v326_v17  ;;  %v308_v58 = vld [vmem:[%s13675_s1 + $0x38] sm:$0xff]  ;;  %v6867_v60 = vld [vmem:[%s8412_s15 + $0x108] sm:$0xff]  ;;  %v6868_v5 = vld [vmem:[%s8412_s15 + $0x110] sm:$0xff] }
  0x37   : > { %491 = vmatmul.f32.gmra.mxu0 %v6856_v2  ;;  %579 = vmatmul.f32.gmra.mxu2 %v6856_v2  ;;  %v340_v59 = vld [vmem:[%s13675_s1 + $0x138] sm:$0xff]  ;;  %v306_v61 = vld [vmem:[%s13675_s1 + $0x28] sm:$0xff]  ;;  %v6870_v7 = vld [vmem:[%s8412_s15 + $0x120] sm:$0xff] }
  0x38   : > { %687 = vmatpush.msrb.mxu1 %v319_v13  ;;  %732 = vmatpush.msrb.mxu3 %v349_v20  ;;  %v338_v62 = vld [vmem:[%s13675_s1 + $0x128] sm:$0xff]  ;;  %v304_v63 = vld [vmem:[%s13675_s1 + $0x18] sm:$0xff]  ;;  %v283_v8 = vld [vmem:[%s8412_s15] sm:$0xff] }
  0x39   : > { %6933 = vmatmul.msk.f32.gmra.mxu1 %vm437_vm1, %v6859_v3  ;;  %6943 = vmatmul.msk.f32.gmra.mxu3 %vm437_vm1, %v6859_v3  ;;  %v336_v0 = vld [vmem:[%s13675_s1 + $0x118] sm:$0xff]  ;;  %v302_v1 = vld [vmem:[%s13675_s1 + $0x8] sm:$0xff]  ;;  %v6866_v3 = vld [vmem:[%s8412_s15 + $0x100] sm:$0xff] }
  0x3a   : > { %688 = vmatpush.msrb.mxu1 %v317_v19  ;;  %773 = vmatpush.msrb.mxu0 %v324_v21  ;;  %v334_v2 = vld [vmem:[%s13675_s1 + $0x108] sm:$0xff]  ;;  %v6869_v4 = vld [vmem:[%s8412_s15 + $0x118] sm:$0xff]  ;;  %v8657_v10 = vld [vmem:[%s8412_s15 + $0x10] sm:$0xff] }
  0x3b   : > { %733 = vmatpush.msrb.mxu3 %v347_v24  ;;  %818 = vmatpush.msrb.mxu2 %v354_v26  ;;  %v6871_v6 = vld [vmem:[%s8412_s15 + $0x128] sm:$0xff]  ;;  %v8660_v11 = vld [vmem:[%s8412_s15 + $0x18] sm:$0xff]  ;;  %v8667_v12 = vld [vmem:[%s8412_s15 + $0x20] sm:$0xff] }
  0x3c   : > { %689 = vmatpush.msrb.mxu1 %v315_v23  ;;  %774 = vmatpush.msrb.mxu0 %v322_v25  ;;  %v284_v9 = vld [vmem:[%s8412_s15 + $0x8] sm:$0xff]  ;;  %v7044_v15 = vld [vmem:[%s13675_s1 + $0x560] sm:$0xf]  ;;  %v7042_v17 = vld [vmem:[%s13675_s1 + $0x550] sm:$0xff] }
  0x3d   : > { %734 = vmatpush.msrb.mxu3 %v345_v28  ;;  %819 = vmatpush.msrb.mxu2 %v352_v31  ;;  %v8670_v13 = vld [vmem:[%s8412_s15 + $0x28] sm:$0xff]  ;;  %v7016_v16 = vld [vmem:[%s13675_s1 + $0x480] sm:$0xff]  ;;  %v7038_v21 = vld [vmem:[%s13675_s1 + $0x530] sm:$0xff] }
  0x3e   : > { %690 = vmatpush.msrb.mxu1 %v313_v27  ;;  %775 = vmatpush.msrb.mxu0 %v320_v30  ;;  %v7040_v19 = vld [vmem:[%s13675_s1 + $0x540] sm:$0xff]  ;;  %v7019_v22 = vld [vmem:[%s13675_s1 + $0x498] sm:$0xff]  ;;  %v8707_v23 = vld [vmem:[%s8412_s15 + $0x30] sm:$0xff] }
  0x3f   : > { %494 = vmatmul.f32.gmra.mxu0 %v6858_v14  ;;  %582 = vmatmul.f32.gmra.mxu2 %v6858_v14  ;;  %v7018_v14 = vld [vmem:[%s13675_s1 + $0x490] sm:$0xff]  ;;  %v7012_v20 = vld [vmem:[%s13675_s1 + $0x460] sm:$0xff]  ;;  %v8710_v24 = vld [vmem:[%s8412_s15 + $0x38] sm:$0xff] }
  0x40   : > { %691 = vmatpush.msrb.mxu1 %v311_v33  ;;  %735 = vmatpush.msrb.mxu3 %v343_v34  ;;  %v7045_v25 = vld [vmem:[%s13675_s1 + $0x568] sm:$0xf]  ;;  %v7010_v26 = vld [vmem:[%s13675_s1 + $0x450] sm:$0xff]  ;;  %v7036_v27 = vld [vmem:[%s13675_s1 + $0x520] sm:$0xff] }
  0x41   : > { %6934 = vmatmul.msk.f32.gmra.mxu1 %vm437_vm1, %v6861_v18  ;;  %6944 = vmatmul.msk.f32.gmra.mxu3 %vm437_vm1, %v6861_v18  ;;  %v7014_v18 = vld [vmem:[%s13675_s1 + $0x470] sm:$0xff]  ;;  %v7017_v28 = vld [vmem:[%s13675_s1 + $0x488] sm:$0xff]  ;;  %v7008_v30 = vld [vmem:[%s13675_s1 + $0x440] sm:$0xff] }
  0x42   : > { %776 = vmatpush.msrb.mxu0 %v318_v35  ;;  %820 = vmatpush.msrb.mxu2 %v350_v36  ;;  %v7034_v31 = vld [vmem:[%s13675_s1 + $0x510] sm:$0xff]  ;;  %v7041_v33 = vld [vmem:[%s13675_s1 + $0x548] sm:$0xff]  ;;  %v7032_v35 = vld [vmem:[%s13675_s1 + $0x500] sm:$0xff] }
  0x43   : > { %692 = vmatpush.msrb.mxu1 %v309_v37  ;;  %736 = vmatpush.msrb.mxu3 %v341_v38  ;;  %v7006_v34 = vld [vmem:[%s13675_s1 + $0x430] sm:$0xff]  ;;  %v7013_v36 = vld [vmem:[%s13675_s1 + $0x468] sm:$0xff]  ;;  %v7039_v37 = vld [vmem:[%s13675_s1 + $0x538] sm:$0xff] }
  0x44   : > { %777 = vmatpush.msrb.mxu0 %v316_v39  ;;  %821 = vmatpush.msrb.mxu2 %v348_v40  ;;  %v8759_v38 = vld [vmem:[%s8412_s15 + $0x40] sm:$0xff]  ;;  %v8762_v39 = vld [vmem:[%s8412_s15 + $0x48] sm:$0xff] }
  0x45   : > { %693 = vmatpush.msrb.mxu1 %v307_v41  ;;  %737 = vmatpush.msrb.mxu3 %v339_v42  ;;  %v7004_v40 = vld [vmem:[%s13675_s1 + $0x420] sm:$0xff]  ;;  %v7030_v41 = vld [vmem:[%s13675_s1 + $0x4f0] sm:$0xff]  ;;  %v7011_v42 = vld [vmem:[%s13675_s1 + $0x458] sm:$0xff] }
  0x46   : > { %778 = vmatpush.msrb.mxu0 %v314_v44  ;;  %822 = vmatpush.msrb.mxu2 %v346_v45  ;;  %v7002_v44 = vld [vmem:[%s13675_s1 + $0x410] sm:$0xff]  ;;  %v7028_v45 = vld [vmem:[%s13675_s1 + $0x4e0] sm:$0xff] }
  0x47   : > { %497 = vmatmul.f32.gmra.mxu0 %v6860_v29  ;;  %585 = vmatmul.f32.gmra.mxu2 %v6860_v29  ;;  %v7043_v29 = vld [vmem:[%s13675_s1 + $0x558] sm:$0xff] }
  0x48   : > { %694 = vmatpush.msrb.mxu1 %v305_v47  ;;  %738 = vmatpush.msrb.mxu3 %v337_v48  ;;  %v7035_v47 = vld [vmem:[%s13675_s1 + $0x518] sm:$0xff]  ;;  %v7000_v48 = vld [vmem:[%s13675_s1 + $0x400] sm:$0xff] }
  0x49   : > { %6935 = vmatmul.msk.f32.gmra.mxu1 %vm437_vm1, %v6863_v32  ;;  %6945 = vmatmul.msk.f32.gmra.mxu3 %vm437_vm1, %v6863_v32  ;;  %v7015_v32 = vld [vmem:[%s13675_s1 + $0x478] sm:$0xff] }
  0x4a   : > { %779 = vmatpush.msrb.mxu0 %v312_v49  ;;  %823 = vmatpush.msrb.mxu2 %v344_v50  ;;  %v7026_v49 = vld [vmem:[%s13675_s1 + $0x4d0] sm:$0xff]  ;;  %v7007_v50 = vld [vmem:[%s13675_s1 + $0x438] sm:$0xff] }
  0x4b   : > { %695 = vmatpush.msrb.mxu1 %v303_v51  ;;  %739 = vmatpush.msrb.mxu3 %v335_v52  ;;  %v7033_v51 = vld [vmem:[%s13675_s1 + $0x508] sm:$0xff]  ;;  %v8807_v52 = vld [vmem:[%s8412_s15 + $0x50] sm:$0xff] }
  0x4c   : > { %780 = vmatpush.msrb.mxu0 %v310_v53  ;;  %824 = vmatpush.msrb.mxu2 %v342_v54  ;;  %v8810_v53 = vld [vmem:[%s8412_s15 + $0x58] sm:$0xff]  ;;  %v6998_v54 = vld [vmem:[%s13675_s1 + $0x3f0] sm:$0xff] }
  0x4d   : > { %696 = vmatpush.msrb.mxu1 %v301_v55  ;;  %740 = vmatpush.msrb.mxu3 %v333_v56  ;;  %v7024_v55 = vld [vmem:[%s13675_s1 + $0x4c0] sm:$0xff]  ;;  %v7005_v56 = vld [vmem:[%s13675_s1 + $0x428] sm:$0xff] }
  0x4e   : > { %781 = vmatpush.msrb.mxu0 %v308_v58  ;;  %825 = vmatpush.msrb.mxu2 %v340_v59  ;;  %v6996_v58 = vld [vmem:[%s13675_s1 + $0x3e0] sm:$0xff]  ;;  %v7022_v59 = vld [vmem:[%s13675_s1 + $0x4b0] sm:$0xff] }
  0x4f   : > { %500 = vmatmul.f32.gmra.mxu0 %v6862_v43  ;;  %588 = vmatmul.f32.gmra.mxu2 %v6862_v43  ;;  %v7037_v43 = vld [vmem:[%s13675_s1 + $0x528] sm:$0xff] }
  0x50   : > { %782 = vmatpush.msrb.mxu0 %v306_v61  ;;  %826 = vmatpush.msrb.mxu2 %v338_v62  ;;  %v7029_v61 = vld [vmem:[%s13675_s1 + $0x4e8] sm:$0xff]  ;;  %v6994_v62 = vld [vmem:[%s13675_s1 + $0x3d0] sm:$0xff] }
  0x51   : > { %6936 = vmatmul.msk.f32.gmra.mxu1 %vm437_vm1, %v6865_v46  ;;  %6946 = vmatmul.msk.f32.gmra.mxu3 %vm437_vm1, %v6865_v46  ;;  %v7009_v46 = vld [vmem:[%s13675_s1 + $0x448] sm:$0xff] }
  0x52   : > { %783 = vmatpush.msrb.mxu0 %v304_v63  ;;  %827 = vmatpush.msrb.mxu2 %v336_v0  ;;  %v7020_v63 = vld [vmem:[%s13675_s1 + $0x4a0] sm:$0xff]  ;;  %v7001_v0 = vld [vmem:[%s13675_s1 + $0x408] sm:$0xff] }
  0x53   : > { %968 = vmatpush.msra.mxu1 %v7018_v14  ;;  %7046 = vmatpush.msk.msra.mxu3 %vm465_vm0, %v7044_v15  ;;  %v6988_v14 = vld [vmem:[%s13675_s1 + $0x3a0] sm:$0xff]  ;;  %v6995_v15 = vld [vmem:[%s13675_s1 + $0x3d8] sm:$0xff] }
  0x54   : > { %784 = vmatpush.msrb.mxu0 %v302_v1  ;;  %828 = vmatpush.msrb.mxu2 %v334_v2  ;;  %v7027_v1 = vld [vmem:[%s13675_s1 + $0x4d8] sm:$0xff]  ;;  %v8855_v2 = vld [vmem:[%s8412_s15 + $0x60] sm:$0xff] }
  0x55   : > { %969 = vmatpush.msra.mxu1 %v7016_v16  ;;  %1016 = vmatpush.msra.mxu3 %v7042_v17  ;;  %v7021_v16 = vld [vmem:[%s13675_s1 + $0x4a8] sm:$0xff] }
  0x56   : > { %1056 = vmatpush.msra.mxu0 %v7019_v22  ;;  %7056 = vmatpush.msk.msra.mxu2 %vm465_vm0, %v7045_v25  ;;  %v6993_v17 = vld [vmem:[%s13675_s1 + $0x3c8] sm:$0xff] }
  0x57   : > { %503 = vmatmul.f32.gmra.mxu0 %v6864_v57  ;;  %591 = vmatmul.f32.gmra.mxu2 %v6864_v57  ;;  %v7031_v57 = vld [vmem:[%s13675_s1 + $0x4f8] sm:$0xff]  ;;  %v6989_v22 = vld [vmem:[%s13675_s1 + $0x3a8] sm:$0xff] }
  0x58   : > { %970 = vmatpush.msra.mxu1 %v7014_v18  ;;  %1017 = vmatpush.msra.mxu3 %v7040_v19  ;;  %v8899_v19 = vld [vmem:[%s8412_s15 + $0x70] sm:$0xff] }
  0x59   : > { %6937 = vmatmul.msk.f32.gmra.mxu1 %vm437_vm1, %v6867_v60  ;;  %6947 = vmatmul.msk.f32.gmra.mxu3 %vm437_vm1, %v6867_v60  ;;  %v7003_v60 = vld [vmem:[%s13675_s1 + $0x418] sm:$0xff] }
  0x5a   : > { %971 = vmatpush.msra.mxu1 %v7012_v20  ;;  %1018 = vmatpush.msra.mxu3 %v7038_v21  ;;  %v8902_v20 = vld [vmem:[%s8412_s15 + $0x78] sm:$0xff] }
  0x5b   : > { %1057 = vmatpush.msra.mxu0 %v7017_v28  ;;  %1104 = vmatpush.msra.mxu2 %v7043_v29  ;;  %v6991_v21 = vld [vmem:[%s13675_s1 + $0x3b8] sm:$0xff]  ;;  %v8921_v28 = vld [vmem:[%s8412_s15 + $0x80] sm:$0xff]  ;;  %v8924_v29 = vld [vmem:[%s8412_s15 + $0x88] sm:$0xff] }
  0x5c   : > { %972 = vmatpush.msra.mxu1 %v7010_v26  ;;  %1019 = vmatpush.msra.mxu3 %v7036_v27 }
  0x5d   : > { %1058 = vmatpush.msra.mxu0 %v7015_v32  ;;  %1105 = vmatpush.msra.mxu2 %v7041_v33 }
  0x5e   : > { %973 = vmatpush.msra.mxu1 %v7008_v30  ;;  %1020 = vmatpush.msra.mxu3 %v7034_v31 }
  0x5f   : > { %506 = vmatmul.f32.gmra.mxu0 %v6866_v3  ;;  %594 = vmatmul.f32.gmra.mxu2 %v6866_v3  ;;  %v8858_v3 = vld [vmem:[%s8412_s15 + $0x68] sm:$0xff] }
  0x60   : > { %974 = vmatpush.msra.mxu1 %v7006_v34  ;;  %1021 = vmatpush.msra.mxu3 %v7032_v35  ;;  %v6971_v35 = vld [vmem:[%s8412_s15 + $0x148] sm:$0xff] }
  0x61   : > { %6938 = vmatmul.msk.f32.gmra.mxu1 %vm437_vm1, %v6869_v4  ;;  %6948 = vmatmul.msk.f32.gmra.mxu3 %vm437_vm1, %v6869_v4  ;;  %v6992_v4 = vld [vmem:[%s13675_s1 + $0x3c0] sm:$0xff] }
  0x62   : > { %1059 = vmatpush.msra.mxu0 %v7013_v36  ;;  %1106 = vmatpush.msra.mxu2 %v7039_v37  ;;  %v6970_v36 = vld [vmem:[%s8412_s15 + $0x140] sm:$0xff] }
  0x63   : > { %975 = vmatpush.msra.mxu1 %v7004_v40  ;;  %1022 = vmatpush.msra.mxu3 %v7030_v41 }
  0x64   : > { %1060 = vmatpush.msra.mxu0 %v7011_v42  ;;  %1107 = vmatpush.msra.mxu2 %v7037_v43 }
  0x65   : > { %976 = vmatpush.msra.mxu1 %v7002_v44  ;;  %1023 = vmatpush.msra.mxu3 %v7028_v45  ;;  %v6973_v44 = vld [vmem:[%s8412_s15 + $0x158] sm:$0xff]  ;;  %v6972_v45 = vld [vmem:[%s8412_s15 + $0x150] sm:$0xff] }
  0x66   : > { %1061 = vmatpush.msra.mxu0 %v7009_v46  ;;  %1108 = vmatpush.msra.mxu2 %v7035_v47 }
  0x67   : > { %509 = vmatmul.f32.gmra.mxu0 %v6868_v5  ;;  %597 = vmatmul.f32.gmra.mxu2 %v6868_v5  ;;  %v6999_v5 = vld [vmem:[%s13675_s1 + $0x3f8] sm:$0xff] }
  0x68   : > { %977 = vmatpush.msra.mxu1 %v7000_v48  ;;  %1024 = vmatpush.msra.mxu3 %v7026_v49 }
  0x69   : > { %6939 = vmatmul.msk.f32.gmra.mxu1 %vm437_vm1, %v6871_v6  ;;  %6949 = vmatmul.msk.f32.gmra.mxu3 %vm437_vm1, %v6871_v6  ;;  %v7025_v6 = vld [vmem:[%s13675_s1 + $0x4c8] sm:$0xff] }
  0x6a   : > { %1062 = vmatpush.msra.mxu0 %v7007_v50  ;;  %1109 = vmatpush.msra.mxu2 %v7033_v51  ;;  %v6975_v51 = vld [vmem:[%s8412_s15 + $0x168] sm:$0xff] }
  0x6b   : > { %978 = vmatpush.msra.mxu1 %v6998_v54  ;;  %1025 = vmatpush.msra.mxu3 %v7024_v55  ;;  %v6974_v54 = vld [vmem:[%s8412_s15 + $0x160] sm:$0xff] }
  0x6c   : > { %1063 = vmatpush.msra.mxu0 %v7005_v56  ;;  %1110 = vmatpush.msra.mxu2 %v7031_v57  ;;  %v7096_v55 = vld [vmem:[%s13675_s1 + $0x660] sm:$0xff]  ;;  %v7122_v56 = vld [vmem:[%s13675_s1 + $0x730] sm:$0xf] }
  0x6d   : > { %979 = vmatpush.msra.mxu1 %v6996_v58  ;;  %1026 = vmatpush.msra.mxu3 %v7022_v59  ;;  %v7094_v57 = vld [vmem:[%s13675_s1 + $0x650] sm:$0xff]  ;;  %v7120_v58 = vld [vmem:[%s13675_s1 + $0x720] sm:$0xff] }
  0x6e   : > { %1064 = vmatpush.msra.mxu0 %v7003_v60  ;;  %1111 = vmatpush.msra.mxu2 %v7029_v61  ;;  %v7092_v61 = vld [vmem:[%s13675_s1 + $0x640] sm:$0xff] }
  0x6f   : > { %512 = vmatmul.f32.gmra.mxu0 %v6870_v7  ;;  %600 = vmatmul.f32.gmra.mxu2 %v6870_v7  ;;  %v6990_v7 = vld [vmem:[%s13675_s1 + $0x3b0] sm:$0xff] }
  0x70   : > { %980 = vmatpush.msra.mxu1 %v6994_v62  ;;  %1027 = vmatpush.msra.mxu3 %v7020_v63  ;;  %v7118_v62 = vld [vmem:[%s13675_s1 + $0x710] sm:$0xff] }
  0x71   : > { %697 = vmatmul.f32.vlgmr.msrb.gmra.mxu1 %v283_v8  ;;  %6951 = vmatmul.msk.f32.vlgmr.msrb.gmra.mxu3 %vm437_vm1, %v284_v9 }
  0x72   : > { %1065 = vmatpush.msra.mxu0 %v7001_v0  ;;  %1112 = vmatpush.msra.mxu2 %v7027_v1  ;;  %v7090_v1 = vld [vmem:[%s13675_s1 + $0x630] sm:$0xff] }
  0x73   : > { %981 = vmatpush.msra.mxu1 %v6992_v4  ;;  %7124 = vmatpush.msk.msrb.mxu3 %vm465_vm0, %v7122_v56  ;;  %v7116_v4 = vld [vmem:[%s13675_s1 + $0x700] sm:$0xff] }
  0x74   : > { %1066 = vmatpush.msra.mxu0 %v6999_v5  ;;  %1113 = vmatpush.msra.mxu2 %v7025_v6  ;;  %v7097_v5 = vld [vmem:[%s13675_s1 + $0x668] sm:$0xff]  ;;  %v7108_v56 = vld [vmem:[%s13675_s1 + $0x6c0] sm:$0xff] }
  0x75   : > { %982 = vmatpush.msra.mxu1 %v6990_v7  ;;  %1381 = vmatpush.msrb.mxu3 %v7120_v58  ;;  %v6977_v7 = vld [vmem:[%s8412_s15 + $0x178] sm:$0xff] }
  0x76   : > { %v7115_v58 = vld [vmem:[%s13675_s1 + $0x6f8] sm:$0xff] }
  0x77   : > { %785 = vmatmul.f32.vlgmr.msrb.gmra.mxu0 %v283_v8  ;;  %6961 = vmatmul.msk.f32.vlgmr.msrb.gmra.mxu2 %vm437_vm1, %v284_v9  ;;  %v6997_v8 = vld [vmem:[%s13675_s1 + $0x3e8] sm:$0xff]  ;;  %v7023_v9 = vld [vmem:[%s13675_s1 + $0x4b8] sm:$0xff] }
  0x78   : > { %1067 = vmatpush.msra.mxu0 %v6997_v8  ;;  %1114 = vmatpush.msra.mxu2 %v7023_v9  ;;  %v6976_v8 = vld [vmem:[%s8412_s15 + $0x170] sm:$0xff]  ;;  %v7123_v9 = vld [vmem:[%s13675_s1 + $0x738] sm:$0xf] }
  0x79   : > { %700 = vmatmul.f32.gmra.mxu1 %v8657_v10  ;;  %6952 = vmatmul.msk.f32.gmra.mxu3 %vm437_vm1, %v8660_v11 }
  0x7a   : > { %983 = vmatpush.msra.mxu1 %v6988_v14  ;;  %1068 = vmatpush.msra.mxu0 %v6995_v15  ;;  %v7088_v14 = vld [vmem:[%s13675_s1 + $0x620] sm:$0xff]  ;;  %v7114_v15 = vld [vmem:[%s13675_s1 + $0x6f0] sm:$0xff] }
  0x7b   : > { %1115 = vmatpush.msra.mxu2 %v7021_v16  ;;  %1382 = vmatpush.msrb.mxu3 %v7118_v62  ;;  %v7095_v16 = vld [vmem:[%s13675_s1 + $0x658] sm:$0xff] }
  0x7c   : > { %1069 = vmatpush.msra.mxu0 %v6993_v17  ;;  %1333 = vmatpush.msrb.mxu1 %v7096_v55  ;;  %v7121_v17 = vld [vmem:[%s13675_s1 + $0x728] sm:$0xff]  ;;  %v7082_v55 = vld [vmem:[%s13675_s1 + $0x5f0] sm:$0xff] }
  0x7d   : > { %1383 = vmatpush.msrb.mxu3 %v7116_v4  ;;  %7134 = vmatpush.msk.msrb.mxu2 %vm465_vm0, %v7123_v9 }
  0x7e   : > { %1070 = vmatpush.msra.mxu0 %v6991_v21  ;;  %1334 = vmatpush.msrb.mxu1 %v7094_v57  ;;  %v7086_v21 = vld [vmem:[%s13675_s1 + $0x610] sm:$0xff]  ;;  %v7089_v57 = vld [vmem:[%s13675_s1 + $0x628] sm:$0xff] }
  0x7f   : > { %788 = vmatmul.f32.gmra.mxu0 %v8657_v10  ;;  %6962 = vmatmul.msk.f32.gmra.mxu2 %vm437_vm1, %v8660_v11 }
  0x80   : > { %1071 = vmatpush.msra.mxu0 %v6989_v22  ;;  %1335 = vmatpush.msrb.mxu1 %v7092_v61  ;;  %v7112_v22 = vld [vmem:[%s13675_s1 + $0x6e0] sm:$0xff]  ;;  %v7106_v61 = vld [vmem:[%s13675_s1 + $0x6b0] sm:$0xff] }
  0x81   : > { %703 = vmatmul.f32.gmra.mxu1 %v8667_v12  ;;  %6953 = vmatmul.msk.f32.gmra.mxu3 %vm437_vm1, %v8670_v13 }
  0x82   : > { %1336 = vmatpush.msrb.mxu1 %v7090_v1  ;;  %1421 = vmatpush.msrb.mxu0 %v7097_v5  ;;  %v7113_v1 = vld [vmem:[%s13675_s1 + $0x6e8] sm:$0xff]  ;;  %v7078_v5 = vld [vmem:[%s13675_s1 + $0x5d0] sm:$0xff] }
  0x83   : > { %1384 = vmatpush.msrb.mxu3 %v7114_v15  ;;  %1469 = vmatpush.msrb.mxu2 %v7121_v17  ;;  %v7111_v15 = vld [vmem:[%s13675_s1 + $0x6d8] sm:$0xff] }
  0x84   : > { %1337 = vmatpush.msrb.mxu1 %v7088_v14  ;;  %1422 = vmatpush.msrb.mxu0 %v7095_v16  ;;  %v7085_v14 = vld [vmem:[%s13675_s1 + $0x608] sm:$0xff]  ;;  %v6981_v17 = vld [vmem:[%s8412_s15 + $0x198] sm:$0xff] }
  0x85   : > { %1385 = vmatpush.msrb.mxu3 %v7112_v22  ;;  %v7076_v22 = vld [vmem:[%s13675_s1 + $0x5c0] sm:$0xff] }
  0x86   : > { %1338 = vmatpush.msrb.mxu1 %v7086_v21  ;;  %v6980_v21 = vld [vmem:[%s8412_s15 + $0x190] sm:$0xff] }
  0x87   : > { %791 = vmatmul.f32.gmra.mxu0 %v8667_v12  ;;  %6963 = vmatmul.msk.f32.gmra.mxu2 %vm437_vm1, %v8670_v13 }
  0x89   : > { %706 = vmatmul.f32.gmra.mxu1 %v8707_v23  ;;  %6954 = vmatmul.msk.f32.gmra.mxu3 %vm437_vm1, %v8710_v24 }
  0x8f   : > { %794 = vmatmul.f32.gmra.mxu0 %v8707_v23  ;;  %6964 = vmatmul.msk.f32.gmra.mxu2 %vm437_vm1, %v8710_v24 }
  0x91   : > { %709 = vmatmul.f32.gmra.mxu1 %v8759_v38  ;;  %6955 = vmatmul.msk.f32.gmra.mxu3 %vm437_vm1, %v8762_v39 }
  0x97   : > { %797 = vmatmul.f32.gmra.mxu0 %v8759_v38  ;;  %6965 = vmatmul.msk.f32.gmra.mxu2 %vm437_vm1, %v8762_v39 }
  0x99   : > { %712 = vmatmul.f32.gmra.mxu1 %v8807_v52  ;;  %6956 = vmatmul.msk.f32.gmra.mxu3 %vm437_vm1, %v8810_v53 }
  0x9f   : > { %800 = vmatmul.f32.gmra.mxu0 %v8807_v52  ;;  %6966 = vmatmul.msk.f32.gmra.mxu2 %vm437_vm1, %v8810_v53 }
  0xa1   : > { %715 = vmatmul.f32.gmra.mxu1 %v8855_v2  ;;  %6957 = vmatmul.msk.f32.gmra.mxu3 %vm437_vm1, %v8858_v3 }
  0xa6   : > { %v8896_v18 = vpop.f32.mrf.mxu1 }
  0xa7   : > { %803 = vmatmul.f32.gmra.mxu0 %v8855_v2  ;;  %6967 = vmatmul.msk.f32.gmra.mxu2 %vm437_vm1, %v8858_v3 }
  0xa9   : > { %718 = vmatmul.f32.gmra.mxu1 %v8899_v19  ;;  %6958 = vmatmul.msk.f32.gmra.mxu3 %vm437_vm1, %v8902_v20 }
  0xac   : > { %v8916_v25 = vpop.f32.mrf.mxu0  ;;  %v621_v26 = vpop.f32.mrf.mxu3 }
  0xae   : > { %v8918_v27 = vpop.f32.mrf.mxu1 }
  0xaf   : > { %806 = vmatmul.f32.gmra.mxu0 %v8899_v19  ;;  %6968 = vmatmul.msk.f32.gmra.mxu2 %vm437_vm1, %v8902_v20 }
  0xb1   : > { %721 = vmatmul.f32.gmra.mxu1 %v8921_v28  ;;  %6959 = vmatmul.msk.f32.gmra.mxu3 %vm437_vm1, %v8924_v29 }
  0xb2   : > { %v577_v30 = vpop.f32.mrf.mxu2 }
  0xb3   : > { %v8932_v31 = vadd.f32 %v621_v26, %v577_v30  ;;  %v7093_v30 = vld [vmem:[%s13675_s1 + $0x648] sm:$0xff] }
  0xb4   : > { %v8934_v32 = vpop.f32.mrf.mxu0  ;;  %v624_v33 = vpop.f32.mrf.mxu3  ;;  %1423 = vmatpush.msrb.mxu0 %v7093_v30  ;;  %v7083_v30 = vld [vmem:[%s13675_s1 + $0x5f8] sm:$0xff] }
  0xb6   : > { %v8936_v34 = vpop.f32.mrf.mxu1 }
  0xb7   : > { %809 = vmatmul.f32.gmra.mxu0 %v8921_v28  ;;  %6969 = vmatmul.msk.f32.gmra.mxu2 %vm437_vm1, %v8924_v29 }
  0xb9   : > { %7047 = vmatmul.msk.f32.vlgmr.msra.gmra.mxu3 %vm437_vm1, %v6971_v35  ;;  %984 = vmatmul.f32.vlgmr.msra.gmra.mxu1 %v6970_v36 }
  0xba   : > { %v580_v37 = vpop.f32.mrf.mxu2 }
  0xbb   : > { %v8944_v40 = vadd.f32 %v624_v33, %v580_v37  ;;  %v7119_v33 = vld [vmem:[%s13675_s1 + $0x718] sm:$0xff]  ;;  %v7110_v37 = vld [vmem:[%s13675_s1 + $0x6d0] sm:$0xff] }
  0xbc   : > { %v8946_v41 = vpop.f32.mrf.mxu0  ;;  %v627_v42 = vpop.f32.mrf.mxu3  ;;  %1470 = vmatpush.msrb.mxu2 %v7119_v33  ;;  %1386 = vmatpush.msrb.mxu3 %v7110_v37  ;;  %v7109_v33 = vld [vmem:[%s13675_s1 + $0x6c8] sm:$0xff]  ;;  %v7100_v37 = vld [vmem:[%s13675_s1 + $0x680] sm:$0xff] }
  0xbe   : > { %v8948_v43 = vpop.f32.mrf.mxu1  ;;  %1387 = vmatpush.msrb.mxu3 %v7108_v56 }
  0xbf   : > { %7057 = vmatmul.msk.f32.vlgmr.msra.gmra.mxu2 %vm437_vm1, %v6971_v35  ;;  %1072 = vmatmul.f32.vlgmr.msra.gmra.mxu0 %v6970_v36  ;;  %v7084_v36 = vld [vmem:[%s13675_s1 + $0x600] sm:$0xff] }
  0xc0   : > { %1339 = vmatpush.msrb.mxu1 %v7084_v36  ;;  %1388 = vmatpush.msrb.mxu3 %v7106_v61  ;;  %v7074_v36 = vld [vmem:[%s13675_s1 + $0x5b0] sm:$0xff] }
  0xc1   : > { %7048 = vmatmul.msk.f32.gmra.mxu3 %vm437_vm1, %v6973_v44  ;;  %987 = vmatmul.f32.gmra.mxu1 %v6972_v45 }
  0xc2   : > { %v583_v46 = vpop.f32.mrf.mxu2  ;;  %1340 = vmatpush.msrb.mxu1 %v7082_v55  ;;  %v7098_v55 = vld [vmem:[%s13675_s1 + $0x670] sm:$0xff] }
  0xc3   : > { %v8954_v47 = vadd.f32 %v627_v42, %v583_v46  ;;  %v7117_v46 = vld [vmem:[%s13675_s1 + $0x708] sm:$0xff] }
  0xc4   : > { %v8956_v48 = vpop.f32.mrf.mxu0  ;;  %v630_v49 = vpop.f32.mrf.mxu3  ;;  %1471 = vmatpush.msrb.mxu2 %v7117_v46  ;;  %v7107_v46 = vld [vmem:[%s13675_s1 + $0x6b8] sm:$0xff] }
  0xc6   : > { %v8958_v50 = vpop.f32.mrf.mxu1  ;;  %1472 = vmatpush.msrb.mxu2 %v7115_v58  ;;  %v7079_v58 = vld [vmem:[%s13675_s1 + $0x5d8] sm:$0xff] }
  0xc7   : > { %7058 = vmatmul.msk.f32.gmra.mxu2 %vm437_vm1, %v6973_v44  ;;  %1075 = vmatmul.f32.gmra.mxu0 %v6972_v45  ;;  %v7091_v45 = vld [vmem:[%s13675_s1 + $0x638] sm:$0xff] }
  0xc8   : > { %1424 = vmatpush.msrb.mxu0 %v7091_v45  ;;  %1473 = vmatpush.msrb.mxu2 %v7113_v1  ;;  %v7081_v45 = vld [vmem:[%s13675_s1 + $0x5e8] sm:$0xff]  ;;  %v7070_v1 = vld [vmem:[%s13675_s1 + $0x590] sm:$0xff] }
  0xc9   : > { %7049 = vmatmul.msk.f32.gmra.mxu3 %vm437_vm1, %v6975_v51  ;;  %990 = vmatmul.f32.gmra.mxu1 %v6974_v54 }
  0xca   : > { %v586_v59 = vpop.f32.mrf.mxu2  ;;  %1425 = vmatpush.msrb.mxu0 %v7089_v57  ;;  %1474 = vmatpush.msrb.mxu2 %v7111_v15 }
  0xcb   : > { %v8977_v60 = vadd.f32 %v630_v49, %v586_v59  ;;  %v7080_v59 = vld [vmem:[%s13675_s1 + $0x5e0] sm:$0xff] }
  0xcc   : > { %v8985_v63 = vpop.f32.mrf.mxu0  ;;  %v633_v0 = vpop.f32.mrf.mxu3  ;;  %1341 = vmatpush.msrb.mxu1 %v7080_v59  ;;  %1475 = vmatpush.msrb.mxu2 %v7109_v33  ;;  %v7105_v59 = vld [vmem:[%s13675_s1 + $0x6a8] sm:$0xff] }
  0xce   : > { %v8996_v6 = vpop.f32.mrf.mxu1  ;;  %1342 = vmatpush.msrb.mxu1 %v7078_v5  ;;  %1476 = vmatpush.msrb.mxu2 %v7107_v46  ;;  %v7077_v5 = vld [vmem:[%s13675_s1 + $0x5c8] sm:$0xff]  ;;  %v6984_v46 = vld [vmem:[%s8412_s15 + $0x1b0] sm:$0xff] }
  0xcf   : > { %7059 = vmatmul.msk.f32.gmra.mxu2 %vm437_vm1, %v6975_v51  ;;  %1078 = vmatmul.f32.gmra.mxu0 %v6974_v54  ;;  %v6979_v51 = vld [vmem:[%s8412_s15 + $0x188] sm:$0xff]  ;;  %v6978_v54 = vld [vmem:[%s8412_s15 + $0x180] sm:$0xff] }
  0xd0   : > { %1343 = vmatpush.msrb.mxu1 %v7076_v22  ;;  %1477 = vmatpush.msrb.mxu2 %v7105_v59  ;;  %v7066_v22 = vld [vmem:[%s13675_s1 + $0x570] sm:$0xff] }
  0xd1   : > { %7050 = vmatmul.msk.f32.gmra.mxu3 %vm437_vm1, %v6977_v7  ;;  %993 = vmatmul.f32.gmra.mxu1 %v6976_v8 }
  0xd2   : > { %v589_v26 = vpop.f32.mrf.mxu2  ;;  %1344 = vmatpush.msrb.mxu1 %v7074_v36  ;;  %v7099_v36 = vld [vmem:[%s13675_s1 + $0x678] sm:$0xff] }
  0xd3   : > { %v9030_v35 = vadd.f32 %v633_v0, %v589_v26  ;;  %v7087_v0 = vld [vmem:[%s13675_s1 + $0x618] sm:$0xff]  ;;  %v7102_v26 = vld [vmem:[%s13675_s1 + $0x690] sm:$0xff] }
  0xd4   : > { %v9038_v42 = vpop.f32.mrf.mxu0  ;;  %v636_v44 = vpop.f32.mrf.mxu3  ;;  %1426 = vmatpush.msrb.mxu0 %v7087_v0  ;;  %v6982_v0 = vld [vmem:[%s8412_s15 + $0x1a0] sm:$0xff] }
  0xd6   : > { %v9046_v49 = vpop.f32.mrf.mxu1  ;;  %1427 = vmatpush.msrb.mxu0 %v7085_v14  ;;  %v7075_v14 = vld [vmem:[%s13675_s1 + $0x5b8] sm:$0xff] }
  0xd7   : > { %7060 = vmatmul.msk.f32.gmra.mxu2 %vm437_vm1, %v6977_v7  ;;  %1081 = vmatmul.f32.gmra.mxu0 %v6976_v8  ;;  %v7104_v7 = vld [vmem:[%s13675_s1 + $0x6a0] sm:$0xff] }
  0xd8   : > { %1389 = vmatpush.msrb.mxu3 %v7104_v7  ;;  %1428 = vmatpush.msrb.mxu0 %v7083_v30  ;;  %v7103_v7 = vld [vmem:[%s13675_s1 + $0x698] sm:$0xff] }
  0xd9   : > { %7051 = vmatmul.msk.f32.gmra.mxu3 %vm437_vm1, %v6979_v51  ;;  %996 = vmatmul.f32.gmra.mxu1 %v6978_v54 }
  0xda   : > { %v592_v62 = vpop.f32.mrf.mxu2  ;;  %1390 = vmatpush.msrb.mxu3 %v7102_v26  ;;  %1429 = vmatpush.msrb.mxu0 %v7081_v45  ;;  %v7073_v26 = vld [vmem:[%s13675_s1 + $0x5a8] sm:$0xff]  ;;  %v6985_v45 = vld [vmem:[%s8412_s15 + $0x1b8] sm:$0xff] }
  0xdb   : > { %v9076_v4 = vadd.f32 %v636_v44, %v592_v62  ;;  %v6983_v62 = vld [vmem:[%s8412_s15 + $0x1a8] sm:$0xff]  ;;  %1478 = vmatpush.msrb.mxu2 %v7103_v7  ;;  %v6986_v7 = vld [vmem:[%s8412_s15 + $0x1c0] sm:$0xff] }
  0xdc   : > { %v9084_v8 = vpop.f32.mrf.mxu0  ;;  %v639_v9 = vpop.f32.mrf.mxu3  ;;  %1391 = vmatpush.msrb.mxu3 %v7100_v37  ;;  %1430 = vmatpush.msrb.mxu0 %v7079_v58  ;;  %v7071_v37 = vld [vmem:[%s13675_s1 + $0x598] sm:$0xff] }
  0xde   : > { %v9092_v16 = vpop.f32.mrf.mxu1  ;;  %1392 = vmatpush.msrb.mxu3 %v7098_v55  ;;  %1431 = vmatpush.msrb.mxu0 %v7077_v5  ;;  %v534_v55 = vadd.f32 %v8896_v18, %v8916_v25  ;;  %v6987_v25 = vld [vmem:[%s8412_s15 + $0x1c8] sm:$0xff] }
  0xdf   : > { %7061 = vmatmul.msk.f32.gmra.mxu2 %vm437_vm1, %v6979_v51  ;;  %1084 = vmatmul.f32.gmra.mxu0 %v6978_v54  ;;  %v7072_v54 = vld [vmem:[%s13675_s1 + $0x5a0] sm:$0xff] }
  0xe0   : > { %1345 = vmatpush.msrb.mxu1 %v7072_v54  ;;  %1432 = vmatpush.msrb.mxu0 %v7075_v14  ;;  %v7069_v54 = vld [vmem:[%s13675_s1 + $0x588] sm:$0xff]  ;;  %v1162_v14 = vld [vmem:[%s8412_s15] sm:$0xfe] }
  0xe1   : > { %7052 = vmatmul.msk.f32.gmra.mxu3 %vm437_vm1, %v6981_v17  ;;  %999 = vmatmul.f32.gmra.mxu1 %v6980_v21 }
  0xe2   : > { %v595_v44 = vpop.f32.mrf.mxu2  ;;  %1346 = vmatpush.msrb.mxu1 %v7070_v1  ;;  %1433 = vmatpush.msrb.mxu0 %v7073_v26 }
  0xe3   : > { %v9122_v51 = vadd.f32 %v639_v9, %v595_v44  ;;  %v7068_v9 = vld [vmem:[%s13675_s1 + $0x580] sm:$0xff] }
  0xe4   : > { %v9130_v56 = vpop.f32.mrf.mxu0  ;;  %v642_v57 = vpop.f32.mrf.mxu3  ;;  %1347 = vmatpush.msrb.mxu1 %v7068_v9  ;;  %1434 = vmatpush.msrb.mxu0 %v7071_v37  ;;  %v1163_v9 = vld [vmem:[%s8412_s15 + $0x8] sm:$0xfe]  ;;  %v1263_v37 = vrot.slane %v8657_v10, 1 }
  0xe5   : > { %v1265_v26 = vrot.slane %v1163_v9, 1 }
  0xe6   : > { %v9138_v61 = vpop.f32.mrf.mxu1  ;;  %1348 = vmatpush.msrb.mxu1 %v7066_v22  ;;  %1435 = vmatpush.msrb.mxu0 %v7069_v54 }
  0xe7   : > { %7062 = vmatmul.msk.f32.gmra.mxu2 %vm437_vm1, %v6981_v17  ;;  %1087 = vmatmul.f32.gmra.mxu0 %v6980_v21  ;;  %v7101_v17 = vld [vmem:[%s13675_s1 + $0x688] sm:$0xff] }
  0xe8   : > { %1479 = vmatpush.msrb.mxu2 %v7101_v17 }
  0xe9   : > { %7053 = vmatmul.msk.f32.gmra.mxu3 %vm437_vm1, %v6983_v62  ;;  %1002 = vmatmul.f32.gmra.mxu1 %v6982_v0 }
  0xea   : > { %v598_v15 = vpop.f32.mrf.mxu2  ;;  %1480 = vmatpush.msrb.mxu2 %v7099_v36  ;;  %v1262_v36 = vrot.slane %v1162_v14, 1  ;;  %v1274_v14 = vrot.slane %v8710_v24, 1  ;;  %v7194_v24 = vld [vmem:[%s13675_s1 + $0x830] sm:$0xff] }
  0xeb   : > { %v9162_v21 = vadd.f32 %v642_v57, %v598_v15  ;;  %v7067_v57 = vld [vmem:[%s13675_s1 + $0x578] sm:$0xff]  ;;  %v537_v15 = vadd.f32 %v8918_v27, %v8934_v32  ;;  %1697 = vmatpush.msra.mxu1 %v7194_v24  ;;  %v7208_v24 = vld [vmem:[%s13675_s1 + $0x8a0] sm:$0xff] }
  0xec   : > { %v9170_v30 = vpop.f32.mrf.mxu0  ;;  %v645_v33 = vpop.f32.mrf.mxu3  ;;  %1436 = vmatpush.msrb.mxu0 %v7067_v57  ;;  %v1264_v32 = vsel %vm1261_vm2, %v1262_v36, %v1263_v37 }
  0xee   : > { %v698_v44 = vpop.f32.mrf.mxu1 }
  0xef   : > { %7063 = vmatmul.msk.f32.gmra.mxu2 %vm437_vm1, %v6983_v62  ;;  %1090 = vmatmul.f32.gmra.mxu0 %v6982_v0  ;;  %v699_v59 = vadd.f32 %v698_v44, %v534_v55 }
  0xf1   : > { %7054 = vmatmul.msk.f32.gmra.mxu3 %vm437_vm1, %v6985_v45  ;;  %1005 = vmatmul.f32.gmra.mxu1 %v6984_v46 }
  0xf2   : > { %v601_v58 = vpop.f32.mrf.mxu2 }
  0xf3   : > { %v9190_v62 = vadd.f32 %v645_v33, %v601_v58  ;;  %v1266_v33 = vrot.slane %v8660_v11, 1  ;;  %v540_v11 = vadd.f32 %v8936_v34, %v8946_v41  ;;  %v1270_v58 = vrot.slane %v8670_v13, 1 }
  0xf4   : > { %v742_v0 = vpop.f32.mrf.mxu3  ;;  %v786_v1 = vpop.f32.mrf.mxu0  ;;  %v543_v13 = vadd.f32 %v8948_v43, %v8956_v48  ;;  %v546_v48 = vadd.f32 %v8958_v50, %v8985_v63  ;;  %v7190_v63 = vld [vmem:[%s13675_s1 + $0x810] sm:$0xff] }
  0xf5   : > { %v9192_v5 = vadd.f32 %v742_v0, %v699_v59  ;;  %v787_v17 = vadd.f32 %v786_v1, %v8932_v31  ;;  %v1267_v31 = vsel %vm1261_vm2, %v1265_v26, %v1266_v33  ;;  %v1268_v59 = vrot.slane %v8667_v12, 1 }
  0xf6   : > { %v701_v18 = vpop.f32.mrf.mxu1  ;;  %v1271_v34 = vsel %vm1261_vm2, %v1266_v33, %v1270_v58  ;;  %v1275_v43 = vsel %vm1261_vm2, %v1270_v58, %v1274_v14  ;;  %v7214_v58 = vld [vmem:[%s13675_s1 + $0x8d0] sm:$0xff] }
  0xf7   : > { %7064 = vmatmul.msk.f32.gmra.mxu2 %vm437_vm1, %v6985_v45  ;;  %1093 = vmatmul.f32.gmra.mxu0 %v6984_v46  ;;  %v702_v44 = vadd.f32 %v701_v18, %v537_v15  ;;  %v1272_v15 = vrot.slane %v8707_v23, 1  ;;  %v7220_v23 = vld [vmem:[%s13675_s1 + $0x900] sm:$0xf] }
  0xf8   : > { %7222 = vmatpush.msk.msra.mxu3 %vm465_vm0, %v7220_v23 }
  0xf9   : > { %7055 = vmatmul.msk.f32.gmra.mxu3 %vm437_vm1, %v6987_v25  ;;  %1008 = vmatmul.f32.gmra.mxu1 %v6986_v7 }
  0xfa   : > { %v830_v22 = vpop.f32.mrf.mxu2 }
  0xfb   : > { %v9205_v45 = vadd.f32 %v830_v22, %v787_v17 }
  0xfc   : > { %v745_v46 = vpop.f32.mrf.mxu3  ;;  %v789_v54 = vpop.f32.mrf.mxu0 }
  0xfd   : > { %v9207_v55 = vadd.f32 %v745_v46, %v702_v44  ;;  %v790_v10 = vadd.f32 %v789_v54, %v8944_v40  ;;  %v1269_v40 = vsel %vm1261_vm2, %v1263_v37, %v1268_v59  ;;  %v7192_v46 = vld [vmem:[%s13675_s1 + $0x820] sm:$0xff]  ;;  %v7218_v54 = vld [vmem:[%s13675_s1 + $0x8f0] sm:$0xff] }
  0xfe   : > { %v704_v27 = vpop.f32.mrf.mxu1  ;;  %1698 = vmatpush.msra.mxu1 %v7192_v46  ;;  %1745 = vmatpush.msra.mxu3 %v7218_v54  ;;  %v7189_v46 = vld [vmem:[%s13675_s1 + $0x808] sm:$0xff]  ;;  %v7215_v54 = vld [vmem:[%s13675_s1 + $0x8d8] sm:$0xff] }
  0xff   : > { %7065 = vmatmul.msk.f32.gmra.mxu2 %vm437_vm1, %v6987_v25  ;;  %1096 = vmatmul.f32.gmra.mxu0 %v6986_v7  ;;  %v705_v0 = vadd.f32 %v704_v27, %v540_v11  ;;  %v7216_v11 = vld [vmem:[%s13675_s1 + $0x8e0] sm:$0xff] }
 0x100   : > { %1699 = vmatpush.msra.mxu1 %v7190_v63  ;;  %1746 = vmatpush.msra.mxu3 %v7216_v11  ;;  %v7180_v11 = vld [vmem:[%s13675_s1 + $0x7c0] sm:$0xff] }
 0x101   : > { %7125 = vmatmul.msk.f32.vlgmr.msrb.gmra.mxu3 %vm437_vm1, %v1267_v31  ;;  %1349 = vmatmul.f32.vlgmr.msrb.gmra.mxu1 %v1264_v32 }
 0x102   : > { %v833_v57 = vpop.f32.mrf.mxu2  ;;  %1747 = vmatpush.msra.mxu3 %v7214_v58  ;;  %v7178_v58 = vld [vmem:[%s13675_s1 + $0x7b0] sm:$0xff] }
 0x103   : > { %v9218_v1 = vadd.f32 %v833_v57, %v790_v10 }
 0x104   : > { %v748_v18 = vpop.f32.mrf.mxu3  ;;  %v792_v9 = vpop.f32.mrf.mxu0 }
 0x105   : > { %v9220_v25 = vadd.f32 %v748_v18, %v705_v0  ;;  %v793_v12 = vadd.f32 %v792_v9, %v8954_v47  ;;  %v1273_v47 = vsel %vm1261_vm2, %v1268_v59, %v1272_v15  ;;  %v7195_v59 = vld [vmem:[%s13675_s1 + $0x838] sm:$0xff] }
 0x106   : > { %v707_v7 = vpop.f32.mrf.mxu1  ;;  %1785 = vmatpush.msra.mxu0 %v7195_v59  ;;  %v7204_v59 = vld [vmem:[%s13675_s1 + $0x880] sm:$0xff] }
 0x107   : > { %7135 = vmatmul.msk.f32.vlgmr.msrb.gmra.mxu2 %vm437_vm1, %v1267_v31  ;;  %1437 = vmatmul.f32.vlgmr.msrb.gmra.mxu0 %v1264_v32  ;;  %v708_v17 = vadd.f32 %v707_v7, %v543_v13  ;;  %v1278_v31 = vrot.slane %v8762_v39, 1  ;;  %v1276_v32 = vrot.slane %v8759_v38, 1  ;;  %v7188_v38 = vld [vmem:[%s13675_s1 + $0x800] sm:$0xff]  ;;  %v7221_v7 = vld [vmem:[%s13675_s1 + $0x908] sm:$0xf] }
 0x108   : > { %1700 = vmatpush.msra.mxu1 %v7188_v38  ;;  %7232 = vmatpush.msk.msra.mxu2 %vm465_vm0, %v7221_v7  ;;  %v7193_v13 = vld [vmem:[%s13675_s1 + $0x828] sm:$0xff] }
 0x109   : > { %7126 = vmatmul.msk.f32.gmra.mxu3 %vm437_vm1, %v1271_v34  ;;  %1352 = vmatmul.f32.gmra.mxu1 %v1269_v40  ;;  %v1279_v18 = vsel %vm1261_vm2, %v1274_v14, %v1278_v31  ;;  %v1277_v9 = vsel %vm1261_vm2, %v1272_v15, %v1276_v32  ;;  %v7184_v15 = vld [vmem:[%s13675_s1 + $0x7e0] sm:$0xff] }
 0x10a   : > { %v836_v41 = vpop.f32.mrf.mxu2  ;;  %1786 = vmatpush.msra.mxu0 %v7193_v13 }
 0x10b   : > { %v9231_v22 = vadd.f32 %v836_v41, %v793_v12  ;;  %v7219_v12 = vld [vmem:[%s13675_s1 + $0x8f8] sm:$0xff]  ;;  %v549_v41 = vadd.f32 %v8996_v6, %v9038_v42 }
 0x10c   : > { %v751_v26 = vpop.f32.mrf.mxu3  ;;  %v795_v33 = vpop.f32.mrf.mxu0  ;;  %v7191_v6 = vld [vmem:[%s13675_s1 + $0x818] sm:$0xff]  ;;  %1833 = vmatpush.msra.mxu2 %v7219_v12 }
 0x10d   : > { %v9233_v36 = vadd.f32 %v751_v26, %v708_v17  ;;  %v796_v44 = vadd.f32 %v795_v33, %v8977_v60  ;;  %v7210_v17 = vld [vmem:[%s13675_s1 + $0x8b0] sm:$0xff]  ;;  %v1282_v33 = vrot.slane %v8810_v53, 1  ;;  %1787 = vmatpush.msra.mxu0 %v7191_v6  ;;  %v7200_v53 = vld [vmem:[%s13675_s1 + $0x860] sm:$0xff] }
 0x10e   : > { %v710_v37 = vpop.f32.mrf.mxu1 }
 0x10f   : > { %7136 = vmatmul.msk.f32.gmra.mxu2 %vm437_vm1, %v1271_v34  ;;  %1440 = vmatmul.f32.gmra.mxu0 %v1269_v40  ;;  %v711_v50 = vadd.f32 %v710_v37, %v546_v48  ;;  %v7186_v34 = vld [vmem:[%s13675_s1 + $0x7f0] sm:$0xff]  ;;  %v7212_v40 = vld [vmem:[%s13675_s1 + $0x8c0] sm:$0xff]  ;;  %v1280_v37 = vrot.slane %v8807_v52, 1  ;;  %v7181_v52 = vld [vmem:[%s13675_s1 + $0x7c8] sm:$0xff] }
 0x110   : > { %1701 = vmatpush.msra.mxu1 %v7186_v34  ;;  %1748 = vmatpush.msra.mxu3 %v7212_v40  ;;  %v7176_v34 = vld [vmem:[%s13675_s1 + $0x7a0] sm:$0xff]  ;;  %v7202_v40 = vld [vmem:[%s13675_s1 + $0x870] sm:$0xff] }
 0x111   : > { %7127 = vmatmul.msk.f32.gmra.mxu3 %vm437_vm1, %v1275_v43  ;;  %1355 = vmatmul.f32.gmra.mxu1 %v1273_v47  ;;  %v1281_v63 = vsel %vm1261_vm2, %v1276_v32, %v1280_v37  ;;  %v7213_v32 = vld [vmem:[%s13675_s1 + $0x8c8] sm:$0xff] }
 0x112   : > { %v839_v27 = vpop.f32.mrf.mxu2  ;;  %1702 = vmatpush.msra.mxu1 %v7184_v15  ;;  %1749 = vmatpush.msra.mxu3 %v7210_v17  ;;  %v7209_v15 = vld [vmem:[%s13675_s1 + $0x8a8] sm:$0xff] }
 0x113   : > { %v9257_v60 = vadd.f32 %v839_v27, %v796_v44  ;;  %1788 = vmatpush.msra.mxu0 %v7189_v46  ;;  %v1288_v46 = vrot.slane %v8899_v19, 1  ;;  %v7196_v19 = vld [vmem:[%s13675_s1 + $0x840] sm:$0xff] }
 0x114   : > { %v754_v10 = vpop.f32.mrf.mxu3  ;;  %v798_v57 = vpop.f32.mrf.mxu0  ;;  %1750 = vmatpush.msra.mxu3 %v7208_v24  ;;  %v7198_v24 = vld [vmem:[%s13675_s1 + $0x850] sm:$0xff] }
 0x115   : > { %v9265_v39 = vadd.f32 %v754_v10, %v711_v50  ;;  %v799_v14 = vadd.f32 %v798_v57, %v9030_v35  ;;  %v7217_v35 = vld [vmem:[%s13675_s1 + $0x8e8] sm:$0xff]  ;;  %v1283_v50 = vsel %vm1261_vm2, %v1278_v31, %v1282_v33  ;;  %v7206_v10 = vld [vmem:[%s13675_s1 + $0x890] sm:$0xff]  ;;  %v7187_v31 = vld [vmem:[%s13675_s1 + $0x7f8] sm:$0xff]  ;;  %v552_v57 = vadd.f32 %v9046_v49, %v9084_v8 }
 0x116   : > { %v713_v0 = vpop.f32.mrf.mxu1  ;;  %1834 = vmatpush.msra.mxu2 %v7217_v35  ;;  %1751 = vmatpush.msra.mxu3 %v7206_v10  ;;  %v7185_v49 = vld [vmem:[%s13675_s1 + $0x7e8] sm:$0xff]  ;;  %v7174_v35 = vld [vmem:[%s13675_s1 + $0x790] sm:$0xff]  ;;  %v7203_v10 = vld [vmem:[%s13675_s1 + $0x878] sm:$0xff] }
 0x117   : > { %7137 = vmatmul.msk.f32.gmra.mxu2 %vm437_vm1, %v1275_v43  ;;  %1443 = vmatmul.f32.gmra.mxu0 %v1273_v47  ;;  %v714_v42 = vadd.f32 %v713_v0, %v549_v41  ;;  %v7182_v47 = vld [vmem:[%s13675_s1 + $0x7d0] sm:$0xff] }
 0x118   : > { %1703 = vmatpush.msra.mxu1 %v7182_v47  ;;  %1835 = vmatpush.msra.mxu2 %v7215_v54  ;;  %v7172_v47 = vld [vmem:[%s13675_s1 + $0x780] sm:$0xff] }
 0x119   : > { %7128 = vmatmul.msk.f32.gmra.mxu3 %vm437_vm1, %v1279_v18  ;;  %1358 = vmatmul.f32.gmra.mxu1 %v1277_v9 }
 0x11a   : > { %v842_v26 = vpop.f32.mrf.mxu2  ;;  %1704 = vmatpush.msra.mxu1 %v7180_v11  ;;  %1789 = vmatpush.msra.mxu0 %v7187_v31  ;;  %v7177_v11 = vld [vmem:[%s13675_s1 + $0x7a8] sm:$0xff] }
 0x11b   : > { %v9313_v43 = vadd.f32 %v842_v26, %v799_v14  ;;  %1836 = vmatpush.msra.mxu2 %v7213_v32  ;;  %1752 = vmatpush.msra.mxu3 %v7204_v59  ;;  %v7183_v14 = vld [vmem:[%s13675_s1 + $0x7d8] sm:$0xff] }
 0x11c   : > { %v757_v23 = vpop.f32.mrf.mxu3  ;;  %v801_v48 = vpop.f32.mrf.mxu0  ;;  %1705 = vmatpush.msra.mxu1 %v7178_v58  ;;  %1790 = vmatpush.msra.mxu0 %v7185_v49  ;;  %v7175_v58 = vld [vmem:[%s13675_s1 + $0x798] sm:$0xff]  ;;  %v1294_v49 = vrot.slane %v8924_v29, 1 }
 0x11d   : > { %v9321_v44 = vadd.f32 %v757_v23, %v714_v42  ;;  %v802_v38 = vadd.f32 %v801_v48, %v9076_v4  ;;  %v7211_v4 = vld [vmem:[%s13675_s1 + $0x8b8] sm:$0xff]  ;;  %1753 = vmatpush.msra.mxu3 %v7202_v40  ;;  %v1290_v48 = vrot.slane %v8902_v20, 1  ;;  %v7170_v20 = vld [vmem:[%s13675_s1 + $0x770] sm:$0xff] }
 0x11e   : > { %v716_v27 = vpop.f32.mrf.mxu1  ;;  %1837 = vmatpush.msra.mxu2 %v7211_v4  ;;  %1706 = vmatpush.msra.mxu1 %v7176_v34  ;;  %v1292_v4 = vrot.slane %v8921_v28, 1  ;;  %v7171_v29 = vld [vmem:[%s13675_s1 + $0x778] sm:$0xff] }
 0x11f   : > { %7138 = vmatmul.msk.f32.gmra.mxu2 %vm437_vm1, %v1279_v18  ;;  %1446 = vmatmul.f32.gmra.mxu0 %v1277_v9  ;;  %v1286_v18 = vrot.slane %v8858_v3, 1  ;;  %v1284_v9 = vrot.slane %v8855_v2, 1  ;;  %v717_v8 = vadd.f32 %v716_v27, %v552_v57  ;;  %v7201_v2 = vld [vmem:[%s13675_s1 + $0x868] sm:$0xff]  ;;  %v558_v3 = vadd.f32 %v9138_v61, %v9170_v30  ;;  %v7199_v61 = vld [vmem:[%s13675_s1 + $0x858] sm:$0xff] }
 0x120   : > { %1791 = vmatpush.msra.mxu0 %v7183_v14  ;;  %1838 = vmatpush.msra.mxu2 %v7209_v15  ;;  %v1295_v14 = vsel %vm1261_vm2, %v1290_v48, %v1294_v49 }
 0x121   : > { %7129 = vmatmul.msk.f32.gmra.mxu3 %vm437_vm1, %v1283_v50  ;;  %1361 = vmatmul.f32.gmra.mxu1 %v1281_v63  ;;  %v1287_v26 = vsel %vm1261_vm2, %v1282_v33, %v1286_v18  ;;  %v1285_v6 = vsel %vm1261_vm2, %v1280_v37, %v1284_v9  ;;  %v7207_v33 = vld [vmem:[%s13675_s1 + $0x898] sm:$0xff]  ;;  %v555_v37 = vadd.f32 %v9092_v16, %v9130_v56 }
 0x122   : > { %v845_v0 = vpop.f32.mrf.mxu2  ;;  %1707 = vmatpush.msra.mxu1 %v7174_v35  ;;  %1754 = vmatpush.msra.mxu3 %v7200_v53  ;;  %v7179_v16 = vld [vmem:[%s13675_s1 + $0x7b8] sm:$0xff]  ;;  %v1291_v32 = vsel %vm1261_vm2, %v1286_v18, %v1290_v48  ;;  %v1289_v57 = vsel %vm1261_vm2, %v1284_v9, %v1288_v46  ;;  %v7173_v18 = vld [vmem:[%s13675_s1 + $0x788] sm:$0xff] }
 0x123   : > { %v9366_v7 = vadd.f32 %v845_v0, %v802_v38  ;;  %1792 = vmatpush.msra.mxu0 %v7181_v52  ;;  %1839 = vmatpush.msra.mxu2 %v7207_v33  ;;  %v7168_v38 = vld [vmem:[%s13675_s1 + $0x760] sm:$0xff]  ;;  %v7166_v0 = vld [vmem:[%s13675_s1 + $0x750] sm:$0xff]  ;;  %v7167_v35 = vld [vmem:[%s13675_s1 + $0x758] sm:$0xff] }
 0x124   : > { %v760_v13 = vpop.f32.mrf.mxu3  ;;  %v804_v12 = vpop.f32.mrf.mxu0  ;;  %1708 = vmatpush.msra.mxu1 %v7172_v47  ;;  %1755 = vmatpush.msra.mxu3 %v7198_v24  ;;  %v7165_v52 = vld [vmem:[%s13675_s1 + $0x748] sm:$0xff] }
 0x125   : > { %v9374_v41 = vadd.f32 %v760_v13, %v717_v8  ;;  %v805_v42 = vadd.f32 %v804_v12, %v9122_v51  ;;  %v7205_v51 = vld [vmem:[%s13675_s1 + $0x888] sm:$0xff]  ;;  %1793 = vmatpush.msra.mxu0 %v7179_v16  ;;  %v7164_v8 = vld [vmem:[%s13675_s1 + $0x740] sm:$0xff] }
 0x126   : > { %v719_v17 = vpop.f32.mrf.mxu1  ;;  %1840 = vmatpush.msra.mxu2 %v7205_v51  ;;  %1709 = vmatpush.msra.mxu1 %v7170_v20  ;;  %v7197_v13 = vld [vmem:[%s13675_s1 + $0x848] sm:$0xff]  ;;  %v7147_v20 = vld [vmem:[%s8412_s15 + $0xb8] sm:$0xff] }
 0x127   : > { %7139 = vmatmul.msk.f32.gmra.mxu2 %vm437_vm1, %v1283_v50  ;;  %1449 = vmatmul.f32.gmra.mxu0 %v1281_v63  ;;  %v720_v56 = vadd.f32 %v719_v17, %v555_v37  ;;  %v7169_v12 = vld [vmem:[%s13675_s1 + $0x768] sm:$0xff]  ;;  %v1293_v17 = vsel %vm1261_vm2, %v1288_v46, %v1292_v4 }
 0x128   : > { %1756 = vmatpush.msra.mxu3 %v7196_v19  ;;  %1794 = vmatpush.msra.mxu0 %v7177_v11  ;;  %v7145_v51 = vld [vmem:[%s8412_s15 + $0xa8] sm:$0xfe]  ;;  %v7144_v19 = vld [vmem:[%s8412_s15 + $0xa0] sm:$0xfe] }
 0x129   : > { %7130 = vmatmul.msk.f32.gmra.mxu3 %vm437_vm1, %v1287_v26  ;;  %1364 = vmatmul.f32.gmra.mxu1 %v1285_v6  ;;  %v1629_v11 = vrot.slane %v7145_v51, 1 }
 0x12a   : > { %v848_v23 = vpop.f32.mrf.mxu2  ;;  %1841 = vmatpush.msra.mxu2 %v7203_v10  ;;  %1710 = vmatpush.msra.mxu1 %v7168_v38  ;;  %v1630_v10 = vrot.slane %v7147_v20, 1 }
 0x12b   : > { %v9423_v54 = vadd.f32 %v848_v23, %v805_v42  ;;  %1795 = vmatpush.msra.mxu0 %v7175_v58 }
 0x12c   : > { %v763_v27 = vpop.f32.mrf.mxu3  ;;  %v807_v50 = vpop.f32.mrf.mxu0  ;;  %1842 = vmatpush.msra.mxu2 %v7201_v2  ;;  %1711 = vmatpush.msra.mxu1 %v7166_v0 }
 0x12d   : > { %v9431_v63 = vadd.f32 %v763_v27, %v720_v56  ;;  %v808_v59 = vadd.f32 %v807_v50, %v9162_v21  ;;  %1796 = vmatpush.msra.mxu0 %v7173_v18  ;;  %v7146_v27 = vld [vmem:[%s8412_s15 + $0xb0] sm:$0xff] }
 0x12e   : > { %v722_v31 = vpop.f32.mrf.mxu1  ;;  %1843 = vmatpush.msra.mxu2 %v7199_v61  ;;  %1712 = vmatpush.msra.mxu1 %v7164_v8 }
 0x12f   : > { %7140 = vmatmul.msk.f32.gmra.mxu2 %vm437_vm1, %v1287_v26  ;;  %1452 = vmatmul.f32.gmra.mxu0 %v1285_v6  ;;  %v723_v21 = vadd.f32 %v722_v31, %v558_v3  ;;  %v1181_v26 = vld [vmem:[%s8412_s15 + $0x98] sm:$0x1]  ;;  %v1180_v6 = vld [vmem:[%s8412_s15 + $0x90] sm:$0x1]  ;;  %v1626_v31 = vrot.slane %v7144_v19, 1  ;;  %v1631_v3 = vsel %vm1261_vm2, %v1629_v11, %v1630_v10 }
 0x130   : > { %1797 = vmatpush.msra.mxu0 %v7171_v29  ;;  %1844 = vmatpush.msra.mxu2 %v7197_v13  ;;  %v1298_v37 = vrot.slane %v1181_v26, 1  ;;  %v1296_v42 = vrot.slane %v1180_v6, 1  ;;  %v7314_v11 = vld [vmem:[%s13675_s1 + $0xab0] sm:$0xff] }
 0x131   : > { %7131 = vmatmul.msk.f32.gmra.mxu3 %vm437_vm1, %v1291_v32  ;;  %1367 = vmatmul.f32.gmra.mxu1 %v1289_v57 }
 0x132   : > { %v851_v9 = vpop.f32.mrf.mxu2  ;;  %1798 = vmatpush.msra.mxu0 %v7169_v12  ;;  %v1299_v48 = vsel %vm1261_vm2, %v1294_v49, %v1298_v37  ;;  %v1297_v16 = vsel %vm1261_vm2, %v1292_v4, %v1296_v42  ;;  %v7148_v49 = vld [vmem:[%s8412_s15 + $0xc0] sm:$0xff] }
 0x133   : > { %v9470_v30 = vadd.f32 %v851_v9, %v808_v59  ;;  %v7149_v9 = vld [vmem:[%s8412_s15 + $0xc8] sm:$0xff]  ;;  %v1632_v61 = vrot.slane %v7148_v49, 1 }
 0x134   : > { %v766_v28 = vpop.f32.mrf.mxu3  ;;  %v810_v34 = vpop.f32.mrf.mxu0  ;;  %1799 = vmatpush.msra.mxu0 %v7167_v35  ;;  %v1634_v4 = vrot.slane %v7149_v9, 1  ;;  %v7319_v9 = vld [vmem:[%s13675_s1 + $0xad8] sm:$0xf] }
 0x135   : > { %v9478_v40 = vadd.f32 %v766_v28, %v723_v21  ;;  %v811_v53 = vadd.f32 %v810_v34, %v9190_v62  ;;  %7330 = vmatpush.msk.msrb.mxu2 %vm465_vm0, %v7319_v9  ;;  %v7307_v9 = vld [vmem:[%s13675_s1 + $0xa78] sm:$0xff] }
 0x136   : > { %v985_v15 = vpop.f32.mrf.mxu1  ;;  %1800 = vmatpush.msra.mxu0 %v7165_v52  ;;  %v1635_v34 = vsel %vm1261_vm2, %v1630_v10, %v1634_v4 }
 0x137   : > { %7141 = vmatmul.msk.f32.gmra.mxu2 %vm437_vm1, %v1291_v32  ;;  %1455 = vmatmul.f32.gmra.mxu0 %v1289_v57  ;;  %v1627_v32 = vrot.slane %v7146_v27, 1 }
 0x139   : > { %7132 = vmatmul.msk.f32.gmra.mxu3 %vm437_vm1, %v1295_v14  ;;  %1370 = vmatmul.f32.gmra.mxu1 %v1293_v17  ;;  %v1628_v0 = vsel %vm1261_vm2, %v1626_v31, %v1627_v32  ;;  %v1633_v12 = vsel %vm1261_vm2, %v1627_v32, %v1632_v61 }
 0x13a   : > { %v854_v33 = vpop.f32.mrf.mxu2 }
 0x13b   : > { %v9499_v47 = vadd.f32 %v854_v33, %v811_v53 }
 0x13c   : > { %v1029_v24 = vpop.f32.mrf.mxu3  ;;  %v1073_v23 = vpop.f32.mrf.mxu0 }
 0x13d   : > { %v1030_v62 = vadd.f32 %v1029_v24, %v985_v15  ;;  %v7151_v15 = vld [vmem:[%s8412_s15 + $0xd8] sm:$0xff] }
 0x13e   : > { %v988_v46 = vpop.f32.mrf.mxu1  ;;  %v1638_v26 = vrot.slane %v7151_v15, 1  ;;  %v7315_v15 = vld [vmem:[%s13675_s1 + $0xab8] sm:$0xff] }
 0x13f   : > { %v9505_v56 = vadd.f32 %v1030_v62, %v9192_v5  ;;  %7142 = vmatmul.msk.f32.gmra.mxu2 %vm437_vm1, %v1295_v14  ;;  %1458 = vmatmul.f32.gmra.mxu0 %v1293_v17  ;;  %v7150_v17 = vld [vmem:[%s8412_s15 + $0xd0] sm:$0xff] }
 0x140   : > { %v1636_v6 = vrot.slane %v7150_v17, 1  ;;  %v1639_v37 = vsel %vm1261_vm2, %v1634_v4, %v1638_v26  ;;  %v7284_v4 = vld [vmem:[%s13675_s1 + $0x9c0] sm:$0xff] }
 0x141   : > { %7133 = vmatmul.msk.f32.gmra.mxu3 %vm437_vm1, %v1299_v48  ;;  %1373 = vmatmul.f32.gmra.mxu1 %v1297_v16 }
 0x142   : > { %v1117_v50 = vpop.f32.mrf.mxu2  ;;  %v1637_v24 = vsel %vm1261_vm2, %v1632_v61, %v1636_v6  ;;  %v7310_v61 = vld [vmem:[%s13675_s1 + $0xa90] sm:$0xff] }
 0x143   : > { %v1118_v57 = vadd.f32 %v1117_v50, %v1073_v23  ;;  %v9542_v23 = vld [vmem:[%s8412_s15 + $0xe8] sm:$0xff]  ;;  %v7288_v50 = vld [vmem:[%s13675_s1 + $0x9e0] sm:$0xff] }
 0x144   : > { %v1032_v38 = vpop.f32.mrf.mxu3  ;;  %v1076_v5 = vpop.f32.mrf.mxu0  ;;  %v1642_v20 = vrot.slane %v9542_v23, 1  ;;  %v9650_v23 = vld [vmem:[%s8412_s15 + $0x108] sm:$0xff] }
 0x145   : > { %v9513_v58 = vadd.f32 %v1118_v57, %v9205_v45  ;;  %v1033_v2 = vadd.f32 %v1032_v38, %v988_v46  ;;  %v7318_v46 = vld [vmem:[%s13675_s1 + $0xad0] sm:$0xf] }
 0x146   : > { %v991_v59 = vpop.f32.mrf.mxu1  ;;  %7320 = vmatpush.msk.msrb.mxu3 %vm465_vm0, %v7318_v46  ;;  %v7286_v38 = vld [vmem:[%s13675_s1 + $0x9d0] sm:$0xff] }
 0x147   : > { %v9518_v18 = vadd.f32 %v1033_v2, %v9207_v55  ;;  %7143 = vmatmul.msk.f32.gmra.mxu2 %vm437_vm1, %v1299_v48  ;;  %1461 = vmatmul.f32.gmra.mxu0 %v1297_v16  ;;  %v9549_v48 = vld [vmem:[%s8412_s15 + $0xe0] sm:$0xff]  ;;  %v7293_v2 = vld [vmem:[%s13675_s1 + $0xa08] sm:$0xff]  ;;  %v7278_v46 = vld [vmem:[%s13675_s1 + $0x990] sm:$0xff] }
 0x148   : > { %v7316_v16 = vld [vmem:[%s13675_s1 + $0xac0] sm:$0xff]  ;;  %v1640_v19 = vrot.slane %v9549_v48, 1  ;;  %2149 = vmatpush.msrb.mxu0 %v7293_v2 }
 0x149   : > { %7223 = vmatmul.msk.f32.vlgmr.msra.gmra.mxu3 %vm437_vm1, %v1631_v3  ;;  %1713 = vmatmul.f32.vlgmr.msra.gmra.mxu1 %v1628_v0 }
 0x14a   : > { %v1120_v45 = vpop.f32.mrf.mxu2  ;;  %2109 = vmatpush.msrb.mxu3 %v7316_v16  ;;  %v7311_v16 = vld [vmem:[%s13675_s1 + $0xa98] sm:$0xff] }
 0x14b   : > { %v1121_v21 = vadd.f32 %v1120_v45, %v1076_v5  ;;  %v7312_v5 = vld [vmem:[%s13675_s1 + $0xaa0] sm:$0xff]  ;;  %v9598_v45 = vld [vmem:[%s8412_s15 + $0xf0] sm:$0xff] }
 0x14c   : > { %v1035_v8 = vpop.f32.mrf.mxu3  ;;  %v1079_v29 = vpop.f32.mrf.mxu0  ;;  %2110 = vmatpush.msrb.mxu3 %v7314_v11  ;;  %v7283_v11 = vld [vmem:[%s13675_s1 + $0x9b8] sm:$0xff] }
 0x14d   : > { %v9525_v28 = vadd.f32 %v1121_v21, %v9218_v1  ;;  %v1036_v55 = vadd.f32 %v1035_v8, %v991_v59  ;;  %v7317_v21 = vld [vmem:[%s13675_s1 + $0xac8] sm:$0xff]  ;;  %v7282_v8 = vld [vmem:[%s13675_s1 + $0x9b0] sm:$0xff] }
 0x14e   : > { %v994_v13 = vpop.f32.mrf.mxu1  ;;  %2111 = vmatpush.msrb.mxu3 %v7312_v5  ;;  %2197 = vmatpush.msrb.mxu2 %v7317_v21 }
 0x14f   : > { %v9530_v14 = vadd.f32 %v1036_v55, %v9220_v25  ;;  %7233 = vmatmul.msk.f32.vlgmr.msra.gmra.mxu2 %vm437_vm1, %v1631_v3  ;;  %1801 = vmatmul.f32.vlgmr.msra.gmra.mxu0 %v1628_v0  ;;  %v1643_v3 = vsel %vm1261_vm2, %v1638_v26, %v1642_v20  ;;  %v1641_v0 = vsel %vm1261_vm2, %v1636_v6, %v1640_v19  ;;  %v7306_v26 = vld [vmem:[%s13675_s1 + $0xa70] sm:$0xff] }
 0x150   : > { %2112 = vmatpush.msrb.mxu3 %v7310_v61  ;;  %2198 = vmatpush.msrb.mxu2 %v7315_v15 }
 0x151   : > { %7224 = vmatmul.msk.f32.gmra.mxu3 %vm437_vm1, %v1635_v34  ;;  %1716 = vmatmul.f32.gmra.mxu1 %v1633_v12 }
 0x152   : > { %v1123_v1 = vpop.f32.mrf.mxu2 }
 0x153   : > { %v1124_v35 = vadd.f32 %v1123_v1, %v1079_v29  ;;  %v7308_v29 = vld [vmem:[%s13675_s1 + $0xa80] sm:$0xff] }
 0x154   : > { %v1038_v53 = vpop.f32.mrf.mxu3  ;;  %v1082_v52 = vpop.f32.mrf.mxu0  ;;  %v7280_v1 = vld [vmem:[%s13675_s1 + $0x9a0] sm:$0xff]  ;;  %2113 = vmatpush.msrb.mxu3 %v7308_v29  ;;  %v7305_v29 = vld [vmem:[%s13675_s1 + $0xa68] sm:$0xff] }
 0x155   : > { %v9537_v33 = vadd.f32 %v1124_v35, %v9231_v22  ;;  %v1039_v25 = vadd.f32 %v1038_v53, %v994_v13  ;;  %v7292_v22 = vld [vmem:[%s13675_s1 + $0xa00] sm:$0xff]  ;;  %v1644_v13 = vrot.slane %v9598_v45, 1  ;;  %v7298_v45 = vld [vmem:[%s13675_s1 + $0xa30] sm:$0xff] }
 0x156   : > { %v997_v42 = vpop.f32.mrf.mxu1  ;;  %2061 = vmatpush.msrb.mxu1 %v7292_v22  ;;  %2114 = vmatpush.msrb.mxu3 %v7306_v26  ;;  %v9657_v22 = vld [vmem:[%s8412_s15 + $0x100] sm:$0xff] }
 0x157   : > { %v9545_v62 = vadd.f32 %v1039_v25, %v9233_v36  ;;  %7234 = vmatmul.msk.f32.gmra.mxu2 %vm437_vm1, %v1635_v34  ;;  %1804 = vmatmul.f32.gmra.mxu0 %v1633_v12  ;;  %v7290_v36 = vld [vmem:[%s13675_s1 + $0x9f0] sm:$0xff]  ;;  %v7289_v12 = vld [vmem:[%s13675_s1 + $0x9e8] sm:$0xff]  ;;  %v7287_v25 = vld [vmem:[%s13675_s1 + $0x9d8] sm:$0xff] }
 0x158   : > { %2062 = vmatpush.msrb.mxu1 %v7290_v36  ;;  %v7304_v36 = vld [vmem:[%s13675_s1 + $0xa60] sm:$0xff] }
 0x159   : > { %7225 = vmatmul.msk.f32.gmra.mxu3 %vm437_vm1, %v1639_v37  ;;  %1719 = vmatmul.f32.gmra.mxu1 %v1637_v24 }
 0x15a   : > { %v1126_v51 = vpop.f32.mrf.mxu2  ;;  %2063 = vmatpush.msrb.mxu1 %v7288_v50  ;;  %v1648_v50 = vrot.slane %v9657_v22, 1  ;;  %2115 = vmatpush.msrb.mxu3 %v7304_v36  ;;  %v7273_v22 = vld [vmem:[%s13675_s1 + $0x968] sm:$0xff] }
 0x15b   : > { %v1127_v27 = vadd.f32 %v1126_v51, %v1082_v52  ;;  %v7276_v51 = vld [vmem:[%s13675_s1 + $0x980] sm:$0xff] }
 0x15c   : > { %v1041_v10 = vpop.f32.mrf.mxu3  ;;  %v1085_v31 = vpop.f32.mrf.mxu0  ;;  %2064 = vmatpush.msrb.mxu1 %v7286_v38  ;;  %v7300_v38 = vld [vmem:[%s13675_s1 + $0xa40] sm:$0xff] }
 0x15d   : > { %v9574_v32 = vadd.f32 %v1127_v27, %v9257_v60  ;;  %v1042_v57 = vadd.f32 %v1041_v10, %v997_v42  ;;  %v9588_v60 = vld [vmem:[%s8412_s15 + $0xf8] sm:$0xff]  ;;  %v1650_v27 = vrot.slane %v9650_v23, 1  ;;  %v7309_v10 = vld [vmem:[%s13675_s1 + $0xa88] sm:$0xff]  ;;  %v7266_v23 = vld [vmem:[%s13675_s1 + $0x930] sm:$0xff] }
 0x15e   : > { %v1000_v59 = vpop.f32.mrf.mxu1  ;;  %v1646_v34 = vrot.slane %v9588_v60, 1  ;;  %2065 = vmatpush.msrb.mxu1 %v7284_v4  ;;  %v9719_v60 = vld [vmem:[%s8412_s15 + $0x110] sm:$0xff] }
 0x15f   : > { %v9594_v49 = vadd.f32 %v1042_v57, %v9265_v39  ;;  %7235 = vmatmul.msk.f32.gmra.mxu2 %vm437_vm1, %v1639_v37  ;;  %1807 = vmatmul.f32.gmra.mxu0 %v1637_v24  ;;  %v7291_v39 = vld [vmem:[%s13675_s1 + $0x9f8] sm:$0xff]  ;;  %v7313_v37 = vld [vmem:[%s13675_s1 + $0xaa8] sm:$0xff]  ;;  %v7274_v57 = vld [vmem:[%s13675_s1 + $0x970] sm:$0xff]  ;;  %v1652_v15 = vrot.slane %v9719_v60, 1 }
 0x160   : > { %2150 = vmatpush.msrb.mxu0 %v7291_v39  ;;  %2066 = vmatpush.msrb.mxu1 %v7282_v8  ;;  %v1647_v42 = vsel %vm1261_vm2, %v1642_v20, %v1646_v34  ;;  %v7302_v20 = vld [vmem:[%s13675_s1 + $0xa50] sm:$0xff]  ;;  %v1651_v4 = vsel %vm1261_vm2, %v1646_v34, %v1650_v27  ;;  %v9712_v39 = vld [vmem:[%s8412_s15 + $0x118] sm:$0xff]  ;;  %v7272_v8 = vld [vmem:[%s13675_s1 + $0x960] sm:$0xff] }
 0x161   : > { %7226 = vmatmul.msk.f32.gmra.mxu3 %vm437_vm1, %v1643_v3  ;;  %1722 = vmatmul.f32.gmra.mxu1 %v1641_v0  ;;  %v7296_v34 = vld [vmem:[%s13675_s1 + $0xa20] sm:$0xff]  ;;  %v7163_v60 = vld [vmem:[%s8412_s15 + $0x138] sm:$0x1] }
 0x162   : > { %v1129_v55 = vpop.f32.mrf.mxu2  ;;  %2151 = vmatpush.msrb.mxu0 %v7289_v12  ;;  %2067 = vmatpush.msrb.mxu1 %v7280_v1  ;;  %v1654_v12 = vrot.slane %v9712_v39, 1  ;;  %v7303_v1 = vld [vmem:[%s13675_s1 + $0xa58] sm:$0xff] }
 0x163   : > { %v1130_v17 = vadd.f32 %v1129_v55, %v1085_v31  ;;  %2199 = vmatpush.msrb.mxu2 %v7313_v37  ;;  %2116 = vmatpush.msrb.mxu3 %v7302_v20  ;;  %v7270_v55 = vld [vmem:[%s13675_s1 + $0x950] sm:$0xff]  ;;  %v7299_v20 = vld [vmem:[%s13675_s1 + $0xa38] sm:$0xff] }
 0x164   : > { %v1044_v6 = vpop.f32.mrf.mxu3  ;;  %v1088_v35 = vpop.f32.mrf.mxu0  ;;  %2152 = vmatpush.msrb.mxu0 %v7287_v25  ;;  %2068 = vmatpush.msrb.mxu1 %v7278_v46  ;;  %v1655_v46 = vsel %vm1261_vm2, %v1650_v27, %v1654_v12 }
 0x165   : > { %v9635_v53 = vadd.f32 %v1130_v17, %v9313_v43  ;;  %v1045_v52 = vadd.f32 %v1044_v6, %v1000_v59  ;;  %v1645_v43 = vsel %vm1261_vm2, %v1640_v19, %v1644_v13  ;;  %2200 = vmatpush.msrb.mxu2 %v7311_v16  ;;  %2117 = vmatpush.msrb.mxu3 %v7300_v38  ;;  %v7277_v17 = vld [vmem:[%s13675_s1 + $0x988] sm:$0xff]  ;;  %v7268_v6 = vld [vmem:[%s13675_s1 + $0x940] sm:$0xff] }
 0x166   : > { %v1003_v24 = vpop.f32.mrf.mxu1  ;;  %2069 = vmatpush.msrb.mxu1 %v7276_v51  ;;  %v7160_v51 = vld [vmem:[%s8412_s15 + $0x120] sm:$0xff]  ;;  %v7269_v38 = vld [vmem:[%s13675_s1 + $0x948] sm:$0xff] }
 0x167   : > { %v9653_v48 = vadd.f32 %v1045_v52, %v9321_v44  ;;  %7236 = vmatmul.msk.f32.gmra.mxu2 %vm437_vm1, %v1643_v3  ;;  %1810 = vmatmul.f32.gmra.mxu0 %v1641_v0  ;;  %v7285_v44 = vld [vmem:[%s13675_s1 + $0x9c8] sm:$0xff] }
 0x168   : > { %2153 = vmatpush.msrb.mxu0 %v7285_v44  ;;  %2201 = vmatpush.msrb.mxu2 %v7309_v10  ;;  %v7281_v0 = vld [vmem:[%s13675_s1 + $0x9a8] sm:$0xff] }
 0x169   : > { %7227 = vmatmul.msk.f32.gmra.mxu3 %vm437_vm1, %v1647_v42  ;;  %1725 = vmatmul.f32.gmra.mxu1 %v1645_v43  ;;  %v9770_v44 = vld [vmem:[%s8412_s15 + $0x128] sm:$0xff] }
 0x16a   : > { %v1132_v19 = vpop.f32.mrf.mxu2  ;;  %2154 = vmatpush.msrb.mxu0 %v7283_v11  ;;  %2070 = vmatpush.msrb.mxu1 %v7274_v57  ;;  %v1656_v11 = vrot.slane %v7160_v51, 1  ;;  %v7297_v10 = vld [vmem:[%s13675_s1 + $0xa28] sm:$0xff]  ;;  %v7262_v57 = vld [vmem:[%s13675_s1 + $0x910] sm:$0xff] }
 0x16b   : > { %v1133_v31 = vadd.f32 %v1132_v19, %v1088_v35  ;;  %2202 = vmatpush.msrb.mxu2 %v7307_v9  ;;  %2118 = vmatpush.msrb.mxu3 %v7298_v45  ;;  %v7294_v35 = vld [vmem:[%s13675_s1 + $0xa10] sm:$0xff]  ;;  %v7271_v19 = vld [vmem:[%s13675_s1 + $0x958] sm:$0xff]  ;;  %v7265_v45 = vld [vmem:[%s13675_s1 + $0x928] sm:$0xff] }
 0x16c   : > { %v1047_v5 = vpop.f32.mrf.mxu3  ;;  %v1091_v2 = vpop.f32.mrf.mxu0  ;;  %2155 = vmatpush.msrb.mxu0 %v7281_v0  ;;  %2071 = vmatpush.msrb.mxu1 %v7272_v8  ;;  %v7295_v9 = vld [vmem:[%s13675_s1 + $0xa18] sm:$0xff]  ;;  %v1657_v39 = vsel %vm1261_vm2, %v1652_v15, %v1656_v11  ;;  %v7162_v8 = vld [vmem:[%s8412_s15 + $0x130] sm:$0x1] }
 0x16d   : > { %v9693_v3 = vadd.f32 %v1133_v31, %v9366_v7  ;;  %v1048_v59 = vadd.f32 %v1047_v5, %v1003_v24  ;;  %v1649_v7 = vsel %vm1261_vm2, %v1644_v13, %v1648_v50  ;;  %2203 = vmatpush.msrb.mxu2 %v7305_v29  ;;  %2119 = vmatpush.msrb.mxu3 %v7296_v34  ;;  %v7275_v24 = vld [vmem:[%s13675_s1 + $0x978] sm:$0xff]  ;;  %v1662_v29 = vrot.slane %v7163_v60, 1 }
 0x16e   : > { %v1006_v61 = vpop.f32.mrf.mxu1  ;;  %2072 = vmatpush.msrb.mxu1 %v7270_v55  ;;  %v1660_v55 = vrot.slane %v7162_v8, 1 }
 0x16f   : > { %v9715_v21 = vadd.f32 %v1048_v59, %v9374_v41  ;;  %7237 = vmatmul.msk.f32.gmra.mxu2 %vm437_vm1, %v1647_v42  ;;  %1813 = vmatmul.f32.gmra.mxu0 %v1645_v43  ;;  %v7279_v41 = vld [vmem:[%s13675_s1 + $0x998] sm:$0xff]  ;;  %v7301_v43 = vld [vmem:[%s13675_s1 + $0xa48] sm:$0xff] }
 0x170   : > { %2156 = vmatpush.msrb.mxu0 %v7279_v41  ;;  %2204 = vmatpush.msrb.mxu2 %v7303_v1 }
 0x171   : > { %7228 = vmatmul.msk.f32.gmra.mxu3 %vm437_vm1, %v1651_v4  ;;  %1728 = vmatmul.f32.gmra.mxu1 %v1649_v7 }
 0x172   : > { %v1135_v13 = vpop.f32.mrf.mxu2  ;;  %2157 = vmatpush.msrb.mxu0 %v7277_v17  ;;  %2073 = vmatpush.msrb.mxu1 %v7268_v6  ;;  %v1661_v6 = vsel %vm1261_vm2, %v1656_v11, %v1660_v55  ;;  %v7246_v11 = vld [vmem:[%s8412_s15 + $0x160] sm:$0xff] }
 0x173   : > { %v1136_v26 = vadd.f32 %v1135_v13, %v1091_v2  ;;  %2120 = vmatpush.msrb.mxu3 %v7294_v35  ;;  %2205 = vmatpush.msrb.mxu2 %v7301_v43  ;;  %v7243_v35 = vld [vmem:[%s8412_s15 + $0x148] sm:$0xfe] }
 0x174   : > { %v1050_v52 = vpop.f32.mrf.mxu3  ;;  %v1094_v25 = vpop.f32.mrf.mxu0  ;;  %2158 = vmatpush.msrb.mxu0 %v7275_v24  ;;  %2074 = vmatpush.msrb.mxu1 %v7266_v23  ;;  %v7244_v24 = vld [vmem:[%s8412_s15 + $0x150] sm:$0xff]  ;;  %v1993_v43 = vrot.slane %v7243_v35, 1 }
 0x175   : > { %v9755_v37 = vadd.f32 %v1136_v26, %v9423_v54  ;;  %v1051_v42 = vadd.f32 %v1050_v52, %v1006_v61  ;;  %v1653_v54 = vsel %vm1261_vm2, %v1648_v50, %v1652_v15  ;;  %v1658_v50 = vrot.slane %v9770_v44, 1  ;;  %2206 = vmatpush.msrb.mxu2 %v7299_v20 }
 0x176   : > { %v1009_v36 = vpop.f32.mrf.mxu1  ;;  %2159 = vmatpush.msrb.mxu0 %v7273_v22 }
 0x177   : > { %v9773_v16 = vadd.f32 %v1051_v42, %v9431_v63  ;;  %7238 = vmatmul.msk.f32.gmra.mxu2 %vm437_vm1, %v1651_v4  ;;  %1816 = vmatmul.f32.gmra.mxu0 %v1649_v7  ;;  %v7264_v63 = vld [vmem:[%s13675_s1 + $0x920] sm:$0xff]  ;;  %v7267_v4 = vld [vmem:[%s13675_s1 + $0x938] sm:$0xff]  ;;  %v1659_v61 = vsel %vm1261_vm2, %v1654_v12, %v1658_v50  ;;  %v1663_v1 = vsel %vm1261_vm2, %v1658_v50, %v1662_v29  ;;  %v7247_v50 = vld [vmem:[%s8412_s15 + $0x168] sm:$0xff] }
 0x178   : > { %2075 = vmatpush.msrb.mxu1 %v7264_v63  ;;  %2160 = vmatpush.msrb.mxu0 %v7271_v19  ;;  %v7242_v42 = vld [vmem:[%s8412_s15 + $0x140] sm:$0xfe] }
 0x179   : > { %7229 = vmatmul.msk.f32.gmra.mxu3 %vm437_vm1, %v1655_v46  ;;  %1731 = vmatmul.f32.gmra.mxu1 %v1653_v54 }
 0x17a   : > { %v1138_v27 = vpop.f32.mrf.mxu2  ;;  %2207 = vmatpush.msrb.mxu2 %v7297_v10  ;;  %2076 = vmatpush.msrb.mxu1 %v7262_v57  ;;  %v1998_v10 = vrot.slane %v7247_v50, 1  ;;  %v7397_v50 = vld [vmem:[%s13675_s1 + $0xca8] sm:$0xf] }
 0x17b   : > { %v1139_v31 = vadd.f32 %v1138_v27, %v1094_v25  ;;  %2161 = vmatpush.msrb.mxu0 %v7269_v38  ;;  %v7245_v25 = vld [vmem:[%s8412_s15 + $0x158] sm:$0xff] }
 0x17c   : > { %v1053_v5 = vpop.f32.mrf.mxu3  ;;  %v1097_v2 = vpop.f32.mrf.mxu0  ;;  %2208 = vmatpush.msrb.mxu2 %v7295_v9 }
 0x17d   : > { %v9804_v59 = vadd.f32 %v1139_v31, %v9470_v30  ;;  %v1054_v0 = vadd.f32 %v1053_v5, %v1009_v36  ;;  %2162 = vmatpush.msrb.mxu0 %v7267_v4  ;;  %v1990_v36 = vrot.slane %v7242_v42, 1  ;;  %v1996_v31 = vrot.slane %v7246_v11, 1 }
 0x17e   : > { %v1350_v7 = vpop.f32.mrf.mxu1  ;;  %7408 = vmatpush.msk.msra.mxu2 %vm465_vm0, %v7397_v50  ;;  %v7385_v50 = vld [vmem:[%s13675_s1 + $0xc48] sm:$0xff] }
 0x17f   : > { %v9815_v30 = vadd.f32 %v1054_v0, %v9478_v40  ;;  %7239 = vmatmul.msk.f32.gmra.mxu2 %vm437_vm1, %v1655_v46  ;;  %1819 = vmatmul.f32.gmra.mxu0 %v1653_v54  ;;  %v7263_v40 = vld [vmem:[%s13675_s1 + $0x918] sm:$0xff]  ;;  %v1994_v46 = vrot.slane %v7245_v25, 1  ;;  %v1991_v54 = vrot.slane %v7244_v24, 1 }
 0x180   : > { %2163 = vmatpush.msrb.mxu0 %v7265_v45 }
 0x181   : > { %7230 = vmatmul.msk.f32.gmra.mxu3 %vm437_vm1, %v1659_v61  ;;  %1734 = vmatmul.f32.gmra.mxu1 %v1657_v39  ;;  %v1995_v20 = vsel %vm1261_vm2, %v1993_v43, %v1994_v46  ;;  %v1992_v19 = vsel %vm1261_vm2, %v1990_v36, %v1991_v54  ;;  %v1999_v0 = vsel %vm1261_vm2, %v1994_v46, %v1998_v10  ;;  %v7392_v43 = vld [vmem:[%s13675_s1 + $0xc80] sm:$0xff] }
 0x182   : > { %v1141_v41 = vpop.f32.mrf.mxu2  ;;  %2164 = vmatpush.msrb.mxu0 %v7263_v40  ;;  %v1997_v4 = vsel %vm1261_vm2, %v1991_v54, %v1996_v31 }
 0x183   : > { %v1142_v34 = vadd.f32 %v1141_v41, %v1097_v2 }
 0x184   : > { %v1394_v13 = vpop.f32.mrf.mxu3  ;;  %v1438_v12 = vpop.f32.mrf.mxu0 }
 0x185   : > { %v9828_v15 = vadd.f32 %v1142_v34, %v9499_v47  ;;  %v1395_v17 = vadd.f32 %v1394_v13, %v1350_v7  ;;  %v7249_v7 = vld [vmem:[%s8412_s15 + $0x178] sm:$0xff] }
 0x186   : > { %v1353_v26 = vpop.f32.mrf.mxu1  ;;  %v2002_v60 = vrot.slane %v7249_v7, 1  ;;  %v7393_v7 = vld [vmem:[%s13675_s1 + $0xc88] sm:$0xff] }
 0x187   : > { %v9834_v52 = vadd.f32 %v1395_v17, %v9505_v56  ;;  %7240 = vmatmul.msk.f32.gmra.mxu2 %vm437_vm1, %v1659_v61  ;;  %1822 = vmatmul.f32.gmra.mxu0 %v1657_v39  ;;  %v7248_v39 = vld [vmem:[%s8412_s15 + $0x170] sm:$0xff] }
 0x188   : > { %v2000_v8 = vrot.slane %v7248_v39, 1  ;;  %v2003_v55 = vsel %vm1261_vm2, %v1998_v10, %v2002_v60  ;;  %v7362_v10 = vld [vmem:[%s13675_s1 + $0xb90] sm:$0xff] }
 0x189   : > { %7231 = vmatmul.msk.f32.gmra.mxu3 %vm437_vm1, %v1663_v1  ;;  %1737 = vmatmul.f32.gmra.mxu1 %v1661_v6 }
 0x18a   : > { %v1482_v47 = vpop.f32.mrf.mxu2  ;;  %v2001_v13 = vsel %vm1261_vm2, %v1996_v31, %v2000_v8  ;;  %v7388_v31 = vld [vmem:[%s13675_s1 + $0xc60] sm:$0xff] }
 0x18b   : > { %v1483_v44 = vadd.f32 %v1482_v47, %v1438_v12  ;;  %v9871_v12 = vld [vmem:[%s8412_s15 + $0x188] sm:$0xff]  ;;  %v7366_v47 = vld [vmem:[%s13675_s1 + $0xbb0] sm:$0xff] }
 0x18c   : > { %v1397_v51 = vpop.f32.mrf.mxu3  ;;  %v1441_v56 = vpop.f32.mrf.mxu0  ;;  %v2006_v25 = vrot.slane %v9871_v12, 1  ;;  %v9979_v12 = vld [vmem:[%s8412_s15 + $0x1a8] sm:$0xff] }
 0x18d   : > { %v9842_v23 = vadd.f32 %v1483_v44, %v9513_v58  ;;  %v1398_v22 = vadd.f32 %v1397_v51, %v1353_v26  ;;  %v7396_v26 = vld [vmem:[%s13675_s1 + $0xca0] sm:$0xf] }
 0x18e   : > { %v1356_v63 = vpop.f32.mrf.mxu1  ;;  %7398 = vmatpush.msk.msra.mxu3 %vm465_vm0, %v7396_v26  ;;  %v7364_v51 = vld [vmem:[%s13675_s1 + $0xba0] sm:$0xff] }
 0x18f   : > { %v9847_v27 = vadd.f32 %v1398_v22, %v9518_v18  ;;  %7241 = vmatmul.msk.f32.gmra.mxu2 %vm437_vm1, %v1663_v1  ;;  %1825 = vmatmul.f32.gmra.mxu0 %v1661_v6  ;;  %v9878_v1 = vld [vmem:[%s8412_s15 + $0x180] sm:$0xff]  ;;  %v7394_v6 = vld [vmem:[%s13675_s1 + $0xc90] sm:$0xff]  ;;  %v7371_v22 = vld [vmem:[%s13675_s1 + $0xbd8] sm:$0xff] }
 0x190   : > { %v2004_v42 = vrot.slane %v9878_v1, 1  ;;  %2442 = vmatpush.msra.mxu3 %v7394_v6  ;;  %2482 = vmatpush.msra.mxu0 %v7371_v22  ;;  %v7356_v26 = vld [vmem:[%s13675_s1 + $0xb60] sm:$0xff]  ;;  %v7389_v6 = vld [vmem:[%s13675_s1 + $0xc68] sm:$0xff] }
 0x191   : > { %7321 = vmatmul.msk.f32.vlgmr.msrb.gmra.mxu3 %vm437_vm1, %v1995_v20  ;;  %2077 = vmatmul.f32.vlgmr.msrb.gmra.mxu1 %v1992_v19 }
 0x192   : > { %v1485_v58 = vpop.f32.mrf.mxu2  ;;  %2443 = vmatpush.msra.mxu3 %v7392_v43  ;;  %v7361_v43 = vld [vmem:[%s13675_s1 + $0xb88] sm:$0xff] }
 0x193   : > { %v1486_v57 = vadd.f32 %v1485_v58, %v1441_v56  ;;  %v7390_v56 = vld [vmem:[%s13675_s1 + $0xc70] sm:$0xff] }
 0x194   : > { %v1400_v38 = vpop.f32.mrf.mxu3  ;;  %v1444_v5 = vpop.f32.mrf.mxu0  ;;  %2444 = vmatpush.msra.mxu3 %v7390_v56  ;;  %v9927_v58 = vld [vmem:[%s8412_s15 + $0x190] sm:$0xff] }
 0x195   : > { %v9854_v2 = vadd.f32 %v1486_v57, %v9525_v28  ;;  %v1401_v18 = vadd.f32 %v1400_v38, %v1356_v63  ;;  %v7395_v57 = vld [vmem:[%s13675_s1 + $0xc98] sm:$0xff]  ;;  %v7360_v38 = vld [vmem:[%s13675_s1 + $0xb80] sm:$0xff] }
 0x196   : > { %v1359_v9 = vpop.f32.mrf.mxu1  ;;  %2445 = vmatpush.msra.mxu3 %v7388_v31  ;;  %2530 = vmatpush.msra.mxu2 %v7395_v57 }
 0x197   : > { %v9859_v61 = vadd.f32 %v1401_v18, %v9530_v14  ;;  %7331 = vmatmul.msk.f32.vlgmr.msrb.gmra.mxu2 %vm437_vm1, %v1995_v20  ;;  %2165 = vmatmul.f32.vlgmr.msrb.gmra.mxu0 %v1992_v19  ;;  %v2007_v20 = vsel %vm1261_vm2, %v2002_v60, %v2006_v25  ;;  %v2005_v19 = vsel %vm1261_vm2, %v2000_v8, %v2004_v42  ;;  %v7384_v60 = vld [vmem:[%s13675_s1 + $0xc40] sm:$0xff] }
 0x198   : > { %2531 = vmatpush.msra.mxu2 %v7393_v7 }
 0x199   : > { %7322 = vmatmul.msk.f32.gmra.mxu3 %vm437_vm1, %v1999_v0  ;;  %2080 = vmatmul.f32.gmra.mxu1 %v1997_v4 }
 0x19a   : > { %v1488_v28 = vpop.f32.mrf.mxu2 }
 0x19b   : > { %v1489_v45 = vadd.f32 %v1488_v28, %v1444_v5  ;;  %v7386_v5 = vld [vmem:[%s13675_s1 + $0xc50] sm:$0xff] }
 0x19c   : > { %v1403_v40 = vpop.f32.mrf.mxu3  ;;  %v1447_v41 = vpop.f32.mrf.mxu0  ;;  %v7358_v28 = vld [vmem:[%s13675_s1 + $0xb70] sm:$0xff]  ;;  %2446 = vmatpush.msra.mxu3 %v7386_v5  ;;  %v7383_v5 = vld [vmem:[%s13675_s1 + $0xc38] sm:$0xff] }
 0x19d   : > { %v9866_v29 = vadd.f32 %v1489_v45, %v9537_v33  ;;  %v1404_v14 = vadd.f32 %v1403_v40, %v1359_v9  ;;  %v7370_v33 = vld [vmem:[%s13675_s1 + $0xbd0] sm:$0xff]  ;;  %v2008_v9 = vrot.slane %v9927_v58, 1  ;;  %v7376_v58 = vld [vmem:[%s13675_s1 + $0xc00] sm:$0xff] }
 0x19e   : > { %v1362_v34 = vpop.f32.mrf.mxu1  ;;  %2394 = vmatpush.msra.mxu1 %v7370_v33  ;;  %2447 = vmatpush.msra.mxu3 %v7384_v60  ;;  %v9986_v33 = vld [vmem:[%s8412_s15 + $0x1a0] sm:$0xff] }
 0x19f   : > { %v9874_v17 = vadd.f32 %v1404_v14, %v9545_v62  ;;  %7332 = vmatmul.msk.f32.gmra.mxu2 %vm437_vm1, %v1999_v0  ;;  %2168 = vmatmul.f32.gmra.mxu0 %v1997_v4  ;;  %v7368_v62 = vld [vmem:[%s13675_s1 + $0xbc0] sm:$0xff]  ;;  %v7367_v4 = vld [vmem:[%s13675_s1 + $0xbb8] sm:$0xff]  ;;  %v7365_v14 = vld [vmem:[%s13675_s1 + $0xba8] sm:$0xff] }
 0x1a0   : > { %2395 = vmatpush.msra.mxu1 %v7368_v62  ;;  %v7382_v62 = vld [vmem:[%s13675_s1 + $0xc30] sm:$0xff] }
 0x1a1   : > { %7323 = vmatmul.msk.f32.gmra.mxu3 %vm437_vm1, %v2003_v55  ;;  %2083 = vmatmul.f32.gmra.mxu1 %v2001_v13 }
 0x1a2   : > { %v1491_v35 = vpop.f32.mrf.mxu2  ;;  %2396 = vmatpush.msra.mxu1 %v7366_v47  ;;  %v2012_v47 = vrot.slane %v9986_v33, 1  ;;  %2448 = vmatpush.msra.mxu3 %v7382_v62  ;;  %v7351_v33 = vld [vmem:[%s13675_s1 + $0xb38] sm:$0xff] }
 0x1a3   : > { %v1492_v24 = vadd.f32 %v1491_v35, %v1447_v41  ;;  %v7354_v35 = vld [vmem:[%s13675_s1 + $0xb50] sm:$0xff] }
 0x1a4   : > { %v1406_v46 = vpop.f32.mrf.mxu3  ;;  %v1450_v36 = vpop.f32.mrf.mxu0  ;;  %2397 = vmatpush.msra.mxu1 %v7364_v51  ;;  %v7378_v51 = vld [vmem:[%s13675_s1 + $0xc10] sm:$0xff] }
 0x1a5   : > { %v9903_v54 = vadd.f32 %v1492_v24, %v9574_v32  ;;  %v1407_v44 = vadd.f32 %v1406_v46, %v1362_v34  ;;  %v9917_v32 = vld [vmem:[%s8412_s15 + $0x198] sm:$0xff]  ;;  %v2014_v24 = vrot.slane %v9979_v12, 1  ;;  %v7344_v12 = vld [vmem:[%s13675_s1 + $0xb00] sm:$0xff] }
 0x1a6   : > { %v1365_v63 = vpop.f32.mrf.mxu1  ;;  %v2010_v0 = vrot.slane %v9917_v32, 1  ;;  %2398 = vmatpush.msra.mxu1 %v7362_v10  ;;  %v7387_v46 = vld [vmem:[%s13675_s1 + $0xc58] sm:$0xff]  ;;  %v10048_v32 = vld [vmem:[%s8412_s15 + $0x1b0] sm:$0xff] }
 0x1a7   : > { %v9923_v11 = vadd.f32 %v1407_v44, %v9594_v49  ;;  %7333 = vmatmul.msk.f32.gmra.mxu2 %vm437_vm1, %v2003_v55  ;;  %2171 = vmatmul.f32.gmra.mxu0 %v2001_v13  ;;  %v7369_v49 = vld [vmem:[%s13675_s1 + $0xbc8] sm:$0xff]  ;;  %v7391_v55 = vld [vmem:[%s13675_s1 + $0xc78] sm:$0xff]  ;;  %v7352_v44 = vld [vmem:[%s13675_s1 + $0xb40] sm:$0xff]  ;;  %v2016_v7 = vrot.slane %v10048_v32, 1 }
 0x1a8   : > { %2483 = vmatpush.msra.mxu0 %v7369_v49  ;;  %2399 = vmatpush.msra.mxu1 %v7360_v38  ;;  %v2011_v34 = vsel %vm1261_vm2, %v2006_v25, %v2010_v0  ;;  %v7380_v25 = vld [vmem:[%s13675_s1 + $0xc20] sm:$0xff]  ;;  %v2015_v10 = vsel %vm1261_vm2, %v2010_v0, %v2014_v24  ;;  %v10041_v49 = vld [vmem:[%s8412_s15 + $0x1b8] sm:$0xff]  ;;  %v7350_v38 = vld [vmem:[%s13675_s1 + $0xb30] sm:$0xff] }
 0x1a9   : > { %7324 = vmatmul.msk.f32.gmra.mxu3 %vm437_vm1, %v2007_v20  ;;  %2086 = vmatmul.f32.gmra.mxu1 %v2005_v19  ;;  %v7374_v0 = vld [vmem:[%s13675_s1 + $0xbf0] sm:$0xff]  ;;  %v7261_v32 = vld [vmem:[%s8412_s15 + $0x1d8] sm:$0x1] }
 0x1aa   : > { %v1494_v18 = vpop.f32.mrf.mxu2  ;;  %2484 = vmatpush.msra.mxu0 %v7367_v4  ;;  %2400 = vmatpush.msra.mxu1 %v7358_v28  ;;  %v2018_v4 = vrot.slane %v10041_v49, 1  ;;  %v7381_v28 = vld [vmem:[%s13675_s1 + $0xc28] sm:$0xff] }
 0x1ab   : > { %v1495_v39 = vadd.f32 %v1494_v18, %v1450_v36  ;;  %2532 = vmatpush.msra.mxu2 %v7391_v55  ;;  %2449 = vmatpush.msra.mxu3 %v7380_v25  ;;  %v7348_v18 = vld [vmem:[%s13675_s1 + $0xb20] sm:$0xff]  ;;  %v7377_v25 = vld [vmem:[%s13675_s1 + $0xc08] sm:$0xff] }
 0x1ac   : > { %v1409_v8 = vpop.f32.mrf.mxu3  ;;  %v1453_v45 = vpop.f32.mrf.mxu0  ;;  %2485 = vmatpush.msra.mxu0 %v7365_v14  ;;  %2401 = vmatpush.msra.mxu1 %v7356_v26  ;;  %v2019_v26 = vsel %vm1261_vm2, %v2014_v24, %v2018_v4 }
 0x1ad   : > { %v9964_v40 = vadd.f32 %v1495_v39, %v9635_v53  ;;  %v1410_v41 = vadd.f32 %v1409_v8, %v1365_v63  ;;  %v2009_v53 = vsel %vm1261_vm2, %v2004_v42, %v2008_v9  ;;  %2533 = vmatpush.msra.mxu2 %v7389_v6  ;;  %2450 = vmatpush.msra.mxu3 %v7378_v51  ;;  %v7355_v39 = vld [vmem:[%s13675_s1 + $0xb58] sm:$0xff]  ;;  %v7346_v8 = vld [vmem:[%s13675_s1 + $0xb10] sm:$0xff] }
 0x1ae   : > { %v1368_v13 = vpop.f32.mrf.mxu1  ;;  %2402 = vmatpush.msra.mxu1 %v7354_v35  ;;  %v7258_v35 = vld [vmem:[%s8412_s15 + $0x1c0] sm:$0xff]  ;;  %v7347_v51 = vld [vmem:[%s13675_s1 + $0xb18] sm:$0xff] }
 0x1af   : > { %v9982_v1 = vadd.f32 %v1410_v41, %v9653_v48  ;;  %7334 = vmatmul.msk.f32.gmra.mxu2 %vm437_vm1, %v2007_v20  ;;  %2174 = vmatmul.f32.gmra.mxu0 %v2005_v19  ;;  %v7363_v48 = vld [vmem:[%s13675_s1 + $0xb98] sm:$0xff] }
 0x1b0   : > { %2486 = vmatpush.msra.mxu0 %v7363_v48  ;;  %2534 = vmatpush.msra.mxu2 %v7387_v46  ;;  %v7359_v19 = vld [vmem:[%s13675_s1 + $0xb78] sm:$0xff]  ;;  %v10099_v48 = vld [vmem:[%s8412_s15 + $0x1c8] sm:$0xff] }
 0x1b1   : > { %7325 = vmatmul.msk.f32.gmra.mxu3 %vm437_vm1, %v2011_v34  ;;  %2089 = vmatmul.f32.gmra.mxu1 %v2009_v53  ;;  %v7375_v46 = vld [vmem:[%s13675_s1 + $0xbf8] sm:$0xff] }
 0x1b2   : > { %v1497_v42 = vpop.f32.mrf.mxu2  ;;  %2487 = vmatpush.msra.mxu0 %v7361_v43  ;;  %2403 = vmatpush.msra.mxu1 %v7352_v44  ;;  %v2020_v43 = vrot.slane %v7258_v35, 1  ;;  %v7340_v44 = vld [vmem:[%s13675_s1 + $0xae0] sm:$0xff] }
 0x1b3   : > { %v1498_v36 = vadd.f32 %v1497_v42, %v1453_v45  ;;  %2535 = vmatpush.msra.mxu2 %v7385_v50  ;;  %2451 = vmatpush.msra.mxu3 %v7376_v58  ;;  %v7372_v45 = vld [vmem:[%s13675_s1 + $0xbe0] sm:$0xff]  ;;  %v7349_v42 = vld [vmem:[%s13675_s1 + $0xb28] sm:$0xff]  ;;  %v7343_v58 = vld [vmem:[%s13675_s1 + $0xaf8] sm:$0xff] }
 0x1b4   : > { %v1412_v56 = vpop.f32.mrf.mxu3  ;;  %v1456_v22 = vpop.f32.mrf.mxu0  ;;  %2488 = vmatpush.msra.mxu0 %v7359_v19  ;;  %2404 = vmatpush.msra.mxu1 %v7350_v38  ;;  %v7373_v50 = vld [vmem:[%s13675_s1 + $0xbe8] sm:$0xff]  ;;  %v2021_v49 = vsel %vm1261_vm2, %v2016_v7, %v2020_v43  ;;  %v7260_v38 = vld [vmem:[%s8412_s15 + $0x1d0] sm:$0x1] }
 0x1b5   : > { %v10022_v20 = vadd.f32 %v1498_v36, %v9693_v3  ;;  %v1413_v63 = vadd.f32 %v1412_v56, %v1368_v13  ;;  %v2013_v3 = vsel %vm1261_vm2, %v2008_v9, %v2012_v47  ;;  %2536 = vmatpush.msra.mxu2 %v7383_v5  ;;  %2452 = vmatpush.msra.mxu3 %v7374_v0  ;;  %v7353_v13 = vld [vmem:[%s13675_s1 + $0xb48] sm:$0xff]  ;;  %v2026_v5 = vrot.slane %v7261_v32, 1 }
 0x1b6   : > { %v1371_v31 = vpop.f32.mrf.mxu1  ;;  %2405 = vmatpush.msra.mxu1 %v7348_v18  ;;  %v2024_v18 = vrot.slane %v7260_v38, 1 }
 0x1b7   : > { %v10044_v57 = vadd.f32 %v1413_v63, %v9715_v21  ;;  %7335 = vmatmul.msk.f32.gmra.mxu2 %vm437_vm1, %v2011_v34  ;;  %2177 = vmatmul.f32.gmra.mxu0 %v2009_v53  ;;  %v7357_v21 = vld [vmem:[%s13675_s1 + $0xb68] sm:$0xff]  ;;  %v7379_v53 = vld [vmem:[%s13675_s1 + $0xc18] sm:$0xff] }
 0x1b8   : > { %2489 = vmatpush.msra.mxu0 %v7357_v21  ;;  %2537 = vmatpush.msra.mxu2 %v7381_v28  ;;  %v7341_v21 = vld [vmem:[%s13675_s1 + $0xae8] sm:$0xff] }
 0x1b9   : > { %7326 = vmatmul.msk.f32.gmra.mxu3 %vm437_vm1, %v2015_v10  ;;  %2092 = vmatmul.f32.gmra.mxu1 %v2013_v3 }
 0x1ba   : > { %v1500_v9 = vpop.f32.mrf.mxu2  ;;  %2490 = vmatpush.msra.mxu0 %v7355_v39  ;;  %2406 = vmatpush.msra.mxu1 %v7346_v8  ;;  %v2025_v8 = vsel %vm1261_vm2, %v2020_v43, %v2024_v18  ;;  %v8095_v43 = vld [vmem:[%s8412_s15 + $0x28] sm:$0xff] }
 0x1bb   : > { %v1501_v60 = vadd.f32 %v1500_v9, %v1456_v22  ;;  %2453 = vmatpush.msra.mxu3 %v7372_v45  ;;  %2538 = vmatpush.msra.mxu2 %v7379_v53 }
 0x1bc   : > { %v1415_v41 = vpop.f32.mrf.mxu3  ;;  %v1459_v14 = vpop.f32.mrf.mxu0  ;;  %2491 = vmatpush.msra.mxu0 %v7353_v13  ;;  %2407 = vmatpush.msra.mxu1 %v7344_v12  ;;  %v8093_v13 = vld [vmem:[%s8412_s15 + $0x18] sm:$0xff] }
 0x1bd   : > { %v10084_v55 = vadd.f32 %v1501_v60, %v9755_v37  ;;  %v1416_v34 = vadd.f32 %v1415_v41, %v1371_v31  ;;  %v2017_v37 = vsel %vm1261_vm2, %v2012_v47, %v2016_v7  ;;  %v2022_v47 = vrot.slane %v10099_v48, 1  ;;  %2539 = vmatpush.msra.mxu2 %v7377_v25  ;;  %v2256_v41 = vld [vmem:[%s8412_s15 + $0x8] sm:$0xfc] }
 0x1be   : > { %v1374_v62 = vpop.f32.mrf.mxu1  ;;  %2492 = vmatpush.msra.mxu0 %v7351_v33  ;;  %v2327_v53 = vrot.slane %v8093_v13, 2  ;;  %v7448_v13 = vld [vmem:[%s13675_s1 + $0xd80] sm:$0xff] }
 0x1bf   : > { %v10102_v6 = vadd.f32 %v1416_v34, %v9773_v16  ;;  %7336 = vmatmul.msk.f32.gmra.mxu2 %vm437_vm1, %v2015_v10  ;;  %2180 = vmatmul.f32.gmra.mxu0 %v2013_v3  ;;  %v7342_v16 = vld [vmem:[%s13675_s1 + $0xaf0] sm:$0xff]  ;;  %v7345_v10 = vld [vmem:[%s13675_s1 + $0xb08] sm:$0xff]  ;;  %v2023_v31 = vsel %vm1261_vm2, %v2018_v4, %v2022_v47  ;;  %v2027_v28 = vsel %vm1261_vm2, %v2022_v47, %v2026_v5  ;;  %v2326_v34 = vrot.slane %v2256_v41, 2 }
 0x1c0   : > { %2408 = vmatpush.msra.mxu1 %v7342_v16  ;;  %2493 = vmatpush.msra.mxu0 %v7349_v42 }
 0x1c1   : > { %7327 = vmatmul.msk.f32.gmra.mxu3 %vm437_vm1, %v2019_v26  ;;  %2095 = vmatmul.f32.gmra.mxu1 %v2017_v37  ;;  %v2328_v25 = vsel %vm2322_vm3, %v2326_v34, %v2327_v53 }
 0x1c2   : > { %v1503_v24 = vpop.f32.mrf.mxu2  ;;  %2540 = vmatpush.msra.mxu2 %v7375_v46  ;;  %2409 = vmatpush.msra.mxu1 %v7340_v44  ;;  %v2331_v46 = vrot.slane %v8095_v43, 2  ;;  %v7444_v43 = vld [vmem:[%s13675_s1 + $0xd60] sm:$0xff] }
 0x1c3   : > { %v1504_v36 = vadd.f32 %v1503_v24, %v1459_v14  ;;  %2494 = vmatpush.msra.mxu0 %v7347_v51  ;;  %v2255_v14 = vld [vmem:[%s8412_s15] sm:$0xfc] }
 0x1c4   : > { %v1418_v56 = vpop.f32.mrf.mxu3  ;;  %v1462_v22 = vpop.f32.mrf.mxu0  ;;  %2541 = vmatpush.msra.mxu2 %v7373_v50 }
 0x1c5   : > { %v10133_v63 = vadd.f32 %v1504_v36, %v9804_v59  ;;  %v1419_v19 = vadd.f32 %v1418_v56, %v1374_v62  ;;  %2495 = vmatpush.msra.mxu0 %v7345_v10  ;;  %v8094_v62 = vld [vmem:[%s8412_s15 + $0x10] sm:$0xff] }
 0x1c6   : > { %v1714_v3 = vpop.f32.mrf.mxu1 }
 0x1c7   : > { %v10144_v59 = vadd.f32 %v1419_v19, %v9815_v30  ;;  %7337 = vmatmul.msk.f32.gmra.mxu2 %vm437_vm1, %v2019_v26  ;;  %2183 = vmatmul.f32.gmra.mxu0 %v2017_v37  ;;  %v2323_v26 = vrot.slane %v2255_v14, 2  ;;  %v2324_v37 = vrot.slane %v8094_v62, 2  ;;  %v2332_v19 = vsel %vm2322_vm3, %v2327_v53, %v2331_v46  ;;  %v10222_v14 = vld [vmem:[%s8412_s15 + $0x40] sm:$0xff]  ;;  %v7474_v53 = vld [vmem:[%s13675_s1 + $0xe50] sm:$0xff] }
 0x1c8   : > { %2496 = vmatpush.msra.mxu0 %v7343_v58 }
 0x1c9   : > { %7328 = vmatmul.msk.f32.gmra.mxu3 %vm437_vm1, %v2023_v31  ;;  %2098 = vmatmul.f32.gmra.mxu1 %v2021_v49  ;;  %v2325_v42 = vsel %vm2322_vm3, %v2323_v26, %v2324_v37 }
 0x1ca   : > { %v1506_v30 = vpop.f32.mrf.mxu2  ;;  %2497 = vmatpush.msra.mxu0 %v7341_v21 }
 0x1cb   : > { %v1507_v0 = vadd.f32 %v1506_v30, %v1462_v22 }
 0x1cc   : > { %v1758_v9 = vpop.f32.mrf.mxu3  ;;  %v1802_v4 = vpop.f32.mrf.mxu0 }
 0x1cd   : > { %v10157_v7 = vadd.f32 %v1507_v0, %v9828_v15  ;;  %v1759_v39 = vadd.f32 %v1758_v9, %v1714_v3 }
 0x1ce   : > { %v1717_v60 = vpop.f32.mrf.mxu1 }
 0x1cf   : > { %v10162_v45 = vadd.f32 %v1759_v39, %v9834_v52  ;;  %7338 = vmatmul.msk.f32.gmra.mxu2 %vm437_vm1, %v2023_v31  ;;  %2186 = vmatmul.f32.gmra.mxu0 %v2021_v49  ;;  %v8097_v49 = vld [vmem:[%s8412_s15 + $0x38] sm:$0xff]  ;;  %v7452_v39 = vld [vmem:[%s13675_s1 + $0xda0] sm:$0xff] }
 0x1d0   : > { %v2335_v32 = vrot.slane %v8097_v49, 2  ;;  %2726 = vmatpush.msrb.mxu1 %v7452_v39 }
 0x1d1   : > { %7329 = vmatmul.msk.f32.gmra.mxu3 %vm437_vm1, %v2027_v28  ;;  %2101 = vmatmul.f32.gmra.mxu1 %v2025_v8 }
 0x1d2   : > { %v1846_v15 = vpop.f32.mrf.mxu2 }
 0x1d3   : > { %v1847_v48 = vadd.f32 %v1846_v15, %v1802_v4  ;;  %v2337_v15 = vrot.slane %v10222_v14, 2  ;;  %v10331_v14 = vld [vmem:[%s8412_s15 + $0x68] sm:$0xff] }
 0x1d4   : > { %v1761_v52 = vpop.f32.mrf.mxu3  ;;  %v1805_v35 = vpop.f32.mrf.mxu0 }
 0x1d5   : > { %v10171_v12 = vadd.f32 %v1847_v48, %v9842_v23  ;;  %v1762_v33 = vadd.f32 %v1761_v52, %v1717_v60  ;;  %v8096_v23 = vld [vmem:[%s8412_s15 + $0x20] sm:$0xff]  ;;  %v7446_v52 = vld [vmem:[%s13675_s1 + $0xd70] sm:$0xff] }
 0x1d6   : > { %v1720_v16 = vpop.f32.mrf.mxu1  ;;  %v2329_v36 = vrot.slane %v8096_v23, 2  ;;  %v7477_v23 = vld [vmem:[%s13675_s1 + $0xe68] sm:$0xff] }
 0x1d7   : > { %v10176_v24 = vadd.f32 %v1762_v33, %v9847_v27  ;;  %7339 = vmatmul.msk.f32.gmra.mxu2 %vm437_vm1, %v2027_v28  ;;  %2189 = vmatmul.f32.gmra.mxu0 %v2025_v8  ;;  %v7476_v28 = vld [vmem:[%s13675_s1 + $0xe60] sm:$0xff]  ;;  %v10218_v8 = vld [vmem:[%s8412_s15 + $0x48] sm:$0xff] }
 0x1d8   : > { %v2330_v10 = vsel %vm2322_vm3, %v2324_v37, %v2329_v36  ;;  %v2339_v41 = vrot.slane %v10218_v8, 2  ;;  %v7453_v33 = vld [vmem:[%s13675_s1 + $0xda8] sm:$0xff]  ;;  %v7462_v8 = vld [vmem:[%s13675_s1 + $0xdf0] sm:$0xff] }
 0x1d9   : > { %7399 = vmatmul.msk.f32.vlgmr.msra.gmra.mxu3 %vm437_vm1, %v2328_v25  ;;  %2410 = vmatmul.f32.vlgmr.msra.gmra.mxu1 %v2325_v42 }
 0x1da   : > { %v1849_v47 = vpop.f32.mrf.mxu2  ;;  %2814 = vmatpush.msrb.mxu0 %v7453_v33 }
 0x1db   : > { %v1850_v44 = vadd.f32 %v1849_v47, %v1805_v35  ;;  %v7472_v35 = vld [vmem:[%s13675_s1 + $0xe40] sm:$0xff] }
 0x1dc   : > { %v1764_v51 = vpop.f32.mrf.mxu3  ;;  %v1808_v56 = vpop.f32.mrf.mxu0 }
 0x1dd   : > { %v10183_v22 = vadd.f32 %v1850_v44, %v9854_v2  ;;  %v1765_v27 = vadd.f32 %v1764_v51, %v1720_v16  ;;  %v8098_v2 = vld [vmem:[%s8412_s15 + $0x30] sm:$0xff]  ;;  %v7468_v44 = vld [vmem:[%s13675_s1 + $0xe20] sm:$0xff] }
 0x1de   : > { %v1723_v50 = vpop.f32.mrf.mxu1  ;;  %v2333_v38 = vrot.slane %v8098_v2, 2  ;;  %v7466_v2 = vld [vmem:[%s13675_s1 + $0xe10] sm:$0xff] }
 0x1df   : > { %v10188_v31 = vadd.f32 %v1765_v27, %v9859_v61  ;;  %7409 = vmatmul.msk.f32.vlgmr.msra.gmra.mxu2 %vm437_vm1, %v2328_v25  ;;  %2498 = vmatmul.f32.vlgmr.msra.gmra.mxu0 %v2325_v42  ;;  %v2336_v61 = vsel %vm2322_vm3, %v2331_v46, %v2335_v32  ;;  %v2340_v25 = vsel %vm2322_vm3, %v2335_v32, %v2339_v41  ;;  %v7470_v46 = vld [vmem:[%s13675_s1 + $0xe30] sm:$0xff]  ;;  %v7440_v32 = vld [vmem:[%s13675_s1 + $0xd40] sm:$0xff] }
 0x1e0   : > { %v2334_v9 = vsel %vm2322_vm3, %v2329_v36, %v2333_v38  ;;  %v2338_v42 = vsel %vm2322_vm3, %v2333_v38, %v2337_v15  ;;  %v7442_v36 = vld [vmem:[%s13675_s1 + $0xd50] sm:$0xff] }
 0x1e1   : > { %7400 = vmatmul.msk.f32.gmra.mxu3 %vm437_vm1, %v2332_v19  ;;  %2413 = vmatmul.f32.gmra.mxu1 %v2330_v10 }
 0x1e2   : > { %v1852_v3 = vpop.f32.mrf.mxu2 }
 0x1e3   : > { %v1853_v58 = vadd.f32 %v1852_v3, %v1808_v56  ;;  %v10273_v56 = vld [vmem:[%s8412_s15 + $0x58] sm:$0xff] }
 0x1e4   : > { %v1767_v21 = vpop.f32.mrf.mxu3  ;;  %v1811_v30 = vpop.f32.mrf.mxu0  ;;  %v2343_v27 = vrot.slane %v10273_v56, 2  ;;  %v7475_v3 = vld [vmem:[%s13675_s1 + $0xe58] sm:$0xff]  ;;  %v7456_v56 = vld [vmem:[%s13675_s1 + $0xdc0] sm:$0xff] }
 0x1e5   : > { %v10195_v5 = vadd.f32 %v1853_v58, %v9866_v29  ;;  %v1768_v18 = vadd.f32 %v1767_v21, %v1723_v50  ;;  %v7478_v29 = vld [vmem:[%s13675_s1 + $0xe70] sm:$0xf] }
 0x1e6   : > { %v1726_v0 = vpop.f32.mrf.mxu1  ;;  %7480 = vmatpush.msk.msrb.mxu3 %vm465_vm0, %v7478_v29  ;;  %v7438_v29 = vld [vmem:[%s13675_s1 + $0xd30] sm:$0xff] }
 0x1e7   : > { %v10200_v4 = vadd.f32 %v1768_v18, %v9874_v17  ;;  %7410 = vmatmul.msk.f32.gmra.mxu2 %vm437_vm1, %v2332_v19  ;;  %2501 = vmatmul.f32.gmra.mxu0 %v2330_v10  ;;  %v7450_v17 = vld [vmem:[%s13675_s1 + $0xd90] sm:$0xff]  ;;  %v7449_v10 = vld [vmem:[%s13675_s1 + $0xd88] sm:$0xff]  ;;  %v7447_v18 = vld [vmem:[%s13675_s1 + $0xd78] sm:$0xff] }
 0x1e8   : > { %2727 = vmatpush.msrb.mxu1 %v7450_v17  ;;  %2774 = vmatpush.msrb.mxu3 %v7476_v28  ;;  %v10277_v19 = vld [vmem:[%s8412_s15 + $0x50] sm:$0xff]  ;;  %v7464_v17 = vld [vmem:[%s13675_s1 + $0xe00] sm:$0xff]  ;;  %v7445_v28 = vld [vmem:[%s13675_s1 + $0xd68] sm:$0xff] }
 0x1e9   : > { %7401 = vmatmul.msk.f32.gmra.mxu3 %vm437_vm1, %v2336_v61  ;;  %2416 = vmatmul.f32.gmra.mxu1 %v2334_v9  ;;  %v2341_v50 = vrot.slane %v10277_v19, 2  ;;  %v10393_v19 = vld [vmem:[%s8412_s15 + $0x78] sm:$0xff] }
 0x1ea   : > { %v1855_v60 = vpop.f32.mrf.mxu2  ;;  %2728 = vmatpush.msrb.mxu1 %v7448_v13  ;;  %2775 = vmatpush.msrb.mxu3 %v7474_v53  ;;  %v7443_v53 = vld [vmem:[%s13675_s1 + $0xd58] sm:$0xff] }
 0x1eb   : > { %v1856_v34 = vadd.f32 %v1855_v60, %v1811_v30  ;;  %v7436_v60 = vld [vmem:[%s13675_s1 + $0xd20] sm:$0xff] }
 0x1ec   : > { %v1770_v26 = vpop.f32.mrf.mxu3  ;;  %v1814_v62 = vpop.f32.mrf.mxu0  ;;  %2729 = vmatpush.msrb.mxu1 %v7446_v52  ;;  %2776 = vmatpush.msrb.mxu3 %v7472_v35  ;;  %v7460_v52 = vld [vmem:[%s13675_s1 + $0xde0] sm:$0xff] }
 0x1ed   : > { %v10232_v37 = vadd.f32 %v1856_v34, %v9903_v54  ;;  %v1771_v48 = vadd.f32 %v1770_v26, %v1726_v0  ;;  %v7479_v54 = vld [vmem:[%s13675_s1 + $0xe78] sm:$0xf]  ;;  %v2344_v0 = vsel %vm2322_vm3, %v2339_v41, %v2343_v27  ;;  %v10335_v34 = vld [vmem:[%s8412_s15 + $0x60] sm:$0xff]  ;;  %v7469_v26 = vld [vmem:[%s13675_s1 + $0xe28] sm:$0xff] }
 0x1ee   : > { %v1729_v16 = vpop.f32.mrf.mxu1  ;;  %7490 = vmatpush.msk.msrb.mxu2 %vm465_vm0, %v7479_v54  ;;  %2730 = vmatpush.msrb.mxu1 %v7444_v43  ;;  %v2345_v13 = vrot.slane %v10335_v34, 2  ;;  %v7467_v54 = vld [vmem:[%s13675_s1 + $0xe18] sm:$0xff] }
 0x1ef   : > { %v10249_v47 = vadd.f32 %v1771_v48, %v9923_v11  ;;  %7411 = vmatmul.msk.f32.gmra.mxu2 %vm437_vm1, %v2336_v61  ;;  %2504 = vmatmul.f32.gmra.mxu0 %v2334_v9  ;;  %v7451_v11 = vld [vmem:[%s13675_s1 + $0xd98] sm:$0xff]  ;;  %v7473_v61 = vld [vmem:[%s13675_s1 + $0xe48] sm:$0xff]  ;;  %v7434_v48 = vld [vmem:[%s13675_s1 + $0xd10] sm:$0xff] }
 0x1f0   : > { %2777 = vmatpush.msrb.mxu3 %v7470_v46  ;;  %2815 = vmatpush.msrb.mxu0 %v7451_v11 }
 0x1f1   : > { %7402 = vmatmul.msk.f32.gmra.mxu3 %vm437_vm1, %v2340_v25  ;;  %2419 = vmatmul.f32.gmra.mxu1 %v2338_v42 }
 0x1f2   : > { %v1858_v51 = vpop.f32.mrf.mxu2  ;;  %2862 = vmatpush.msrb.mxu2 %v7477_v23  ;;  %2731 = vmatpush.msrb.mxu1 %v7442_v36  ;;  %v7432_v23 = vld [vmem:[%s13675_s1 + $0xd00] sm:$0xff]  ;;  %v7458_v36 = vld [vmem:[%s13675_s1 + $0xdd0] sm:$0xff] }
 0x1f3   : > { %v1859_v49 = vadd.f32 %v1858_v51, %v1814_v62  ;;  %2778 = vmatpush.msrb.mxu3 %v7468_v44  ;;  %2816 = vmatpush.msrb.mxu0 %v7449_v10  ;;  %v7439_v44 = vld [vmem:[%s13675_s1 + $0xd38] sm:$0xff]  ;;  %v7430_v51 = vld [vmem:[%s13675_s1 + $0xcf0] sm:$0xff] }
 0x1f4   : > { %v1773_v38 = vpop.f32.mrf.mxu3  ;;  %v1817_v58 = vpop.f32.mrf.mxu0  ;;  %2863 = vmatpush.msrb.mxu2 %v7475_v3  ;;  %2732 = vmatpush.msrb.mxu1 %v7440_v32  ;;  %v10397_v10 = vld [vmem:[%s8412_s15 + $0x70] sm:$0xff]  ;;  %v7463_v32 = vld [vmem:[%s13675_s1 + $0xdf8] sm:$0xff] }
 0x1f5   : > { %v10293_v21 = vadd.f32 %v1859_v49, %v9964_v40  ;;  %v1774_v30 = vadd.f32 %v1773_v38, %v1729_v16  ;;  %v2342_v40 = vsel %vm2322_vm3, %v2337_v15, %v2341_v50  ;;  %2779 = vmatpush.msrb.mxu3 %v7466_v2  ;;  %2817 = vmatpush.msrb.mxu0 %v7447_v18  ;;  %v2347_v15 = vrot.slane %v10331_v14, 2  ;;  %v7437_v49 = vld [vmem:[%s13675_s1 + $0xd28] sm:$0xff]  ;;  %v7428_v38 = vld [vmem:[%s13675_s1 + $0xce0] sm:$0xff] }
 0x1f6   : > { %v1732_v9 = vpop.f32.mrf.mxu1  ;;  %2864 = vmatpush.msrb.mxu2 %v7473_v61  ;;  %2733 = vmatpush.msrb.mxu1 %v7438_v29  ;;  %v2349_v3 = vrot.slane %v10397_v10, 2 }
 0x1f7   : > { %v10308_v39 = vadd.f32 %v1774_v30, %v9982_v1  ;;  %7412 = vmatmul.msk.f32.gmra.mxu2 %vm437_vm1, %v2340_v25  ;;  %2507 = vmatmul.f32.gmra.mxu0 %v2338_v42  ;;  %v7471_v1 = vld [vmem:[%s13675_s1 + $0xe38] sm:$0xff]  ;;  %v7441_v42 = vld [vmem:[%s13675_s1 + $0xd48] sm:$0xff]  ;;  %v2348_v43 = vsel %vm2322_vm3, %v2343_v27, %v2347_v15 }
 0x1f8   : > { %2780 = vmatpush.msrb.mxu3 %v7464_v17  ;;  %2818 = vmatpush.msrb.mxu0 %v7445_v28 }
 0x1f9   : > { %7403 = vmatmul.msk.f32.gmra.mxu3 %vm437_vm1, %v2344_v0  ;;  %2422 = vmatmul.f32.gmra.mxu1 %v2342_v40 }
 0x1fa   : > { %v1861_v41 = vpop.f32.mrf.mxu2  ;;  %2865 = vmatpush.msrb.mxu2 %v7471_v1  ;;  %2734 = vmatpush.msrb.mxu1 %v7436_v60  ;;  %v7426_v1 = vld [vmem:[%s13675_s1 + $0xcd0] sm:$0xff]  ;;  %v7433_v60 = vld [vmem:[%s13675_s1 + $0xd08] sm:$0xff] }
 0x1fb   : > { %v1862_v62 = vadd.f32 %v1861_v41, %v1817_v58  ;;  %2781 = vmatpush.msrb.mxu3 %v7462_v8  ;;  %2819 = vmatpush.msrb.mxu0 %v7443_v53  ;;  %v7454_v58 = vld [vmem:[%s13675_s1 + $0xdb0] sm:$0xff]  ;;  %v7459_v8 = vld [vmem:[%s13675_s1 + $0xdd8] sm:$0xff] }
 0x1fc   : > { %v1776_v35 = vpop.f32.mrf.mxu3  ;;  %v1820_v33 = vpop.f32.mrf.mxu0  ;;  %2866 = vmatpush.msrb.mxu2 %v7469_v26  ;;  %2735 = vmatpush.msrb.mxu1 %v7434_v48  ;;  %v7431_v41 = vld [vmem:[%s13675_s1 + $0xcf8] sm:$0xff]  ;;  %v7457_v26 = vld [vmem:[%s13675_s1 + $0xdc8] sm:$0xff]  ;;  %v7422_v48 = vld [vmem:[%s13675_s1 + $0xcb0] sm:$0xff] }
 0x1fd   : > { %v10351_v25 = vadd.f32 %v1862_v62, %v10022_v20  ;;  %v1777_v16 = vadd.f32 %v1776_v35, %v1732_v9  ;;  %v2346_v20 = vsel %vm2322_vm3, %v2341_v50, %v2345_v13  ;;  %2782 = vmatpush.msrb.mxu3 %v7460_v52  ;;  %2820 = vmatpush.msrb.mxu0 %v7441_v42  ;;  %v2351_v50 = vrot.slane %v10393_v19, 2  ;;  %v7435_v9 = vld [vmem:[%s13675_s1 + $0xd18] sm:$0xff]  ;;  %v7429_v52 = vld [vmem:[%s13675_s1 + $0xce8] sm:$0xff] }
 0x1fe   : > { %v1735_v46 = vpop.f32.mrf.mxu1  ;;  %2867 = vmatpush.msrb.mxu2 %v7467_v54  ;;  %2736 = vmatpush.msrb.mxu1 %v7432_v23  ;;  %v7455_v54 = vld [vmem:[%s13675_s1 + $0xdb8] sm:$0xff] }
 0x1ff   : > { %v10370_v11 = vadd.f32 %v1777_v16, %v10044_v57  ;;  %7413 = vmatmul.msk.f32.gmra.mxu2 %vm437_vm1, %v2344_v0  ;;  %2510 = vmatmul.f32.gmra.mxu0 %v2342_v40  ;;  %v7465_v57 = vld [vmem:[%s13675_s1 + $0xe08] sm:$0xff]  ;;  %v2352_v29 = vsel %vm2322_vm3, %v2347_v15, %v2351_v50 }
 0x200   : > { %2783 = vmatpush.msrb.mxu3 %v7458_v36  ;;  %2821 = vmatpush.msrb.mxu0 %v7439_v44  ;;  %v7461_v40 = vld [vmem:[%s13675_s1 + $0xde8] sm:$0xff]  ;;  %v2258_v36 = vld [vmem:[%s8412_s15 + $0x98] sm:$0x3]  ;;  %v2257_v44 = vld [vmem:[%s8412_s15 + $0x90] sm:$0x3] }
 0x201   : > { %7404 = vmatmul.msk.f32.gmra.mxu3 %vm437_vm1, %v2348_v43  ;;  %2425 = vmatmul.f32.gmra.mxu1 %v2346_v20  ;;  %v8107_v15 = vld [vmem:[%s8412_s15 + $0x88] sm:$0xff] }
 0x202   : > { %v1864_v27 = vpop.f32.mrf.mxu2  ;;  %2868 = vmatpush.msrb.mxu2 %v7465_v57  ;;  %2737 = vmatpush.msrb.mxu1 %v7430_v51  ;;  %v2355_v34 = vrot.slane %v8107_v15, 2  ;;  %v7425_v57 = vld [vmem:[%s13675_s1 + $0xcc8] sm:$0xff]  ;;  %v7423_v51 = vld [vmem:[%s13675_s1 + $0xcb8] sm:$0xff] }
 0x203   : > { %v1865_v2 = vadd.f32 %v1864_v27, %v1820_v33  ;;  %2784 = vmatpush.msrb.mxu3 %v7456_v56  ;;  %2822 = vmatpush.msrb.mxu0 %v7437_v49  ;;  %v2359_v56 = vrot.slane %v2258_v36, 2  ;;  %v2357_v27 = vrot.slane %v2257_v44, 2 }
 0x204   : > { %v1779_v30 = vpop.f32.mrf.mxu3  ;;  %v1823_v18 = vpop.f32.mrf.mxu0  ;;  %2869 = vmatpush.msrb.mxu2 %v7463_v32  ;;  %2738 = vmatpush.msrb.mxu1 %v7428_v38 }
 0x205   : > { %v10413_v61 = vadd.f32 %v1865_v2, %v10084_v55  ;;  %v1780_v0 = vadd.f32 %v1779_v30, %v1735_v46  ;;  %v2350_v55 = vsel %vm2322_vm3, %v2345_v13, %v2349_v3  ;;  %2785 = vmatpush.msrb.mxu3 %v7454_v58  ;;  %2823 = vmatpush.msrb.mxu0 %v7435_v9  ;;  %v8108_v13 = vld [vmem:[%s8412_s15 + $0x80] sm:$0xff]  ;;  %v7419_v30 = vld [vmem:[%s8412_s15 + $0xa8] sm:$0xfc]  ;;  %v8109_v9 = vld [vmem:[%s8412_s15 + $0xb8] sm:$0xff] }
 0x206   : > { %v1738_v17 = vpop.f32.mrf.mxu1  ;;  %2870 = vmatpush.msrb.mxu2 %v7461_v40  ;;  %v2353_v53 = vrot.slane %v8108_v13, 2  ;;  %2739 = vmatpush.msrb.mxu1 %v7426_v1  ;;  %v2356_v46 = vsel %vm2322_vm3, %v2351_v50, %v2355_v34  ;;  %v2360_v32 = vsel %vm2322_vm3, %v2355_v34, %v2359_v56  ;;  %v2659_v40 = vrot.slane %v8109_v9, 2  ;;  %v7530_v9 = vld [vmem:[%s13675_s1 + $0xf50] sm:$0xff] }
 0x207   : > { %v10428_v28 = vadd.f32 %v1780_v0, %v10102_v6  ;;  %7414 = vmatmul.msk.f32.gmra.mxu2 %vm437_vm1, %v2348_v43  ;;  %2513 = vmatmul.f32.gmra.mxu0 %v2346_v20  ;;  %v7424_v6 = vld [vmem:[%s13675_s1 + $0xcc0] sm:$0xff]  ;;  %v7427_v43 = vld [vmem:[%s13675_s1 + $0xcd8] sm:$0xff]  ;;  %v2658_v0 = vrot.slane %v7419_v30, 2 }
 0x208   : > { %2824 = vmatpush.msrb.mxu0 %v7433_v60  ;;  %2871 = vmatpush.msrb.mxu2 %v7459_v8  ;;  %v2354_v23 = vsel %vm2322_vm3, %v2349_v3, %v2353_v53  ;;  %v2358_v38 = vsel %vm2322_vm3, %v2353_v53, %v2357_v27  ;;  %v8111_v53 = vld [vmem:[%s8412_s15 + $0xc8] sm:$0xff] }
 0x209   : > { %7405 = vmatmul.msk.f32.gmra.mxu3 %vm437_vm1, %v2352_v29  ;;  %2428 = vmatmul.f32.gmra.mxu1 %v2350_v55 }
 0x20a   : > { %v1867_v14 = vpop.f32.mrf.mxu2  ;;  %2740 = vmatpush.msrb.mxu1 %v7424_v6  ;;  %2825 = vmatpush.msrb.mxu0 %v7431_v41  ;;  %v2660_v41 = vsel %vm2322_vm3, %v2658_v0, %v2659_v40 }
 0x20b   : > { %v1868_v62 = vadd.f32 %v1867_v14, %v1823_v18  ;;  %2872 = vmatpush.msrb.mxu2 %v7457_v26  ;;  %v7418_v18 = vld [vmem:[%s8412_s15 + $0xa0] sm:$0xfc]  ;;  %v2663_v26 = vrot.slane %v8111_v53, 2  ;;  %v7526_v53 = vld [vmem:[%s13675_s1 + $0xf30] sm:$0xff] }
 0x20c   : > { %v1782_v35 = vpop.f32.mrf.mxu3  ;;  %v1826_v33 = vpop.f32.mrf.mxu0  ;;  %2741 = vmatpush.msrb.mxu1 %v7422_v48  ;;  %2826 = vmatpush.msrb.mxu0 %v7429_v52 }
 0x20d   : > { %v10459_v16 = vadd.f32 %v1868_v62, %v10133_v63  ;;  %v1783_v42 = vadd.f32 %v1782_v35, %v1738_v17  ;;  %2873 = vmatpush.msrb.mxu2 %v7455_v54  ;;  %v8110_v17 = vld [vmem:[%s8412_s15 + $0xb0] sm:$0xff] }
 0x20e   : > { %v2078_v20 = vpop.f32.mrf.mxu1  ;;  %2827 = vmatpush.msrb.mxu0 %v7427_v43 }
 0x20f   : > { %v10470_v63 = vadd.f32 %v1783_v42, %v10144_v59  ;;  %7415 = vmatmul.msk.f32.gmra.mxu2 %vm437_vm1, %v2352_v29  ;;  %2516 = vmatmul.f32.gmra.mxu0 %v2350_v55  ;;  %v2655_v29 = vrot.slane %v7418_v18, 2  ;;  %v2656_v55 = vrot.slane %v8110_v17, 2  ;;  %v2664_v42 = vsel %vm2322_vm3, %v2659_v40, %v2663_v26  ;;  %v10548_v18 = vld [vmem:[%s8412_s15 + $0xe0] sm:$0xff] }
 0x210   : > { %2828 = vmatpush.msrb.mxu0 %v7425_v57  ;;  %v7556_v40 = vld [vmem:[%s13675_s1 + $0x1020] sm:$0xff] }
 0x211   : > { %7406 = vmatmul.msk.f32.gmra.mxu3 %vm437_vm1, %v2356_v46  ;;  %2431 = vmatmul.f32.gmra.mxu1 %v2354_v23  ;;  %v2657_v15 = vsel %vm2322_vm3, %v2655_v29, %v2656_v55 }
 0x212   : > { %v1870_v59 = vpop.f32.mrf.mxu2  ;;  %2829 = vmatpush.msrb.mxu0 %v7423_v51 }
 0x213   : > { %v1871_v19 = vadd.f32 %v1870_v59, %v1826_v33 }
 0x214   : > { %v2122_v50 = vpop.f32.mrf.mxu3  ;;  %v2166_v10 = vpop.f32.mrf.mxu0 }
 0x215   : > { %v10483_v3 = vadd.f32 %v1871_v19, %v10157_v7  ;;  %v2123_v49 = vadd.f32 %v2122_v50, %v2078_v20 }
 0x216   : > { %v2081_v2 = vpop.f32.mrf.mxu1 }
 0x217   : > { %v10488_v58 = vadd.f32 %v2123_v49, %v10162_v45  ;;  %7416 = vmatmul.msk.f32.gmra.mxu2 %vm437_vm1, %v2356_v46  ;;  %2519 = vmatmul.f32.gmra.mxu0 %v2354_v23  ;;  %v8113_v23 = vld [vmem:[%s8412_s15 + $0xd8] sm:$0xff]  ;;  %v7534_v49 = vld [vmem:[%s13675_s1 + $0xf70] sm:$0xff] }
 0x218   : > { %v2667_v36 = vrot.slane %v8113_v23, 2  ;;  %3058 = vmatpush.msra.mxu1 %v7534_v49 }
 0x219   : > { %7407 = vmatmul.msk.f32.gmra.mxu3 %vm437_vm1, %v2360_v32  ;;  %2434 = vmatmul.f32.gmra.mxu1 %v2358_v38 }
 0x21a   : > { %v2210_v7 = vpop.f32.mrf.mxu2 }
 0x21b   : > { %v2211_v1 = vadd.f32 %v2210_v7, %v2166_v10  ;;  %v2669_v7 = vrot.slane %v10548_v18, 2  ;;  %v10657_v18 = vld [vmem:[%s8412_s15 + $0x108] sm:$0xff] }
 0x21c   : > { %v2125_v45 = vpop.f32.mrf.mxu3  ;;  %v2169_v60 = vpop.f32.mrf.mxu0 }
 0x21d   : > { %v10497_v8 = vadd.f32 %v2211_v1, %v10171_v12  ;;  %v2126_v6 = vadd.f32 %v2125_v45, %v2081_v2  ;;  %v8112_v12 = vld [vmem:[%s8412_s15 + $0xc0] sm:$0xff] }
 0x21e   : > { %v2084_v14 = vpop.f32.mrf.mxu1  ;;  %v2661_v62 = vrot.slane %v8112_v12, 2  ;;  %v7528_v45 = vld [vmem:[%s13675_s1 + $0xf40] sm:$0xff]  ;;  %v7559_v12 = vld [vmem:[%s13675_s1 + $0x1038] sm:$0xff] }
 0x21f   : > { %v10502_v34 = vadd.f32 %v2126_v6, %v10176_v24  ;;  %7417 = vmatmul.msk.f32.gmra.mxu2 %vm437_vm1, %v2360_v32  ;;  %2522 = vmatmul.f32.gmra.mxu0 %v2358_v38  ;;  %v7558_v32 = vld [vmem:[%s13675_s1 + $0x1030] sm:$0xff]  ;;  %v10544_v38 = vld [vmem:[%s8412_s15 + $0xe8] sm:$0xff]  ;;  %v7535_v6 = vld [vmem:[%s13675_s1 + $0xf78] sm:$0xff] }
 0x220   : > { %v2662_v43 = vsel %vm2322_vm3, %v2656_v55, %v2661_v62  ;;  %v2671_v30 = vrot.slane %v10544_v38, 2  ;;  %3146 = vmatpush.msra.mxu0 %v7535_v6  ;;  %v7544_v38 = vld [vmem:[%s13675_s1 + $0xfc0] sm:$0xff] }
 0x221   : > { %7481 = vmatmul.msk.f32.vlgmr.msrb.gmra.mxu3 %vm437_vm1, %v2660_v41  ;;  %2742 = vmatmul.f32.vlgmr.msrb.gmra.mxu1 %v2657_v15 }
 0x222   : > { %v2213_v13 = vpop.f32.mrf.mxu2 }
 0x223   : > { %v2214_v48 = vadd.f32 %v2213_v13, %v2169_v60  ;;  %v7554_v60 = vld [vmem:[%s13675_s1 + $0x1010] sm:$0xff] }
 0x224   : > { %v2128_v52 = vpop.f32.mrf.mxu3  ;;  %v2172_v35 = vpop.f32.mrf.mxu0 }
 0x225   : > { %v10509_v33 = vadd.f32 %v2214_v48, %v10183_v22  ;;  %v2129_v24 = vadd.f32 %v2128_v52, %v2084_v14  ;;  %v8114_v22 = vld [vmem:[%s8412_s15 + $0xd0] sm:$0xff] }
 0x226   : > { %v2087_v54 = vpop.f32.mrf.mxu1  ;;  %v2665_v44 = vrot.slane %v8114_v22, 2  ;;  %v7550_v48 = vld [vmem:[%s13675_s1 + $0xff0] sm:$0xff]  ;;  %v7548_v22 = vld [vmem:[%s13675_s1 + $0xfe0] sm:$0xff] }
 0x227   : > { %v10514_v46 = vadd.f32 %v2129_v24, %v10188_v31  ;;  %7491 = vmatmul.msk.f32.vlgmr.msrb.gmra.mxu2 %vm437_vm1, %v2660_v41  ;;  %2830 = vmatmul.f32.vlgmr.msrb.gmra.mxu0 %v2657_v15  ;;  %v2668_v31 = vsel %vm2322_vm3, %v2663_v26, %v2667_v36  ;;  %v2672_v41 = vsel %vm2322_vm3, %v2667_v36, %v2671_v30  ;;  %v7552_v26 = vld [vmem:[%s13675_s1 + $0x1000] sm:$0xff]  ;;  %v7522_v36 = vld [vmem:[%s13675_s1 + $0xf10] sm:$0xff] }
 0x228   : > { %v2666_v50 = vsel %vm2322_vm3, %v2661_v62, %v2665_v44  ;;  %v2670_v15 = vsel %vm2322_vm3, %v2665_v44, %v2669_v7  ;;  %v7524_v62 = vld [vmem:[%s13675_s1 + $0xf20] sm:$0xff] }
 0x229   : > { %7482 = vmatmul.msk.f32.gmra.mxu3 %vm437_vm1, %v2664_v42  ;;  %2745 = vmatmul.f32.gmra.mxu1 %v2662_v43 }
 0x22a   : > { %v2216_v20 = vpop.f32.mrf.mxu2 }
 0x22b   : > { %v2217_v57 = vadd.f32 %v2216_v20, %v2172_v35  ;;  %v10599_v35 = vld [vmem:[%s8412_s15 + $0xf8] sm:$0xff]  ;;  %v7557_v20 = vld [vmem:[%s13675_s1 + $0x1028] sm:$0xff] }
 0x22c   : > { %v2131_v51 = vpop.f32.mrf.mxu3  ;;  %v2175_v59 = vpop.f32.mrf.mxu0  ;;  %v2675_v24 = vrot.slane %v10599_v35, 2  ;;  %v7538_v35 = vld [vmem:[%s13675_s1 + $0xf90] sm:$0xff] }
 0x22d   : > { %v10521_v56 = vadd.f32 %v2217_v57, %v10195_v5  ;;  %v2132_v27 = vadd.f32 %v2131_v51, %v2087_v54  ;;  %v7560_v5 = vld [vmem:[%s13675_s1 + $0x1040] sm:$0xf] }
 0x22e   : > { %v2090_v19 = vpop.f32.mrf.mxu1  ;;  %7562 = vmatpush.msk.msra.mxu3 %vm465_vm0, %v7560_v5  ;;  %v7520_v5 = vld [vmem:[%s13675_s1 + $0xf00] sm:$0xff] }
 0x22f   : > { %v10526_v10 = vadd.f32 %v2132_v27, %v10200_v4  ;;  %7492 = vmatmul.msk.f32.gmra.mxu2 %vm437_vm1, %v2664_v42  ;;  %2833 = vmatmul.f32.gmra.mxu0 %v2662_v43  ;;  %v7532_v4 = vld [vmem:[%s13675_s1 + $0xf60] sm:$0xff]  ;;  %v10603_v42 = vld [vmem:[%s8412_s15 + $0xf0] sm:$0xff]  ;;  %v7531_v43 = vld [vmem:[%s13675_s1 + $0xf58] sm:$0xff] }
 0x230   : > { %3059 = vmatpush.msra.mxu1 %v7532_v4  ;;  %3106 = vmatpush.msra.mxu3 %v7558_v32  ;;  %v2673_v54 = vrot.slane %v10603_v42, 2  ;;  %v7529_v27 = vld [vmem:[%s13675_s1 + $0xf48] sm:$0xff]  ;;  %v7546_v4 = vld [vmem:[%s13675_s1 + $0xfd0] sm:$0xff]  ;;  %v7527_v32 = vld [vmem:[%s13675_s1 + $0xf38] sm:$0xff] }
 0x231   : > { %7483 = vmatmul.msk.f32.gmra.mxu3 %vm437_vm1, %v2668_v31  ;;  %2748 = vmatmul.f32.gmra.mxu1 %v2666_v50  ;;  %v10719_v42 = vld [vmem:[%s8412_s15 + $0x118] sm:$0xff] }
 0x232   : > { %v2219_v2 = vpop.f32.mrf.mxu2  ;;  %3060 = vmatpush.msra.mxu1 %v7530_v9  ;;  %3107 = vmatpush.msra.mxu3 %v7556_v40  ;;  %v7525_v40 = vld [vmem:[%s13675_s1 + $0xf28] sm:$0xff] }
 0x233   : > { %v2220_v0 = vadd.f32 %v2219_v2, %v2175_v59  ;;  %v7518_v2 = vld [vmem:[%s13675_s1 + $0xef0] sm:$0xff] }
 0x234   : > { %v2134_v29 = vpop.f32.mrf.mxu3  ;;  %v2178_v17 = vpop.f32.mrf.mxu0  ;;  %3061 = vmatpush.msra.mxu1 %v7528_v45  ;;  %3108 = vmatpush.msra.mxu3 %v7554_v60  ;;  %v7542_v45 = vld [vmem:[%s13675_s1 + $0xfb0] sm:$0xff] }
 0x235   : > { %v10558_v55 = vadd.f32 %v2220_v0, %v10232_v37  ;;  %v2135_v1 = vadd.f32 %v2134_v29, %v2090_v19  ;;  %v7561_v37 = vld [vmem:[%s13675_s1 + $0x1048] sm:$0xf]  ;;  %v2676_v19 = vsel %vm2322_vm3, %v2671_v30, %v2675_v24  ;;  %v10661_v0 = vld [vmem:[%s8412_s15 + $0x100] sm:$0xff]  ;;  %v7551_v29 = vld [vmem:[%s13675_s1 + $0xff8] sm:$0xff] }
 0x236   : > { %v2093_v14 = vpop.f32.mrf.mxu1  ;;  %7572 = vmatpush.msk.msra.mxu2 %vm465_vm0, %v7561_v37  ;;  %3062 = vmatpush.msra.mxu1 %v7526_v53  ;;  %v2677_v9 = vrot.slane %v10661_v0, 2  ;;  %v7549_v37 = vld [vmem:[%s13675_s1 + $0xfe8] sm:$0xff] }
 0x237   : > { %v10575_v13 = vadd.f32 %v2135_v1, %v10249_v47  ;;  %7493 = vmatmul.msk.f32.gmra.mxu2 %vm437_vm1, %v2668_v31  ;;  %2836 = vmatmul.f32.gmra.mxu0 %v2666_v50  ;;  %v7533_v47 = vld [vmem:[%s13675_s1 + $0xf68] sm:$0xff]  ;;  %v7555_v31 = vld [vmem:[%s13675_s1 + $0x1018] sm:$0xff]  ;;  %v7516_v1 = vld [vmem:[%s13675_s1 + $0xee0] sm:$0xff] }
 0x238   : > { %3109 = vmatpush.msra.mxu3 %v7552_v26  ;;  %3147 = vmatpush.msra.mxu0 %v7533_v47 }
 0x239   : > { %7484 = vmatmul.msk.f32.gmra.mxu3 %vm437_vm1, %v2672_v41  ;;  %2751 = vmatmul.f32.gmra.mxu1 %v2670_v15 }
 0x23a   : > { %v2222_v52 = vpop.f32.mrf.mxu2  ;;  %3194 = vmatpush.msra.mxu2 %v7559_v12  ;;  %3063 = vmatpush.msra.mxu1 %v7524_v62  ;;  %v7514_v12 = vld [vmem:[%s13675_s1 + $0xed0] sm:$0xff]  ;;  %v7540_v62 = vld [vmem:[%s13675_s1 + $0xfa0] sm:$0xff] }
 0x23b   : > { %v2223_v23 = vadd.f32 %v2222_v52, %v2178_v17  ;;  %3110 = vmatpush.msra.mxu3 %v7550_v48  ;;  %3148 = vmatpush.msra.mxu0 %v7531_v43  ;;  %v7521_v48 = vld [vmem:[%s13675_s1 + $0xf08] sm:$0xff]  ;;  %v7512_v52 = vld [vmem:[%s13675_s1 + $0xec0] sm:$0xff]  ;;  %v10723_v43 = vld [vmem:[%s8412_s15 + $0x110] sm:$0xff] }
 0x23c   : > { %v2137_v44 = vpop.f32.mrf.mxu3  ;;  %v2181_v57 = vpop.f32.mrf.mxu0  ;;  %3195 = vmatpush.msra.mxu2 %v7557_v20  ;;  %3064 = vmatpush.msra.mxu1 %v7522_v36  ;;  %v2681_v20 = vrot.slane %v10723_v43, 2  ;;  %v7545_v36 = vld [vmem:[%s13675_s1 + $0xfc8] sm:$0xff] }
 0x23d   : > { %v10619_v51 = vadd.f32 %v2223_v23, %v10293_v21  ;;  %v2138_v59 = vadd.f32 %v2137_v44, %v2093_v14  ;;  %v2674_v21 = vsel %vm2322_vm3, %v2669_v7, %v2673_v54  ;;  %3111 = vmatpush.msra.mxu3 %v7548_v22  ;;  %3149 = vmatpush.msra.mxu0 %v7529_v27  ;;  %v2679_v7 = vrot.slane %v10657_v18, 2  ;;  %v7519_v23 = vld [vmem:[%s13675_s1 + $0xef8] sm:$0xff]  ;;  %v7510_v44 = vld [vmem:[%s13675_s1 + $0xeb0] sm:$0xff] }
 0x23e   : > { %v2096_v50 = vpop.f32.mrf.mxu1  ;;  %3196 = vmatpush.msra.mxu2 %v7555_v31  ;;  %3065 = vmatpush.msra.mxu1 %v7520_v5 }
 0x23f   : > { %v10634_v49 = vadd.f32 %v2138_v59, %v10308_v39  ;;  %7494 = vmatmul.msk.f32.gmra.mxu2 %vm437_vm1, %v2672_v41  ;;  %2839 = vmatmul.f32.gmra.mxu0 %v2670_v15  ;;  %v7553_v39 = vld [vmem:[%s13675_s1 + $0x1008] sm:$0xff]  ;;  %v7523_v15 = vld [vmem:[%s13675_s1 + $0xf18] sm:$0xff]  ;;  %v2680_v53 = vsel %vm2322_vm3, %v2675_v24, %v2679_v7 }
 0x240   : > { %3112 = vmatpush.msra.mxu3 %v7546_v4  ;;  %3150 = vmatpush.msra.mxu0 %v7527_v32 }
 0x241   : > { %7485 = vmatmul.msk.f32.gmra.mxu3 %vm437_vm1, %v2676_v19  ;;  %2754 = vmatmul.f32.gmra.mxu1 %v2674_v21 }
 0x242   : > { %v2225_v30 = vpop.f32.mrf.mxu2  ;;  %3197 = vmatpush.msra.mxu2 %v7553_v39  ;;  %3066 = vmatpush.msra.mxu1 %v7518_v2  ;;  %v7508_v39 = vld [vmem:[%s13675_s1 + $0xea0] sm:$0xff]  ;;  %v7515_v2 = vld [vmem:[%s13675_s1 + $0xed8] sm:$0xff] }
 0x243   : > { %v2226_v17 = vadd.f32 %v2225_v30, %v2181_v57  ;;  %3113 = vmatpush.msra.mxu3 %v7544_v38  ;;  %3151 = vmatpush.msra.mxu0 %v7525_v40  ;;  %v7536_v57 = vld [vmem:[%s13675_s1 + $0xf80] sm:$0xff]  ;;  %v7541_v38 = vld [vmem:[%s13675_s1 + $0xfa8] sm:$0xff] }
 0x244   : > { %v2140_v60 = vpop.f32.mrf.mxu3  ;;  %v2184_v6 = vpop.f32.mrf.mxu0  ;;  %3198 = vmatpush.msra.mxu2 %v7551_v29  ;;  %3067 = vmatpush.msra.mxu1 %v7516_v1  ;;  %v7513_v30 = vld [vmem:[%s13675_s1 + $0xec8] sm:$0xff]  ;;  %v7539_v29 = vld [vmem:[%s13675_s1 + $0xf98] sm:$0xff]  ;;  %v7504_v1 = vld [vmem:[%s13675_s1 + $0xe80] sm:$0xff] }
 0x245   : > { %v10677_v41 = vadd.f32 %v2226_v17, %v10351_v25  ;;  %v2141_v14 = vadd.f32 %v2140_v60, %v2096_v50  ;;  %v2678_v25 = vsel %vm2322_vm3, %v2673_v54, %v2677_v9  ;;  %3114 = vmatpush.msra.mxu3 %v7542_v45  ;;  %3152 = vmatpush.msra.mxu0 %v7523_v15  ;;  %v2683_v54 = vrot.slane %v10719_v42, 2  ;;  %v7517_v50 = vld [vmem:[%s13675_s1 + $0xee8] sm:$0xff]  ;;  %v7511_v45 = vld [vmem:[%s13675_s1 + $0xeb8] sm:$0xff] }
 0x246   : > { %v2099_v26 = vpop.f32.mrf.mxu1  ;;  %3199 = vmatpush.msra.mxu2 %v7549_v37  ;;  %3068 = vmatpush.msra.mxu1 %v7514_v12  ;;  %v7537_v37 = vld [vmem:[%s13675_s1 + $0xf88] sm:$0xff] }
 0x247   : > { %v10696_v47 = vadd.f32 %v2141_v14, %v10370_v11  ;;  %7495 = vmatmul.msk.f32.gmra.mxu2 %vm437_vm1, %v2676_v19  ;;  %2842 = vmatmul.f32.gmra.mxu0 %v2674_v21  ;;  %v7547_v11 = vld [vmem:[%s13675_s1 + $0xfd8] sm:$0xff]  ;;  %v2684_v5 = vsel %vm2322_vm3, %v2679_v7, %v2683_v54  ;;  %v8123_v7 = vld [vmem:[%s8412_s15 + $0x128] sm:$0xff] }
 0x248   : > { %3115 = vmatpush.msra.mxu3 %v7540_v62  ;;  %3153 = vmatpush.msra.mxu0 %v7521_v48  ;;  %v7543_v21 = vld [vmem:[%s13675_s1 + $0xfb8] sm:$0xff]  ;;  %v2687_v0 = vrot.slane %v8123_v7, 2  ;;  %v7420_v48 = vld [vmem:[%s8412_s15 + $0x130] sm:$0x3] }
 0x249   : > { %7486 = vmatmul.msk.f32.gmra.mxu3 %vm437_vm1, %v2680_v53  ;;  %2757 = vmatmul.f32.gmra.mxu1 %v2678_v25  ;;  %v7421_v62 = vld [vmem:[%s8412_s15 + $0x138] sm:$0x3] }
 0x24a   : > { %v2228_v24 = vpop.f32.mrf.mxu2  ;;  %3200 = vmatpush.msra.mxu2 %v7547_v11  ;;  %3069 = vmatpush.msra.mxu1 %v7512_v52  ;;  %v7507_v11 = vld [vmem:[%s13675_s1 + $0xe98] sm:$0xff]  ;;  %v7505_v52 = vld [vmem:[%s13675_s1 + $0xe88] sm:$0xff] }
 0x24b   : > { %v2229_v22 = vadd.f32 %v2228_v24, %v2184_v6  ;;  %3116 = vmatpush.msra.mxu3 %v7538_v35  ;;  %3154 = vmatpush.msra.mxu0 %v7519_v23  ;;  %v2691_v35 = vrot.slane %v7421_v62, 2  ;;  %v2689_v24 = vrot.slane %v7420_v48, 2 }
 0x24c   : > { %v2143_v59 = vpop.f32.mrf.mxu3  ;;  %v2187_v27 = vpop.f32.mrf.mxu0  ;;  %3201 = vmatpush.msra.mxu2 %v7545_v36  ;;  %3070 = vmatpush.msra.mxu1 %v7510_v44 }
 0x24d   : > { %v10739_v31 = vadd.f32 %v2229_v22, %v10413_v61  ;;  %v2144_v19 = vadd.f32 %v2143_v59, %v2099_v26  ;;  %v2682_v61 = vsel %vm2322_vm3, %v2677_v9, %v2681_v20  ;;  %3117 = vmatpush.msra.mxu3 %v7536_v57  ;;  %3155 = vmatpush.msra.mxu0 %v7517_v50  ;;  %v8124_v9 = vld [vmem:[%s8412_s15 + $0x120] sm:$0xff]  ;;  %v7501_v59 = vld [vmem:[%s8412_s15 + $0x148] sm:$0xfc]  ;;  %v8125_v50 = vld [vmem:[%s8412_s15 + $0x158] sm:$0xff] }
 0x24e   : > { %v2102_v4 = vpop.f32.mrf.mxu1  ;;  %3202 = vmatpush.msra.mxu2 %v7543_v21  ;;  %v2685_v40 = vrot.slane %v8124_v9, 2  ;;  %3071 = vmatpush.msra.mxu1 %v7508_v39  ;;  %v2688_v26 = vsel %vm2322_vm3, %v2683_v54, %v2687_v0  ;;  %v2692_v36 = vsel %vm2322_vm3, %v2687_v0, %v2691_v35  ;;  %v2991_v21 = vrot.slane %v8125_v50, 2  ;;  %v7608_v50 = vld [vmem:[%s13675_s1 + $0x1120] sm:$0xff] }
 0x24f   : > { %v10754_v32 = vadd.f32 %v2144_v19, %v10428_v28  ;;  %7496 = vmatmul.msk.f32.gmra.mxu2 %vm437_vm1, %v2680_v53  ;;  %2845 = vmatmul.f32.gmra.mxu0 %v2678_v25  ;;  %v7506_v28 = vld [vmem:[%s13675_s1 + $0xe90] sm:$0xff]  ;;  %v7509_v53 = vld [vmem:[%s13675_s1 + $0xea8] sm:$0xff]  ;;  %v2990_v19 = vrot.slane %v7501_v59, 2 }
 0x250   : > { %3156 = vmatpush.msra.mxu0 %v7515_v2  ;;  %3203 = vmatpush.msra.mxu2 %v7541_v38  ;;  %v2686_v12 = vsel %vm2322_vm3, %v2681_v20, %v2685_v40  ;;  %v2690_v44 = vsel %vm2322_vm3, %v2685_v40, %v2689_v24  ;;  %v8127_v40 = vld [vmem:[%s8412_s15 + $0x168] sm:$0xff] }
 0x251   : > { %7487 = vmatmul.msk.f32.gmra.mxu3 %vm437_vm1, %v2684_v5  ;;  %2760 = vmatmul.f32.gmra.mxu1 %v2682_v61 }
 0x252   : > { %v2231_v18 = vpop.f32.mrf.mxu2  ;;  %3072 = vmatpush.msra.mxu1 %v7506_v28  ;;  %3157 = vmatpush.msra.mxu0 %v7513_v30  ;;  %v2992_v30 = vsel %vm2322_vm3, %v2990_v19, %v2991_v21 }
 0x253   : > { %v2232_v17 = vadd.f32 %v2231_v18, %v2187_v27  ;;  %3204 = vmatpush.msra.mxu2 %v7539_v29  ;;  %v7500_v27 = vld [vmem:[%s8412_s15 + $0x140] sm:$0xfc]  ;;  %v2995_v29 = vrot.slane %v8127_v40, 2 }
 0x254   : > { %v2146_v60 = vpop.f32.mrf.mxu3  ;;  %v2190_v6 = vpop.f32.mrf.mxu0  ;;  %3073 = vmatpush.msra.mxu1 %v7504_v1  ;;  %3158 = vmatpush.msra.mxu0 %v7511_v45  ;;  %v7604_v40 = vld [vmem:[%s13675_s1 + $0x1100] sm:$0xff] }
 0x255   : > { %v10785_v14 = vadd.f32 %v2232_v17, %v10459_v16  ;;  %v2147_v15 = vadd.f32 %v2146_v60, %v2102_v4  ;;  %3205 = vmatpush.msra.mxu2 %v7537_v37  ;;  %v8126_v4 = vld [vmem:[%s8412_s15 + $0x150] sm:$0xff] }
 0x256   : > { %v2411_v25 = vpop.f32.mrf.mxu1  ;;  %3159 = vmatpush.msra.mxu0 %v7509_v53 }
 0x257   : > { %v10796_v16 = vadd.f32 %v2147_v15, %v10470_v63  ;;  %7497 = vmatmul.msk.f32.gmra.mxu2 %vm437_vm1, %v2684_v5  ;;  %2848 = vmatmul.f32.gmra.mxu0 %v2682_v61  ;;  %v2987_v5 = vrot.slane %v7500_v27, 2  ;;  %v2988_v61 = vrot.slane %v8126_v4, 2  ;;  %v2996_v15 = vsel %vm2322_vm3, %v2991_v21, %v2995_v29  ;;  %v10874_v27 = vld [vmem:[%s8412_s15 + $0x180] sm:$0xff]  ;;  %v7634_v21 = vld [vmem:[%s13675_s1 + $0x11f0] sm:$0xff] }
 0x258   : > { %3160 = vmatpush.msra.mxu0 %v7507_v11 }
 0x259   : > { %7488 = vmatmul.msk.f32.gmra.mxu3 %vm437_vm1, %v2688_v26  ;;  %2763 = vmatmul.f32.gmra.mxu1 %v2686_v12  ;;  %v2989_v7 = vsel %vm2322_vm3, %v2987_v5, %v2988_v61 }
 0x25a   : > { %v2234_v63 = vpop.f32.mrf.mxu2  ;;  %3161 = vmatpush.msra.mxu0 %v7505_v52 }
 0x25b   : > { %v2235_v42 = vadd.f32 %v2234_v63, %v2190_v6 }
 0x25c   : > { %v2455_v54 = vpop.f32.mrf.mxu3  ;;  %v2499_v43 = vpop.f32.mrf.mxu0 }
 0x25d   : > { %v10809_v20 = vadd.f32 %v2235_v42, %v10483_v3  ;;  %v2456_v23 = vadd.f32 %v2455_v54, %v2411_v25 }
 0x25e   : > { %v2414_v22 = vpop.f32.mrf.mxu1 }
 0x25f   : > { %v10814_v57 = vadd.f32 %v2456_v23, %v10488_v58  ;;  %7498 = vmatmul.msk.f32.gmra.mxu2 %vm437_vm1, %v2688_v26  ;;  %2851 = vmatmul.f32.gmra.mxu0 %v2686_v12  ;;  %v8129_v12 = vld [vmem:[%s8412_s15 + $0x178] sm:$0xff]  ;;  %v7612_v23 = vld [vmem:[%s13675_s1 + $0x1140] sm:$0xff] }
 0x260   : > { %v2999_v62 = vrot.slane %v8129_v12, 2  ;;  %3391 = vmatpush.msrb.mxu1 %v7612_v23 }
 0x261   : > { %7489 = vmatmul.msk.f32.gmra.mxu3 %vm437_vm1, %v2692_v36  ;;  %2766 = vmatmul.f32.gmra.mxu1 %v2690_v44 }
 0x262   : > { %v2543_v3 = vpop.f32.mrf.mxu2 }
 0x263   : > { %v2544_v39 = vadd.f32 %v2543_v3, %v2499_v43  ;;  %v3001_v3 = vrot.slane %v10874_v27, 2  ;;  %v10983_v27 = vld [vmem:[%s8412_s15 + $0x1a8] sm:$0xff] }
 0x264   : > { %v2458_v58 = vpop.f32.mrf.mxu3  ;;  %v2502_v2 = vpop.f32.mrf.mxu0 }
 0x265   : > { %v10823_v38 = vadd.f32 %v2544_v39, %v10497_v8  ;;  %v2459_v28 = vadd.f32 %v2458_v58, %v2414_v22  ;;  %v8128_v8 = vld [vmem:[%s8412_s15 + $0x160] sm:$0xff]  ;;  %v7606_v58 = vld [vmem:[%s13675_s1 + $0x1110] sm:$0xff] }
 0x266   : > { %v2417_v18 = vpop.f32.mrf.mxu1  ;;  %v2993_v17 = vrot.slane %v8128_v8, 2  ;;  %v7637_v8 = vld [vmem:[%s13675_s1 + $0x1208] sm:$0xff] }
 0x267   : > { %v10828_v0 = vadd.f32 %v2459_v28, %v10502_v34  ;;  %7499 = vmatmul.msk.f32.gmra.mxu2 %vm437_vm1, %v2692_v36  ;;  %2854 = vmatmul.f32.gmra.mxu0 %v2690_v44  ;;  %v7636_v36 = vld [vmem:[%s13675_s1 + $0x1200] sm:$0xff]  ;;  %v10870_v44 = vld [vmem:[%s8412_s15 + $0x188] sm:$0xff] }
 0x268   : > { %v2994_v53 = vsel %vm2322_vm3, %v2988_v61, %v2993_v17  ;;  %v3003_v59 = vrot.slane %v10870_v44, 2  ;;  %v7613_v28 = vld [vmem:[%s13675_s1 + $0x1148] sm:$0xff]  ;;  %v7622_v44 = vld [vmem:[%s13675_s1 + $0x1190] sm:$0xff] }
 0x269   : > { %7563 = vmatmul.msk.f32.vlgmr.msra.gmra.mxu3 %vm437_vm1, %v2992_v30  ;;  %3074 = vmatmul.f32.vlgmr.msra.gmra.mxu1 %v2989_v7 }
 0x26a   : > { %v2546_v9 = vpop.f32.mrf.mxu2  ;;  %3479 = vmatpush.msrb.mxu0 %v7613_v28 }
 0x26b   : > { %v2547_v1 = vadd.f32 %v2546_v9, %v2502_v2  ;;  %v7632_v2 = vld [vmem:[%s13675_s1 + $0x11e0] sm:$0xff] }
 0x26c   : > { %v2461_v45 = vpop.f32.mrf.mxu3  ;;  %v2505_v60 = vpop.f32.mrf.mxu0 }
 0x26d   : > { %v10835_v6 = vadd.f32 %v2547_v1, %v10509_v33  ;;  %v2462_v34 = vadd.f32 %v2461_v45, %v2417_v18  ;;  %v8130_v33 = vld [vmem:[%s8412_s15 + $0x170] sm:$0xff]  ;;  %v7628_v1 = vld [vmem:[%s13675_s1 + $0x11c0] sm:$0xff] }
 0x26e   : > { %v2420_v37 = vpop.f32.mrf.mxu1  ;;  %v2997_v48 = vrot.slane %v8130_v33, 2  ;;  %v7626_v33 = vld [vmem:[%s13675_s1 + $0x11b0] sm:$0xff] }
 0x26f   : > { %v10840_v26 = vadd.f32 %v2462_v34, %v10514_v46  ;;  %7573 = vmatmul.msk.f32.vlgmr.msra.gmra.mxu2 %vm437_vm1, %v2992_v30  ;;  %3162 = vmatmul.f32.vlgmr.msra.gmra.mxu0 %v2989_v7  ;;  %v3000_v46 = vsel %vm2322_vm3, %v2995_v29, %v2999_v62  ;;  %v3004_v30 = vsel %vm2322_vm3, %v2999_v62, %v3003_v59  ;;  %v7630_v29 = vld [vmem:[%s13675_s1 + $0x11d0] sm:$0xff]  ;;  %v7600_v62 = vld [vmem:[%s13675_s1 + $0x10e0] sm:$0xff] }
 0x270   : > { %v2998_v54 = vsel %vm2322_vm3, %v2993_v17, %v2997_v48  ;;  %v3002_v7 = vsel %vm2322_vm3, %v2997_v48, %v3001_v3  ;;  %v7602_v17 = vld [vmem:[%s13675_s1 + $0x10f0] sm:$0xff] }
 0x271   : > { %7564 = vmatmul.msk.f32.gmra.mxu3 %vm437_vm1, %v2996_v15  ;;  %3077 = vmatmul.f32.gmra.mxu1 %v2994_v53 }
 0x272   : > { %v2549_v25 = vpop.f32.mrf.mxu2 }
 0x273   : > { %v2550_v11 = vadd.f32 %v2549_v25, %v2505_v60  ;;  %v10925_v60 = vld [vmem:[%s8412_s15 + $0x198] sm:$0xff] }
 0x274   : > { %v2464_v52 = vpop.f32.mrf.mxu3  ;;  %v2508_v63 = vpop.f32.mrf.mxu0  ;;  %v3007_v34 = vrot.slane %v10925_v60, 2  ;;  %v7635_v25 = vld [vmem:[%s13675_s1 + $0x11f8] sm:$0xff]  ;;  %v7616_v60 = vld [vmem:[%s13675_s1 + $0x1160] sm:$0xff] }
 0x275   : > { %v10847_v35 = vadd.f32 %v2550_v11, %v10521_v56  ;;  %v2465_v24 = vadd.f32 %v2464_v52, %v2420_v37  ;;  %v7638_v56 = vld [vmem:[%s13675_s1 + $0x1210] sm:$0xf] }
 0x276   : > { %v2423_v42 = vpop.f32.mrf.mxu1  ;;  %7640 = vmatpush.msk.msrb.mxu3 %vm465_vm0, %v7638_v56  ;;  %v7598_v56 = vld [vmem:[%s13675_s1 + $0x10d0] sm:$0xff] }
 0x277   : > { %v10852_v43 = vadd.f32 %v2465_v24, %v10526_v10  ;;  %7574 = vmatmul.msk.f32.gmra.mxu2 %vm437_vm1, %v2996_v15  ;;  %3165 = vmatmul.f32.gmra.mxu0 %v2994_v53  ;;  %v7610_v10 = vld [vmem:[%s13675_s1 + $0x1130] sm:$0xff]  ;;  %v7609_v53 = vld [vmem:[%s13675_s1 + $0x1128] sm:$0xff]  ;;  %v7607_v24 = vld [vmem:[%s13675_s1 + $0x1118] sm:$0xff] }
 0x278   : > { %3392 = vmatpush.msrb.mxu1 %v7610_v10  ;;  %3439 = vmatpush.msrb.mxu3 %v7636_v36  ;;  %v10929_v15 = vld [vmem:[%s8412_s15 + $0x190] sm:$0xff]  ;;  %v7624_v10 = vld [vmem:[%s13675_s1 + $0x11a0] sm:$0xff]  ;;  %v7605_v36 = vld [vmem:[%s13675_s1 + $0x1108] sm:$0xff] }
 0x279   : > { %7565 = vmatmul.msk.f32.gmra.mxu3 %vm437_vm1, %v3000_v46  ;;  %3080 = vmatmul.f32.gmra.mxu1 %v2998_v54  ;;  %v3005_v37 = vrot.slane %v10929_v15, 2  ;;  %v11045_v15 = vld [vmem:[%s8412_s15 + $0x1b8] sm:$0xff] }
 0x27a   : > { %v2552_v22 = vpop.f32.mrf.mxu2  ;;  %3393 = vmatpush.msrb.mxu1 %v7608_v50  ;;  %3440 = vmatpush.msrb.mxu3 %v7634_v21  ;;  %v7603_v21 = vld [vmem:[%s13675_s1 + $0x10f8] sm:$0xff] }
 0x27b   : > { %v2553_v19 = vadd.f32 %v2552_v22, %v2508_v63  ;;  %v7596_v22 = vld [vmem:[%s13675_s1 + $0x10c0] sm:$0xff] }
 0x27c   : > { %v2467_v5 = vpop.f32.mrf.mxu3  ;;  %v2511_v4 = vpop.f32.mrf.mxu0  ;;  %3394 = vmatpush.msrb.mxu1 %v7606_v58  ;;  %3441 = vmatpush.msrb.mxu3 %v7632_v2  ;;  %v7620_v58 = vld [vmem:[%s13675_s1 + $0x1180] sm:$0xff] }
 0x27d   : > { %v10884_v61 = vadd.f32 %v2553_v19, %v10558_v55  ;;  %v2468_v39 = vadd.f32 %v2467_v5, %v2423_v42  ;;  %v7639_v55 = vld [vmem:[%s13675_s1 + $0x1218] sm:$0xf]  ;;  %v3008_v42 = vsel %vm2322_vm3, %v3003_v59, %v3007_v34  ;;  %v10987_v19 = vld [vmem:[%s8412_s15 + $0x1a0] sm:$0xff]  ;;  %v7629_v5 = vld [vmem:[%s13675_s1 + $0x11c8] sm:$0xff] }
 0x27e   : > { %v2426_v18 = vpop.f32.mrf.mxu1  ;;  %7650 = vmatpush.msk.msrb.mxu2 %vm465_vm0, %v7639_v55  ;;  %3395 = vmatpush.msrb.mxu1 %v7604_v40  ;;  %v3009_v50 = vrot.slane %v10987_v19, 2  ;;  %v7627_v55 = vld [vmem:[%s13675_s1 + $0x11b8] sm:$0xff] }
 0x27f   : > { %v10901_v9 = vadd.f32 %v2468_v39, %v10575_v13  ;;  %7575 = vmatmul.msk.f32.gmra.mxu2 %vm437_vm1, %v3000_v46  ;;  %3168 = vmatmul.f32.gmra.mxu0 %v2998_v54  ;;  %v7611_v13 = vld [vmem:[%s13675_s1 + $0x1138] sm:$0xff]  ;;  %v7633_v46 = vld [vmem:[%s13675_s1 + $0x11e8] sm:$0xff]  ;;  %v7594_v39 = vld [vmem:[%s13675_s1 + $0x10b0] sm:$0xff] }
 0x280   : > { %3442 = vmatpush.msrb.mxu3 %v7630_v29  ;;  %3480 = vmatpush.msrb.mxu0 %v7611_v13 }
 0x281   : > { %7566 = vmatmul.msk.f32.gmra.mxu3 %vm437_vm1, %v3004_v30  ;;  %3083 = vmatmul.f32.gmra.mxu1 %v3002_v7 }
 0x282   : > { %v2555_v45 = vpop.f32.mrf.mxu2  ;;  %3527 = vmatpush.msrb.mxu2 %v7637_v8  ;;  %3396 = vmatpush.msrb.mxu1 %v7602_v17  ;;  %v7592_v8 = vld [vmem:[%s13675_s1 + $0x10a0] sm:$0xff]  ;;  %v7618_v17 = vld [vmem:[%s13675_s1 + $0x1170] sm:$0xff] }
 0x283   : > { %v2556_v12 = vadd.f32 %v2555_v45, %v2511_v4  ;;  %3443 = vmatpush.msrb.mxu3 %v7628_v1  ;;  %3481 = vmatpush.msrb.mxu0 %v7609_v53  ;;  %v7599_v1 = vld [vmem:[%s13675_s1 + $0x10d8] sm:$0xff]  ;;  %v7590_v45 = vld [vmem:[%s13675_s1 + $0x1090] sm:$0xff] }
 0x284   : > { %v2470_v48 = vpop.f32.mrf.mxu3  ;;  %v2514_v11 = vpop.f32.mrf.mxu0  ;;  %3528 = vmatpush.msrb.mxu2 %v7635_v25  ;;  %3397 = vmatpush.msrb.mxu1 %v7600_v62  ;;  %v11049_v53 = vld [vmem:[%s8412_s15 + $0x1b0] sm:$0xff]  ;;  %v7623_v62 = vld [vmem:[%s13675_s1 + $0x1198] sm:$0xff] }
 0x285   : > { %v10945_v52 = vadd.f32 %v2556_v12, %v10619_v51  ;;  %v2471_v63 = vadd.f32 %v2470_v48, %v2426_v18  ;;  %v3006_v51 = vsel %vm2322_vm3, %v3001_v3, %v3005_v37  ;;  %3444 = vmatpush.msrb.mxu3 %v7626_v33  ;;  %3482 = vmatpush.msrb.mxu0 %v7607_v24  ;;  %v3011_v3 = vrot.slane %v10983_v27, 2  ;;  %v7597_v12 = vld [vmem:[%s13675_s1 + $0x10c8] sm:$0xff]  ;;  %v7588_v48 = vld [vmem:[%s13675_s1 + $0x1080] sm:$0xff] }
 0x286   : > { %v2429_v54 = vpop.f32.mrf.mxu1  ;;  %3529 = vmatpush.msrb.mxu2 %v7633_v46  ;;  %3398 = vmatpush.msrb.mxu1 %v7598_v56  ;;  %v3013_v25 = vrot.slane %v11049_v53, 2 }
 0x287   : > { %v10960_v23 = vadd.f32 %v2471_v63, %v10634_v49  ;;  %7576 = vmatmul.msk.f32.gmra.mxu2 %vm437_vm1, %v3004_v30  ;;  %3171 = vmatmul.f32.gmra.mxu0 %v3002_v7  ;;  %v7631_v49 = vld [vmem:[%s13675_s1 + $0x11d8] sm:$0xff]  ;;  %v7601_v7 = vld [vmem:[%s13675_s1 + $0x10e8] sm:$0xff]  ;;  %v3012_v40 = vsel %vm2322_vm3, %v3007_v34, %v3011_v3 }
 0x288   : > { %3445 = vmatpush.msrb.mxu3 %v7624_v10  ;;  %3483 = vmatpush.msrb.mxu0 %v7605_v36 }
 0x289   : > { %7567 = vmatmul.msk.f32.gmra.mxu3 %vm437_vm1, %v3008_v42  ;;  %3086 = vmatmul.f32.gmra.mxu1 %v3006_v51 }
 0x28a   : > { %v2558_v59 = vpop.f32.mrf.mxu2  ;;  %3530 = vmatpush.msrb.mxu2 %v7631_v49  ;;  %3399 = vmatpush.msrb.mxu1 %v7596_v22  ;;  %v7586_v49 = vld [vmem:[%s13675_s1 + $0x1070] sm:$0xff]  ;;  %v7593_v22 = vld [vmem:[%s13675_s1 + $0x10a8] sm:$0xff] }
 0x28b   : > { %v2559_v4 = vadd.f32 %v2558_v59, %v2514_v11  ;;  %3446 = vmatpush.msrb.mxu3 %v7622_v44  ;;  %3484 = vmatpush.msrb.mxu0 %v7603_v21  ;;  %v7614_v11 = vld [vmem:[%s13675_s1 + $0x1150] sm:$0xff]  ;;  %v7619_v44 = vld [vmem:[%s13675_s1 + $0x1178] sm:$0xff] }
 0x28c   : > { %v2473_v2 = vpop.f32.mrf.mxu3  ;;  %v2517_v28 = vpop.f32.mrf.mxu0  ;;  %3531 = vmatpush.msrb.mxu2 %v7629_v5  ;;  %3400 = vmatpush.msrb.mxu1 %v7594_v39  ;;  %v7591_v59 = vld [vmem:[%s13675_s1 + $0x1098] sm:$0xff]  ;;  %v7617_v5 = vld [vmem:[%s13675_s1 + $0x1168] sm:$0xff]  ;;  %v7582_v39 = vld [vmem:[%s13675_s1 + $0x1050] sm:$0xff] }
 0x28d   : > { %v11003_v30 = vadd.f32 %v2559_v4, %v10677_v41  ;;  %v2474_v18 = vadd.f32 %v2473_v2, %v2429_v54  ;;  %v3010_v41 = vsel %vm2322_vm3, %v3005_v37, %v3009_v50  ;;  %3447 = vmatpush.msrb.mxu3 %v7620_v58  ;;  %3485 = vmatpush.msrb.mxu0 %v7601_v7  ;;  %v3015_v37 = vrot.slane %v11045_v15, 2  ;;  %v7595_v54 = vld [vmem:[%s13675_s1 + $0x10b8] sm:$0xff]  ;;  %v7589_v58 = vld [vmem:[%s13675_s1 + $0x1088] sm:$0xff] }
 0x28e   : > { %v2432_v29 = vpop.f32.mrf.mxu1  ;;  %3532 = vmatpush.msrb.mxu2 %v7627_v55  ;;  %3401 = vmatpush.msrb.mxu1 %v7592_v8  ;;  %v7615_v55 = vld [vmem:[%s13675_s1 + $0x1158] sm:$0xff] }
 0x28f   : > { %v11022_v13 = vadd.f32 %v2474_v18, %v10696_v47  ;;  %7577 = vmatmul.msk.f32.gmra.mxu2 %vm437_vm1, %v3008_v42  ;;  %3174 = vmatmul.f32.gmra.mxu0 %v3006_v51  ;;  %v7625_v47 = vld [vmem:[%s13675_s1 + $0x11a8] sm:$0xff]  ;;  %v3016_v56 = vsel %vm2322_vm3, %v3011_v3, %v3015_v37 }
 0x290   : > { %3448 = vmatpush.msrb.mxu3 %v7618_v17  ;;  %3486 = vmatpush.msrb.mxu0 %v7599_v1  ;;  %v7621_v51 = vld [vmem:[%s13675_s1 + $0x1188] sm:$0xff]  ;;  %v7503_v17 = vld [vmem:[%s8412_s15 + $0x1d8] sm:$0x3]  ;;  %v7502_v1 = vld [vmem:[%s8412_s15 + $0x1d0] sm:$0x3] }
 0x291   : > { %7568 = vmatmul.msk.f32.gmra.mxu3 %vm437_vm1, %v3012_v40  ;;  %3089 = vmatmul.f32.gmra.mxu1 %v3010_v41  ;;  %v8139_v3 = vld [vmem:[%s8412_s15 + $0x1c8] sm:$0xff] }
 0x292   : > { %v2561_v34 = vpop.f32.mrf.mxu2  ;;  %3533 = vmatpush.msrb.mxu2 %v7625_v47  ;;  %3402 = vmatpush.msrb.mxu1 %v7590_v45  ;;  %v3019_v19 = vrot.slane %v8139_v3, 2  ;;  %v7585_v47 = vld [vmem:[%s13675_s1 + $0x1068] sm:$0xff]  ;;  %v7583_v45 = vld [vmem:[%s13675_s1 + $0x1058] sm:$0xff] }
 0x293   : > { %v2562_v33 = vadd.f32 %v2561_v34, %v2517_v28  ;;  %3449 = vmatpush.msrb.mxu3 %v7616_v60  ;;  %3487 = vmatpush.msrb.mxu0 %v7597_v12  ;;  %v3023_v60 = vrot.slane %v7503_v17, 2  ;;  %v3021_v34 = vrot.slane %v7502_v1, 2 }
 0x294   : > { %v2476_v63 = vpop.f32.mrf.mxu3  ;;  %v2520_v24 = vpop.f32.mrf.mxu0  ;;  %3534 = vmatpush.msrb.mxu2 %v7623_v62  ;;  %3403 = vmatpush.msrb.mxu1 %v7588_v48 }
 0x295   : > { %v11065_v46 = vadd.f32 %v2562_v33, %v10739_v31  ;;  %v2477_v42 = vadd.f32 %v2476_v63, %v2432_v29  ;;  %v3014_v31 = vsel %vm2322_vm3, %v3009_v50, %v3013_v25  ;;  %3450 = vmatpush.msrb.mxu3 %v7614_v11  ;;  %3488 = vmatpush.msrb.mxu0 %v7595_v54  ;;  %v8140_v50 = vld [vmem:[%s8412_s15 + $0x1c0] sm:$0xff]  ;;  %v3253_v63 = vld [vmem:[%s8412_s15 + $0x8] sm:$0xf8]  ;;  %v8141_v54 = vld [vmem:[%s8412_s15 + $0x18] sm:$0xff] }
 0x296   : > { %v2435_v10 = vpop.f32.mrf.mxu1  ;;  %3535 = vmatpush.msrb.mxu2 %v7621_v51  ;;  %v3017_v21 = vrot.slane %v8140_v50, 2  ;;  %3404 = vmatpush.msrb.mxu1 %v7586_v49  ;;  %v3020_v29 = vsel %vm2322_vm3, %v3015_v37, %v3019_v19  ;;  %v3024_v62 = vsel %vm2322_vm3, %v3019_v19, %v3023_v60  ;;  %v3324_v51 = vrot.slane %v8141_v54, 3  ;;  %v7690_v54 = vld [vmem:[%s13675_s1 + $0x12f0] sm:$0xff] }
 0x297   : > { %v11080_v36 = vadd.f32 %v2477_v42, %v10754_v32  ;;  %7578 = vmatmul.msk.f32.gmra.mxu2 %vm437_vm1, %v3012_v40  ;;  %3177 = vmatmul.f32.gmra.mxu0 %v3010_v41  ;;  %v7584_v32 = vld [vmem:[%s13675_s1 + $0x1060] sm:$0xff]  ;;  %v7587_v40 = vld [vmem:[%s13675_s1 + $0x1078] sm:$0xff]  ;;  %v3323_v42 = vrot.slane %v3253_v63, 3 }
 0x298   : > { %3489 = vmatpush.msrb.mxu0 %v7593_v22  ;;  %3536 = vmatpush.msrb.mxu2 %v7619_v44  ;;  %v3018_v8 = vsel %vm2322_vm3, %v3013_v25, %v3017_v21  ;;  %v3022_v48 = vsel %vm2322_vm3, %v3017_v21, %v3021_v34  ;;  %v8143_v21 = vld [vmem:[%s8412_s15 + $0x28] sm:$0xff] }
 0x299   : > { %7569 = vmatmul.msk.f32.gmra.mxu3 %vm437_vm1, %v3016_v56  ;;  %3092 = vmatmul.f32.gmra.mxu1 %v3014_v31 }
 0x29a   : > { %v2564_v27 = vpop.f32.mrf.mxu2  ;;  %3405 = vmatpush.msrb.mxu1 %v7584_v32  ;;  %3490 = vmatpush.msrb.mxu0 %v7591_v59  ;;  %v3325_v59 = vsel %vm13710_vm4, %v3323_v42, %v3324_v51 }
 0x29b   : > { %v2565_v4 = vadd.f32 %v2564_v27, %v2520_v24  ;;  %3537 = vmatpush.msrb.mxu2 %v7617_v5  ;;  %v3252_v24 = vld [vmem:[%s8412_s15] sm:$0xf8]  ;;  %v3328_v5 = vrot.slane %v8143_v21, 3  ;;  %v7686_v21 = vld [vmem:[%s13675_s1 + $0x12d0] sm:$0xff] }
 0x29c   : > { %v2479_v2 = vpop.f32.mrf.mxu3  ;;  %v2523_v28 = vpop.f32.mrf.mxu0  ;;  %3406 = vmatpush.msrb.mxu1 %v7582_v39  ;;  %3491 = vmatpush.msrb.mxu0 %v7589_v58 }
 0x29d   : > { %v11111_v18 = vadd.f32 %v2565_v4, %v10785_v14  ;;  %v2480_v7 = vadd.f32 %v2479_v2, %v2435_v10  ;;  %3538 = vmatpush.msrb.mxu2 %v7615_v55  ;;  %v8142_v10 = vld [vmem:[%s8412_s15 + $0x10] sm:$0xff] }
 0x29e   : > { %v2743_v41 = vpop.f32.mrf.mxu1  ;;  %3492 = vmatpush.msrb.mxu0 %v7587_v40 }
 0x29f   : > { %v11122_v14 = vadd.f32 %v2480_v7, %v10796_v16  ;;  %7579 = vmatmul.msk.f32.gmra.mxu2 %vm437_vm1, %v3016_v56  ;;  %3180 = vmatmul.f32.gmra.mxu0 %v3014_v31  ;;  %v3320_v56 = vrot.slane %v3252_v24, 3  ;;  %v3321_v31 = vrot.slane %v8142_v10, 3  ;;  %v3329_v7 = vsel %vm13710_vm4, %v3324_v51, %v3328_v5  ;;  %v11200_v24 = vld [vmem:[%s8412_s15 + $0x40] sm:$0xff] }
 0x2a0   : > { %3493 = vmatpush.msrb.mxu0 %v7585_v47  ;;  %v7716_v51 = vld [vmem:[%s13675_s1 + $0x13c0] sm:$0xff] }
 0x2a1   : > { %7570 = vmatmul.msk.f32.gmra.mxu3 %vm437_vm1, %v3020_v29  ;;  %3095 = vmatmul.f32.gmra.mxu1 %v3018_v8  ;;  %v3322_v3 = vsel %vm13710_vm4, %v3320_v56, %v3321_v31 }
 0x2a2   : > { %v2567_v16 = vpop.f32.mrf.mxu2  ;;  %3494 = vmatpush.msrb.mxu0 %v7583_v45 }
 0x2a3   : > { %v2568_v15 = vadd.f32 %v2567_v16, %v2523_v28 }
 0x2a4   : > { %v2787_v37 = vpop.f32.mrf.mxu3  ;;  %v2831_v53 = vpop.f32.mrf.mxu0 }
 0x2a5   : > { %v11135_v25 = vadd.f32 %v2568_v15, %v10809_v20  ;;  %v2788_v12 = vadd.f32 %v2787_v37, %v2743_v41 }
 0x2a6   : > { %v2746_v33 = vpop.f32.mrf.mxu1 }
 0x2a7   : > { %v11140_v11 = vadd.f32 %v2788_v12, %v10814_v57  ;;  %7580 = vmatmul.msk.f32.gmra.mxu2 %vm437_vm1, %v3020_v29  ;;  %3183 = vmatmul.f32.gmra.mxu0 %v3018_v8  ;;  %v8145_v8 = vld [vmem:[%s8412_s15 + $0x38] sm:$0xff]  ;;  %v7694_v12 = vld [vmem:[%s13675_s1 + $0x1310] sm:$0xff] }
 0x2a8   : > { %v3332_v17 = vrot.slane %v8145_v8, 3  ;;  %3723 = vmatpush.msra.mxu1 %v7694_v12 }
 0x2a9   : > { %7571 = vmatmul.msk.f32.gmra.mxu3 %vm437_vm1, %v3024_v62  ;;  %3098 = vmatmul.f32.gmra.mxu1 %v3022_v48 }
 0x2aa   : > { %v2875_v20 = vpop.f32.mrf.mxu2 }
 0x2ab   : > { %v2876_v49 = vadd.f32 %v2875_v20, %v2831_v53  ;;  %v3334_v20 = vrot.slane %v11200_v24, 3  ;;  %v11309_v24 = vld [vmem:[%s8412_s15 + $0x68] sm:$0xff] }
 0x2ac   : > { %v2790_v57 = vpop.f32.mrf.mxu3  ;;  %v2834_v22 = vpop.f32.mrf.mxu0 }
 0x2ad   : > { %v11149_v44 = vadd.f32 %v2876_v49, %v10823_v38  ;;  %v2791_v32 = vadd.f32 %v2790_v57, %v2746_v33  ;;  %v8144_v38 = vld [vmem:[%s8412_s15 + $0x20] sm:$0xff] }
 0x2ae   : > { %v2749_v27 = vpop.f32.mrf.mxu1  ;;  %v3326_v4 = vrot.slane %v8144_v38, 3  ;;  %v7688_v57 = vld [vmem:[%s13675_s1 + $0x12e0] sm:$0xff]  ;;  %v7719_v38 = vld [vmem:[%s13675_s1 + $0x13d8] sm:$0xff] }
 0x2af   : > { %v11154_v19 = vadd.f32 %v2791_v32, %v10828_v0  ;;  %7581 = vmatmul.msk.f32.gmra.mxu2 %vm437_vm1, %v3024_v62  ;;  %3186 = vmatmul.f32.gmra.mxu0 %v3022_v48  ;;  %v7718_v62 = vld [vmem:[%s13675_s1 + $0x13d0] sm:$0xff]  ;;  %v11196_v48 = vld [vmem:[%s8412_s15 + $0x48] sm:$0xff]  ;;  %v7695_v32 = vld [vmem:[%s13675_s1 + $0x1318] sm:$0xff] }
 0x2b0   : > { %v3327_v40 = vsel %vm13710_vm4, %v3321_v31, %v3326_v4  ;;  %v3336_v63 = vrot.slane %v11196_v48, 3  ;;  %3811 = vmatpush.msra.mxu0 %v7695_v32  ;;  %v7704_v48 = vld [vmem:[%s13675_s1 + $0x1360] sm:$0xff] }
 0x2b1   : > { %7641 = vmatmul.msk.f32.vlgmr.msrb.gmra.mxu3 %vm437_vm1, %v3325_v59  ;;  %3407 = vmatmul.f32.vlgmr.msrb.gmra.mxu1 %v3322_v3 }
 0x2b2   : > { %v2878_v50 = vpop.f32.mrf.mxu2 }
 0x2b3   : > { %v2879_v39 = vadd.f32 %v2878_v50, %v2834_v22  ;;  %v7714_v22 = vld [vmem:[%s13675_s1 + $0x13b0] sm:$0xff] }
 0x2b4   : > { %v2793_v58 = vpop.f32.mrf.mxu3  ;;  %v2837_v2 = vpop.f32.mrf.mxu0 }
 0x2b5   : > { %v11161_v28 = vadd.f32 %v2879_v39, %v10835_v6  ;;  %v2794_v0 = vadd.f32 %v2793_v58, %v2749_v27  ;;  %v8146_v6 = vld [vmem:[%s8412_s15 + $0x30] sm:$0xff] }
 0x2b6   : > { %v2752_v55 = vpop.f32.mrf.mxu1  ;;  %v3330_v1 = vrot.slane %v8146_v6, 3  ;;  %v7710_v39 = vld [vmem:[%s13675_s1 + $0x1390] sm:$0xff]  ;;  %v7708_v6 = vld [vmem:[%s13675_s1 + $0x1380] sm:$0xff] }
 0x2b7   : > { %v11166_v29 = vadd.f32 %v2794_v0, %v10840_v26  ;;  %7651 = vmatmul.msk.f32.vlgmr.msrb.gmra.mxu2 %vm437_vm1, %v3325_v59  ;;  %3495 = vmatmul.f32.vlgmr.msrb.gmra.mxu0 %v3322_v3  ;;  %v3333_v26 = vsel %vm13710_vm4, %v3328_v5, %v3332_v17  ;;  %v3337_v59 = vsel %vm13710_vm4, %v3332_v17, %v3336_v63  ;;  %v7712_v5 = vld [vmem:[%s13675_s1 + $0x13a0] sm:$0xff]  ;;  %v7682_v17 = vld [vmem:[%s13675_s1 + $0x12b0] sm:$0xff] }
 0x2b8   : > { %v3331_v37 = vsel %vm13710_vm4, %v3326_v4, %v3330_v1  ;;  %v3335_v3 = vsel %vm13710_vm4, %v3330_v1, %v3334_v20  ;;  %v7684_v4 = vld [vmem:[%s13675_s1 + $0x12c0] sm:$0xff] }
 0x2b9   : > { %7642 = vmatmul.msk.f32.gmra.mxu3 %vm437_vm1, %v3329_v7  ;;  %3410 = vmatmul.f32.gmra.mxu1 %v3327_v40 }
 0x2ba   : > { %v2881_v41 = vpop.f32.mrf.mxu2 }
 0x2bb   : > { %v2882_v47 = vadd.f32 %v2881_v41, %v2837_v2  ;;  %v11251_v2 = vld [vmem:[%s8412_s15 + $0x58] sm:$0xff]  ;;  %v7717_v41 = vld [vmem:[%s13675_s1 + $0x13c8] sm:$0xff] }
 0x2bc   : > { %v2796_v45 = vpop.f32.mrf.mxu3  ;;  %v2840_v16 = vpop.f32.mrf.mxu0  ;;  %v3340_v0 = vrot.slane %v11251_v2, 3  ;;  %v7698_v2 = vld [vmem:[%s13675_s1 + $0x1330] sm:$0xff] }
 0x2bd   : > { %v11173_v60 = vadd.f32 %v2882_v47, %v10847_v35  ;;  %v2797_v34 = vadd.f32 %v2796_v45, %v2752_v55  ;;  %v7720_v35 = vld [vmem:[%s13675_s1 + $0x13e0] sm:$0xf] }
 0x2be   : > { %v2755_v15 = vpop.f32.mrf.mxu1  ;;  %7722 = vmatpush.msk.msra.mxu3 %vm465_vm0, %v7720_v35  ;;  %v7680_v35 = vld [vmem:[%s13675_s1 + $0x12a0] sm:$0xff] }
 0x2bf   : > { %v11178_v53 = vadd.f32 %v2797_v34, %v10852_v43  ;;  %7652 = vmatmul.msk.f32.gmra.mxu2 %vm437_vm1, %v3329_v7  ;;  %3498 = vmatmul.f32.gmra.mxu0 %v3327_v40  ;;  %v7692_v43 = vld [vmem:[%s13675_s1 + $0x1300] sm:$0xff]  ;;  %v11255_v7 = vld [vmem:[%s8412_s15 + $0x50] sm:$0xff]  ;;  %v7691_v40 = vld [vmem:[%s13675_s1 + $0x12f8] sm:$0xff] }
 0x2c0   : > { %3724 = vmatpush.msra.mxu1 %v7692_v43  ;;  %3771 = vmatpush.msra.mxu3 %v7718_v62  ;;  %v3338_v55 = vrot.slane %v11255_v7, 3  ;;  %v7689_v34 = vld [vmem:[%s13675_s1 + $0x12e8] sm:$0xff]  ;;  %v7706_v43 = vld [vmem:[%s13675_s1 + $0x1370] sm:$0xff]  ;;  %v7687_v62 = vld [vmem:[%s13675_s1 + $0x12d8] sm:$0xff] }
 0x2c1   : > { %7643 = vmatmul.msk.f32.gmra.mxu3 %vm437_vm1, %v3333_v26  ;;  %3413 = vmatmul.f32.gmra.mxu1 %v3331_v37  ;;  %v11371_v7 = vld [vmem:[%s8412_s15 + $0x78] sm:$0xff] }
 0x2c2   : > { %v2884_v33 = vpop.f32.mrf.mxu2  ;;  %3725 = vmatpush.msra.mxu1 %v7690_v54  ;;  %3772 = vmatpush.msra.mxu3 %v7716_v51  ;;  %v7685_v51 = vld [vmem:[%s13675_s1 + $0x12c8] sm:$0xff] }
 0x2c3   : > { %v2885_v42 = vadd.f32 %v2884_v33, %v2840_v16  ;;  %v7678_v33 = vld [vmem:[%s13675_s1 + $0x1290] sm:$0xff] }
 0x2c4   : > { %v2799_v56 = vpop.f32.mrf.mxu3  ;;  %v2843_v10 = vpop.f32.mrf.mxu0  ;;  %3726 = vmatpush.msra.mxu1 %v7688_v57  ;;  %3773 = vmatpush.msra.mxu3 %v7714_v22  ;;  %v7702_v57 = vld [vmem:[%s13675_s1 + $0x1350] sm:$0xff] }
 0x2c5   : > { %v11210_v31 = vadd.f32 %v2885_v42, %v10884_v61  ;;  %v2800_v49 = vadd.f32 %v2799_v56, %v2755_v15  ;;  %v7721_v61 = vld [vmem:[%s13675_s1 + $0x13e8] sm:$0xf]  ;;  %v3341_v15 = vsel %vm13710_vm4, %v3336_v63, %v3340_v0  ;;  %v11313_v42 = vld [vmem:[%s8412_s15 + $0x60] sm:$0xff]  ;;  %v7711_v56 = vld [vmem:[%s13675_s1 + $0x1398] sm:$0xff] }
 0x2c6   : > { %v2758_v27 = vpop.f32.mrf.mxu1  ;;  %7732 = vmatpush.msk.msra.mxu2 %vm465_vm0, %v7721_v61  ;;  %3727 = vmatpush.msra.mxu1 %v7686_v21  ;;  %v3342_v54 = vrot.slane %v11313_v42, 3  ;;  %v7709_v61 = vld [vmem:[%s13675_s1 + $0x1388] sm:$0xff] }
 0x2c7   : > { %v11227_v50 = vadd.f32 %v2800_v49, %v10901_v9  ;;  %7653 = vmatmul.msk.f32.gmra.mxu2 %vm437_vm1, %v3333_v26  ;;  %3501 = vmatmul.f32.gmra.mxu0 %v3331_v37  ;;  %v7693_v9 = vld [vmem:[%s13675_s1 + $0x1308] sm:$0xff]  ;;  %v7715_v26 = vld [vmem:[%s13675_s1 + $0x13b8] sm:$0xff]  ;;  %v7676_v49 = vld [vmem:[%s13675_s1 + $0x1280] sm:$0xff] }
 0x2c8   : > { %3774 = vmatpush.msra.mxu3 %v7712_v5  ;;  %3812 = vmatpush.msra.mxu0 %v7693_v9 }
 0x2c9   : > { %7644 = vmatmul.msk.f32.gmra.mxu3 %vm437_vm1, %v3337_v59  ;;  %3416 = vmatmul.f32.gmra.mxu1 %v3335_v3 }
 0x2ca   : > { %v2887_v58 = vpop.f32.mrf.mxu2  ;;  %3859 = vmatpush.msra.mxu2 %v7719_v38  ;;  %3728 = vmatpush.msra.mxu1 %v7684_v4  ;;  %v7674_v38 = vld [vmem:[%s13675_s1 + $0x1270] sm:$0xff]  ;;  %v7700_v4 = vld [vmem:[%s13675_s1 + $0x1340] sm:$0xff] }
 0x2cb   : > { %v2888_v8 = vadd.f32 %v2887_v58, %v2843_v10  ;;  %3775 = vmatpush.msra.mxu3 %v7710_v39  ;;  %3813 = vmatpush.msra.mxu0 %v7691_v40  ;;  %v7681_v39 = vld [vmem:[%s13675_s1 + $0x12a8] sm:$0xff]  ;;  %v7672_v58 = vld [vmem:[%s13675_s1 + $0x1260] sm:$0xff]  ;;  %v11375_v40 = vld [vmem:[%s8412_s15 + $0x70] sm:$0xff] }
 0x2cc   : > { %v2802_v1 = vpop.f32.mrf.mxu3  ;;  %v2846_v47 = vpop.f32.mrf.mxu0  ;;  %3860 = vmatpush.msra.mxu2 %v7717_v41  ;;  %3729 = vmatpush.msra.mxu1 %v7682_v17  ;;  %v3346_v41 = vrot.slane %v11375_v40, 3  ;;  %v7705_v17 = vld [vmem:[%s13675_s1 + $0x1368] sm:$0xff] }
 0x2cd   : > { %v11271_v45 = vadd.f32 %v2888_v8, %v10945_v52  ;;  %v2803_v16 = vadd.f32 %v2802_v1, %v2758_v27  ;;  %v3339_v52 = vsel %vm13710_vm4, %v3334_v20, %v3338_v55  ;;  %3776 = vmatpush.msra.mxu3 %v7708_v6  ;;  %3814 = vmatpush.msra.mxu0 %v7689_v34  ;;  %v3344_v20 = vrot.slane %v11309_v24, 3  ;;  %v7679_v8 = vld [vmem:[%s13675_s1 + $0x1298] sm:$0xff]  ;;  %v7670_v1 = vld [vmem:[%s13675_s1 + $0x1250] sm:$0xff] }
 0x2ce   : > { %v2761_v37 = vpop.f32.mrf.mxu1  ;;  %3861 = vmatpush.msra.mxu2 %v7715_v26  ;;  %3730 = vmatpush.msra.mxu1 %v7680_v35 }
 0x2cf   : > { %v11286_v12 = vadd.f32 %v2803_v16, %v10960_v23  ;;  %7654 = vmatmul.msk.f32.gmra.mxu2 %vm437_vm1, %v3337_v59  ;;  %3504 = vmatmul.f32.gmra.mxu0 %v3335_v3  ;;  %v7713_v23 = vld [vmem:[%s13675_s1 + $0x13a8] sm:$0xff]  ;;  %v7683_v3 = vld [vmem:[%s13675_s1 + $0x12b8] sm:$0xff]  ;;  %v3345_v21 = vsel %vm13710_vm4, %v3340_v0, %v3344_v20 }
 0x2d0   : > { %3777 = vmatpush.msra.mxu3 %v7706_v43  ;;  %3815 = vmatpush.msra.mxu0 %v7687_v62 }
 0x2d1   : > { %7645 = vmatmul.msk.f32.gmra.mxu3 %vm437_vm1, %v3341_v15  ;;  %3419 = vmatmul.f32.gmra.mxu1 %v3339_v52 }
 0x2d2   : > { %v2890_v63 = vpop.f32.mrf.mxu2  ;;  %3862 = vmatpush.msra.mxu2 %v7713_v23  ;;  %3731 = vmatpush.msra.mxu1 %v7678_v33  ;;  %v7668_v23 = vld [vmem:[%s13675_s1 + $0x1240] sm:$0xff]  ;;  %v7675_v33 = vld [vmem:[%s13675_s1 + $0x1278] sm:$0xff] }
 0x2d3   : > { %v2891_v10 = vadd.f32 %v2890_v63, %v2846_v47  ;;  %3778 = vmatpush.msra.mxu3 %v7704_v48  ;;  %3816 = vmatpush.msra.mxu0 %v7685_v51  ;;  %v7696_v47 = vld [vmem:[%s13675_s1 + $0x1320] sm:$0xff]  ;;  %v7701_v48 = vld [vmem:[%s13675_s1 + $0x1348] sm:$0xff] }
 0x2d4   : > { %v2805_v22 = vpop.f32.mrf.mxu3  ;;  %v2849_v32 = vpop.f32.mrf.mxu0  ;;  %3863 = vmatpush.msra.mxu2 %v7711_v56  ;;  %3732 = vmatpush.msra.mxu1 %v7676_v49  ;;  %v7673_v63 = vld [vmem:[%s13675_s1 + $0x1268] sm:$0xff]  ;;  %v7699_v56 = vld [vmem:[%s13675_s1 + $0x1338] sm:$0xff]  ;;  %v7664_v49 = vld [vmem:[%s13675_s1 + $0x1220] sm:$0xff] }
 0x2d5   : > { %v11329_v59 = vadd.f32 %v2891_v10, %v11003_v30  ;;  %v2806_v27 = vadd.f32 %v2805_v22, %v2761_v37  ;;  %v3343_v30 = vsel %vm13710_vm4, %v3338_v55, %v3342_v54  ;;  %3779 = vmatpush.msra.mxu3 %v7702_v57  ;;  %3817 = vmatpush.msra.mxu0 %v7683_v3  ;;  %v3348_v55 = vrot.slane %v11371_v7, 3  ;;  %v7677_v37 = vld [vmem:[%s13675_s1 + $0x1288] sm:$0xff]  ;;  %v7671_v57 = vld [vmem:[%s13675_s1 + $0x1258] sm:$0xff] }
 0x2d6   : > { %v2764_v5 = vpop.f32.mrf.mxu1  ;;  %3864 = vmatpush.msra.mxu2 %v7709_v61  ;;  %3733 = vmatpush.msra.mxu1 %v7674_v38  ;;  %v7697_v61 = vld [vmem:[%s13675_s1 + $0x1328] sm:$0xff] }
 0x2d7   : > { %v11348_v9 = vadd.f32 %v2806_v27, %v11022_v13  ;;  %7655 = vmatmul.msk.f32.gmra.mxu2 %vm437_vm1, %v3341_v15  ;;  %3507 = vmatmul.f32.gmra.mxu0 %v3339_v52  ;;  %v7707_v13 = vld [vmem:[%s13675_s1 + $0x1378] sm:$0xff]  ;;  %v3349_v35 = vsel %vm13710_vm4, %v3344_v20, %v3348_v55  ;;  %v8155_v20 = vld [vmem:[%s8412_s15 + $0x88] sm:$0xff] }
 0x2d8   : > { %3780 = vmatpush.msra.mxu3 %v7700_v4  ;;  %3818 = vmatpush.msra.mxu0 %v7681_v39  ;;  %v7703_v52 = vld [vmem:[%s13675_s1 + $0x1358] sm:$0xff]  ;;  %v3352_v42 = vrot.slane %v8155_v20, 3  ;;  %v3254_v39 = vld [vmem:[%s8412_s15 + $0x90] sm:$0x7] }
 0x2d9   : > { %7646 = vmatmul.msk.f32.gmra.mxu3 %vm437_vm1, %v3345_v21  ;;  %3422 = vmatmul.f32.gmra.mxu1 %v3343_v30  ;;  %v3255_v4 = vld [vmem:[%s8412_s15 + $0x98] sm:$0x7] }
 0x2da   : > { %v2893_v0 = vpop.f32.mrf.mxu2  ;;  %3865 = vmatpush.msra.mxu2 %v7707_v13  ;;  %3734 = vmatpush.msra.mxu1 %v7672_v58  ;;  %v7667_v13 = vld [vmem:[%s13675_s1 + $0x1238] sm:$0xff]  ;;  %v7665_v58 = vld [vmem:[%s13675_s1 + $0x1228] sm:$0xff] }
 0x2db   : > { %v2894_v6 = vadd.f32 %v2893_v0, %v2849_v32  ;;  %3781 = vmatpush.msra.mxu3 %v7698_v2  ;;  %3819 = vmatpush.msra.mxu0 %v7679_v8  ;;  %v3356_v2 = vrot.slane %v3255_v4, 3  ;;  %v3354_v0 = vrot.slane %v3254_v39, 3  ;;  %v8161_v39 = vld [vmem:[%s8412_s15 + $0xd8] sm:$0xff] }
 0x2dc   : > { %v2808_v16 = vpop.f32.mrf.mxu3  ;;  %v2852_v34 = vpop.f32.mrf.mxu0  ;;  %3866 = vmatpush.msra.mxu2 %v7705_v17  ;;  %3735 = vmatpush.msra.mxu1 %v7670_v1 }
 0x2dd   : > { %v11391_v26 = vadd.f32 %v2894_v6, %v11065_v46  ;;  %v2809_v15 = vadd.f32 %v2808_v16, %v2764_v5  ;;  %v3347_v46 = vsel %vm13710_vm4, %v3342_v54, %v3346_v41  ;;  %3782 = vmatpush.msra.mxu3 %v7696_v47  ;;  %3820 = vmatpush.msra.mxu0 %v7677_v37  ;;  %v8156_v54 = vld [vmem:[%s8412_s15 + $0x80] sm:$0xff]  ;;  %v8181_v37 = vmov 0  }
 0x2de   : > { %v2767_v43 = vpop.f32.mrf.mxu1  ;;  %3867 = vmatpush.msra.mxu2 %v7703_v52  ;;  %v3350_v51 = vrot.slane %v8156_v54, 3  ;;  %3736 = vmatpush.msra.mxu1 %v7668_v23  ;;  %v3353_v5 = vsel %vm13710_vm4, %v3348_v55, %v3352_v42  ;;  %v3357_v17 = vsel %vm13710_vm4, %v3352_v42, %v3356_v2  ;;  %v8091_v47 = vld [vmem:[#allocation2] ss:$0 sm:$0xff]  ;;  %v8158_v23 = vld [vmem:[%s8412_s15 + $0xb0] sm:$0xff] }
 0x2df   : > { %v11406_v62 = vadd.f32 %v2809_v15, %v11080_v36  ;;  %7656 = vmatmul.msk.f32.gmra.mxu2 %vm437_vm1, %v3345_v21  ;;  %3510 = vmatmul.f32.gmra.mxu0 %v3343_v30  ;;  %v7666_v36 = vld [vmem:[%s13675_s1 + $0x1230] sm:$0xff]  ;;  %v7669_v21 = vld [vmem:[%s13675_s1 + $0x1248] sm:$0xff]  ;;  %v7660_v15 = vld [vmem:[%s8412_s15 + $0xa0] sm:$0xf8] }
 0x2e0   : > { %3821 = vmatpush.msra.mxu0 %v7675_v33  ;;  %3868 = vmatpush.msra.mxu2 %v7701_v48  ;;  %v3351_v38 = vsel %vm13710_vm4, %v3346_v41, %v3350_v51  ;;  %v3355_v1 = vsel %vm13710_vm4, %v3350_v51, %v3354_v0  ;;  %v3653_v33 = vrot.slane %v8158_v23, 3 }
 0x2e1   : > { %7647 = vmatmul.msk.f32.gmra.mxu3 %vm437_vm1, %v3349_v35  ;;  %3425 = vmatmul.f32.gmra.mxu1 %v3347_v46 }
 0x2e2   : > { %v2896_v24 = vpop.f32.mrf.mxu2  ;;  %3737 = vmatpush.msra.mxu1 %v7666_v36  ;;  %3822 = vmatpush.msra.mxu0 %v7673_v63 }
 0x2e3   : > { %v2897_v10 = vadd.f32 %v2896_v24, %v2852_v34  ;;  %3869 = vmatpush.msra.mxu2 %v7699_v56  ;;  %v7661_v34 = vld [vmem:[%s8412_s15 + $0xa8] sm:$0xf8]  ;;  %8089 = vset.pattern.permute.xlu0 %v8181_v37 }
 0x2e4   : > { %v2811_v22 = vpop.f32.mrf.mxu3  ;;  %v2855_v32 = vpop.f32.mrf.mxu0  ;;  %3738 = vmatpush.msra.mxu1 %v7664_v49  ;;  %3823 = vmatpush.msra.mxu0 %v7671_v57  ;;  %v3655_v52 = vrot.slane %v7661_v34, 3 }
 0x2e5   : > { %v11437_v27 = vadd.f32 %v2897_v10, %v11111_v18  ;;  %v2812_v3 = vadd.f32 %v2811_v22, %v2767_v43  ;;  %3870 = vmatpush.msra.mxu2 %v7697_v61  ;;  %8090 = vset.pattern.permute.xlu1 %v8181_v37  ;;  %v8159_v10 = vld [vmem:[%s8412_s15 + $0xc8] sm:$0xff] }
 0x2e6   : > { %v3075_v30 = vpop.f32.mrf.mxu1  ;;  %3824 = vmatpush.msra.mxu0 %v7669_v21  ;;  %3963 = vperm.xlu0 %8089, %v8091_v47   ;;  %v3660_v49 = vrot.slane %v8159_v10, 3 }
 0x2e7   : > { %v11448_v18 = vadd.f32 %v2812_v3, %v11122_v14  ;;  %7657 = vmatmul.msk.f32.gmra.mxu2 %vm437_vm1, %v3349_v35  ;;  %3513 = vmatmul.f32.gmra.mxu0 %v3347_v46  ;;  %v8157_v35 = vld [vmem:[%s8412_s15 + $0xb8] sm:$0xff]  ;;  %v3652_v46 = vrot.slane %v7660_v15, 3 }
 0x2e8   : > { %3825 = vmatpush.msra.mxu0 %v7667_v13  ;;  %v3656_v43 = vrot.slane %v8157_v35, 3  ;;  %v8162_v13 = vld [vmem:[%s8412_s15 + $0xd0] sm:$0xff]  ;;  %v8165_v35 = vld [vmem:[%s8412_s15 + $0xf8] sm:$0xff] }
 0x2e9   : > { %7648 = vmatmul.msk.f32.gmra.mxu3 %vm437_vm1, %v3353_v5  ;;  %3428 = vmatmul.f32.gmra.mxu1 %v3351_v38  ;;  %v3654_v54 = vsel %vm13710_vm4, %v3652_v46, %v3653_v33  ;;  %v8166_v46 = vld [vmem:[%s8412_s15 + $0xf0] sm:$0xff] }
 0x2ea   : > { %v2899_v14 = vpop.f32.mrf.mxu2  ;;  %3826 = vmatpush.msra.mxu0 %v7665_v58  ;;  %v3657_v20 = vsel %vm13710_vm4, %v3655_v52, %v3656_v43  ;;  %v3661_v21 = vsel %vm13710_vm4, %v3656_v43, %v3660_v49  ;;  %v3662_v58 = vrot.slane %v8162_v13, 3  ;;  %v3672_v43 = vrot.slane %v8165_v35, 3 }
 0x2eb   : > { %v2900_v7 = vadd.f32 %v2899_v14, %v2855_v32  ;;  %v3670_v23 = vrot.slane %v8166_v46, 3  ;;  %v7663_v46 = vld [vmem:[%s8412_s15 + $0x138] sm:$0x7] }
 0x2ec   : > { %v3119_v55 = vpop.f32.mrf.mxu3  ;;  %v3163_v40 = vpop.f32.mrf.mxu0 }
 0x2ed   : > { %v11461_v41 = vadd.f32 %v2900_v7, %v11135_v25  ;;  %v3120_v8 = vadd.f32 %v3119_v55, %v3075_v30 }
 0x2ee   : > { %v3078_v6 = vpop.f32.mrf.mxu1 }
 0x2ef   : > { %v11466_v16 = vadd.f32 %v3120_v8, %v11140_v11  ;;  %7658 = vmatmul.msk.f32.gmra.mxu2 %vm437_vm1, %v3353_v5  ;;  %3516 = vmatmul.f32.gmra.mxu0 %v3351_v38 }
 0x2f1   : > { %7649 = vmatmul.msk.f32.gmra.mxu3 %vm437_vm1, %v3357_v17  ;;  %3431 = vmatmul.f32.gmra.mxu1 %v3355_v1 }
 0x2f2   : > { %v3207_v25 = vpop.f32.mrf.mxu2 }
 0x2f3   : > { %v3208_v11 = vadd.f32 %v3207_v25, %v3163_v40 }
 0x2f4   : > { %v3122_v48 = vpop.f32.mrf.mxu3  ;;  %v3166_v36 = vpop.f32.mrf.mxu0 }
 0x2f5   : > { %v11475_v63 = vadd.f32 %v3208_v11, %v11149_v44  ;;  %v3123_v24 = vadd.f32 %v3122_v48, %v3078_v6  ;;  %v8160_v44 = vld [vmem:[%s8412_s15 + $0xc0] sm:$0xff] }
 0x2f6   : > { %v3081_v42 = vpop.f32.mrf.mxu1  ;;  %v3658_v57 = vrot.slane %v8160_v44, 3 }
 0x2f7   : > { %v11480_v51 = vadd.f32 %v3123_v24, %v11154_v19  ;;  %7659 = vmatmul.msk.f32.gmra.mxu2 %vm437_vm1, %v3357_v17  ;;  %3519 = vmatmul.f32.gmra.mxu0 %v3355_v1  ;;  %v8163_v17 = vld [vmem:[%s8412_s15 + $0xe8] sm:$0xff] }
 0x2f8   : > { %v3659_v30 = vsel %vm13710_vm4, %v3653_v33, %v3658_v57  ;;  %v3663_v40 = vsel %vm13710_vm4, %v3658_v57, %v3662_v58  ;;  %v3668_v6 = vrot.slane %v8163_v17, 3 }
 0x2f9   : > { %7723 = vmatmul.msk.f32.vlgmr.msra.gmra.mxu3 %vm437_vm1, %v3657_v20  ;;  %3739 = vmatmul.f32.vlgmr.msra.gmra.mxu1 %v3654_v54 }
 0x2fa   : > { %v3210_v56 = vpop.f32.mrf.mxu2  ;;  %v3673_v48 = vsel %vm13710_vm4, %v3668_v6, %v3672_v43 }
 0x2fb   : > { %v3211_v22 = vadd.f32 %v3210_v56, %v3166_v36  ;;  %v8168_v56 = vld [vmem:[%s8412_s15 + $0x100] sm:$0xff] }
 0x2fc   : > { %v3125_v32 = vpop.f32.mrf.mxu3  ;;  %v3169_v3 = vpop.f32.mrf.mxu0  ;;  %v3674_v10 = vrot.slane %v8168_v56, 3 }
 0x2fd   : > { %v11487_v61 = vadd.f32 %v3211_v22, %v11161_v28  ;;  %v3126_v19 = vadd.f32 %v3125_v32, %v3081_v42  ;;  %v3664_v28 = vrot.slane %v8161_v39, 3  ;;  %v8167_v42 = vld [vmem:[%s8412_s15 + $0x108] sm:$0xff] }
 0x2fe   : > { %v11490_v5 = vpop.f32.mrf.mxu1  ;;  %v3675_v32 = vsel %vm13710_vm4, %v3670_v23, %v3674_v10 }
 0x2ff   : > { %13714 = vst [vmem:[#allocation4_spill] sm:$0xff] %v11487_v61  ;;  %v11494_v38 = vadd.f32 %v3126_v19, %v11166_v29  ;;  %7733 = vmatmul.msk.f32.vlgmr.msra.gmra.mxu2 %vm437_vm1, %v3657_v20  ;;  %3827 = vmatmul.f32.vlgmr.msra.gmra.mxu0 %v3654_v54  ;;  %v3665_v7 = vsel %vm13710_vm4, %v3660_v49, %v3664_v28  ;;  %v3676_v54 = vrot.slane %v8167_v42, 3  ;;  %v8169_v19 = vld [vmem:[%s8412_s15 + $0x118] sm:$0xff] }
 0x300   : > { %v3669_v15 = vsel %vm13710_vm4, %v3664_v28, %v3668_v6  ;;  %v8172_v6 = vld [vmem:[%s8412_s15 + $0x120] sm:$0xff] }
 0x301   : > { %13715 = vst [vmem:[#allocation5_spill] sm:$0xff] %v11494_v38  ;;  %7724 = vmatmul.msk.f32.gmra.mxu3 %vm437_vm1, %v3661_v21  ;;  %3742 = vmatmul.f32.gmra.mxu1 %v3659_v30  ;;  %v3677_v57 = vsel %vm13710_vm4, %v3672_v43, %v3676_v54 }
 0x302   : > { %v3213_v4 = vpop.f32.mrf.mxu2 }
 0x303   : > { %v3214_v14 = vadd.f32 %v3213_v4, %v3169_v3 }
 0x304   : > { %v11500_v2 = vpop.f32.mrf.mxu3  ;;  %v11502_v0 = vpop.f32.mrf.mxu0 }
 0x305   : > { %v11505_v29 = vadd.f32 %v3214_v14, %v11173_v60  ;;  %v8164_v60 = vld [vmem:[%s8412_s15 + $0xe0] sm:$0xff] }
 0x306   : > { %v11508_v55 = vpop.f32.mrf.mxu1  ;;  %v3666_v1 = vrot.slane %v8164_v60, 3  ;;  %v3682_v60 = vrot.slane %v8172_v6, 3 }
 0x307   : > { %13716 = vst [vmem:[#allocation6_spill] sm:$0xff] %v11505_v29  ;;  %7734 = vmatmul.msk.f32.gmra.mxu2 %vm437_vm1, %v3661_v21  ;;  %3830 = vmatmul.f32.gmra.mxu0 %v3659_v30  ;;  %v3680_v21 = vrot.slane %v8169_v19, 3  ;;  %v8170_v30 = vld [vmem:[%s8412_s15 + $0x110] sm:$0xff] }
 0x308   : > { %v3667_v25 = vsel %vm13710_vm4, %v3662_v58, %v3666_v1  ;;  %v3671_v24 = vsel %vm13710_vm4, %v3666_v1, %v3670_v23  ;;  %v3678_v4 = vrot.slane %v8170_v30, 3  ;;  %v7662_v23 = vld [vmem:[%s8412_s15 + $0x130] sm:$0x7] }
 0x309   : > { %7725 = vmatmul.msk.f32.gmra.mxu3 %vm437_vm1, %v3665_v7  ;;  %3745 = vmatmul.f32.gmra.mxu1 %v3663_v40  ;;  %v3681_v13 = vsel %vm13710_vm4, %v3676_v54, %v3680_v21  ;;  %v3686_v42 = vrot.slane %v7662_v23, 3 }
 0x30a   : > { %v11513_v8 = vpop.f32.mrf.mxu2  ;;  %v3679_v14 = vsel %vm13710_vm4, %v3674_v10, %v3678_v4  ;;  %v3683_v43 = vsel %vm13710_vm4, %v3678_v4, %v3682_v60 }
 0x30c   : > { %v11517_v47 = vpop.f32.mrf.mxu3  ;;  %v11519_v34 = vpop.f32.mrf.mxu0 }
 0x30e   : > { %v11522_v37 = vpop.f32.mrf.mxu1 }
 0x30f   : > { %7735 = vmatmul.msk.f32.gmra.mxu2 %vm437_vm1, %v3665_v7  ;;  %3833 = vmatmul.f32.gmra.mxu0 %v3663_v40  ;;  %v8171_v40 = vld [vmem:[%s8412_s15 + $0x128] sm:$0xff] }
 0x310   : > { %v3684_v17 = vrot.slane %v8171_v40, 3 }
 0x311   : > { %7726 = vmatmul.msk.f32.gmra.mxu3 %vm437_vm1, %v3669_v15  ;;  %3748 = vmatmul.f32.gmra.mxu1 %v3667_v25 }
 0x312   : > { %v11527_v52 = vpop.f32.mrf.mxu2 }
 0x314   : > { %v11531_v33 = vpop.f32.mrf.mxu3  ;;  %v11533_v11 = vpop.f32.mrf.mxu0 }
 0x316   : > { %v11536_v36 = vpop.f32.mrf.mxu1 }
 0x317   : > { %7736 = vmatmul.msk.f32.gmra.mxu2 %vm437_vm1, %v3669_v15  ;;  %3836 = vmatmul.f32.gmra.mxu0 %v3667_v25  ;;  %v3685_v25 = vsel %vm13710_vm4, %v3680_v21, %v3684_v17 }
 0x319   : > { %7727 = vmatmul.msk.f32.gmra.mxu3 %vm437_vm1, %v3673_v48  ;;  %3751 = vmatmul.f32.gmra.mxu1 %v3671_v24 }
 0x31a   : > { %v11541_v20 = vpop.f32.mrf.mxu2 }
 0x31c   : > { %v11545_v49 = vpop.f32.mrf.mxu3  ;;  %v11547_v44 = vpop.f32.mrf.mxu0 }
 0x31e   : > { %v11550_v22 = vpop.f32.mrf.mxu1 }
 0x31f   : > { %7737 = vmatmul.msk.f32.gmra.mxu2 %vm437_vm1, %v3673_v48  ;;  %3839 = vmatmul.f32.gmra.mxu0 %v3671_v24  ;;  %v3688_v24 = vrot.slane %v7663_v46, 3 }
 0x321   : > { %7728 = vmatmul.msk.f32.gmra.mxu3 %vm437_vm1, %v3677_v57  ;;  %3754 = vmatmul.f32.gmra.mxu1 %v3675_v32  ;;  %v3689_v10 = vsel %vm13710_vm4, %v3684_v17, %v3688_v24 }
 0x322   : > { %v11555_v3 = vpop.f32.mrf.mxu2 }
 0x324   : > { %v11559_v39 = vpop.f32.mrf.mxu3  ;;  %v11561_v28 = vpop.f32.mrf.mxu0 }
 0x326   : > { %v11564_v58 = vpop.f32.mrf.mxu1 }
 0x327   : > { %7738 = vmatmul.msk.f32.gmra.mxu2 %vm437_vm1, %v3677_v57  ;;  %3842 = vmatmul.f32.gmra.mxu0 %v3675_v32  ;;  %v3687_v32 = vsel %vm13710_vm4, %v3682_v60, %v3686_v42 }
 0x329   : > { %7729 = vmatmul.msk.f32.gmra.mxu3 %vm437_vm1, %v3681_v13  ;;  %3757 = vmatmul.f32.gmra.mxu1 %v3679_v14 }
 0x32a   : > { %v11569_v7 = vpop.f32.mrf.mxu2 }
 0x32c   : > { %v11573_v1 = vpop.f32.mrf.mxu3  ;;  %v11575_v15 = vpop.f32.mrf.mxu0 }
 0x32e   : > { %v3408_v35 = vpop.f32.mrf.mxu1 }
 0x32f   : > { %7739 = vmatmul.msk.f32.gmra.mxu2 %vm437_vm1, %v3681_v13  ;;  %3845 = vmatmul.f32.gmra.mxu0 %v3679_v14 }
 0x331   : > { %7730 = vmatmul.msk.f32.gmra.mxu3 %vm437_vm1, %v3685_v25  ;;  %3760 = vmatmul.f32.gmra.mxu1 %v3683_v43 }
 0x332   : > { %v3231_v48 = vpop.f32.mrf.mxu2 }
 0x334   : > { %v3452_v54 = vpop.f32.mrf.mxu3  ;;  %v11583_v56 = vpop.f32.mrf.mxu0 }
 0x336   : > { %v11586_v57 = vpop.f32.mrf.mxu1 }
 0x337   : > { %7740 = vmatmul.msk.f32.gmra.mxu2 %vm437_vm1, %v3685_v25  ;;  %3848 = vmatmul.f32.gmra.mxu0 %v3683_v43 }
 0x339   : > { %7731 = vmatmul.msk.f32.gmra.mxu3 %vm437_vm1, %v3689_v10  ;;  %3763 = vmatmul.f32.gmra.mxu1 %v3687_v32 }
 0x33a   : > { %v3540_v19 = vpop.f32.mrf.mxu2 }
 0x33c   : > { %v3455_v21 = vpop.f32.mrf.mxu3  ;;  %v11591_v30 = vpop.f32.mrf.mxu0 }
 0x33e   : > { %v11593_v4 = vpop.f32.mrf.mxu1 }
 0x33f   : > { %7741 = vmatmul.msk.f32.gmra.mxu2 %vm437_vm1, %v3689_v10  ;;  %3851 = vmatmul.f32.gmra.mxu0 %v3687_v32 }
 0x342   : > { %v11596_v13 = vpop.f32.mrf.mxu2 }
 0x344   : > { %v11598_v14 = vpop.f32.mrf.mxu3  ;;  %v11600_v40 = vpop.f32.mrf.mxu0 }
 0x346   : > { %v11602_v17 = vpop.f32.mrf.mxu1 }
 0x34a   : > { %v11604_v6 = vpop.f32.mrf.mxu2 }
 0x34c   : > { %v11606_v60 = vpop.f32.mrf.mxu3  ;;  %v11608_v25 = vpop.f32.mrf.mxu0 }
 0x34d   : > { %13717 = vst [vmem:[#allocation7_spill] sm:$0xff] %v11608_v25 }
 0x34e   : > { %v11610_v43 = vpop.f32.mrf.mxu1 }
 0x34f   : > { %13718 = vst [vmem:[#allocation8_spill] sm:$0xff] %v11610_v43 }
 0x352   : > { %v11612_v46 = vpop.f32.mrf.mxu2 }
 0x353   : > { %13719 = vst [vmem:[#allocation9_spill] sm:$0xff] %v11612_v46 }
 0x354   : > { %v11614_v23 = vpop.f32.mrf.mxu3  ;;  %v11616_v24 = vpop.f32.mrf.mxu0 }
 0x355   : > { %13720 = vst [vmem:[#allocation10_spill] sm:$0xff] %v11614_v23 }
 0x356   : > { %13721 = vst [vmem:[#allocation11_spill] sm:$0xff] %v11616_v24  ;;  %v11618_v42 = vpop.f32.mrf.mxu1 }
 0x357   : > { %13722 = vst [vmem:[#allocation12_spill] sm:$0xff] %v11618_v42 }
 0x35a   : > { %v11620_v10 = vpop.f32.mrf.mxu2 }
 0x35b   : > { %13723 = vst [vmem:[#allocation13_spill] sm:$0xff] %v11620_v10 }
 0x35c   : > { %v11622_v32 = vpop.f32.mrf.mxu3  ;;  %v11624_v29 = vpop.f32.mrf.mxu0 }
 0x35d   : > { %13724 = vst [vmem:[#allocation14_spill] sm:$0xff] %v11622_v32 }
 0x35e   : > { %13725 = vst [vmem:[#allocation15_spill] sm:$0xff] %v11624_v29  ;;  %v11626_v38 = vpop.f32.mrf.mxu1 }
 0x35f   : > { %13726 = vst [vmem:[#allocation16_spill] sm:$0xff] %v11626_v38 }
 0x362   : > { %v11628_v61 = vpop.f32.mrf.mxu2 }
 0x363   : > { %13727 = vst [vmem:[#allocation17_spill] sm:$0xff] %v11628_v61 }
 0x364   : > { %v11630_v25 = vpop.f32.mrf.mxu3  ;;  %v11632_v43 = vpop.f32.mrf.mxu0 }
 0x365   : > { %13728 = vst [vmem:[#allocation18_spill] sm:$0xff] %v11630_v25  ;;  %v3453_v25 = vadd.f32 %v3452_v54, %v3408_v35  ;;  %v3135_v35 = vadd.f32 %v11531_v33, %v11522_v37 }
 0x366   : > { %13729 = vst [vmem:[#allocation19_spill] sm:$0xff] %v11632_v43  ;;  %v11634_v46 = vpop.f32.mrf.mxu1  ;;  %v3129_v43 = vadd.f32 %v11500_v2, %v11490_v5  ;;  %v3223_v5 = vadd.f32 %v11541_v20, %v11533_v11  ;;  %v3138_v2 = vadd.f32 %v11545_v49, %v11536_v36 }
 0x367   : > { %13730 = vst [vmem:[#allocation20_spill] sm:$0xff] %v11634_v46  ;;  %v3217_v46 = vadd.f32 %v11513_v8, %v11502_v0  ;;  %v3226_v0 = vadd.f32 %v11555_v3, %v11547_v44  ;;  %v3229_v8 = vadd.f32 %v11569_v7, %v11561_v28  ;;  %v3567_v33 = vadd.f32 %v3453_v25, %v11466_v16 }
 0x368   : > { %v3240_v20 = vadd.f32 %v3129_v43, %v11178_v53  ;;  %v3541_v44 = vadd.f32 %v3540_v19, %v11583_v56  ;;  %v3245_v16 = vadd.f32 %v3223_v5, %v11329_v59  ;;  %v13737_v56 = vld [vmem:[#allocation8_spill] sm:$0xff] }
 0x369   : > { %v3241_v49 = vadd.f32 %v3217_v46, %v11210_v31  ;;  %v3247_v53 = vadd.f32 %v3226_v0, %v11391_v26  ;;  %v3459_v26 = vadd.f32 %v11598_v14, %v11593_v4  ;;  %v13742_v14 = vld [vmem:[#allocation14_spill] sm:$0xff] }
 0x36a   : > { %v11636_v23 = vpop.f32.mrf.mxu2  ;;  %v13744_v46 = vld [vmem:[#allocation17_spill] sm:$0xff] }
 0x36c   : > { %v11638_v24 = vpop.f32.mrf.mxu3  ;;  %v11640_v42 = vpop.f32.mrf.mxu0  ;;  %v13747_v0 = vld [vmem:[#allocation18_spill] sm:$0xff] }
 0x36d   : > { %13731 = vst [vmem:[#allocation21_spill] sm:$0xff] %v11638_v24  ;;  %v3132_v24 = vadd.f32 %v11517_v47, %v11508_v55  ;;  %v3141_v55 = vadd.f32 %v11559_v39, %v11550_v22  ;;  %v3144_v47 = vadd.f32 %v11573_v1, %v11564_v58  ;;  %v3456_v22 = vadd.f32 %v3455_v21, %v11586_v57  ;;  %v13738_v57 = vld [vmem:[#allocation10_spill] sm:$0xff]  ;;  %v13739_v21 = vld [vmem:[#allocation11_spill] sm:$0xff] }
 0x36e   : > { %13732 = vst [vmem:[#allocation22_spill] sm:$0xff] %v11640_v42  ;;  %v11642_v10 = vpop.f32.mrf.mxu1  ;;  %v3244_v58 = vadd.f32 %v3135_v35, %v11286_v12  ;;  %v11695_v1 = vadd.f32 %v3229_v8, %v11437_v27  ;;  %v3568_v12 = vadd.f32 %v3541_v44, %v11475_v63  ;;  %v13735_v63 = vld [vmem:[#allocation7_spill] sm:$0xff]  ;;  %v3465_v19 = vadd.f32 %v13738_v57, %v13737_v56  ;;  %v13745_v35 = vld [vmem:[#allocation4_spill] sm:$0xff] }
 0x36f   : > { %13733 = vst [vmem:[#allocation23_spill] sm:$0xff] %v11642_v10  ;;  %v3917_v10 = vld [vmem:[%s13676_s2] sm:$0x3]  ;;  %v3242_v39 = vadd.f32 %v3132_v24, %v11227_v50  ;;  %v11692_v31 = vadd.f32 %v3141_v55, %v11406_v62  ;;  %v3569_v59 = vadd.f32 %v3456_v22, %v11480_v51  ;;  %v11710_v62 = vpop.permute.xlu0 %3963  ;;  %v13736_v51 = vld [vmem:[#allocation9_spill] sm:$0xff] }
 0x370   : > { %v11679_v36 = vperm.slane %v3917_v10, 0  ;;  %v3550_v54 = vadd.f32 %v13736_v51, %v13735_v63  ;;  %v13748_v8 = vld [vmem:[#allocation19_spill] sm:$0xff] }
 0x372   : > { %v11644_v32 = vpop.f32.mrf.mxu2 }
 0x374   : > { %v11646_v29 = vpop.f32.mrf.mxu3  ;;  %v11648_v38 = vpop.f32.mrf.mxu0 }
 0x375   : > { %13734 = vst [vmem:[#allocation24_spill] sm:$0xff] %v11648_v38  ;;  %v3220_v38 = vadd.f32 %v11527_v52, %v11519_v34  ;;  %v3232_v52 = vadd.f32 %v3231_v48, %v11575_v15  ;;  %v11698_v15 = vadd.f32 %v3144_v47, %v11448_v18  ;;  %v3547_v18 = vadd.f32 %v11604_v6, %v11600_v40  ;;  %v13743_v6 = vld [vmem:[#allocation15_spill] sm:$0xff] }
 0x376   : > { %v3740_v61 = vpop.f32.mrf.mxu1  ;;  %v11716_v48 = vperm.slane %v3917_v10, 1  ;;  %v3559_v47 = vadd.f32 %v11636_v23, %v13748_v8 }
 0x377   : > { %v3243_v28 = vadd.f32 %v3220_v38, %v11271_v45  ;;  %v11701_v50 = vadd.f32 %v3232_v52, %v11461_v41  ;;  %v3462_v41 = vadd.f32 %v11606_v60, %v11602_v17  ;;  %v3556_v17 = vadd.f32 %v13744_v46, %v13743_v6 }
 0x378   : > { %v11754_v63 = vadd.f32 %v3559_v47, %v3247_v53 }
 0x379   : > { %v11749_v23 = vadd.f32 %v3556_v17, %v3245_v16 }
 0x37a   : > { %v11656_v42 = vpop.f32.mrf.mxu2 }
 0x37c   : > { %v3784_v34 = vpop.f32.mrf.mxu3  ;;  %v3828_v37 = vpop.f32.mrf.mxu0 }
 0x37d   : > { %v3785_v11 = vadd.f32 %v3784_v34, %v3740_v61  ;;  %v3246_v61 = vadd.f32 %v3138_v2, %v11348_v9  ;;  %v3544_v9 = vadd.f32 %v11596_v13, %v11591_v30  ;;  %v13740_v30 = vld [vmem:[#allocation13_spill] sm:$0xff]  ;;  %v13741_v13 = vld [vmem:[#allocation12_spill] sm:$0xff] }
 0x37e   : > { %v3743_v3 = vpop.f32.mrf.mxu1  ;;  %v3553_v4 = vadd.f32 %v13740_v30, %v13739_v21  ;;  %v3468_v25 = vadd.f32 %v13742_v14, %v13741_v13  ;;  %v13746_v2 = vld [vmem:[#allocation16_spill] sm:$0xff] }
 0x37f   : > { %v3899_v7 = vadd.f32 %v3785_v11, %v3567_v33  ;;  %v3570_v5 = vadd.f32 %v3544_v9, %v13745_v35  ;;  %v3471_v55 = vadd.f32 %v13747_v0, %v13746_v2  ;;  %v13750_v33 = vld [vmem:[#allocation6_spill] sm:$0xff]  ;;  %v13754_v0 = vld [vmem:[#allocation23_spill] sm:$0xff] }
 0x380   : > { %v11736_v11 = vadd.f32 %v3547_v18, %v13750_v33  ;;  %v11745_v9 = vadd.f32 %v3553_v4, %v3243_v28 }
 0x381   : > { %v3923_v45 = vadd.f32 %v11679_v36, %v3899_v7  ;;  %v11741_v7 = vadd.f32 %v3550_v54, %v3241_v49  ;;  %v11752_v18 = vadd.f32 %v3471_v55, %v3246_v61  ;;  %v13753_v49 = vld [vmem:[#allocation22_spill] sm:$0xff]  ;;  %v11786_v55 = vadd.f32 %v11646_v29, %v13754_v0 }
 0x382   : > { %v3872_v27 = vpop.f32.mrf.mxu2 }
 0x383   : > { %v3873_v38 = vadd.f32 %v3872_v27, %v3828_v37  ;;  %v3966_v10 = vmul.f32 %v11710_v62, %v3923_v45  ;;  %vm3941_vm5 = vcmp.gt.f32.partialorder %v3923_v45, 0.0  ;;  %v13749_v37 = vld [vmem:[#allocation5_spill] sm:$0xff]  ;;  %v11747_v27 = vadd.f32 %v3468_v25, %v3244_v58 }
 0x384   : > { %v3787_v43 = vpop.f32.mrf.mxu3  ;;  %v3831_v40 = vpop.f32.mrf.mxu0  ;;  %v3571_v52 = vadd.f32 %v3459_v26, %v13749_v37 }
 0x385   : > { %v3900_v60 = vadd.f32 %v3873_v38, %v3568_v12  ;;  %v3788_v24 = vadd.f32 %v3787_v43, %v3743_v3  ;;  %v11739_v3 = vadd.f32 %v3462_v41, %v3240_v20  ;;  %v11743_v12 = vadd.f32 %v3465_v19, %v3242_v39  ;;  %v13752_v20 = vld [vmem:[#allocation21_spill] sm:$0xff] }
 0x386   : > { %v3746_v34 = vpop.f32.mrf.mxu1  ;;  %v3984_v38 = vsel %vm3941_vm5, %v3923_v45, %v3966_v10  ;;  %v3562_v39 = vadd.f32 %v11644_v32, %v13753_v49 }
 0x387   : > { %v3924_v44 = vadd.f32 %v11716_v48, %v3900_v60  ;;  %v3901_v22 = vadd.f32 %v3788_v24, %v3569_v59  ;;  %v13751_v59 = vld [vmem:[#allocation20_spill] sm:$0xff]  ;;  %v4057_v54 = vrot.slane %v3984_v38, 1  ;;  %v4092_v45 = vrot.slane %v3984_v38, 2 }
 0x388   : > { %v3474_v41 = vadd.f32 %v13752_v20, %v13751_v59  ;;  %v4127_v53 = vrot.slane %v3984_v38, 3  ;;  %v4162_v30 = vrot.slane %v3984_v38, 4  ;;  %v11782_v2 = vadd.f32 %v3562_v39, %v11695_v1 }
 0x389   : > { %v3925_v26 = vadd.f32 %v11679_v36, %v3901_v22  ;;  %v3967_v28 = vmul.f32 %v11710_v62, %v3924_v44  ;;  %vm3942_vm7 = vcmp.gt.f32.partialorder %v3924_v44, 0.0 }
 0x38a   : > { %v3875_v51 = vpop.f32.mrf.mxu2  ;;  %v11769_v43 = vadd.f32 %v3474_v41, %v11692_v31 }
 0x38b   : > { %vm3943_vm6 = vcmp.gt.f32.partialorder %v3925_v26, 0.0  ;;  %v3968_v58 = vmul.f32 %v11710_v62, %v3925_v26  ;;  %v3876_v16 = vadd.f32 %v3875_v51, %v3831_v40  ;;  %v11772_v40 = vsel %vm3942_vm7, %v3924_v44, %v3967_v28 }
 0x38c   : > { %v3790_v61 = vpop.f32.mrf.mxu3  ;;  %v3834_v56 = vpop.f32.mrf.mxu0  ;;  %v4484_v8 = vrot.slane %v11772_v40, 1  ;;  %v4519_v47 = vrot.slane %v11772_v40, 2  ;;  %v4554_v44 = vrot.slane %v11772_v40, 3 }
 0x38d   : > { %v11762_v57 = vsel %vm3943_vm6, %v3925_v26, %v3968_v58  ;;  %v3902_v19 = vadd.f32 %v3876_v16, %v3570_v5  ;;  %v3791_v21 = vadd.f32 %v3790_v61, %v3746_v34 }
 0x38e   : > { %v4058_v32 = vrot.slane %v11762_v57, 1  ;;  %v4093_v4 = vrot.slane %v11762_v57, 2  ;;  %v4128_v13 = vrot.slane %v11762_v57, 3  ;;  %v4163_v14 = vrot.slane %v11762_v57, 4  ;;  %v3749_v25 = vpop.f32.mrf.mxu1 }
 0x38f   : > { %v3926_v6 = vadd.f32 %v11716_v48, %v3902_v19  ;;  %v3903_v46 = vadd.f32 %v3791_v21, %v3571_v52 }
 0x390   : > { %v4059_v17 = vsel %vm1261_vm2, %v4057_v54, %v4058_v32  ;;  %v4094_v60 = vsel %vm2322_vm3, %v4092_v45, %v4093_v4  ;;  %v4129_v24 = vsel %vm13710_vm4, %v4127_v53, %v4128_v13  ;;  %v4164_v10 = vsel %vm465_vm0, %v4162_v30, %v4163_v14 }
 0x391   : > { %v4083_v35 = vmax.f32 %v3984_v38, %v4059_v17  ;;  %vm3944_vm8 = vcmp.gt.f32.partialorder %v3926_v6, 0.0  ;;  %v3969_v5 = vmul.f32 %v11710_v62, %v3926_v6  ;;  %v3927_v31 = vadd.f32 %v11679_v36, %v3903_v46 }
 0x392   : > { %v3878_v34 = vpop.f32.mrf.mxu2 }
 0x393   : > { %v11790_v37 = vsel %vm3944_vm8, %v3926_v6, %v3969_v5  ;;  %vm3945_vm9 = vcmp.gt.f32.partialorder %v3927_v31, 0.0  ;;  %v3970_v52 = vmul.f32 %v11710_v62, %v3927_v31  ;;  %v3879_v33 = vadd.f32 %v3878_v34, %v3834_v56 }
 0x394   : > { %v4485_v1 = vrot.slane %v11790_v37, 1  ;;  %v4520_v22 = vrot.slane %v11790_v37, 2  ;;  %v4555_v29 = vrot.slane %v11790_v37, 3  ;;  %v3793_v26 = vpop.f32.mrf.mxu3  ;;  %v3837_v38 = vpop.f32.mrf.mxu0  ;;  %v4118_v49 = vmax.f32 %v4083_v35, %v4094_v60  ;;  %v13755_v60 = vld [vmem:[#allocation24_spill] sm:$0xff] }
 0x395   : > { %v11797_v59 = vsel %vm3945_vm9, %v3927_v31, %v3970_v52  ;;  %v3904_v20 = vadd.f32 %v3879_v33, %v11736_v11  ;;  %v3794_v41 = vadd.f32 %v3793_v26, %v3749_v25  ;;  %v4590_v35 = vrot.slane %v11790_v37, 4 }
 0x396   : > { %v4060_v39 = vrot.slane %v11797_v59, 1  ;;  %v4095_v51 = vrot.slane %v11797_v59, 2  ;;  %v4130_v28 = vrot.slane %v11797_v59, 3  ;;  %v4165_v58 = vrot.slane %v11797_v59, 4  ;;  %v3752_v16 = vpop.f32.mrf.mxu1 }
 0x397   : > { %v3928_v54 = vadd.f32 %v11716_v48, %v3904_v20  ;;  %v3905_v45 = vadd.f32 %v3794_v41, %v11739_v3  ;;  %v4153_v61 = vmax.f32 %v4118_v49, %v4129_v24  ;;  %v4486_v11 = vsel %vm1261_vm2, %v4484_v8, %v4485_v1 }
 0x398   : > { %v4061_v56 = vsel %vm1261_vm2, %v4058_v32, %v4060_v39  ;;  %v4096_v53 = vsel %vm2322_vm3, %v4093_v4, %v4095_v51  ;;  %v4131_v19 = vsel %vm13710_vm4, %v4128_v13, %v4130_v28  ;;  %v4166_v21 = vsel %vm465_vm0, %v4163_v14, %v4165_v58 }
 0x399   : > { %v4084_v30 = vmax.f32 %v11762_v57, %v4061_v56  ;;  %vm3946_vm10 = vcmp.gt.f32.partialorder %v3928_v54, 0.0  ;;  %v3971_v25 = vmul.f32 %v11710_v62, %v3928_v54  ;;  %v3929_v3 = vadd.f32 %v11679_v36, %v3905_v45 }
 0x39a   : > { %v11816_v6 = vmax.f32 %v4153_v61, %v4164_v10  ;;  %v3881_v46 = vpop.f32.mrf.mxu2  ;;  %v4510_v17 = vmax.f32 %v11772_v40, %v4486_v11  ;;  %v4521_v32 = vsel %vm2322_vm3, %v4519_v47, %v4520_v22  ;;  %v11825_v4 = vsel %vm13710_vm4, %v4554_v44, %v4555_v29 }
 0x39b   : > { %v11827_v57 = vsel %vm3946_vm10, %v3928_v54, %v3971_v25  ;;  %vm3947_vm11 = vcmp.gt.f32.partialorder %v3929_v3, 0.0  ;;  %v3972_v13 = vmul.f32 %v11710_v62, %v3929_v3  ;;  %v3882_v14 = vadd.f32 %v3881_v46, %v3837_v38 }
 0x39c   : > { %v3565_v24 = vadd.f32 %v11656_v42, %v13755_v60  ;;  %v4589_v10 = vrot.slane %v11772_v40, 4  ;;  %v4487_v5 = vrot.slane %v11827_v57, 1  ;;  %4314 = vrot.lane.b32.xlu2 %v11816_v6, %s8182_s30  ;;  %4242 = vrot.lane.b32.xlu1 %v11816_v6, %s8183_s6  ;;  %v3796_v31 = vpop.f32.mrf.mxu3  ;;  %v3840_v0 = vpop.f32.mrf.mxu0  ;;  %v4119_v47 = vmax.f32 %v4084_v30, %v4096_v53 }
 0x39d   : > { %v11839_v8 = vsel %vm3947_vm11, %v3929_v3, %v3972_v13  ;;  %4206 = vrot.lane.b32.xlu0 %v11816_v6, %s8184_s8  ;;  %v3906_v42 = vadd.f32 %v3882_v14, %v11741_v7  ;;  %v3797_v40 = vadd.f32 %v3796_v31, %v3752_v16  ;;  %v4545_v49 = vmax.f32 %v4510_v17, %v4521_v32 }
 0x39e   : > { %v4062_v34 = vrot.slane %v11839_v8, 1  ;;  %v4097_v52 = vrot.slane %v11839_v8, 2  ;;  %v4132_v33 = vrot.slane %v11839_v8, 3  ;;  %v4167_v44 = vrot.slane %v11839_v8, 4  ;;  %v3755_v26 = vpop.f32.mrf.mxu1 }
 0x39f   : > { %v3930_v38 = vadd.f32 %v11716_v48, %v3906_v42  ;;  %v3907_v20 = vadd.f32 %v3797_v40, %v11743_v12  ;;  %v4154_v41 = vmax.f32 %v4119_v47, %v4131_v19  ;;  %v4580_v19 = vmax.f32 %v4545_v49, %v11825_v4 }
 0x3a0   : > { %v4063_v54 = vsel %vm1261_vm2, %v4060_v39, %v4062_v34  ;;  %v4098_v7 = vsel %vm2322_vm3, %v4095_v51, %v4097_v52  ;;  %v4133_v16 = vsel %vm13710_vm4, %v4130_v28, %v4132_v33  ;;  %v4168_v45 = vsel %vm465_vm0, %v4165_v58, %v4167_v44 }
 0x3a1   : > { %v4085_v61 = vmax.f32 %v11797_v59, %v4063_v54  ;;  %vm3948_vm12 = vcmp.gt.f32.partialorder %v3930_v38, 0.0  ;;  %v3973_v11 = vmul.f32 %v11710_v62, %v3930_v38  ;;  %v3931_v56 = vadd.f32 %v11679_v36, %v3907_v20 }
 0x3a2   : > { %v11857_v53 = vmax.f32 %v4154_v41, %v4166_v21  ;;  %v3884_v12 = vpop.f32.mrf.mxu2  ;;  %v4591_v39 = vsel %vm465_vm0, %v4589_v10, %v4590_v35  ;;  %v11868_v59 = vsel %vm1261_vm2, %v4485_v1, %v4487_v5  ;;  %v11872_v51 = vadd.f32 %v11786_v55, %v11698_v15 }
 0x3a3   : > { %vm3949_vm13 = vcmp.gt.f32.partialorder %v3931_v56, 0.0  ;;  %v3974_v28 = vmul.f32 %v11710_v62, %v3931_v56  ;;  %v3885_v58 = vadd.f32 %v3884_v12, %v3840_v0  ;;  %v11876_v21 = vadd.f32 %v3565_v24, %v11701_v50 }
 0x3a4   : > { %v4522_v30 = vrot.slane %v11827_v57, 2  ;;  %v4557_v25 = vrot.slane %v11827_v57, 3  ;;  %v11880_v3 = vsel %vm3948_vm12, %v3930_v38, %v3973_v11  ;;  %4208 = vrot.lane.b32.xlu2 %v11857_v53, %s8184_s8  ;;  %4278 = vrot.lane.b32.xlu1 %v11816_v6, %s8185_s9  ;;  %v3799_v15 = vpop.f32.mrf.mxu3  ;;  %v3843_v55 = vpop.f32.mrf.mxu0  ;;  %v4120_v17 = vmax.f32 %v4085_v61, %v4098_v7 }
 0x3a5   : > { %v11886_v1 = vsel %vm3949_vm13, %v3931_v56, %v3974_v28  ;;  %4244 = vrot.lane.b32.xlu0 %v11857_v53, %s8183_s6  ;;  %v3908_v50 = vadd.f32 %v3885_v58, %v11745_v9  ;;  %v3800_v46 = vadd.f32 %v3799_v15, %v3755_v26  ;;  %v11897_v0 = vmax.f32 %v4580_v19, %v4591_v39 }
 0x3a6   : > { %v4064_v32 = vrot.slane %v11886_v1, 1  ;;  %v4099_v4 = vrot.slane %v11886_v1, 2  ;;  %v4134_v13 = vrot.slane %v11886_v1, 3  ;;  %v4169_v14 = vrot.slane %v11886_v1, 4  ;;  %v3758_v60 = vpop.f32.mrf.mxu1 }
 0x3a7   : > { %v3932_v24 = vadd.f32 %v11716_v48, %v3908_v50  ;;  %v3909_v10 = vadd.f32 %v3800_v46, %v11747_v27  ;;  %v4155_v31 = vmax.f32 %v4120_v17, %v4133_v16  ;;  %v4511_v49 = vmax.f32 %v11790_v37, %v11868_v59 }
 0x3a8   : > { %v4065_v9 = vsel %vm1261_vm2, %v4062_v34, %v4064_v32  ;;  %v4100_v42 = vsel %vm2322_vm3, %v4097_v52, %v4099_v4  ;;  %v4135_v40 = vsel %vm13710_vm4, %v4132_v33, %v4134_v13  ;;  %v4170_v47 = vsel %vm465_vm0, %v4167_v44, %v4169_v14 }
 0x3a9   : > { %v4086_v26 = vmax.f32 %v11839_v8, %v4065_v9  ;;  %vm3950_vm14 = vcmp.gt.f32.partialorder %v3932_v24, 0.0  ;;  %v3975_v38 = vmul.f32 %v11710_v62, %v3932_v24  ;;  %v3933_v20 = vadd.f32 %v11679_v36, %v3909_v10 }
 0x3aa   : > { %v11906_v41 = vmax.f32 %v4155_v31, %v4168_v45  ;;  %v3887_v27 = vpop.f32.mrf.mxu2  ;;  %v4523_v34 = vsel %vm2322_vm3, %v4520_v22, %v4522_v30  ;;  %v11920_v8 = vsel %vm13710_vm4, %v4555_v29, %v4557_v25  ;;  %v4592_v52 = vrot.slane %v11827_v57, 4 }
 0x3ab   : > { %vm3951_vm15 = vcmp.gt.f32.partialorder %v3933_v20, 0.0  ;;  %v3976_v33 = vmul.f32 %v11710_v62, %v3933_v20  ;;  %v3888_v44 = vadd.f32 %v3887_v27, %v3843_v55  ;;  %v4489_v54 = vrot.slane %v11880_v3, 1 }
 0x3ac   : > { %v4524_v7 = vrot.slane %v11880_v3, 2  ;;  %v4559_v16 = vrot.slane %v11880_v3, 3  ;;  %v11927_v22 = vsel %vm3950_vm14, %v3932_v24, %v3975_v38  ;;  %4316 = vrot.lane.b32.xlu2 %v11857_v53, %s8182_s30  ;;  %4280 = vrot.lane.b32.xlu1 %v11857_v53, %s8185_s9  ;;  %v3802_v29 = vpop.f32.mrf.mxu3  ;;  %v3846_v45 = vpop.f32.mrf.mxu0  ;;  %v4121_v12 = vmax.f32 %v4086_v26, %v4100_v42 }
 0x3ad   : > { %v11933_v61 = vsel %vm3951_vm15, %v3933_v20, %v3976_v33  ;;  %4210 = vrot.lane.b32.xlu0 %v11906_v41, %s8184_s8  ;;  %v3910_v11 = vadd.f32 %v3888_v44, %v11749_v23  ;;  %v3803_v56 = vadd.f32 %v3802_v29, %v3758_v60  ;;  %v4546_v50 = vmax.f32 %v4511_v49, %v4523_v34 }
 0x3ae   : > { %v4066_v19 = vrot.slane %v11933_v61, 1  ;;  %v4101_v39 = vrot.slane %v11933_v61, 2  ;;  %v4136_v59 = vrot.slane %v11933_v61, 3  ;;  %v4171_v28 = vrot.slane %v11933_v61, 4  ;;  %v3761_v17 = vpop.f32.mrf.mxu1 }
 0x3af   : > { %v3934_v58 = vadd.f32 %v11716_v48, %v3910_v11  ;;  %v3911_v15 = vadd.f32 %v3803_v56, %v11752_v18  ;;  %v4156_v55 = vmax.f32 %v4121_v12, %v4135_v40  ;;  %v4581_v40 = vmax.f32 %v4546_v50, %v11920_v8 }
 0x3b0   : > { %v4067_v46 = vsel %vm1261_vm2, %v4064_v32, %v4066_v19  ;;  %v4102_v23 = vsel %vm2322_vm3, %v4099_v4, %v4101_v39  ;;  %v4137_v60 = vsel %vm13710_vm4, %v4134_v13, %v4136_v59  ;;  %v4172_v24 = vsel %vm465_vm0, %v4169_v14, %v4171_v28 }
 0x3b1   : > { %v4087_v10 = vmax.f32 %v11886_v1, %v4067_v46  ;;  %vm3952_vm1 = vcmp.gt.f32.partialorder %v3934_v58, 0.0  ;;  %v3977_v31 = vmul.f32 %v11710_v62, %v3934_v58  ;;  %v3935_v9 = vadd.f32 %v11679_v36, %v3911_v15 }
 0x3b2   : > { %v3890_v42 = vpop.f32.mrf.mxu2  ;;  %v11951_v18 = vmax.f32 %v4156_v55, %v4170_v47  ;;  %v4593_v32 = vsel %vm465_vm0, %v4590_v35, %v4592_v52  ;;  %v11964_v1 = vsel %vm1261_vm2, %v4487_v5, %v4489_v54  ;;  %v4594_v4 = vrot.slane %v11880_v3, 4 }
 0x3b3   : > { %vm3953_vm5 = vcmp.gt.f32.partialorder %v3935_v9, 0.0  ;;  %v3978_v13 = vmul.f32 %v11710_v62, %v3935_v9  ;;  %v3891_v14 = vadd.f32 %v3890_v42, %v3846_v45  ;;  %v4491_v47 = vrot.slane %v11927_v22, 1 }
 0x3b4   : > { %v4526_v26 = vrot.slane %v11927_v22, 2  ;;  %v4561_v37 = vrot.slane %v11927_v22, 3  ;;  %v11971_v35 = vsel %vm3952_vm1, %v3934_v58, %v3977_v31  ;;  %4282 = vrot.lane.b32.xlu2 %v11906_v41, %s8185_s9  ;;  %4246 = vrot.lane.b32.xlu1 %v11906_v41, %s8183_s6  ;;  %v3805_v5 = vpop.f32.mrf.mxu3  ;;  %v4122_v49 = vmax.f32 %v4087_v10, %v4102_v23  ;;  %v3849_v29 = vpop.f32.mrf.mxu0 }
 0x3b5   : > { %v11977_v38 = vsel %vm3953_vm5, %v3935_v9, %v3978_v13  ;;  %4318 = vrot.lane.b32.xlu0 %v11906_v41, %s8182_s30  ;;  %v3912_v20 = vadd.f32 %v3891_v14, %v11754_v63  ;;  %v3806_v27 = vadd.f32 %v3805_v5, %v3761_v17  ;;  %v11988_v12 = vmax.f32 %v4581_v40, %v4593_v32 }
 0x3b6   : > { %v4068_v34 = vrot.slane %v11977_v38, 1  ;;  %v4103_v8 = vrot.slane %v11977_v38, 2  ;;  %v4138_v33 = vrot.slane %v11977_v38, 3  ;;  %v4173_v44 = vrot.slane %v11977_v38, 4 }
 0x3b7   : > { %v3936_v45 = vadd.f32 %v11716_v48, %v3912_v20  ;;  %v3913_v11 = vadd.f32 %v3806_v27, %v11769_v43  ;;  %v4157_v56 = vmax.f32 %v4122_v49, %v4137_v60  ;;  %v3764_v43 = vpop.f32.mrf.mxu1  ;;  %v4493_v10 = vrot.slane %v11971_v35, 1 }
 0x3b8   : > { %v4069_v63 = vsel %vm1261_vm2, %v4066_v19, %v4068_v34  ;;  %v4104_v58 = vsel %vm2322_vm3, %v4101_v39, %v4103_v8  ;;  %v4139_v15 = vsel %vm13710_vm4, %v4136_v59, %v4138_v33  ;;  %v4174_v55 = vsel %vm465_vm0, %v4171_v28, %v4173_v44 }
 0x3b9   : > { %v4088_v50 = vmax.f32 %v11933_v61, %v4069_v63  ;;  %vm3954_vm6 = vcmp.gt.f32.partialorder %v3936_v45, 0.0  ;;  %v3979_v46 = vmul.f32 %v11710_v62, %v3936_v45  ;;  %v3937_v23 = vadd.f32 %v11679_v36, %v3913_v11 }
 0x3ba   : > { %v3893_v17 = vpop.f32.mrf.mxu2  ;;  %v11997_v60 = vmax.f32 %v4157_v56, %v4172_v24  ;;  %v4512_v19 = vmax.f32 %v11827_v57, %v11964_v1  ;;  %v4525_v39 = vsel %vm2322_vm3, %v4522_v30, %v4524_v7  ;;  %v4560_v61 = vsel %vm13710_vm4, %v4557_v25, %v4559_v16 }
 0x3bb   : > { %v4596_v59 = vrot.slane %v11927_v22, 4  ;;  %vm3955_vm7 = vcmp.gt.f32.partialorder %v3937_v23, 0.0  ;;  %v3980_v28 = vmul.f32 %v11710_v62, %v3937_v23  ;;  %v3894_v24 = vadd.f32 %v3893_v17, %v3849_v29 }
 0x3bc   : > { %v4528_v31 = vrot.slane %v11971_v35, 2  ;;  %v4563_v9 = vrot.slane %v11971_v35, 3  ;;  %v12017_v30 = vsel %vm3954_vm6, %v3936_v45, %v3979_v46  ;;  %4248 = vrot.lane.b32.xlu2 %v11951_v18, %s8183_s6  ;;  %4212 = vrot.lane.b32.xlu1 %v11951_v18, %s8184_s8  ;;  %v3808_v25 = vpop.f32.mrf.mxu3  ;;  %v4123_v1 = vmax.f32 %v4088_v50, %v4104_v58  ;;  %v3852_v56 = vpop.f32.mrf.mxu0 }
 0x3bd   : > { %v12023_v42 = vsel %vm3955_vm7, %v3937_v23, %v3980_v28  ;;  %4284 = vrot.lane.b32.xlu0 %v11951_v18, %s8185_s9  ;;  %v3914_v40 = vadd.f32 %v3894_v24, %v11782_v2  ;;  %v3809_v32 = vadd.f32 %v3808_v25, %v3764_v43  ;;  %v4547_v45 = vmax.f32 %v4512_v19, %v4525_v39 }
 0x3be   : > { %v4070_v13 = vrot.slane %v12023_v42, 1  ;;  %v4105_v14 = vrot.slane %v12023_v42, 2  ;;  %v4140_v5 = vrot.slane %v12023_v42, 3  ;;  %v4175_v20 = vrot.slane %v12023_v42, 4 }
 0x3bf   : > { %v3938_v27 = vadd.f32 %v11716_v48, %v3914_v40  ;;  %v3915_v49 = vadd.f32 %v3809_v32, %v11872_v51  ;;  %v4158_v29 = vmax.f32 %v4123_v1, %v4139_v15  ;;  %v4582_v15 = vmax.f32 %v4547_v45, %v4560_v61 }
 0x3c0   : > { %v4071_v11 = vsel %vm1261_vm2, %v4068_v34, %v4070_v13  ;;  %v4106_v2 = vsel %vm2322_vm3, %v4103_v8, %v4105_v14  ;;  %v4141_v63 = vsel %vm13710_vm4, %v4138_v33, %v4140_v5  ;;  %v4176_v58 = vsel %vm465_vm0, %v4173_v44, %v4175_v20 }
 0x3c1   : > { %v4089_v50 = vmax.f32 %v11977_v38, %v4071_v11  ;;  %vm3956_vm8 = vcmp.gt.f32.partialorder %v3938_v27, 0.0  ;;  %v3981_v46 = vmul.f32 %v11710_v62, %v3938_v27  ;;  %v3939_v23 = vadd.f32 %v11679_v36, %v3915_v49 }
 0x3c2   : > { %v3896_v17 = vpop.f32.mrf.mxu2  ;;  %v12041_v51 = vmax.f32 %v4158_v29, %v4174_v55  ;;  %v4595_v34 = vsel %vm465_vm0, %v4592_v52, %v4594_v4  ;;  %v4492_v38 = vsel %vm1261_vm2, %v4489_v54, %v4491_v47  ;;  %v4598_v8 = vrot.slane %v11971_v35, 4 }
 0x3c3   : > { %vm3957_vm9 = vcmp.gt.f32.partialorder %v3939_v23, 0.0  ;;  %v3982_v36 = vmul.f32 %v11710_v62, %v3939_v23  ;;  %v3897_v33 = vadd.f32 %v3896_v17, %v3852_v56  ;;  %v4495_v44 = vrot.slane %v12017_v30, 1 }
 0x3c4   : > { %v4530_v55 = vrot.slane %v12017_v30, 2  ;;  %v4565_v57 = vrot.slane %v12017_v30, 3  ;;  %v12058_v43 = vsel %vm3956_vm8, %v3938_v27, %v3981_v46  ;;  %4214 = vrot.lane.b32.xlu2 %v11997_v60, %s8184_s8  ;;  %4320 = vrot.lane.b32.xlu1 %v11951_v18, %s8182_s30  ;;  %v4124_v19 = vmax.f32 %v4089_v50, %v4106_v2 }
 0x3c5   : > { %v12064_v52 = vsel %vm3957_vm9, %v3939_v23, %v3982_v36  ;;  %4250 = vrot.lane.b32.xlu0 %v11997_v60, %s8183_s6  ;;  %v3916_v54 = vadd.f32 %v3897_v33, %v11876_v21  ;;  %v12069_v39 = vmax.f32 %v4582_v15, %v4595_v34  ;;  %v4513_v1 = vmax.f32 %v11880_v3, %v4492_v38 }
 0x3c6   : > { %v4072_v61 = vrot.slane %v12064_v52, 1  ;;  %v4107_v28 = vrot.slane %v12064_v52, 2  ;;  %v4142_v24 = vrot.slane %v12064_v52, 3  ;;  %v4177_v25 = vrot.slane %v12064_v52, 4 }
 0x3c7   : > { %v3940_v40 = vadd.f32 %v11716_v48, %v3916_v54  ;;  %v4159_v32 = vmax.f32 %v4124_v19, %v4141_v63  ;;  %v4527_v21 = vsel %vm2322_vm3, %v4524_v7, %v4526_v26  ;;  %v4600_v27 = vrot.slane %v12017_v30, 4 }
 0x3c8   : > { %v4073_v49 = vsel %vm1261_vm2, %v4070_v13, %v4072_v61  ;;  %v4108_v29 = vsel %vm2322_vm3, %v4105_v14, %v4107_v28  ;;  %v4143_v48 = vsel %vm13710_vm4, %v4140_v5, %v4142_v24  ;;  %v4497_v2 = vrot.slane %v12058_v43, 1 }
 0x3c9   : > { %v4090_v45 = vmax.f32 %v12023_v42, %v4073_v49  ;;  %vm3958_vm10 = vcmp.gt.f32.partialorder %v3940_v40, 0.0  ;;  %v3983_v11 = vmul.f32 %v11710_v62, %v3940_v40  ;;  %v12094_v7 = vmax.f32 %v4159_v32, %v4176_v58 }
 0x3ca   : > { %v4178_v13 = vsel %vm465_vm0, %v4175_v20, %v4177_v25  ;;  %v4548_v56 = vmax.f32 %v4513_v1, %v4527_v21  ;;  %v4562_v14 = vsel %vm13710_vm4, %v4559_v16, %v4561_v37  ;;  %v4597_v62 = vsel %vm465_vm0, %v4594_v4, %v4596_v59 }
 0x3cb   : > { %v12105_v5 = vsel %vm3958_vm10, %v3940_v40, %v3983_v11  ;;  %v4125_v42 = vmax.f32 %v4090_v45, %v4108_v29  ;;  %v4494_v20 = vsel %vm1261_vm2, %v4491_v47, %v4493_v10  ;;  %v4532_v63 = vrot.slane %v12058_v43, 2 }
 0x3cc   : > { %v4567_v58 = vrot.slane %v12058_v43, 3  ;;  %v4602_v16 = vrot.slane %v12058_v43, 4  ;;  %4322 = vrot.lane.b32.xlu2 %v11997_v60, %s8182_s30  ;;  %4286 = vrot.lane.b32.xlu1 %v11997_v60, %s8185_s9  ;;  %v4583_v3 = vmax.f32 %v4548_v56, %v4562_v14  ;;  %v4514_v50 = vmax.f32 %v11927_v22, %v4494_v20 }
 0x3cd   : > { %4216 = vrot.lane.b32.xlu0 %v12041_v51, %s8184_s8  ;;  %v4160_v4 = vmax.f32 %v4125_v42, %v4143_v48  ;;  %v4529_v47 = vsel %vm2322_vm3, %v4526_v26, %v4528_v31  ;;  %v4564_v46 = vsel %vm13710_vm4, %v4561_v37, %v4563_v9  ;;  %v4499_v23 = vrot.slane %v12105_v5, 1 }
 0x3ce   : > { %v4534_v17 = vrot.slane %v12105_v5, 2  ;;  %v12139_v15 = vmax.f32 %v4583_v3, %v4597_v62  ;;  %v4599_v34 = vsel %vm465_vm0, %v4596_v59, %v4598_v8  ;;  %v4549_v36 = vmax.f32 %v4514_v50, %v4529_v47 }
 0x3cf   : > { %v12144_v38 = vmax.f32 %v4160_v4, %v4178_v13  ;;  %v4496_v26 = vsel %vm1261_vm2, %v4493_v10, %v4495_v44  ;;  %v4531_v37 = vsel %vm2322_vm3, %v4528_v31, %v4530_v55  ;;  %v4566_v54 = vsel %vm13710_vm4, %v4563_v9, %v4565_v57 }
 0x3d0   : > { %v4515_v33 = vmax.f32 %v11971_v35, %v4496_v26  ;;  %v4601_v22 = vsel %vm465_vm0, %v4598_v8, %v4600_v27  ;;  %v4498_v59 = vsel %vm1261_vm2, %v4495_v44, %v4497_v2  ;;  %v4584_v19 = vmax.f32 %v4549_v36, %v4564_v46 }
 0x3d1   : > { %v4516_v40 = vmax.f32 %v12017_v30, %v4498_v59  ;;  %v4533_v32 = vsel %vm2322_vm3, %v4530_v55, %v4532_v63  ;;  %v4568_v10 = vsel %vm13710_vm4, %v4565_v57, %v4567_v58  ;;  %v4603_v31 = vsel %vm465_vm0, %v4600_v27, %v4602_v16 }
 0x3d2   : > { %v4550_v1 = vmax.f32 %v4515_v33, %v4531_v37  ;;  %v4569_v21 = vrot.slane %v12105_v5, 3  ;;  %v12163_v49 = vmax.f32 %v4584_v19, %v4599_v34  ;;  %v4604_v9 = vrot.slane %v12105_v5, 4 }
 0x3d3   : > { %v4551_v35 = vmax.f32 %v4516_v40, %v4533_v32  ;;  %v4500_v8 = vsel %vm1261_vm2, %v4497_v2, %v4499_v23  ;;  %v4535_v57 = vsel %vm2322_vm3, %v4532_v63, %v4534_v17  ;;  %v4091_v13 = vmax.f32 %v12064_v52, %v4072_v61 }
 0x3d4   : > { %4288 = vrot.lane.b32.xlu2 %v12041_v51, %s8185_s9  ;;  %4252 = vrot.lane.b32.xlu1 %v12041_v51, %s8183_s6  ;;  %v4585_v30 = vmax.f32 %v4550_v1, %v4566_v54  ;;  %v4517_v44 = vmax.f32 %v12058_v43, %v4500_v8  ;;  %v4570_v27 = vsel %vm13710_vm4, %v4567_v58, %v4569_v21  ;;  %v4002_v14 = vlaneseq }
 0x3d5   : > { %4324 = vrot.lane.b32.xlu0 %v12041_v51, %s8182_s30  ;;  %v4586_v55 = vmax.f32 %v4551_v35, %v4568_v10  ;;  %v4605_v29 = vsel %vm465_vm0, %v4602_v16, %v4604_v9  ;;  %v4126_v56 = vmax.f32 %v4091_v13, %v4107_v28  ;;  %v13767_v34 = vmov 0 }
 0x3d6   : > { %v12185_v48 = vmax.f32 %v4585_v30, %v4601_v22  ;;  %v4552_v45 = vmax.f32 %v4517_v44, %v4535_v57  ;;  %v12210_v62 = vshrl.u32 %v4002_v14, 7  ;;  %v12212_v20 = vand.u32 127, %v4002_v14 }
 0x3d7   : > { %v12187_v43 = vmax.f32 %v4586_v55, %v4603_v31  ;;  %v4161_v42 = vmax.f32 %v4126_v56, %v4142_v24  ;;  %v13684_v24 = vmov 0.0   ;;  %v13771_v26 = vmov 0 }
 0x3d8   : > { %v4587_v11 = vmax.f32 %v4552_v45, %v4570_v27  ;;  %13756 = vst [vmem:[#allocation7_spill] sm:$0xff] %v12210_v62  ;;  %v4028_v61 = vadd.s32 64, %v12210_v62  ;;  %v12216_v28 = vmul.u32 2, %v12212_v20  ;;  %v12219_v63 = vadd.s32 56, %v12210_v62 }
 0x3d9   : > { %13757 = vst [vmem:[#allocation9_spill] sm:$0xff] %v12212_v20  ;;  %v12223_v58 = vmax.f32 %v4161_v42, %v4177_v25  ;;  %v12238_v52 = vadd.s32 48, %v12210_v62  ;;  %v13682_v25 = vmov 1.0   ;;  %v12251_v3 = vadd.s32 40, %v12210_v62 }
 0x3da   : > { %v12189_v2 = vmax.f32 %v4587_v11, %v4605_v29  ;;  %13758 = vst [vmem:[#allocation8_spill] sm:$0xff] %v12216_v28  ;;  %vm4038_vm11 = vcmp.eq.s32.totalorder %v4028_v61, %v12216_v28  ;;  %vm4037_vm12 = vcmp.eq.s32.totalorder %v12219_v63, %v12216_v28  ;;  %v12254_v4 = vadd.s32 32, %v12210_v62 }
 0x3db   : > { %13759 = vst [vmem:[#allocation10_spill] sm:$0xff] %v12219_v63  ;;  %v12233_v16 = vsel %vm4038_vm11, 1.0, %v13684_v24  ;;  %vm4036_vm13 = vcmp.eq.s32.totalorder %v12238_v52, %v12216_v28  ;;  %vm4035_vm14 = vcmp.eq.s32.totalorder %v12251_v3, %v12216_v28  ;;  %v12267_v50 = vadd.s32 24, %v12210_v62 }
 0x3dc   : > { %4254 = vrot.lane.b32.xlu2 %v12094_v7, %s8183_s6  ;;  %4218 = vrot.lane.b32.xlu1 %v12094_v7, %s8184_s8  ;;  %13760 = vst [vmem:[#allocation11_spill] sm:$0xff] %v12223_v58  ;;  %vm4034_vm15 = vcmp.eq.s32.totalorder %v12254_v4, %v12216_v28  ;;  %v12286_v47 = vadd.s32 16, %v12210_v62  ;;  %v12315_v36 = vadd.s32 8, %v12210_v62  ;;  %vm12336_vm7 = vcmp.eq.s32.totalorder %v12210_v62, %v12216_v28 }
 0x3dd   : > { %4290 = vrot.lane.b32.xlu0 %v12094_v7, %s8185_s9  ;;  %13761 = vst [vmem:[#allocation13_spill] sm:$0xff] %v12233_v16  ;;  %7742 = vmatpush.msk.msrb.mxu1 %vm465_vm0, %v12233_v16  ;;  %vm4033_vm1 = vcmp.eq.s32.totalorder %v12267_v50, %v12216_v28  ;;  %v13774_v37 = vmov 0  ;;  %vm4350_vm8 = vcmask 556032   ;;  %vm4715_vm9 = vcmask 1031168  }
 0x3de   : > { %13762 = vst [vmem:[#allocation12_spill] sm:$0xff] %v12238_v52  ;;  %7766 = vmatpush.msk.msrb.mxu0 %vm465_vm0, %v12233_v16  ;;  %vm12302_vm5 = vcmp.eq.s32.totalorder %v12286_v47, %v12216_v28  ;;  %vm12326_vm6 = vcmp.eq.s32.totalorder %v12315_v36, %v12216_v28  ;;  %v13775_v37 = vsel %vm12336_vm7, 4294967295, %v13774_v37  ;;  %vm4651_vm10 = vcmask 1039360  }
 0x3df   : > { %7743 = vmatpush.msk.msrb.mxu1 %vm4037_vm12, %v13682_v25  ;;  %13763 = vst [vmem:[#allocation14_spill] sm:$0xff] %v12251_v3  ;;  %v13768_v34 = vsel %vm12302_vm5, 4294967295, %v13767_v34  ;;  %v13772_v26 = vsel %vm12326_vm6, 4294967295, %v13771_v26  ;;  %vm4779_vm11 = vcmask 1022976   ;;  %vm4843_vm4 = vcmask 1014784  }
 0x3e0   : > { %13764 = vst [vmem:[#allocation15_spill] sm:$0xff] %v12254_v4  ;;  %7767 = vmatpush.msk.msrb.mxu0 %vm4037_vm12, %v13682_v25 }
 0x3e1   : > { %7744 = vmatpush.msk.msrb.mxu1 %vm4036_vm13, %v13682_v25  ;;  %13765 = vst [vmem:[#allocation17_spill] sm:$0xff] %v12267_v50 }
 0x3e2   : > { %7768 = vmatpush.msk.msrb.mxu0 %vm4036_vm13, %v13682_v25  ;;  %13766 = vst [vmem:[#allocation4_spill] sm:$0xff] %v12286_v47 }
 0x3e3   : > { %7745 = vmatpush.msk.msrb.mxu1 %vm4035_vm14, %v13682_v25  ;;  %13769 = vst [vmem:[#allocation16_spill] sm:$0xff] %v13768_v34 }
 0x3e4   : > { %4220 = vrot.lane.b32.xlu2 %v12144_v38, %s8184_s8  ;;  %4326 = vrot.lane.b32.xlu1 %v12094_v7, %s8182_s30  ;;  %13770 = vst [vmem:[#allocation18_spill] sm:$0xff] %v12315_v36 }
 0x3e5   : > { %4256 = vrot.lane.b32.xlu0 %v12144_v38, %s8183_s6  ;;  %7769 = vmatpush.msk.msrb.mxu0 %vm4035_vm14, %v13682_v25  ;;  %13773 = vst [vmem:[#allocation19_spill] sm:$0xff] %v13772_v26 }
 0x3e6   : > { %7746 = vmatpush.msk.msrb.mxu1 %vm4034_vm15, %v13682_v25  ;;  %13776 = vst [vmem:[#allocation5_spill] sm:$0xff] %v13775_v37 }
 0x3e7   : > { %7770 = vmatpush.msk.msrb.mxu0 %vm4034_vm15, %v13682_v25 }
 0x3e8   : > { %7747 = vmatpush.msk.msrb.mxu1 %vm4033_vm1, %v13682_v25 }
 0x3e9   : > { %7771 = vmatpush.msk.msrb.mxu0 %vm4033_vm1, %v13682_v25 }
 0x3ea   : > { %7748 = vmatpush.msk.msrb.mxu1 %vm12302_vm5, %v13682_v25 }
 0x3eb   : > { %7772 = vmatpush.msk.msrb.mxu0 %vm12302_vm5, %v13682_v25 }
 0x3ec   : > { %4328 = vrot.lane.b32.xlu2 %v12144_v38, %s8182_s30  ;;  %4292 = vrot.lane.b32.xlu1 %v12144_v38, %s8185_s9 }
 0x3ed   : > { %4222 = vrot.lane.b32.xlu0 %v12223_v58, %s8184_s8  ;;  %7749 = vmatpush.msk.msrb.mxu1 %vm12326_vm6, %v13682_v25 }
 0x3ee   : > { %7773 = vmatpush.msk.msrb.mxu0 %vm12326_vm6, %v13682_v25 }
 0x3ef   : > { %7750 = vmatpush.msk.msrb.mxu1 %vm12336_vm7, %v13682_v25 }
 0x3f0   : > { %7774 = vmatpush.msk.msrb.mxu0 %vm12336_vm7, %v13682_v25 }
 0x3f4   : > { %4294 = vrot.lane.b32.xlu2 %v12223_v58, %s8185_s9  ;;  %4258 = vrot.lane.b32.xlu1 %v12223_v58, %s8183_s6 }
 0x3f5   : > { %4330 = vrot.lane.b32.xlu0 %v12223_v58, %s8182_s30 }
 0x3f6   : > { %v12288_v46 = vpop.permute.xlu2 %4314 }
 0x3fc   : > { %4697 = vrot.lane.b32.xlu2 %v11897_v0, %s8183_s6  ;;  %4633 = vrot.lane.b32.xlu1 %v11897_v0, %s8184_s8 }
 0x3fd   : > { %4761 = vrot.lane.b32.xlu0 %v11897_v0, %s8185_s9 }
 0x3fe   : > { %v12345_v33 = vpop.permute.xlu2 %4208 }
 0x3ff   : > { %v4234_v30 = vmax.f32 %v11857_v53, %v12345_v33 }
 0x404   : > { %4635 = vrot.lane.b32.xlu2 %v11988_v12, %s8184_s8  ;;  %4825 = vrot.lane.b32.xlu1 %v11897_v0, %s8182_s30 }
 0x405   : > { %4699 = vrot.lane.b32.xlu0 %v11988_v12, %s8183_s6 }
 0x406   : > { %v12365_v54 = vpop.permute.xlu2 %4316 }
 0x40c   : > { %4827 = vrot.lane.b32.xlu2 %v11988_v12, %s8182_s30  ;;  %4763 = vrot.lane.b32.xlu1 %v11988_v12, %s8185_s9 }
 0x40d   : > { %4637 = vrot.lane.b32.xlu0 %v12069_v39, %s8184_s8 }
 0x40e   : > { %v12373_v22 = vpop.permute.xlu2 %4282  ;;  %v12375_v59 = vpop.permute.xlu1 %4242 }
 0x40f   : > { %v12377_v19 = vpop.permute.xlu0 %4206 }
 0x410   : > { %v4233_v40 = vmax.f32 %v11816_v6, %v12377_v19 }
 0x412   : > { %v4269_v32 = vmax.f32 %v4233_v40, %v12375_v59 }
 0x414   : > { %4765 = vrot.lane.b32.xlu2 %v12069_v39, %s8185_s9  ;;  %4701 = vrot.lane.b32.xlu1 %v12069_v39, %s8183_s6 }
 0x415   : > { %4829 = vrot.lane.b32.xlu0 %v12069_v39, %s8182_s30 }
 0x416   : > { %v12388_v10 = vpop.permute.xlu2 %4248  ;;  %v12390_v1 = vpop.permute.xlu1 %4278 }
 0x417   : > { %v4305_v31 = vmax.f32 %v4269_v32, %v12390_v1  ;;  %v12393_v35 = vpop.permute.xlu0 %4244 }
 0x418   : > { %v4270_v44 = vmax.f32 %v4234_v30, %v12393_v35 }
 0x419   : > { %v4341_v8 = vmax.f32 %v4305_v31, %v12288_v46 }
 0x41b   : > { %7751 = vmatmul.msk.f32.vlgmr.msrb.gmra.mxu1 %vm4350_vm8, %v4341_v8 }
 0x41c   : > { %4703 = vrot.lane.b32.xlu2 %v12139_v15, %s8183_s6  ;;  %4639 = vrot.lane.b32.xlu1 %v12139_v15, %s8184_s8 }
 0x41d   : > { %4767 = vrot.lane.b32.xlu0 %v12139_v15, %s8185_s9 }
 0x41e   : > { %v12406_v55 = vpop.permute.xlu2 %4214  ;;  %v12408_v57 = vpop.permute.xlu1 %4280 }
 0x41f   : > { %v4306_v27 = vmax.f32 %v4270_v44, %v12408_v57  ;;  %v12411_v29 = vpop.permute.xlu0 %4210 }
 0x420   : > { %v4235_v11 = vmax.f32 %v11906_v41, %v12411_v29 }
 0x421   : > { %v4342_v45 = vmax.f32 %v4306_v27, %v12365_v54 }
 0x423   : > { %7752 = vmatmul.msk.f32.gmra.mxu1 %vm4350_vm8, %v4342_v45  ;;  %v4518_v45 = vmax.f32 %v12105_v5, %v4499_v23 }
 0x424   : > { %4641 = vrot.lane.b32.xlu2 %v12163_v49, %s8184_s8  ;;  %4831 = vrot.lane.b32.xlu1 %v12139_v15, %s8182_s30 }
 0x425   : > { %4705 = vrot.lane.b32.xlu0 %v12163_v49, %s8183_s6 }
 0x426   : > { %v12423_v13 = vpop.permute.xlu2 %4322  ;;  %v12425_v56 = vpop.permute.xlu1 %4246 }
 0x427   : > { %v4271_v14 = vmax.f32 %v4235_v11, %v12425_v56  ;;  %v12428_v42 = vpop.permute.xlu0 %4318 }
 0x429   : > { %v4307_v61 = vmax.f32 %v4271_v14, %v12373_v22 }
 0x42b   : > { %v4343_v40 = vmax.f32 %v4307_v61, %v12428_v42 }
 0x42c   : > { %4833 = vrot.lane.b32.xlu2 %v12163_v49, %s8182_s30  ;;  %4769 = vrot.lane.b32.xlu1 %v12163_v49, %s8185_s9 }
 0x42d   : > { %4643 = vrot.lane.b32.xlu0 %v12185_v48, %s8184_s8  ;;  %7753 = vmatmul.msk.f32.gmra.mxu1 %vm4350_vm8, %v4343_v40 }
 0x42e   : > { %v12439_v32 = vpop.permute.xlu2 %4288  ;;  %v12441_v31 = vpop.permute.xlu1 %4212 }
 0x42f   : > { %v4236_v8 = vmax.f32 %v11951_v18, %v12441_v31  ;;  %v12445_v30 = vpop.permute.xlu0 %4284 }
 0x431   : > { %v4272_v44 = vmax.f32 %v4236_v8, %v12388_v10  ;;  %v4553_v8 = vmax.f32 %v4518_v45, %v4534_v17 }
 0x433   : > { %v4308_v27 = vmax.f32 %v4272_v44, %v12445_v30  ;;  %v4237_v44 = vmax.f32 %v11997_v60, %v12406_v55 }
 0x434   : > { %4771 = vrot.lane.b32.xlu2 %v12185_v48, %s8185_s9  ;;  %4707 = vrot.lane.b32.xlu1 %v12185_v48, %s8183_s6 }
 0x435   : > { %4835 = vrot.lane.b32.xlu0 %v12185_v48, %s8182_s30 }
 0x436   : > { %v12458_v11 = vpop.permute.xlu1 %4320  ;;  %v12463_v40 = vpop.permute.xlu2 %4254 }
 0x437   : > { %v4344_v14 = vmax.f32 %v4308_v27, %v12458_v11  ;;  %v12461_v61 = vpop.permute.xlu0 %4250 }
 0x438   : > { %v4273_v23 = vmax.f32 %v4237_v44, %v12461_v61 }
 0x439   : > { %7754 = vmatmul.msk.f32.gmra.mxu1 %vm4350_vm8, %v4344_v14  ;;  %v4588_v14 = vmax.f32 %v4553_v8, %v4569_v21 }
 0x43b   : > { %v12489_v37 = vmax.f32 %v4588_v14, %v4604_v9 }
 0x43c   : > { %4773 = vrot.lane.b32.xlu2 %v12187_v43, %s8185_s9  ;;  %4645 = vrot.lane.b32.xlu1 %v12187_v43, %s8184_s8 }
 0x43d   : > { %4837 = vrot.lane.b32.xlu0 %v12187_v43, %s8182_s30 }
 0x43e   : > { %v12477_v27 = vpop.permute.xlu1 %4286  ;;  %v12485_v24 = vpop.permute.xlu2 %4220 }
 0x43f   : > { %v4309_v17 = vmax.f32 %v4273_v23, %v12477_v27  ;;  %v12482_v45 = vpop.permute.xlu0 %4216  ;;  %v4240_v4 = vmax.f32 %v12144_v38, %v12485_v24 }
 0x440   : > { %v4238_v21 = vmax.f32 %v12041_v51, %v12482_v45 }
 0x441   : > { %v4345_v25 = vmax.f32 %v4309_v17, %v12423_v13 }
 0x443   : > { %7755 = vmatmul.msk.f32.gmra.mxu1 %vm4350_vm8, %v4345_v25 }
 0x444   : > { %4777 = vrot.lane.b32.xlu2 %v12489_v37, %s8185_s9  ;;  %4709 = vrot.lane.b32.xlu1 %v12187_v43, %s8183_s6 }
 0x445   : > { %4839 = vrot.lane.b32.xlu0 %v12189_v2, %s8182_s30 }
 0x446   : > { %v12500_v8 = vpop.permute.xlu1 %4252  ;;  %v12507_v23 = vpop.permute.xlu2 %4328 }
 0x447   : > { %v4274_v5 = vmax.f32 %v4238_v21, %v12500_v8  ;;  %v12503_v9 = vpop.permute.xlu0 %4324 }
 0x449   : > { %v4310_v25 = vmax.f32 %v4274_v5, %v12439_v32 }
 0x44b   : > { %v4346_v44 = vmax.f32 %v4310_v25, %v12503_v9 }
 0x44c   : > { %4775 = vrot.lane.b32.xlu2 %v12189_v2, %s8185_s9  ;;  %4649 = vrot.lane.b32.xlu1 %v12489_v37, %s8184_s8 }
 0x44d   : > { %7756 = vmatmul.msk.f32.gmra.mxu1 %vm4350_vm8, %v4346_v44 }
 0x44e   : > { %v12514_v14 = vpop.permute.xlu1 %4218  ;;  %v12524_v26 = vpop.permute.xlu2 %4294 }
 0x44f   : > { %v4239_v17 = vmax.f32 %v12094_v7, %v12514_v14  ;;  %v12518_v21 = vpop.permute.xlu0 %4290  ;;  %13777 = vst [vmem:[#allocation6_spill] sm:$0xff] %v12524_v26 }
 0x451   : > { %v4275_v5 = vmax.f32 %v4239_v17, %v12463_v40 }
 0x453   : > { %v4311_v25 = vmax.f32 %v4275_v5, %v12518_v21 }
 0x454   : > { %4647 = vrot.lane.b32.xlu1 %v12189_v2, %s8184_s8 }
 0x456   : > { %v12526_v34 = vpop.permute.xlu1 %4326  ;;  %v4698_v52 = vpop.permute.xlu2 %4697 }
 0x457   : > { %v4347_v44 = vmax.f32 %v4311_v25, %v12526_v34  ;;  %v12529_v50 = vpop.permute.xlu0 %4256 }
 0x458   : > { %v4276_v17 = vmax.f32 %v4240_v4, %v12529_v50 }
 0x459   : > { %7757 = vmatmul.msk.f32.gmra.mxu1 %vm4350_vm8, %v4347_v44 }
 0x45c   : > { %4711 = vrot.lane.b32.xlu1 %v12189_v2, %s8183_s6 }
 0x45e   : > { %v12537_v3 = vpop.permute.xlu1 %4292  ;;  %v4636_v16 = vpop.permute.xlu2 %4635 }
 0x45f   : > { %v4312_v5 = vmax.f32 %v4276_v17, %v12537_v3  ;;  %v12540_v47 = vpop.permute.xlu0 %4222 }
 0x460   : > { %13778 = vst [vmem:[#allocation20_spill] sm:$0xff] %v12540_v47  ;;  %v4241_v44 = vmax.f32 %v12223_v58, %v12540_v47 }
 0x461   : > { %v4348_v25 = vmax.f32 %v4312_v5, %v12507_v23 }
 0x463   : > { %7758 = vmatmul.msk.f32.gmra.mxu1 %vm4350_vm8, %v4348_v25 }
 0x464   : > { %4713 = vrot.lane.b32.xlu1 %v12489_v37, %s8183_s6 }
 0x466   : > { %v12548_v28 = vpop.permute.xlu1 %4258 }
 0x467   : > { %13779 = vst [vmem:[#allocation21_spill] sm:$0xff] %v12548_v28  ;;  %v4277_v4 = vmax.f32 %v4241_v44, %v12548_v28  ;;  %v12551_v63 = vpop.permute.xlu0 %4330  ;;  %v4716_v28 = vsel %vm4715_vm9, %v12375_v59, %v4698_v52 }
 0x468   : > { %13780 = vst [vmem:[#allocation22_spill] sm:$0xff] %v12551_v63 }
 0x469   : > { %v4313_v17 = vmax.f32 %v4277_v4, %v12524_v26 }
 0x46b   : > { %v4349_v36 = vmax.f32 %v4313_v17, %v12551_v63  ;;  %v4828_v17 = vpop.permute.xlu2 %4827 }
 0x46d   : > { %7759 = vmatmul.msk.f32.gmra.mxu1 %vm4350_vm8, %v4349_v36 }
 0x46e   : > { %v4634_v5 = vpop.permute.xlu1 %4633 }
 0x46f   : > { %v4652_v25 = vsel %vm4651_vm10, %v12377_v19, %v4634_v5  ;;  %v4680_v20 = vmax.f32 %v11897_v0, %v4634_v5  ;;  %v4762_v62 = vpop.permute.xlu0 %4761 }
 0x470   : > { %v4679_v44 = vmax.f32 %v11816_v6, %v4652_v25  ;;  %v4780_v36 = vsel %vm4779_vm11, %v12390_v1, %v4762_v62  ;;  %v4845_v25 = vsel %vm4843_vm4, %v12365_v54, %v4828_v17 }
 0x471   : > { %v4744_v4 = vmax.f32 %v4680_v20, %v4698_v52  ;;  %v4653_v20 = vsel %vm4651_vm10, %v12345_v33, %v4636_v16 }
 0x472   : > { %v4743_v26 = vmax.f32 %v4679_v44, %v4716_v28  ;;  %v4681_v52 = vmax.f32 %v11857_v53, %v4653_v20 }
 0x473   : > { %v4808_v63 = vmax.f32 %v4744_v4, %v4762_v62  ;;  %v4682_v62 = vmax.f32 %v11988_v12, %v4636_v16 }
 0x474   : > { %v4807_v58 = vmax.f32 %v4743_v26, %v4780_v36 }
 0x476   : > { %v4826_v47 = vpop.permute.xlu1 %4825 }
 0x477   : > { %v4844_v0 = vsel %vm4843_vm4, %v12288_v46, %v4826_v47  ;;  %v12566_v19 = vmax.f32 %v4808_v63, %v4826_v47  ;;  %v4700_v6 = vpop.permute.xlu0 %4699  ;;  %v4766_v47 = vpop.permute.xlu2 %4765 }
 0x478   : > { %v4871_v5 = vmax.f32 %v4807_v58, %v4844_v0  ;;  %v4717_v28 = vsel %vm4715_vm9, %v12393_v35, %v4700_v6  ;;  %v4746_v63 = vmax.f32 %v4682_v62, %v4700_v6 }
 0x479   : > { %4909 = vrot.lane.b32.xlu0 %v12566_v19, %s8188_s10  ;;  %v4745_v46 = vmax.f32 %v4681_v52, %v4717_v28 }
 0x47a   : > { %4907 = vrot.lane.b32.xlu2 %v4871_v5, %s8188_s10 }
 0x47e   : > { %v4764_v58 = vpop.permute.xlu1 %4763 }
 0x47f   : > { %v4781_v26 = vsel %vm4779_vm11, %v12408_v57, %v4764_v58  ;;  %v4810_v33 = vmax.f32 %v4746_v63, %v4764_v58  ;;  %v4638_v59 = vpop.permute.xlu0 %4637  ;;  %v4704_v36 = vpop.permute.xlu2 %4703 }
 0x480   : > { %v4809_v1 = vmax.f32 %v4745_v46, %v4781_v26  ;;  %v4654_v16 = vsel %vm4651_vm10, %v12411_v29, %v4638_v59  ;;  %v4684_v53 = vmax.f32 %v12069_v39, %v4638_v59  ;;  %v4782_v29 = vsel %vm4779_vm11, %v12373_v22, %v4766_v47 }
 0x481   : > { %v12581_v44 = vmax.f32 %v4810_v33, %v4828_v17  ;;  %v4683_v35 = vmax.f32 %v11906_v41, %v4654_v16  ;;  %v4719_v63 = vsel %vm4715_vm9, %v12388_v10, %v4704_v36 }
 0x482   : > { %v4873_v12 = vmax.f32 %v4809_v1, %v4845_v25 }
 0x483   : > { %4913 = vrot.lane.b32.xlu0 %v12581_v44, %s8188_s10 }
 0x484   : > { %4911 = vrot.lane.b32.xlu2 %v4873_v12, %s8188_s10 }
 0x486   : > { %v4702_v57 = vpop.permute.xlu1 %4701 }
 0x487   : > { %v4718_v4 = vsel %vm4715_vm9, %v12425_v56, %v4702_v57  ;;  %v4748_v54 = vmax.f32 %v4684_v53, %v4702_v57  ;;  %v4830_v17 = vpop.permute.xlu0 %4829 }
 0x488   : > { %v4747_v0 = vmax.f32 %v4683_v35, %v4718_v4  ;;  %v4846_v20 = vsel %vm4843_vm4, %v12428_v42, %v4830_v17  ;;  %v4642_v42 = vpop.permute.xlu2 %4641 }
 0x489   : > { %v4812_v6 = vmax.f32 %v4748_v54, %v4766_v47  ;;  %v4656_v10 = vsel %vm4651_vm10, %v12406_v55, %v4642_v42 }
 0x48a   : > { %v4811_v5 = vmax.f32 %v4747_v0, %v4782_v29  ;;  %v4687_v12 = vmax.f32 %v11997_v60, %v4656_v10 }
 0x48b   : > { %v4876_v62 = vmax.f32 %v4812_v6, %v4830_v17 }
 0x48c   : > { %v4875_v39 = vmax.f32 %v4811_v5, %v4846_v20 }
 0x48d   : > { %4917 = vrot.lane.b32.xlu0 %v4876_v62, %s8188_s10 }
 0x48e   : > { %v4640_v41 = vpop.permute.xlu1 %4639  ;;  %4915 = vrot.lane.b32.xlu2 %v4875_v39, %s8188_s10 }
 0x48f   : > { %v4655_v56 = vsel %vm4651_vm10, %v12441_v31, %v4640_v41  ;;  %v4686_v28 = vmax.f32 %v12139_v15, %v4640_v41  ;;  %v4768_v52 = vpop.permute.xlu0 %4767 }
 0x490   : > { %v4685_v22 = vmax.f32 %v11951_v18, %v4655_v56  ;;  %v4783_v58 = vsel %vm4779_vm11, %v12445_v30, %v4768_v52  ;;  %v4688_v30 = vmax.f32 %v12163_v49, %v4642_v42  ;;  %v4834_v16 = vpop.permute.xlu2 %4833 }
 0x491   : > { %v4750_v47 = vmax.f32 %v4686_v28, %v4704_v36  ;;  %v4848_v17 = vsel %vm4843_vm4, %v12423_v13, %v4834_v16 }
 0x492   : > { %v4749_v46 = vmax.f32 %v4685_v22, %v4719_v63 }
 0x493   : > { %v4814_v26 = vmax.f32 %v4750_v47, %v4768_v52 }
 0x494   : > { %v4813_v33 = vmax.f32 %v4749_v46, %v4783_v58 }
 0x495   : > { %4841 = vrot.lane.b32.xlu0 %v12489_v37, %s8182_s30 }
 0x496   : > { %v4832_v31 = vpop.permute.xlu1 %4831 }
 0x497   : > { %v4847_v15 = vsel %vm4843_vm4, %v12458_v11, %v4832_v31  ;;  %v4878_v59 = vmax.f32 %v4814_v26, %v4832_v31  ;;  %v4706_v18 = vpop.permute.xlu0 %4705 }
 0x498   : > { %v4877_v1 = vmax.f32 %v4813_v33, %v4847_v15  ;;  %v4720_v25 = vsel %vm4715_vm9, %v12461_v61, %v4706_v18  ;;  %v4752_v53 = vmax.f32 %v4688_v30, %v4706_v18  ;;  %v12632_v5 = vpop.f32.mrf.mxu1 }
 0x499   : > { %4921 = vrot.lane.b32.xlu2 %v4878_v59, %s8188_s10  ;;  %v4751_v11 = vmax.f32 %v4687_v12, %v4720_v25 }
 0x49a   : > { %4919 = vrot.lane.b32.xlu1 %v4877_v1, %s8188_s10 }
 0x49e   : > { %v4770_v35 = vpop.permute.xlu1 %4769 }
 0x49f   : > { %v4784_v57 = vsel %vm4779_vm11, %v12477_v27, %v4770_v35  ;;  %v4816_v4 = vmax.f32 %v4752_v53, %v4770_v35  ;;  %v4644_v55 = vpop.permute.xlu0 %4643  ;;  %v4772_v27 = vpop.permute.xlu2 %4771 }
 0x4a0   : > { %v4815_v54 = vmax.f32 %v4751_v11, %v4784_v57  ;;  %v4657_v60 = vsel %vm4651_vm10, %v12482_v45, %v4644_v55  ;;  %v4690_v61 = vmax.f32 %v12185_v48, %v4644_v55  ;;  %v4785_v45 = vsel %vm4779_vm11, %v12439_v32, %v4772_v27  ;;  %v12646_v32 = vpop.f32.mrf.mxu1 }
 0x4a1   : > { %v4880_v36 = vmax.f32 %v4816_v4, %v4834_v16  ;;  %5050 = vrot.lane.b32.xlu2 %v12566_v19, %s8189_s11  ;;  %v4689_v0 = vmax.f32 %v12041_v51, %v4657_v60 }
 0x4a2   : > { %v4879_v49 = vmax.f32 %v4815_v54, %v4848_v17 }
 0x4a3   : > { %4925 = vrot.lane.b32.xlu1 %v4880_v36, %s8188_s10 }
 0x4a4   : > { %4923 = vrot.lane.b32.xlu0 %v4879_v49, %s8188_s10 }
 0x4a6   : > { %v4708_v29 = vpop.permute.xlu1 %4707 }
 0x4a7   : > { %v4721_v13 = vsel %vm4715_vm9, %v12500_v8, %v4708_v29  ;;  %v4754_v6 = vmax.f32 %v4690_v61, %v4708_v29  ;;  %v4836_v20 = vpop.permute.xlu0 %4835  ;;  %v4774_v52 = vpop.permute.xlu2 %4773 }
 0x4a8   : > { %v4753_v19 = vmax.f32 %v4689_v0, %v4721_v13  ;;  %v4849_v51 = vsel %vm4843_vm4, %v12503_v9, %v4836_v20 }
 0x4a9   : > { %v4818_v39 = vmax.f32 %v4754_v6, %v4772_v27  ;;  %5052 = vrot.lane.b32.xlu2 %v12581_v44, %s8189_s11 }
 0x4aa   : > { %v4817_v48 = vmax.f32 %v4753_v19, %v4785_v45  ;;  %v4404_v26 = vpop.f32.mrf.mxu1  ;;  %v13785_v45 = vld [vmem:[#allocation7_spill] sm:$0xff] }
 0x4ab   : > { %v12640_v41 = vmax.f32 %v4818_v39, %v4836_v20  ;;  %v4010_v39 = vmul.u32 2, %v13785_v45 }
 0x4ac   : > { %v4881_v56 = vmax.f32 %v4817_v48, %v4849_v51 }
 0x4ad   : > { %4929 = vrot.lane.b32.xlu1 %v12640_v41, %s8188_s10 }
 0x4ae   : > { %v4646_v8 = vpop.permute.xlu1 %4645  ;;  %4927 = vrot.lane.b32.xlu0 %v4881_v56, %s8188_s10 }
 0x4af   : > { %v4658_v44 = vsel %vm4651_vm10, %v12514_v14, %v4646_v8  ;;  %v4692_v28 = vmax.f32 %v12187_v43, %v4646_v8  ;;  %v4838_v42 = vpop.permute.xlu0 %4837  ;;  %v12667_v31 = vpop.permute.xlu2 %4777  ;;  %v13786_v8 = vld [vmem:[#allocation9_spill] sm:$0xff] }
 0x4b0   : > { %v4691_v9 = vmax.f32 %v12094_v7, %v4658_v44  ;;  %v4850_v43 = vsel %vm4843_vm4, %v12526_v34, %v4838_v42  ;;  %v13787_v44 = vmov 0.0  }
 0x4b1   : > { %5054 = vrot.lane.b32.xlu2 %v4876_v62, %s8189_s11  ;;  %v4786_v62 = vsel %vm4779_vm11, %v12518_v21, %v4774_v52 }
 0x4b6   : > { %v4710_v22 = vpop.permute.xlu1 %4709  ;;  %v4407_v21 = vpop.f32.mrf.mxu1 }
 0x4b7   : > { %v4722_v63 = vsel %vm4715_vm9, %v12463_v40, %v4710_v22  ;;  %v4756_v47 = vmax.f32 %v4692_v28, %v4710_v22  ;;  %v4776_v1 = vpop.permute.xlu2 %4775  ;;  %v4840_v16 = vpop.permute.xlu0 %4839  ;;  %v13789_v22 = vld [vmem:[#allocation13_spill] sm:$0xff] }
 0x4b8   : > { %v4755_v46 = vmax.f32 %v4691_v9, %v4722_v63  ;;  %v4787_v11 = vsel %vm4779_vm11, %v12537_v3, %v4776_v1  ;;  %v13783_v3 = vld [vmem:[#allocation21_spill] sm:$0xff] }
 0x4b9   : > { %v4820_v58 = vmax.f32 %v4756_v47, %v4774_v52  ;;  %5056 = vrot.lane.b32.xlu2 %v4878_v59, %s8189_s11  ;;  %v13788_v52 = vld [vmem:[#allocation18_spill] sm:$0xff] }
 0x4ba   : > { %v4819_v14 = vmax.f32 %v4755_v46, %v4786_v62  ;;  %v4011_v9 = vmul.u32 2, %v13788_v52 }
 0x4bb   : > { %v12659_v33 = vmax.f32 %v4820_v58, %v4838_v42  ;;  %v13790_v42 = vmov 1.0  }
 0x4bc   : > { %v4883_v7 = vmax.f32 %v4819_v14, %v4850_v43  ;;  %v13794_v43 = vld [vmem:[#allocation4_spill] sm:$0xff] }
 0x4bd   : > { %4933 = vrot.lane.b32.xlu1 %v12659_v33, %s8188_s10 }
 0x4be   : > { %v12663_v40 = vpop.permute.xlu1 %4649  ;;  %4931 = vrot.lane.b32.xlu0 %v4883_v7, %s8188_s10  ;;  %v4012_v7 = vmul.u32 2, %v13794_v43  ;;  %v7817_v43 = vld [vmem:[%s13678_s4 + $0x68] sm:$0xff] }
 0x4bf   : > { %v4696_v62 = vmax.f32 %v12489_v37, %v12663_v40  ;;  %v13796_v37 = vld [vmem:[#allocation15_spill] sm:$0xff] }
 0x4c0   : > { %v4410_v59 = vpop.f32.mrf.mxu1 }
 0x4c1   : > { %5058 = vrot.lane.b32.xlu2 %v4880_v36, %s8189_s11 }
 0x4c6   : > { %v4648_v15 = vpop.permute.xlu1 %4647 }
 0x4c7   : > { %v4659_v34 = vsel %vm4651_vm10, %v12485_v24, %v4648_v15  ;;  %v4694_v18 = vmax.f32 %v12189_v2, %v4648_v15  ;;  %v4851_v24 = vsel %vm4843_vm4, %v12507_v23, %v4840_v16  ;;  %v13781_v2 = vld [vmem:[#allocation20_spill] sm:$0xff]  ;;  %v13784_v23 = vld [vmem:[#allocation6_spill] sm:$0xff] }
 0x4c8   : > { %v4693_v10 = vmax.f32 %v12144_v38, %v4659_v34  ;;  %v4660_v38 = vsel %vm4651_vm10, %v13781_v2, %v12663_v40  ;;  %v4788_v61 = vsel %vm4779_vm11, %v13784_v23, %v12667_v31  ;;  %vm4943_vm10 = vcmask 457728   ;;  %v13798_v34 = vld [vmem:[#allocation22_spill] sm:$0xff] }
 0x4c9   : > { %vm4016_vm11 = vcmp.eq.s32.totalorder %v13786_v8, %v4011_v9  ;;  %v7823_v9 = vld [vmem:[%s13678_s4 + $0x98] sm:$0x3] }
 0x4ca   : > { %v4413_v57 = vpop.f32.mrf.mxu1  ;;  %v12718_v58 = vsel %vm4016_vm11, 1.0, %v13787_v44 }
 0x4ce   : > { %v4712_v30 = vpop.permute.xlu1 %4711 }
 0x4cf   : > { %v4723_v25 = vsel %vm4715_vm9, %v12529_v50, %v4712_v30  ;;  %v4758_v12 = vmax.f32 %v4694_v18, %v4712_v30  ;;  %v13782_v50 = vld [vmem:[#allocation11_spill] sm:$0xff] }
 0x4d0   : > { %v4757_v53 = vmax.f32 %v4693_v10, %v4723_v25  ;;  %v4695_v17 = vmax.f32 %v13782_v50, %v4660_v38 }
 0x4d1   : > { %v4822_v35 = vmax.f32 %v4758_v12, %v4776_v1 }
 0x4d2   : > { %v4821_v4 = vmax.f32 %v4757_v53, %v4787_v11 }
 0x4d3   : > { %v4886_v55 = vmax.f32 %v4822_v35, %v4840_v16 }
 0x4d4   : > { %v4885_v54 = vmax.f32 %v4821_v4, %v4851_v24  ;;  %v4908_v6 = vpop.permute.xlu2 %4907  ;;  %v4014_v4 = vmul.u32 2, %v13796_v37 }
 0x4d5   : > { %5064 = vrot.lane.b32.xlu2 %v4886_v55, %s8189_s11  ;;  %4937 = vrot.lane.b32.xlu1 %v4886_v55, %s8188_s10 }
 0x4d6   : > { %v4714_v36 = vpop.permute.xlu1 %4713  ;;  %4935 = vrot.lane.b32.xlu0 %v4885_v54, %s8188_s10  ;;  %v4416_v27 = vpop.f32.mrf.mxu1 }
 0x4d7   : > { %v4724_v49 = vsel %vm4715_vm9, %v13783_v3, %v4714_v36  ;;  %vm4015_vm9 = vcmp.eq.s32.totalorder %v13786_v8, %v4010_v39  ;;  %v4760_v14 = vmax.f32 %v4696_v62, %v4714_v36  ;;  %v7816_v62 = vld [vmem:[%s13678_s4 + $0x60] sm:$0xff] }
 0x4d8   : > { %v4759_v60 = vmax.f32 %v4695_v17, %v4724_v49  ;;  %v12700_v28 = vsel %vm4015_vm9, 1.0, %v13787_v44 }
 0x4d9   : > { %v4824_v40 = vmax.f32 %v4760_v14, %v12667_v31 }
 0x4da   : > { %v4823_v0 = vmax.f32 %v4759_v60, %v4788_v61 }
 0x4de   : > { %v4912_v48 = vpop.permute.xlu2 %4911 }
 0x4e0   : > { %v4419_v29 = vpop.f32.mrf.mxu1 }
 0x4e8   : > { %v4916_v63 = vpop.permute.xlu2 %4915 }
 0x4ea   : > { %v4422_v13 = vpop.f32.mrf.mxu1 }
 0x4eb   : > { %7760 = vmatpush.msk.msrb.mxu3 %vm465_vm0, %v4422_v13  ;;  %v4910_v19 = vpop.permute.xlu0 %4909 }
 0x4ec   : > { %v4944_v20 = vsel %vm4943_vm10, %v4908_v6, %v4910_v19 }
 0x4ed   : > { %4451 = vmatpush.msrb.mxu3 %v4419_v29  ;;  %7775 = vmatmul.msk.f32.vlgmr.msrb.gmra.mxu0 %vm4350_vm8, %v4944_v20 }
 0x4ef   : > { %4452 = vmatpush.msrb.mxu3 %v4416_v27 }
 0x4f1   : > { %4453 = vmatpush.msrb.mxu3 %v4413_v57 }
 0x4f3   : > { %4454 = vmatpush.msrb.mxu3 %v4410_v59  ;;  %v13797_v59 = vld [vmem:[#allocation17_spill] sm:$0xff]  ;;  %v4922_v16 = vpop.permute.xlu2 %4921 }
 0x4f4   : > { %v4013_v31 = vmul.u32 2, %v13797_v59 }
 0x4f5   : > { %4455 = vmatpush.msrb.mxu3 %v4407_v21  ;;  %v4914_v51 = vpop.permute.xlu0 %4913 }
 0x4f6   : > { %v4945_v56 = vsel %vm4943_vm10, %v4912_v48, %v4914_v51  ;;  %v7822_v51 = vld [vmem:[%s13678_s4 + $0x90] sm:$0x3] }
 0x4f7   : > { %4456 = vmatpush.msrb.mxu3 %v4404_v26  ;;  %7776 = vmatmul.msk.f32.gmra.mxu0 %vm4350_vm8, %v4945_v56  ;;  %v7820_v56 = vld [vmem:[%s13678_s4 + $0x80] sm:$0xff]  ;;  %v7814_v26 = vld [vmem:[%s13678_s4 + $0x50] sm:$0xff] }
 0x4f9   : > { %4457 = vmatpush.msrb.mxu3 %v12646_v32 }
 0x4fb   : > { %4458 = vmatpush.msrb.mxu3 %v12632_v5 }
 0x4fc   : > { %7761 = vmatmul.msk.f32.vlgmr.msrb.gmra.mxu3 %vm4350_vm8, %v12700_v28 }
 0x4fd   : > { %7790 = vmatpush.msk.msra.mxu3 %vm465_vm0, %v13789_v22  ;;  %v7818_v22 = vld [vmem:[%s13678_s4 + $0x70] sm:$0xff] }
 0x4ff   : > { %v4918_v47 = vpop.permute.xlu0 %4917  ;;  %7791 = vmatpush.msk.msra.mxu3 %vm4037_vm12, %v13790_v42  ;;  %vm4017_vm12 = vcmp.eq.s32.totalorder %v13786_v8, %v4012_v7  ;;  %v7815_v7 = vld [vmem:[%s13678_s4 + $0x58] sm:$0xff] }
 0x500   : > { %v4946_v5 = vsel %vm4943_vm10, %v4916_v63, %v4918_v47  ;;  %v12744_v30 = vsel %vm4017_vm12, 1.0, %v13787_v44  ;;  %v7821_v47 = vld [vmem:[%s13678_s4 + $0x88] sm:$0xff]  ;;  %vm13802_vm12 = vcmask 1044480  }
 0x501   : > { %7777 = vmatmul.msk.f32.gmra.mxu0 %vm4350_vm8, %v4946_v5  ;;  %7792 = vmatpush.msk.msra.mxu3 %vm4036_vm13, %v13790_v42  ;;  %vm4019_vm13 = vcmp.eq.s32.totalorder %v13786_v8, %v4014_v4  ;;  %v7819_v5 = vld [vmem:[%s13678_s4 + $0x78] sm:$0xff] }
 0x502   : > { %v12777_v55 = vsel %vm4019_vm13, 1.0, %v13787_v44  ;;  %vm13803_vm13 = vmmov %vm13802_vm12 }
 0x503   : > { %7793 = vmatpush.msk.msra.mxu3 %vm4035_vm14, %v13790_v42  ;;  %vm5209_vm14 = vcmask 1041408  }
 0x504   : > { %7762 = vmatmul.msk.f32.gmra.mxu3 %vm4350_vm8, %v12718_v58  ;;  %7824 = vmatpush.msk.msra.mxu1 %vm5209_vm14, %v7822_v51 }
 0x505   : > { %7794 = vmatpush.msk.msra.mxu3 %vm4034_vm15, %v13790_v42  ;;  %7829 = vmatpush.msk.msra.mxu0 %vm5209_vm14, %v7823_v9  ;;  %vm5200_vm15 = vcmask 277504  }
 0x506   : > { %5228 = vmatpush.msra.mxu1 %v7820_v56 }
 0x507   : > { %v4842_v15 = vpop.permute.xlu0 %4841  ;;  %7795 = vmatpush.msk.msra.mxu3 %vm4033_vm1, %v13790_v42  ;;  %5257 = vmatpush.msra.mxu0 %v7821_v47 }
 0x508   : > { %v4852_v18 = vsel %vm4843_vm4, %v13798_v34, %v4842_v15  ;;  %v4888_v1 = vmax.f32 %v4824_v40, %v4842_v15  ;;  %vm4018_vm4 = vcmp.eq.s32.totalorder %v13786_v8, %v4013_v31  ;;  %5229 = vmatpush.msra.mxu1 %v7818_v22  ;;  %v5172_v31 = vld [vmem:[%s13678_s4 + $0x38] sm:$0xff] }
 0x509   : > { %v4887_v10 = vmax.f32 %v4823_v0, %v4852_v18  ;;  %7796 = vmatpush.msk.msra.mxu3 %vm12302_vm5, %v13790_v42  ;;  %v12764_v57 = vsel %vm4018_vm4, 1.0, %v13787_v44  ;;  %5258 = vmatpush.msra.mxu0 %v7819_v5  ;;  %v7853_v18 = vld [vmem:[%s13678_s4 + $0xe8] sm:$0x3] }
 0x50a   : > { %4941 = vrot.lane.b32.xlu1 %v4888_v1, %s8188_s10  ;;  %5230 = vmatpush.msra.mxu1 %v7816_v62 }
 0x50b   : > { %4939 = vrot.lane.b32.xlu0 %v4887_v10, %s8188_s10  ;;  %7797 = vmatpush.msk.msra.mxu3 %vm12326_vm6, %v13790_v42  ;;  %v5174_v10 = vld [vmem:[%s13678_s4 + $0x48] sm:$0x3] }
 0x50c   : > { %7763 = vmatmul.msk.f32.gmra.mxu3 %vm4350_vm8, %v12744_v30  ;;  %v4920_v53 = vpop.permute.xlu1 %4919  ;;  %5231 = vmatpush.msra.mxu1 %v7814_v26 }
 0x50d   : > { %v4947_v11 = vsel %vm4943_vm10, %v4920_v53, %v4922_v16  ;;  %7798 = vmatpush.msk.msra.mxu3 %vm12336_vm7, %v13790_v42  ;;  %5259 = vmatpush.msra.mxu0 %v7817_v43  ;;  %v7849_v53 = vld [vmem:[%s13678_s4 + $0xc8] sm:$0xff] }
 0x50e   : > { %7778 = vmatmul.msk.f32.gmra.mxu0 %vm4350_vm8, %v4947_v11  ;;  %7839 = vmatpush.msk.msrb.mxu1 %vm5209_vm14, %v5174_v10  ;;  %v7852_v11 = vld [vmem:[%s13678_s4 + $0xe0] sm:$0x3] }
 0x50f   : > { %5260 = vmatpush.msra.mxu0 %v7815_v7  ;;  %7859 = vmatpush.msk.msrb.mxu3 %vm5209_vm14, %v7853_v18  ;;  %v5173_v10 = vld [vmem:[%s13678_s4 + $0x40] sm:$0x3] }
 0x510   : > { %5329 = vmatpush.msrb.mxu1 %v5172_v31 }
 0x511   : > { %7854 = vmatpush.msk.msrb.mxu0 %vm5209_vm14, %v7852_v11 }
 0x512   : > { %5062 = vrot.lane.b32.xlu1 %v12659_v33, %s8189_s11  ;;  %v5051_v33 = vpop.permute.xlu2 %5050 }
 0x513   : > { %5060 = vrot.lane.b32.xlu0 %v12640_v41, %s8189_s11 }
 0x514   : > { %7764 = vmatmul.msk.f32.gmra.mxu3 %vm4350_vm8, %v12764_v57 }
 0x515   : > { %v4926_v24 = vpop.permute.xlu1 %4925 }
 0x516   : > { %v4924_v2 = vpop.permute.xlu0 %4923 }
 0x517   : > { %v4948_v38 = vsel %vm4943_vm10, %v4924_v2, %v4926_v24 }
 0x518   : > { %7779 = vmatmul.msk.f32.gmra.mxu0 %vm4350_vm8, %v4948_v38  ;;  %v5170_v38 = vld [vmem:[%s13678_s4 + $0x28] sm:$0xff] }
 0x519   : > { %5330 = vmatpush.msrb.mxu1 %v5170_v38 }
 0x51a   : > { %v5053_v17 = vpop.permute.xlu2 %5052 }
 0x51b   : > { %5066 = vrot.lane.b32.xlu0 %v4888_v1, %s8189_s11  ;;  %v7851_v1 = vld [vmem:[%s13678_s4 + $0xd8] sm:$0xff] }
 0x51c   : > { %7765 = vmatmul.msk.f32.gmra.mxu3 %vm4350_vm8, %v12777_v55 }
 0x51d   : > { %5421 = vmatpush.msrb.mxu3 %v7851_v1 }
 0x51f   : > { %v4930_v41 = vpop.permute.xlu1 %4929  ;;  %5422 = vmatpush.msrb.mxu3 %v7849_v53  ;;  %v5169_v53 = vld [vmem:[%s13678_s4 + $0x20] sm:$0xff] }
 0x520   : > { %v4928_v54 = vpop.permute.xlu0 %4927 }
 0x521   : > { %v4949_v50 = vsel %vm4943_vm10, %v4928_v54, %v4930_v41  ;;  %v7847_v41 = vld [vmem:[%s13678_s4 + $0xb8] sm:$0xff]  ;;  %v7850_v54 = vld [vmem:[%s13678_s4 + $0xd0] sm:$0xff] }
 0x522   : > { %7780 = vmatmul.msk.f32.gmra.mxu0 %vm4350_vm8, %v4949_v50  ;;  %v5055_v36 = vpop.permute.xlu2 %5054  ;;  %v5168_v50 = vld [vmem:[%s13678_s4 + $0x18] sm:$0xff]  ;;  %5423 = vmatpush.msrb.mxu3 %v7847_v41 }
 0x523   : > { %5392 = vmatpush.msrb.mxu0 %v7850_v54  ;;  %5331 = vmatpush.msrb.mxu1 %v5168_v50 }
 0x524   : > { %7799 = vmatmul.msk.f32.vlgmr.msra.gmra.mxu3 %vm4350_vm8, %v5051_v33 }
 0x52a   : > { %v5057_v23 = vpop.permute.xlu2 %5056 }
 0x52c   : > { %7800 = vmatmul.msk.f32.gmra.mxu3 %vm4350_vm8, %v5053_v17  ;;  %v7845_v17 = vld [vmem:[%s13678_s4 + $0xa8] sm:$0xff] }
 0x52d   : > { %5424 = vmatpush.msrb.mxu3 %v7845_v17 }
 0x52f   : > { %v4934_v3 = vpop.permute.xlu1 %4933 }
 0x530   : > { %v4932_v49 = vpop.permute.xlu0 %4931 }
 0x531   : > { %v4950_v60 = vsel %vm4943_vm10, %v4932_v49, %v4934_v3  ;;  %v5166_v49 = vld [vmem:[%s13678_s4 + $0x8] sm:$0xff] }
 0x532   : > { %7781 = vmatmul.msk.f32.gmra.mxu0 %vm4350_vm8, %v4950_v60  ;;  %v5059_v61 = vpop.permute.xlu2 %5058  ;;  %5332 = vmatpush.msrb.mxu1 %v5166_v49 }
 0x534   : > { %7801 = vmatmul.msk.f32.gmra.mxu3 %vm4350_vm8, %v5055_v36  ;;  %v7848_v36 = vld [vmem:[%s13678_s4 + $0xc0] sm:$0xff] }
 0x535   : > { %5393 = vmatpush.msrb.mxu0 %v7848_v36 }
 0x53a   : > { %v5065_v63 = vpop.permute.xlu2 %5064 }
 0x53c   : > { %7802 = vmatmul.msk.f32.gmra.mxu3 %vm4350_vm8, %v5057_v23  ;;  %v7846_v23 = vld [vmem:[%s13678_s4 + $0xb0] sm:$0xff] }
 0x53d   : > { %5394 = vmatpush.msrb.mxu0 %v7846_v23  ;;  %v7872_v23 = vld [vmem:[%s13678_s4 + $0x130] sm:$0x3] }
 0x544   : > { %7803 = vmatmul.msk.f32.gmra.mxu3 %vm4350_vm8, %v5059_v61  ;;  %v7844_v61 = vld [vmem:[%s13678_s4 + $0xa0] sm:$0xff] }
 0x545   : > { %5395 = vmatpush.msrb.mxu0 %v7844_v61  ;;  %v7870_v61 = vld [vmem:[%s13678_s4 + $0x120] sm:$0xff] }
 0x547   : > { %v4938_v27 = vpop.permute.xlu1 %4937 }
 0x548   : > { %v4936_v0 = vpop.permute.xlu0 %4935 }
 0x549   : > { %v4951_v29 = vsel %vm4943_vm10, %v4936_v0, %v4938_v27 }
 0x54a   : > { %7782 = vmatmul.msk.f32.gmra.mxu0 %vm4350_vm8, %v4951_v29 }
 0x57c   : > { %v4942_v13 = vpop.permute.xlu1 %4941 }
 0x57d   : > { %v4940_v6 = vpop.permute.xlu0 %4939 }
 0x57e   : > { %v4952_v19 = vsel %vm4943_vm10, %v4940_v6, %v4942_v13  ;;  %v4988_v13 = vpop.f32.mrf.mxu0 }
 0x57f   : > { %7783 = vmatmul.msk.f32.gmra.mxu0 %vm4350_vm8, %v4952_v19  ;;  %v12795_v20 = vpop.f32.mrf.mxu3 }
 0x580   : > { %v5191_v8 = vrot.slane %v12795_v20, 1  ;;  %v5357_v4 = vrot.slane %v12795_v20, 2 }
 0x584   : > { %v5063_v48 = vpop.permute.xlu1 %5062 }
 0x585   : > { %v5061_v45 = vpop.permute.xlu0 %5060 }
 0x586   : > { %7804 = vmatmul.msk.f32.gmra.mxu3 %vm4350_vm8, %v5061_v45  ;;  %v4991_v45 = vpop.f32.mrf.mxu0 }
 0x587   : > { %v12798_v39 = vpop.f32.mrf.mxu3 }
 0x588   : > { %v5192_v52 = vrot.slane %v12798_v39, 1  ;;  %v5358_v24 = vrot.slane %v12798_v39, 2 }
 0x58a   : > { %v5193_v14 = vsel %vm1261_vm2, %v5191_v8, %v5192_v52  ;;  %v5359_v3 = vsel %vm2322_vm3, %v5357_v4, %v5358_v24 }
 0x58b   : > { %7825 = vmatmul.msk.f32.vlgmr.msra.gmra.mxu1 %vm5200_vm15, %v5193_v14  ;;  %7830 = vmatmul.msk.f32.vlgmr.msra.gmra.mxu0 %vm5200_vm15, %v5193_v14 }
 0x58d   : > { %v5067_v21 = vpop.permute.xlu0 %5066 }
 0x58e   : > { %7805 = vmatmul.msk.f32.gmra.mxu3 %vm4350_vm8, %v5063_v48  ;;  %v4994_v51 = vpop.f32.mrf.mxu0 }
 0x58f   : > { %v12820_v46 = vpop.f32.mrf.mxu3 }
 0x590   : > { %v5194_v37 = vrot.slane %v12820_v46, 1  ;;  %v5360_v27 = vrot.slane %v12820_v46, 2 }
 0x592   : > { %v5195_v15 = vsel %vm1261_vm2, %v5192_v52, %v5194_v37  ;;  %v5361_v0 = vsel %vm2322_vm3, %v5358_v24, %v5360_v27  ;;  %v5167_v24 = vld [vmem:[%s13678_s4 + $0x10] sm:$0xff] }
 0x593   : > { %7826 = vmatmul.msk.f32.gmra.mxu1 %vm5200_vm15, %v5195_v15  ;;  %7831 = vmatmul.msk.f32.gmra.mxu0 %vm5200_vm15, %v5195_v15 }
 0x596   : > { %7806 = vmatmul.msk.f32.gmra.mxu3 %vm4350_vm8, %v5065_v63  ;;  %v4997_v56 = vpop.f32.mrf.mxu0 }
 0x597   : > { %v12843_v40 = vpop.f32.mrf.mxu3 }
 0x598   : > { %v5196_v34 = vrot.slane %v12843_v40, 1  ;;  %v5362_v29 = vrot.slane %v12843_v40, 2 }
 0x59a   : > { %v5197_v16 = vsel %vm1261_vm2, %v5194_v37, %v5196_v34  ;;  %v5363_v6 = vsel %vm2322_vm3, %v5360_v27, %v5362_v29  ;;  %v7869_v27 = vld [vmem:[%s13678_s4 + $0x118] sm:$0xff] }
 0x59b   : > { %7827 = vmatmul.msk.f32.gmra.mxu1 %vm5200_vm15, %v5197_v16  ;;  %7832 = vmatmul.msk.f32.gmra.mxu0 %vm5200_vm15, %v5197_v16  ;;  %v5171_v16 = vld [vmem:[%s13678_s4 + $0x30] sm:$0xff] }
 0x59e   : > { %7807 = vmatmul.msk.f32.gmra.mxu3 %vm4350_vm8, %v5067_v21  ;;  %v5000_v52 = vpop.f32.mrf.mxu0 }
 0x59f   : > { %v4472_v2 = vpop.f32.mrf.mxu3 }
 0x5a0   : > { %v5198_v33 = vrot.slane %v4472_v2, 1  ;;  %v5364_v19 = vrot.slane %v4472_v2, 2  ;;  %v5165_v2 = vld [vmem:[%s13678_s4] sm:$0xff] }
 0x5a2   : > { %v5199_v60 = vsel %vm1261_vm2, %v5196_v34, %v5198_v33  ;;  %v5365_v48 = vsel %vm2322_vm3, %v5362_v29, %v5364_v19  ;;  %v7867_v29 = vld [vmem:[%s13678_s4 + $0x108] sm:$0xff]  ;;  %v7892_v19 = vld [vmem:[%s13678_s4 + $0x180] sm:$0x3] }
 0x5a3   : > { %7828 = vmatmul.msk.f32.gmra.mxu1 %vm5200_vm15, %v5199_v60  ;;  %7833 = vmatmul.msk.f32.gmra.mxu0 %vm5200_vm15, %v5199_v60 }
 0x5a4   : > { %7894 = vmatpush.msk.msra.mxu0 %vm5209_vm14, %v7892_v19  ;;  %v7948_v19 = vld [vmem:[%s13678_s4 + $0x250] sm:$0xff] }
 0x5a6   : > { %7860 = vmatmul.msk.f32.vlgmr.msrb.gmra.mxu3 %vm5200_vm15, %v5359_v3  ;;  %v5003_v22 = vpop.f32.mrf.mxu0 }
 0x5a7   : > { %v5103_v8 = vpop.f32.mrf.mxu3 }
 0x5ab   : > { %7840 = vmatmul.msk.f32.vlgmr.msrb.gmra.mxu1 %vm5200_vm15, %v12795_v20  ;;  %7855 = vmatmul.msk.f32.vlgmr.msrb.gmra.mxu0 %vm5200_vm15, %v5359_v3 }
 0x5ae   : > { %7861 = vmatmul.msk.f32.gmra.mxu3 %vm5200_vm15, %v5361_v0 }
 0x5af   : > { %v5106_v9 = vpop.f32.mrf.mxu3  ;;  %v5006_v63 = vpop.f32.mrf.mxu0 }
 0x5b3   : > { %7841 = vmatmul.msk.f32.gmra.mxu1 %vm5200_vm15, %v12798_v39  ;;  %7856 = vmatmul.msk.f32.gmra.mxu0 %vm5200_vm15, %v5361_v0  ;;  %v7866_v0 = vld [vmem:[%s13678_s4 + $0x100] sm:$0xff] }
 0x5b6   : > { %7862 = vmatmul.msk.f32.gmra.mxu3 %vm5200_vm15, %v5363_v6 }
 0x5b7   : > { %v5109_v47 = vpop.f32.mrf.mxu3 }
 0x5bb   : > { %7842 = vmatmul.msk.f32.gmra.mxu1 %vm5200_vm15, %v12820_v46  ;;  %7857 = vmatmul.msk.f32.gmra.mxu0 %vm5200_vm15, %v5363_v6  ;;  %v7865_v6 = vld [vmem:[%s13678_s4 + $0xf8] sm:$0xff] }
 0x5be   : > { %7863 = vmatmul.msk.f32.gmra.mxu3 %vm5200_vm15, %v5365_v48 }
 0x5bf   : > { %v5112_v5 = vpop.f32.mrf.mxu3 }
 0x5c3   : > { %7843 = vmatmul.msk.f32.gmra.mxu1 %vm5200_vm15, %v12843_v40  ;;  %7858 = vmatmul.msk.f32.gmra.mxu0 %vm5200_vm15, %v5365_v48  ;;  %v7889_v48 = vld [vmem:[%s13678_s4 + $0x168] sm:$0xff] }
 0x5c7   : > { %v5009_v62 = vpop.f32.mrf.mxu0  ;;  %v5115_v14 = vpop.f32.mrf.mxu3 }
 0x5fc   : > { %v5012_v26 = vpop.f32.mrf.mxu0 }
 0x5fd   : > { %7784 = vmatpush.msk.msrb.mxu2 %vm465_vm0, %v5012_v26  ;;  %v7907_v26 = vld [vmem:[%s13678_s4 + $0x1a8] sm:$0xff] }
 0x5ff   : > { %5026 = vmatpush.msrb.mxu2 %v5009_v62  ;;  %v7909_v62 = vld [vmem:[%s13678_s4 + $0x1b8] sm:$0xff] }
 0x601   : > { %5027 = vmatpush.msrb.mxu2 %v5006_v63  ;;  %v7911_v63 = vld [vmem:[%s13678_s4 + $0x1c8] sm:$0xff] }
 0x603   : > { %5028 = vmatpush.msrb.mxu2 %v5003_v22  ;;  %v7910_v22 = vld [vmem:[%s13678_s4 + $0x1c0] sm:$0xff] }
 0x605   : > { %5029 = vmatpush.msrb.mxu2 %v5000_v52  ;;  %v7912_v52 = vld [vmem:[%s13678_s4 + $0x1d0] sm:$0x3] }
 0x607   : > { %5030 = vmatpush.msrb.mxu2 %v4997_v56  ;;  %v7887_v56 = vld [vmem:[%s13678_s4 + $0x158] sm:$0xff] }
 0x608   : > { %v12932_v21 = vpop.f32.mrf.mxu1  ;;  %v12950_v31 = vpop.f32.mrf.mxu0 }
 0x609   : > { %5031 = vmatpush.msrb.mxu2 %v4994_v51  ;;  %v5118_v43 = vpop.f32.mrf.mxu3  ;;  %v7886_v51 = vld [vmem:[%s13678_s4 + $0x150] sm:$0xff] }
 0x60b   : > { %5032 = vmatpush.msrb.mxu2 %v4991_v45  ;;  %v7888_v45 = vld [vmem:[%s13678_s4 + $0x160] sm:$0xff] }
 0x60d   : > { %5033 = vmatpush.msrb.mxu2 %v4988_v13  ;;  %v7864_v13 = vld [vmem:[%s13678_s4 + $0xf0] sm:$0xff] }
 0x60e   : > { %7785 = vmatmul.msk.f32.vlgmr.msrb.gmra.mxu2 %vm4350_vm8, %v12700_v28 }
 0x610   : > { %v12936_v15 = vpop.f32.mrf.mxu1  ;;  %v5265_v38 = vpop.f32.mrf.mxu0 }
 0x611   : > { %v5121_v7 = vpop.f32.mrf.mxu3 }
 0x616   : > { %7786 = vmatmul.msk.f32.gmra.mxu2 %vm4350_vm8, %v12718_v58 }
 0x618   : > { %v12941_v18 = vpop.f32.mrf.mxu1  ;;  %v5268_v17 = vpop.f32.mrf.mxu0 }
 0x619   : > { %v5124_v37 = vpop.f32.mrf.mxu3 }
 0x61e   : > { %7787 = vmatmul.msk.f32.gmra.mxu2 %vm4350_vm8, %v12744_v30 }
 0x620   : > { %v12945_v1 = vpop.f32.mrf.mxu1 }
 0x621   : > { %v5127_v34 = vpop.f32.mrf.mxu3 }
 0x622   : > { %7808 = vmatpush.msk.msra.mxu2 %vm465_vm0, %v5127_v34  ;;  %v7933_v34 = vld [vmem:[%s13678_s4 + $0x228] sm:$0x3] }
 0x624   : > { %5141 = vmatpush.msra.mxu2 %v5124_v37  ;;  %v7932_v37 = vld [vmem:[%s13678_s4 + $0x220] sm:$0x3] }
 0x626   : > { %7788 = vmatmul.msk.f32.gmra.mxu2 %vm4350_vm8, %v12764_v57 }
 0x627   : > { %5142 = vmatpush.msra.mxu2 %v5121_v7  ;;  %v7905_v7 = vld [vmem:[%s13678_s4 + $0x198] sm:$0xff] }
 0x628   : > { %v12963_v4 = vpop.f32.mrf.mxu1 }
 0x629   : > { %5143 = vmatpush.msra.mxu2 %v5118_v43  ;;  %v12961_v11 = vpop.f32.mrf.mxu3  ;;  %v7904_v43 = vld [vmem:[%s13678_s4 + $0x190] sm:$0xff] }
 0x62b   : > { %5144 = vmatpush.msra.mxu2 %v5115_v14 }
 0x62d   : > { %5145 = vmatpush.msra.mxu2 %v5112_v5  ;;  %v7906_v5 = vld [vmem:[%s13678_s4 + $0x1a0] sm:$0xff] }
 0x62e   : > { %7789 = vmatmul.msk.f32.gmra.mxu2 %vm4350_vm8, %v12777_v55 }
 0x62f   : > { %5146 = vmatpush.msra.mxu2 %v5109_v47  ;;  %v7908_v47 = vld [vmem:[%s13678_s4 + $0x1b0] sm:$0xff] }
 0x630   : > { %v5337_v41 = vpop.f32.mrf.mxu1 }
 0x631   : > { %5147 = vmatpush.msra.mxu2 %v5106_v9  ;;  %v5429_v33 = vpop.f32.mrf.mxu3  ;;  %v5338_v54 = vadd.f32 %v5337_v41, %v5265_v38  ;;  %v7913_v9 = vld [vmem:[%s13678_s4 + $0x1d8] sm:$0x3]  ;;  %v7926_v41 = vld [vmem:[%s13678_s4 + $0x1f0] sm:$0xff] }
 0x633   : > { %5148 = vmatpush.msra.mxu2 %v5103_v8  ;;  %v12973_v50 = vadd.f32 %v5429_v33, %v5338_v54  ;;  %v7885_v8 = vld [vmem:[%s13678_s4 + $0x148] sm:$0xff]  ;;  %v7927_v54 = vld [vmem:[%s13678_s4 + $0x1f8] sm:$0xff] }
 0x635   : > { %7834 = vmatpush.msk.msrb.mxu2 %vm5209_vm14, %v5173_v10  ;;  %v7930_v10 = vld [vmem:[%s13678_s4 + $0x210] sm:$0xff] }
 0x636   : > { %7809 = vmatmul.msk.f32.vlgmr.msra.gmra.mxu2 %vm4350_vm8, %v12700_v28 }
 0x637   : > { %5300 = vmatpush.msrb.mxu2 %v5171_v16  ;;  %v7931_v16 = vld [vmem:[%s13678_s4 + $0x218] sm:$0xff] }
 0x638   : > { %v5340_v36 = vpop.f32.mrf.mxu1 }
 0x639   : > { %5301 = vmatpush.msrb.mxu2 %v5169_v53  ;;  %v5432_v3 = vpop.f32.mrf.mxu3  ;;  %v5341_v49 = vadd.f32 %v5340_v36, %v5268_v17  ;;  %v7928_v53 = vld [vmem:[%s13678_s4 + $0x200] sm:$0xff]  ;;  %v7925_v36 = vld [vmem:[%s13678_s4 + $0x1e8] sm:$0xff] }
 0x63a   : > { %v7924_v17 = vld [vmem:[%s13678_s4 + $0x1e0] sm:$0xff] }
 0x63b   : > { %5302 = vmatpush.msrb.mxu2 %v5167_v24  ;;  %v12977_v60 = vadd.f32 %v5432_v3, %v5341_v49  ;;  %v7929_v24 = vld [vmem:[%s13678_s4 + $0x208] sm:$0xff] }
 0x63d   : > { %5303 = vmatpush.msrb.mxu2 %v5165_v2 }
 0x63e   : > { %7810 = vmatmul.msk.f32.gmra.mxu2 %vm4350_vm8, %v12718_v58 }
 0x63f   : > { %7874 = vmatpush.msk.msra.mxu2 %vm5209_vm14, %v7872_v23 }
 0x641   : > { %5487 = vmatpush.msra.mxu2 %v7870_v61 }
 0x646   : > { %7811 = vmatmul.msk.f32.gmra.mxu2 %vm4350_vm8, %v12744_v30  ;;  %v7873_v30 = vld [vmem:[%s13678_s4 + $0x138] sm:$0x3] }
 0x647   : > { %7879 = vmatpush.msk.msra.mxu1 %vm5209_vm14, %v7873_v30 }
 0x64e   : > { %7812 = vmatmul.msk.f32.gmra.mxu2 %vm4350_vm8, %v12764_v57  ;;  %v7871_v57 = vld [vmem:[%s13678_s4 + $0x128] sm:$0xff] }
 0x64f   : > { %5516 = vmatpush.msra.mxu1 %v7871_v57  ;;  %v7952_v57 = vld [vmem:[%s13678_s4 + $0x270] sm:$0x3] }
 0x651   : > { %5517 = vmatpush.msra.mxu1 %v7869_v27 }
 0x653   : > { %5518 = vmatpush.msra.mxu1 %v7867_v29  ;;  %v7951_v29 = vld [vmem:[%s13678_s4 + $0x268] sm:$0xff] }
 0x655   : > { %5519 = vmatpush.msra.mxu1 %v7865_v6 }
 0x656   : > { %7813 = vmatmul.msk.f32.gmra.mxu2 %vm4350_vm8, %v12777_v55  ;;  %v7868_v55 = vld [vmem:[%s13678_s4 + $0x110] sm:$0xff] }
 0x657   : > { %5488 = vmatpush.msra.mxu2 %v7868_v55  ;;  %7919 = vmatpush.msk.msrb.mxu1 %vm5209_vm14, %v7913_v9  ;;  %v7953_v55 = vld [vmem:[%s13678_s4 + $0x278] sm:$0x3] }
 0x658   : > { %v7945_v9 = vld [vmem:[%s13678_s4 + $0x238] sm:$0xff] }
 0x659   : > { %5489 = vmatpush.msra.mxu2 %v7866_v0  ;;  %5717 = vmatpush.msrb.mxu1 %v7911_v63  ;;  %v7950_v0 = vld [vmem:[%s13678_s4 + $0x260] sm:$0xff] }
 0x65b   : > { %5490 = vmatpush.msra.mxu2 %v7864_v13  ;;  %5718 = vmatpush.msrb.mxu1 %v7909_v62  ;;  %v7971_v62 = vld [vmem:[%s13678_s4 + $0x2b8] sm:$0xff] }
 0x65d   : > { %5719 = vmatpush.msrb.mxu1 %v7907_v26  ;;  %v7969_v26 = vld [vmem:[%s13678_s4 + $0x2a8] sm:$0xff] }
 0x65e   : > { %7835 = vmatmul.msk.f32.vlgmr.msrb.gmra.mxu2 %vm5200_vm15, %v12795_v20  ;;  %v7893_v20 = vld [vmem:[%s13678_s4 + $0x188] sm:$0x3] }
 0x65f   : > { %7899 = vmatpush.msk.msra.mxu3 %vm5209_vm14, %v7893_v20  ;;  %7914 = vmatpush.msk.msrb.mxu2 %vm5209_vm14, %v7912_v52  ;;  %v7949_v20 = vld [vmem:[%s13678_s4 + $0x258] sm:$0xff]  ;;  %v7944_v52 = vld [vmem:[%s13678_s4 + $0x230] sm:$0xff] }
 0x660   : > { %5720 = vmatpush.msrb.mxu1 %v7905_v7  ;;  %v7966_v7 = vld [vmem:[%s13678_s4 + $0x290] sm:$0xff] }
 0x661   : > { %5688 = vmatpush.msrb.mxu2 %v7910_v22 }
 0x663   : > { %5689 = vmatpush.msrb.mxu2 %v7908_v47  ;;  %v7970_v47 = vld [vmem:[%s13678_s4 + $0x2b0] sm:$0xff] }
 0x665   : > { %5690 = vmatpush.msrb.mxu2 %v7906_v5  ;;  %v7968_v5 = vld [vmem:[%s13678_s4 + $0x2a0] sm:$0xff] }
 0x666   : > { %7836 = vmatmul.msk.f32.gmra.mxu2 %vm5200_vm15, %v12798_v39  ;;  %v7890_v39 = vld [vmem:[%s13678_s4 + $0x170] sm:$0xff] }
 0x667   : > { %5588 = vmatpush.msra.mxu0 %v7890_v39  ;;  %5691 = vmatpush.msrb.mxu2 %v7904_v43 }
 0x669   : > { %5589 = vmatpush.msra.mxu0 %v7888_v45  ;;  %v7947_v45 = vld [vmem:[%s13678_s4 + $0x248] sm:$0xff] }
 0x66b   : > { %5590 = vmatpush.msra.mxu0 %v7886_v51 }
 0x66e   : > { %7837 = vmatmul.msk.f32.gmra.mxu2 %vm5200_vm15, %v12820_v46  ;;  %v7891_v46 = vld [vmem:[%s13678_s4 + $0x178] sm:$0xff] }
 0x66f   : > { %5617 = vmatpush.msra.mxu3 %v7891_v46  ;;  %v7946_v46 = vld [vmem:[%s13678_s4 + $0x240] sm:$0xff] }
 0x671   : > { %5618 = vmatpush.msra.mxu3 %v7889_v48 }
 0x673   : > { %5619 = vmatpush.msra.mxu3 %v7887_v56 }
 0x675   : > { %5620 = vmatpush.msra.mxu3 %v7885_v8  ;;  %v7973_v8 = vld [vmem:[%s13678_s4 + $0x2c8] sm:$0x3] }
 0x676   : > { %7838 = vmatmul.msk.f32.gmra.mxu2 %vm5200_vm15, %v12843_v40  ;;  %v7884_v40 = vld [vmem:[%s13678_s4 + $0x140] sm:$0xff] }
 0x677   : > { %5591 = vmatpush.msra.mxu0 %v7884_v40  ;;  %7939 = vmatpush.msk.msrb.mxu3 %vm5209_vm14, %v7933_v34  ;;  %v7972_v40 = vld [vmem:[%s13678_s4 + $0x2c0] sm:$0x3] }
 0x678   : > { %v7964_v34 = vld [vmem:[%s13678_s4 + $0x280] sm:$0xff] }
 0x679   : > { %7934 = vmatpush.msk.msrb.mxu0 %vm5209_vm14, %v7932_v37  ;;  %5812 = vmatpush.msrb.mxu3 %v7931_v16  ;;  %v7967_v37 = vld [vmem:[%s13678_s4 + $0x298] sm:$0xff] }
 0x67b   : > { %5783 = vmatpush.msrb.mxu0 %v7930_v10  ;;  %5813 = vmatpush.msrb.mxu3 %v7929_v24  ;;  %v7965_v10 = vld [vmem:[%s13678_s4 + $0x288] sm:$0xff] }
 0x67d   : > { %5784 = vmatpush.msrb.mxu0 %v7928_v53  ;;  %5814 = vmatpush.msrb.mxu3 %v7927_v54  ;;  %v13244_v53 = vsel %vm4033_vm1, 1.0, %v13787_v44 }
 0x67f   : > { %5785 = vmatpush.msrb.mxu0 %v7926_v41  ;;  %5815 = vmatpush.msrb.mxu3 %v7925_v36  ;;  %v13271_v36 = vpop.f32.mrf.mxu0 }
 0x681   : > { %5786 = vmatpush.msrb.mxu0 %v7924_v17 }
 0x691   : > { %v13081_v14 = vpop.f32.mrf.mxu2 }
 0x692   : > { %7875 = vmatmul.msk.f32.vlgmr.msra.gmra.mxu2 %vm5200_vm15, %v13081_v14  ;;  %7880 = vmatmul.msk.f32.vlgmr.msra.gmra.mxu1 %vm5200_vm15, %v13081_v14  ;;  %v5553_v38 = vrot.slane %v13081_v14, 1  ;;  %v5653_v39 = vrot.slane %v13081_v14, 2 }
 0x693   : > { %7954 = vmatpush.msk.msra.mxu2 %vm5209_vm14, %v7952_v57  ;;  %7959 = vmatpush.msk.msra.mxu1 %vm5209_vm14, %v7953_v55 }
 0x695   : > { %5884 = vmatpush.msra.mxu2 %v7950_v0  ;;  %5913 = vmatpush.msra.mxu1 %v7951_v29 }
 0x697   : > { %5885 = vmatpush.msra.mxu2 %v7948_v19  ;;  %5914 = vmatpush.msra.mxu1 %v7949_v20 }
 0x699   : > { %v13113_v2 = vpop.f32.mrf.mxu2  ;;  %5886 = vmatpush.msra.mxu2 %v7946_v46  ;;  %5915 = vmatpush.msra.mxu1 %v7947_v45 }
 0x69a   : > { %v5554_v33 = vrot.slane %v13113_v2, 1  ;;  %7876 = vmatmul.msk.f32.gmra.mxu2 %vm5200_vm15, %v13113_v2  ;;  %7881 = vmatmul.msk.f32.gmra.mxu1 %vm5200_vm15, %v13113_v2  ;;  %v5654_v6 = vrot.slane %v13113_v2, 2 }
 0x69b   : > { %5887 = vmatpush.msra.mxu2 %v7944_v52  ;;  %5916 = vmatpush.msra.mxu1 %v7945_v9 }
 0x69c   : > { %v5555_v3 = vsel %vm1261_vm2, %v5553_v38, %v5554_v33  ;;  %v5655_v51 = vsel %vm2322_vm3, %v5653_v39, %v5654_v6  ;;  %v8092_v38 = vld [vmem:[#allocation3] ss:$0 sm:$0xff] }
 0x69d   : > { %7895 = vmatmul.msk.f32.vlgmr.msra.gmra.mxu0 %vm5200_vm15, %v5555_v3  ;;  %7900 = vmatmul.msk.f32.vlgmr.msra.gmra.mxu3 %vm5200_vm15, %v5555_v3 }
 0x69e   : > { %7974 = vmatpush.msk.msra.mxu0 %vm5209_vm14, %v7972_v40  ;;  %7979 = vmatpush.msk.msra.mxu3 %vm5209_vm14, %v7973_v8 }
 0x69f   : > { %6064 = vperm.xlu1 %8090, %v8092_v38  }
 0x6a0   : > { %5984 = vmatpush.msra.mxu0 %v7970_v47  ;;  %6013 = vmatpush.msra.mxu3 %v7971_v62  ;;  %v5343_v47 = vpop.f32.mrf.mxu1  ;;  %v5335_v62 = vadd.f32 %v12963_v4, %v12950_v31 }
 0x6a1   : > { %v13136_v49 = vpop.f32.mrf.mxu2 }
 0x6a2   : > { %7877 = vmatmul.msk.f32.gmra.mxu2 %vm5200_vm15, %v13136_v49  ;;  %7882 = vmatmul.msk.f32.gmra.mxu1 %vm5200_vm15, %v13136_v49  ;;  %v5556_v23 = vrot.slane %v13136_v49, 1  ;;  %v5656_v63 = vrot.slane %v13136_v49, 2 }
 0x6a3   : > { %5985 = vmatpush.msra.mxu0 %v7968_v5  ;;  %6014 = vmatpush.msra.mxu3 %v7969_v26  ;;  %v5439_v5 = vadd.f32 %v12961_v11, %v5335_v62 }
 0x6a4   : > { %v5557_v30 = vsel %vm1261_vm2, %v5554_v33, %v5556_v23  ;;  %v5657_v43 = vsel %vm2322_vm3, %v5654_v6, %v5656_v63 }
 0x6a5   : > { %7896 = vmatmul.msk.f32.gmra.mxu0 %vm5200_vm15, %v5557_v30  ;;  %7901 = vmatmul.msk.f32.gmra.mxu3 %vm5200_vm15, %v5557_v30 }
 0x6a6   : > { %5986 = vmatpush.msra.mxu0 %v7966_v7  ;;  %6015 = vmatpush.msra.mxu3 %v7967_v37 }
 0x6a8   : > { %5987 = vmatpush.msra.mxu0 %v7964_v34  ;;  %6016 = vmatpush.msra.mxu3 %v7965_v10  ;;  %v5435_v34 = vpop.f32.mrf.mxu3 }
 0x6a9   : > { %v13146_v61 = vpop.f32.mrf.mxu2 }
 0x6aa   : > { %7878 = vmatmul.msk.f32.gmra.mxu2 %vm5200_vm15, %v13146_v61  ;;  %7883 = vmatmul.msk.f32.gmra.mxu1 %vm5200_vm15, %v13146_v61  ;;  %v5558_v27 = vrot.slane %v13146_v61, 1  ;;  %v5658_v16 = vrot.slane %v13146_v61, 2 }
 0x6ac   : > { %v5559_v13 = vsel %vm1261_vm2, %v5556_v23, %v5558_v27  ;;  %v5659_v2 = vsel %vm2322_vm3, %v5656_v63, %v5658_v16 }
 0x6ad   : > { %7897 = vmatmul.msk.f32.gmra.mxu0 %vm5200_vm15, %v5559_v13  ;;  %7902 = vmatmul.msk.f32.gmra.mxu3 %vm5200_vm15, %v5559_v13 }
 0x6b1   : > { %v5047_v48 = vpop.f32.mrf.mxu2 }
 0x6b2   : > { %v5560_v56 = vrot.slane %v5047_v48, 1  ;;  %7915 = vmatmul.msk.f32.vlgmr.msrb.gmra.mxu2 %vm5200_vm15, %v5655_v51  ;;  %7920 = vmatmul.msk.f32.vlgmr.msrb.gmra.mxu1 %vm5200_vm15, %v5655_v51  ;;  %v5660_v44 = vrot.slane %v5047_v48, 2 }
 0x6b3   : > { %8062 = vmatpush.msk.msrb.mxu2 %vm5209_vm14, %v7953_v55  ;;  %v5397_v55 = vpop.f32.mrf.mxu0 }
 0x6b4   : > { %v5561_v22 = vsel %vm1261_vm2, %v5558_v27, %v5560_v56  ;;  %v5661_v59 = vsel %vm2322_vm3, %v5658_v16, %v5660_v44 }
 0x6b5   : > { %7898 = vmatmul.msk.f32.gmra.mxu0 %vm5200_vm15, %v5561_v22  ;;  %7903 = vmatmul.msk.f32.gmra.mxu3 %vm5200_vm15, %v5561_v22 }
 0x6b6   : > { %8063 = vmatpush.msrb.mxu2 %v7951_v29 }
 0x6b8   : > { %8064 = vmatpush.msrb.mxu2 %v7949_v20 }
 0x6b9   : > { %v13218_v14 = vpop.f32.mrf.mxu2 }
 0x6ba   : > { %7916 = vmatmul.msk.f32.gmra.mxu2 %vm5200_vm15, %v5657_v43  ;;  %7921 = vmatmul.msk.f32.gmra.mxu1 %vm5200_vm15, %v5657_v43  ;;  %v5849_v41 = vrot.slane %v13218_v14, 1  ;;  %v5949_v61 = vrot.slane %v13218_v14, 2 }
 0x6bb   : > { %8065 = vmatpush.msrb.mxu2 %v7947_v45  ;;  %v13310_v20 = vpop.f32.mrf.mxu0 }
 0x6bd   : > { %7935 = vmatmul.msk.f32.vlgmr.msrb.gmra.mxu0 %vm5200_vm15, %v13218_v14  ;;  %7940 = vmatmul.msk.f32.vlgmr.msrb.gmra.mxu3 %vm5200_vm15, %v13218_v14 }
 0x6be   : > { %7995 = vmatpush.msk.msrb.mxu0 %vm465_vm0, %v13244_v53  ;;  %8066 = vmatpush.msrb.mxu2 %v7945_v9 }
 0x6c0   : > { %7996 = vmatpush.msk.msrb.mxu0 %vm12302_vm5, %v13790_v42 }
 0x6c1   : > { %v5153_v24 = vpop.f32.mrf.mxu2 }
 0x6c2   : > { %7917 = vmatmul.msk.f32.gmra.mxu2 %vm5200_vm15, %v5659_v2  ;;  %7922 = vmatmul.msk.f32.gmra.mxu1 %vm5200_vm15, %v5659_v2  ;;  %v5850_v33 = vrot.slane %v5153_v24, 1  ;;  %v5950_v49 = vrot.slane %v5153_v24, 2 }
 0x6c3   : > { %7997 = vmatpush.msk.msrb.mxu0 %vm12326_vm6, %v13790_v42  ;;  %v13319_v56 = vpop.f32.mrf.mxu0 }
 0x6c4   : > { %v5851_v17 = vsel %vm1261_vm2, %v5849_v41, %v5850_v33  ;;  %v5951_v57 = vsel %vm2322_vm3, %v5949_v61, %v5950_v49 }
 0x6c5   : > { %7936 = vmatmul.msk.f32.gmra.mxu0 %vm5200_vm15, %v5153_v24  ;;  %7941 = vmatmul.msk.f32.gmra.mxu3 %vm5200_vm15, %v5153_v24 }
 0x6c6   : > { %7998 = vmatpush.msk.msrb.mxu0 %vm12336_vm7, %v13790_v42 }
 0x6c9   : > { %v5156_v32 = vpop.f32.mrf.mxu2 }
 0x6ca   : > { %7918 = vmatmul.msk.f32.gmra.mxu2 %vm5200_vm15, %v5661_v59  ;;  %7923 = vmatmul.msk.f32.gmra.mxu1 %vm5200_vm15, %v5661_v59  ;;  %v5852_v3 = vrot.slane %v5156_v32, 1  ;;  %v5952_v0 = vrot.slane %v5156_v32, 2 }
 0x6cb   : > { %v5406_v22 = vpop.f32.mrf.mxu0 }
 0x6cc   : > { %v5853_v30 = vsel %vm1261_vm2, %v5850_v33, %v5852_v3  ;;  %v5953_v6 = vsel %vm2322_vm3, %v5950_v49, %v5952_v0 }
 0x6cd   : > { %7937 = vmatmul.msk.f32.gmra.mxu0 %vm5200_vm15, %v5156_v32  ;;  %7942 = vmatmul.msk.f32.gmra.mxu3 %vm5200_vm15, %v5156_v32 }
 0x6d1   : > { %v5159_v54 = vpop.f32.mrf.mxu2 }
 0x6d2   : > { %7955 = vmatmul.msk.f32.vlgmr.msra.gmra.mxu2 %vm5200_vm15, %v5851_v17  ;;  %7960 = vmatmul.msk.f32.vlgmr.msra.gmra.mxu1 %vm5200_vm15, %v5851_v17  ;;  %v5854_v27 = vrot.slane %v5159_v54, 1  ;;  %v5954_v39 = vrot.slane %v5159_v54, 2 }
 0x6d3   : > { %7984 = vmatpush.msk.msra.mxu2 %vm465_vm0, %v13244_v53 }
 0x6d4   : > { %v5855_v13 = vsel %vm1261_vm2, %v5852_v3, %v5854_v27  ;;  %v5955_v48 = vsel %vm2322_vm3, %v5952_v0, %v5954_v39 }
 0x6d5   : > { %7938 = vmatmul.msk.f32.gmra.mxu0 %vm5200_vm15, %v5159_v54  ;;  %7943 = vmatmul.msk.f32.gmra.mxu3 %vm5200_vm15, %v5159_v54 }
 0x6d6   : > { %7985 = vmatpush.msk.msra.mxu2 %vm12302_vm5, %v13790_v42 }
 0x6d8   : > { %7986 = vmatpush.msk.msra.mxu2 %vm12326_vm6, %v13790_v42 }
 0x6d9   : > { %v5162_v23 = vpop.f32.mrf.mxu2 }
 0x6da   : > { %7956 = vmatmul.msk.f32.gmra.mxu2 %vm5200_vm15, %v5853_v30  ;;  %7961 = vmatmul.msk.f32.gmra.mxu1 %vm5200_vm15, %v5853_v30  ;;  %v5856_v19 = vrot.slane %v5162_v23, 1  ;;  %v5956_v51 = vrot.slane %v5162_v23, 2 }
 0x6db   : > { %7987 = vmatpush.msk.msra.mxu2 %vm12336_vm7, %v13790_v42 }
 0x6dc   : > { %v5857_v45 = vsel %vm1261_vm2, %v5854_v27, %v5856_v19  ;;  %v5957_v8 = vsel %vm2322_vm3, %v5954_v39, %v5956_v51 }
 0x6dd   : > { %7975 = vmatmul.msk.f32.vlgmr.msra.gmra.mxu0 %vm5200_vm15, %v5951_v57  ;;  %7980 = vmatmul.msk.f32.vlgmr.msra.gmra.mxu3 %vm5200_vm15, %v5951_v57 }
 0x6de   : > { %8034 = vmatpush.msk.msra.mxu0 %vm465_vm0, %v13244_v53 }
 0x6e0   : > { %8035 = vmatpush.msk.msra.mxu0 %vm12302_vm5, %v13790_v42 }
 0x6e1   : > { %v5305_v29 = vpop.f32.mrf.mxu2 }
 0x6e2   : > { %7957 = vmatmul.msk.f32.gmra.mxu2 %vm5200_vm15, %v5855_v13  ;;  %7962 = vmatmul.msk.f32.gmra.mxu1 %vm5200_vm15, %v5855_v13  ;;  %v5306_v43 = vadd.f32 %v5305_v29, %v12932_v21  ;;  %v5344_v21 = vadd.f32 %v5343_v47, %v13271_v36 }
 0x6e3   : > { %8036 = vmatpush.msk.msra.mxu0 %vm12326_vm6, %v13790_v42 }
 0x6e4   : > { %v5438_v37 = vadd.f32 %v5397_v55, %v5306_v43  ;;  %v5445_v49 = vadd.f32 %v5435_v34, %v5344_v21 }
 0x6e5   : > { %7976 = vmatmul.msk.f32.gmra.mxu0 %vm5200_vm15, %v5953_v6  ;;  %7981 = vmatmul.msk.f32.gmra.mxu3 %vm5200_vm15, %v5953_v6 }
 0x6e6   : > { %8037 = vmatpush.msk.msra.mxu0 %vm12336_vm7, %v13790_v42 }
 0x6e9   : > { %v13312_v46 = vpop.f32.mrf.mxu2 }
 0x6ea   : > { %7958 = vmatmul.msk.f32.gmra.mxu2 %vm5200_vm15, %v5857_v45 }
 0x6ed   : > { %7977 = vmatmul.msk.f32.gmra.mxu0 %vm5200_vm15, %v5955_v48  ;;  %7982 = vmatmul.msk.f32.gmra.mxu3 %vm5200_vm15, %v5955_v48 }
 0x6f1   : > { %v13321_v40 = vpop.f32.mrf.mxu2 }
 0x6f2   : > { %7963 = vmatmul.msk.f32.vlgmr.msrb.gmra.mxu2 %vm5200_vm15, %v5857_v45 }
 0x6f3   : > { %8008 = vmatpush.msk.msrb.mxu2 %vm465_vm0, %v13244_v53 }
 0x6f5   : > { %7978 = vmatmul.msk.f32.gmra.mxu0 %vm5200_vm15, %v5957_v8  ;;  %7983 = vmatmul.msk.f32.gmra.mxu3 %vm5200_vm15, %v5957_v8  ;;  %vm13804_vm15 = vmmov %vm13802_vm12 }
 0x6f6   : > { %8009 = vmatpush.msk.msrb.mxu2 %vm12302_vm5, %v13790_v42 }
 0x6f8   : > { %8010 = vmatpush.msk.msrb.mxu2 %vm12326_vm6, %v13790_v42 }
 0x6f9   : > { %v5314_v52 = vpop.f32.mrf.mxu2 }
 0x6fa   : > { %v5315_v9 = vadd.f32 %v5314_v52, %v12945_v1  ;;  %8011 = vmatpush.msk.msrb.mxu2 %vm12336_vm7, %v13790_v42 }
 0x6fc   : > { %v13339_v63 = vadd.f32 %v5406_v22, %v5315_v9  ;;  %v5309_v9 = vadd.f32 %v13312_v46, %v12936_v15 }
 0x6fe   : > { %v5440_v62 = vadd.f32 %v13310_v20, %v5309_v9 }
 0x70f   : > { %v5521_v26 = vpop.f32.mrf.mxu1 }
 0x710   : > { %v5534_v14 = vadd.f32 %v5521_v26, %v5439_v5 }
 0x715   : > { %v5492_v7 = vpop.f32.mrf.mxu2 }
 0x716   : > { %v5533_v10 = vadd.f32 %v5492_v7, %v5438_v37  ;;  %v5312_v37 = vadd.f32 %v13321_v40, %v12941_v18 }
 0x717   : > { %v5524_v1 = vpop.f32.mrf.mxu1 }
 0x718   : > { %v5536_v21 = vadd.f32 %v5524_v1, %v12973_v50 }
 0x71a   : > { %v5593_v16 = vpop.f32.mrf.mxu0 }
 0x71b   : > { %v5634_v24 = vadd.f32 %v5593_v16, %v5533_v10 }
 0x71d   : > { %v5495_v2 = vpop.f32.mrf.mxu2 }
 0x71e   : > { %v5535_v43 = vadd.f32 %v5495_v2, %v5440_v62 }
 0x71f   : > { %v5527_v44 = vpop.f32.mrf.mxu1 }
 0x720   : > { %v5622_v32 = vpop.f32.mrf.mxu3  ;;  %v5538_v18 = vadd.f32 %v5527_v44, %v12977_v60 }
 0x721   : > { %v5635_v59 = vadd.f32 %v5622_v32, %v5534_v14  ;;  %v6038_v14 = vld [vmem:[%s13679_s5] sm:$0x3] }
 0x722   : > { %v5596_v38 = vpop.f32.mrf.mxu0  ;;  %v13354_v15 = vperm.slane %v6038_v14, 0 }
 0x723   : > { %v5636_v10 = vadd.f32 %v5596_v38, %v5535_v43  ;;  %v13362_v38 = vpop.permute.xlu1 %6064 }
 0x725   : > { %v5498_v33 = vpop.f32.mrf.mxu2 }
 0x727   : > { %v5530_v31 = vpop.f32.mrf.mxu1 }
 0x728   : > { %v5625_v4 = vpop.f32.mrf.mxu3  ;;  %v5540_v30 = vadd.f32 %v5530_v31, %v5445_v49  ;;  %v5442_v49 = vadd.f32 %v13319_v56, %v5312_v37 }
 0x72a   : > { %v5599_v11 = vpop.f32.mrf.mxu0  ;;  %v5537_v40 = vadd.f32 %v5498_v33, %v5442_v49 }
 0x72c   : > { %v5638_v50 = vadd.f32 %v5599_v11, %v5537_v40 }
 0x72d   : > { %v5501_v41 = vpop.f32.mrf.mxu2 }
 0x72f   : > { %v5722_v54 = vpop.f32.mrf.mxu1 }
 0x730   : > { %v5628_v17 = vpop.f32.mrf.mxu3  ;;  %v5735_v16 = vadd.f32 %v5722_v54, %v5635_v59  ;;  %v5637_v59 = vadd.f32 %v5625_v4, %v5536_v21 }
 0x731   : > { %v5639_v1 = vadd.f32 %v5628_v17, %v5538_v18 }
 0x732   : > { %v5602_v3 = vpop.f32.mrf.mxu0 }
 0x735   : > { %v5693_v23 = vpop.f32.mrf.mxu2 }
 0x736   : > { %v5734_v22 = vadd.f32 %v5693_v23, %v5634_v24 }
 0x737   : > { %v5725_v61 = vpop.f32.mrf.mxu1 }
 0x738   : > { %v5631_v57 = vpop.f32.mrf.mxu3  ;;  %v5737_v56 = vadd.f32 %v5725_v61, %v5637_v59 }
 0x739   : > { %v5641_v55 = vadd.f32 %v5631_v57, %v5540_v30  ;;  %v13359_v57 = vperm.slane %v6038_v14, 1 }
 0x73a   : > { %v5788_v27 = vpop.f32.mrf.mxu0 }
 0x73b   : > { %v5829_v5 = vadd.f32 %v5788_v27, %v5734_v22  ;;  %v5539_v27 = vadd.f32 %v5501_v41, %v13339_v63 }
 0x73d   : > { %v5696_v0 = vpop.f32.mrf.mxu2 }
 0x73e   : > { %v5736_v24 = vadd.f32 %v5696_v0, %v5636_v10 }
 0x73f   : > { %v5728_v29 = vpop.f32.mrf.mxu1 }
 0x740   : > { %v5817_v13 = vpop.f32.mrf.mxu3  ;;  %v5739_v60 = vadd.f32 %v5728_v29, %v5639_v1 }
 0x741   : > { %v5830_v20 = vadd.f32 %v5817_v13, %v5735_v16 }
 0x742   : > { %v5791_v6 = vpop.f32.mrf.mxu0 }
 0x743   : > { %v5831_v23 = vadd.f32 %v5791_v6, %v5736_v24 }
 0x745   : > { %v5699_v19 = vpop.f32.mrf.mxu2 }
 0x746   : > { %v5738_v44 = vadd.f32 %v5699_v19, %v5638_v50 }
 0x747   : > { %v5731_v39 = vpop.f32.mrf.mxu1 }
 0x748   : > { %v5820_v45 = vpop.f32.mrf.mxu3  ;;  %v5741_v4 = vadd.f32 %v5731_v39, %v5641_v55 }
 0x749   : > { %v5832_v33 = vadd.f32 %v5820_v45, %v5737_v56 }
 0x74a   : > { %v5794_v48 = vpop.f32.mrf.mxu0 }
 0x74b   : > { %v5833_v41 = vadd.f32 %v5794_v48, %v5738_v44 }
 0x74d   : > { %v5702_v51 = vpop.f32.mrf.mxu2 }
 0x74f   : > { %v5918_v52 = vpop.f32.mrf.mxu1 }
 0x750   : > { %v5823_v8 = vpop.f32.mrf.mxu3  ;;  %v5931_v2 = vadd.f32 %v5918_v52, %v5830_v20  ;;  %v5640_v52 = vadd.f32 %v5602_v3, %v5539_v27 }
 0x751   : > { %v5834_v11 = vadd.f32 %v5823_v8, %v5739_v60 }
 0x752   : > { %v5797_v36 = vpop.f32.mrf.mxu0 }
 0x755   : > { %v5889_v47 = vpop.f32.mrf.mxu2 }
 0x756   : > { %v5930_v7 = vadd.f32 %v5889_v47, %v5829_v5  ;;  %v5740_v5 = vadd.f32 %v5702_v51, %v5640_v52 }
 0x757   : > { %v5921_v46 = vpop.f32.mrf.mxu1 }
 0x758   : > { %v5826_v26 = vpop.f32.mrf.mxu3  ;;  %v5933_v17 = vadd.f32 %v5921_v46, %v5832_v33 }
 0x759   : > { %v5836_v29 = vadd.f32 %v5826_v26, %v5741_v4 }
 0x75a   : > { %v5989_v34 = vpop.f32.mrf.mxu0 }
 0x75b   : > { %v6030_v32 = vadd.f32 %v5989_v34, %v5930_v7  ;;  %v5835_v7 = vadd.f32 %v5797_v36, %v5740_v5 }
 0x75d   : > { %v5892_v31 = vpop.f32.mrf.mxu2  ;;  %v6044_v30 = vadd.f32 %v13354_v15, %v6030_v32 }
 0x75e   : > { %v5932_v0 = vadd.f32 %v5892_v31, %v5831_v23 }
 0x75f   : > { %v6067_v9 = vmul.f32 %v13362_v38, %v6044_v30  ;;  %vm6052_vm1 = vcmp.gt.f32.partialorder %v6044_v30, 0.0  ;;  %v5924_v61 = vpop.f32.mrf.mxu1 }
 0x760   : > { %v6018_v54 = vpop.f32.mrf.mxu3  ;;  %v5935_v45 = vadd.f32 %v5924_v61, %v5834_v11 }
 0x761   : > { %v6031_v13 = vadd.f32 %v6018_v54, %v5931_v2  ;;  %v6075_v14 = vsel %vm6052_vm1, %v6044_v30, %v6067_v9 }
 0x762   : > { %v5992_v6 = vpop.f32.mrf.mxu0  ;;  %v6087_v48 = vrot.slane %v6075_v14, 1  ;;  %v6102_v10 = vrot.slane %v6075_v14, 2  ;;  %v6117_v26 = vrot.slane %v6075_v14, 3  ;;  %v6132_v31 = vrot.slane %v6075_v14, 4 }
 0x763   : > { %v6045_v22 = vadd.f32 %v13359_v57, %v6031_v13  ;;  %v6032_v47 = vadd.f32 %v5992_v6, %v5932_v0 }
 0x765   : > { %v6046_v62 = vadd.f32 %v13354_v15, %v6032_v47  ;;  %v5895_v63 = vpop.f32.mrf.mxu2  ;;  %v6068_v3 = vmul.f32 %v13362_v38, %v6045_v22  ;;  %vm6053_vm10 = vcmp.gt.f32.partialorder %v6045_v22, 0.0 }
 0x766   : > { %v5934_v39 = vadd.f32 %v5895_v63, %v5833_v41 }
 0x767   : > { %vm6054_vm8 = vcmp.gt.f32.partialorder %v6046_v62, 0.0  ;;  %v6069_v43 = vmul.f32 %v13362_v38, %v6046_v62  ;;  %v13374_v16 = vsel %vm6053_vm10, %v6045_v22, %v6068_v3 }
 0x768   : > { %v6021_v19 = vpop.f32.mrf.mxu3  ;;  %v6520_v30 = vrot.slane %v13374_v16, 1  ;;  %v6535_v18 = vrot.slane %v13374_v16, 2  ;;  %v6550_v40 = vrot.slane %v13374_v16, 3 }
 0x769   : > { %v13370_v55 = vsel %vm6054_vm8, %v6046_v62, %v6069_v43  ;;  %v6033_v37 = vadd.f32 %v6021_v19, %v5933_v17  ;;  %vm13805_vm8 = vmmov %vm13802_vm12 }
 0x76a   : > { %v6088_v51 = vrot.slane %v13370_v55, 1  ;;  %v6103_v8 = vrot.slane %v13370_v55, 2  ;;  %v5995_v34 = vpop.f32.mrf.mxu0  ;;  %v6118_v24 = vrot.slane %v13370_v55, 3  ;;  %v6133_v20 = vrot.slane %v13370_v55, 4  ;;  %vm13806_vm10 = vmmov %vm13805_vm8 }
 0x76b   : > { %v6047_v32 = vadd.f32 %v13359_v57, %v6033_v37  ;;  %v6034_v36 = vadd.f32 %v5995_v34, %v5934_v39 }
 0x76c   : > { %v6089_v46 = vsel %vm1261_vm2, %v6087_v48, %v6088_v51  ;;  %v6104_v59 = vsel %vm2322_vm3, %v6102_v10, %v6103_v8  ;;  %v6119_v56 = vsel %vm13802_vm12, %v6117_v26, %v6118_v24  ;;  %v6134_v6 = vsel %vm465_vm0, %v6132_v31, %v6133_v20 }
 0x76d   : > { %vm6055_vm9 = vcmp.gt.f32.partialorder %v6047_v32, 0.0  ;;  %v6070_v21 = vmul.f32 %v13362_v38, %v6047_v32  ;;  %v6048_v49 = vadd.f32 %v13354_v15, %v6034_v36  ;;  %v5898_v23 = vpop.f32.mrf.mxu2  ;;  %v6098_v2 = vmax.f32 %v6075_v14, %v6089_v46 }
 0x76e   : > { %v5936_v50 = vadd.f32 %v5898_v23, %v5835_v7 }
 0x76f   : > { %v13386_v54 = vsel %vm6055_vm9, %v6047_v32, %v6070_v21  ;;  %vm6056_vm11 = vcmp.gt.f32.partialorder %v6048_v49, 0.0  ;;  %v6071_v27 = vmul.f32 %v13362_v38, %v6048_v49  ;;  %v6113_v0 = vmax.f32 %v6098_v2, %v6104_v59  ;;  %vm13807_vm9 = vmmov %vm13805_vm8 }
 0x770   : > { %v6521_v13 = vrot.slane %v13386_v54, 1  ;;  %v6024_v1 = vpop.f32.mrf.mxu3  ;;  %v6536_v52 = vrot.slane %v13386_v54, 2  ;;  %v6551_v44 = vrot.slane %v13386_v54, 3  ;;  %v6566_v63 = vrot.slane %v13386_v54, 4 }
 0x771   : > { %v13393_v9 = vsel %vm6056_vm11, %v6048_v49, %v6071_v27  ;;  %v6035_v22 = vadd.f32 %v6024_v1, %v5935_v45  ;;  %v6128_v47 = vmax.f32 %v6113_v0, %v6119_v56  ;;  %vm6292_vm11 = vcmask 111616  }
 0x772   : > { %v6522_v60 = vsel %vm1261_vm2, %v6520_v30, %v6521_v13  ;;  %v6090_v33 = vrot.slane %v13393_v9, 1  ;;  %v6105_v4 = vrot.slane %v13393_v9, 2  ;;  %v5998_v62 = vpop.f32.mrf.mxu0  ;;  %v6120_v61 = vrot.slane %v13393_v9, 3 }
 0x773   : > { %v6049_v41 = vadd.f32 %v13359_v57, %v6035_v22  ;;  %v6036_v5 = vadd.f32 %v5998_v62, %v5936_v50  ;;  %v13401_v11 = vmax.f32 %v6128_v47, %v6134_v6  ;;  %v6135_v14 = vrot.slane %v13393_v9, 4 }
 0x774   : > { %v6091_v17 = vsel %vm1261_vm2, %v6088_v51, %v6090_v33  ;;  %v6531_v3 = vmax.f32 %v13374_v16, %v6522_v60  ;;  %v6106_v37 = vsel %vm2322_vm3, %v6103_v8, %v6105_v4  ;;  %v6537_v48 = vsel %vm2322_vm3, %v6535_v18, %v6536_v52 }
 0x775   : > { %vm6057_vm4 = vcmp.gt.f32.partialorder %v6049_v41, 0.0  ;;  %v6072_v43 = vmul.f32 %v13362_v38, %v6049_v41  ;;  %v6050_v7 = vadd.f32 %v13354_v15, %v6036_v5  ;;  %v5927_v19 = vpop.f32.mrf.mxu2  ;;  %6183 = vrot.lane.b32.xlu1 %v13401_v11, %s8185_s9  ;;  %6167 = vrot.lane.b32.xlu0 %v13401_v11, %s8183_s6  ;;  %v6099_v45 = vmax.f32 %v13370_v55, %v6091_v17 }
 0x776   : > { %v5937_v39 = vadd.f32 %v5927_v19, %v5836_v29  ;;  %6151 = vrot.lane.b32.xlu2 %v13401_v11, %s8184_s8  ;;  %v6552_v15 = vsel %vm13803_vm13, %v6550_v40, %v6551_v44  ;;  %v6121_v36 = vsel %vm13804_vm15, %v6118_v24, %v6120_v61  ;;  %v6136_v8 = vsel %vm465_vm0, %v6133_v20, %v6135_v14 }
 0x777   : > { %v6080_v51 = vsel %vm6057_vm4, %v6049_v41, %v6072_v43  ;;  %vm6058_vm14 = vcmp.gt.f32.partialorder %v6050_v7, 0.0  ;;  %v6073_v34 = vmul.f32 %v13362_v38, %v6050_v7  ;;  %v6114_v10 = vmax.f32 %v6099_v45, %v6106_v37 }
 0x778   : > { %v6523_v55 = vrot.slane %v6080_v51, 1  ;;  %v6538_v29 = vrot.slane %v6080_v51, 2  ;;  %v6027_v32 = vpop.f32.mrf.mxu3  ;;  %v6546_v21 = vmax.f32 %v6531_v3, %v6537_v48  ;;  %v6553_v18 = vrot.slane %v6080_v51, 3 }
 0x779   : > { %v6081_v26 = vsel %vm6058_vm14, %v6050_v7, %v6073_v34  ;;  %v6037_v46 = vadd.f32 %v6027_v32, %v5937_v39  ;;  %v6129_v31 = vmax.f32 %v6114_v10, %v6121_v36  ;;  %v6565_v24 = vrot.slane %v13374_v16, 4 }
 0x77a   : > { %v6524_v49 = vsel %vm1261_vm2, %v6521_v13, %v6523_v55  ;;  %v6092_v23 = vrot.slane %v6081_v26, 1  ;;  %v6107_v2 = vrot.slane %v6081_v26, 2  ;;  %v6122_v30 = vrot.slane %v6081_v26, 3 }
 0x77b   : > { %v6051_v40 = vadd.f32 %v13359_v57, %v6037_v46  ;;  %v13430_v59 = vmax.f32 %v6129_v31, %v6136_v8  ;;  %v6561_v27 = vmax.f32 %v6546_v21, %v6552_v15  ;;  %v6568_v0 = vrot.slane %v6080_v51, 4 }
 0x77c   : > { %v6093_v20 = vsel %vm1261_vm2, %v6090_v33, %v6092_v23  ;;  %v6137_v50 = vrot.slane %v6081_v26, 4  ;;  %v6108_v13 = vsel %vm2322_vm3, %v6105_v4, %v6107_v2  ;;  %v6123_v16 = vsel %vm13805_vm8, %v6120_v61, %v6122_v30 }
 0x77d   : > { %vm6059_vm1 = vcmp.gt.f32.partialorder %v6051_v40, 0.0  ;;  %v6074_v1 = vmul.f32 %v13362_v38, %v6051_v40  ;;  %6169 = vrot.lane.b32.xlu1 %v13430_v59, %s8183_s6  ;;  %6153 = vrot.lane.b32.xlu0 %v13430_v59, %s8184_s8  ;;  %v6100_v57 = vmax.f32 %v13393_v9, %v6093_v20  ;;  %v6567_v56 = vsel %vm465_vm0, %v6565_v24, %v6566_v63 }
 0x77e   : > { %6199 = vrot.lane.b32.xlu2 %v13401_v11, %s8182_s30  ;;  %v6532_v38 = vmax.f32 %v13386_v54, %v6524_v49  ;;  %v6539_v6 = vsel %vm2322_vm3, %v6536_v52, %v6538_v29  ;;  %v13453_v60 = vmax.f32 %v6561_v27, %v6567_v56  ;;  %v6554_v33 = vsel %vm13806_vm10, %v6551_v44, %v6553_v18 }
 0x77f   : > { %v13451_v22 = vsel %vm6059_vm1, %v6051_v40, %v6074_v1  ;;  %v6115_v47 = vmax.f32 %v6100_v57, %v6108_v13  ;;  %v6569_v52 = vsel %vm465_vm0, %v6566_v63, %v6568_v0  ;;  %v6138_v44 = vsel %vm465_vm0, %v6135_v14, %v6137_v50 }
 0x780   : > { %v6525_v4 = vrot.slane %v13451_v22, 1  ;;  %v6540_v62 = vrot.slane %v13451_v22, 2  ;;  %v6555_v41 = vrot.slane %v13451_v22, 3  ;;  %v6570_v5 = vrot.slane %v13451_v22, 4 }
 0x781   : > { %v6130_v17 = vmax.f32 %v6115_v47, %v6123_v16  ;;  %v6547_v61 = vmax.f32 %v6532_v38, %v6539_v6  ;;  %v6101_v39 = vmax.f32 %v6081_v26, %v6092_v23 }
 0x782   : > { %v6526_v3 = vsel %vm1261_vm2, %v6523_v55, %v6525_v4  ;;  %v6541_v43 = vsel %vm2322_vm3, %v6538_v29, %v6540_v62  ;;  %v6556_v7 = vsel %vm13807_vm9, %v6553_v18, %v6555_v41  ;;  %v6571_v63 = vsel %vm465_vm0, %v6568_v0, %v6570_v5 }
 0x783   : > { %v6145_v19 = vmax.f32 %v6130_v17, %v6138_v44  ;;  %v6562_v54 = vmax.f32 %v6547_v61, %v6554_v33  ;;  %v6533_v45 = vmax.f32 %v6080_v51, %v6526_v3  ;;  %v6116_v15 = vmax.f32 %v6101_v39, %v6107_v2 }
 0x784   : > { %vm6215_vm2 = vcmask 228352   ;;  %v6534_v17 = vmax.f32 %v13451_v22, %v6525_v4  ;;  %vm6290_vm3 = vcmask 113664  }
 0x785   : > { %6155 = vrot.lane.b32.xlu1 %v6145_v19, %s8184_s8  ;;  %6201 = vrot.lane.b32.xlu0 %v13430_v59, %s8182_s30  ;;  %v13483_v9 = vmax.f32 %v6562_v54, %v6569_v52  ;;  %v6548_v14 = vmax.f32 %v6533_v45, %v6541_v43  ;;  %v6131_v51 = vmax.f32 %v6116_v15, %v6122_v30 }
 0x786   : > { %6185 = vrot.lane.b32.xlu2 %v13430_v59, %s8185_s9  ;;  %v6549_v61 = vmax.f32 %v6534_v17, %v6540_v62 }
 0x787   : > { %v6563_v37 = vmax.f32 %v6548_v14, %v6556_v7  ;;  %v6146_v34 = vmax.f32 %v6131_v51, %v6137_v50 }
 0x788   : > { %v6564_v52 = vmax.f32 %v6549_v61, %v6555_v41 }
 0x789   : > { %v13487_v48 = vmax.f32 %v6563_v37, %v6571_v63 }
 0x78a   : > { %v13535_v4 = vmax.f32 %v6564_v52, %v6570_v5 }
 0x78d   : > { %6203 = vrot.lane.b32.xlu1 %v6145_v19, %s8182_s30  ;;  %6187 = vrot.lane.b32.xlu0 %v6145_v19, %s8185_s9 }
 0x78e   : > { %6171 = vrot.lane.b32.xlu2 %v6145_v19, %s8183_s6 }
 0x795   : > { %6189 = vrot.lane.b32.xlu1 %v6146_v34, %s8185_s9  ;;  %6173 = vrot.lane.b32.xlu0 %v6146_v34, %s8183_s6 }
 0x796   : > { %6157 = vrot.lane.b32.xlu2 %v6146_v34, %s8184_s8 }
 0x79e   : > { %6205 = vrot.lane.b32.xlu2 %v6146_v34, %s8182_s30 }
 0x7d0   : > { %v6152_v10 = vpop.permute.xlu2 %6151 }
 0x7d1   : > { %v6163_v29 = vmax.f32 %v13401_v11, %v6152_v10 }
 0x7d8   : > { %v6200_v55 = vpop.permute.xlu2 %6199 }
 0x7e0   : > { %v6186_v46 = vpop.permute.xlu2 %6185 }
 0x7e7   : > { %v6184_v32 = vpop.permute.xlu1 %6183  ;;  %v6168_v36 = vpop.permute.xlu0 %6167 }
 0x7e8   : > { %v6179_v8 = vmax.f32 %v6163_v29, %v6168_v36  ;;  %v6172_v30 = vpop.permute.xlu2 %6171 }
 0x7ea   : > { %v6195_v26 = vmax.f32 %v6179_v8, %v6184_v32 }
 0x7ec   : > { %v6211_v31 = vmax.f32 %v6195_v26, %v6200_v55 }
 0x7ee   : > { %6294 = vrot.lane.b32.xlu0 %v6211_v31, %s8190_s24  ;;  %7988 = vmatmul.msk.f32.vlgmr.msra.gmra.mxu2 %vm6215_vm2, %v6211_v31 }
 0x7ef   : > { %v6170_v21 = vpop.permute.xlu1 %6169  ;;  %v6154_v49 = vpop.permute.xlu0 %6153 }
 0x7f0   : > { %v6164_v23 = vmax.f32 %v13430_v59, %v6154_v49  ;;  %v6158_v57 = vpop.permute.xlu2 %6157 }
 0x7f1   : > { %v6166_v59 = vmax.f32 %v6146_v34, %v6158_v57 }
 0x7f2   : > { %v6180_v2 = vmax.f32 %v6164_v23, %v6170_v21 }
 0x7f4   : > { %v6196_v18 = vmax.f32 %v6180_v2, %v6186_v46 }
 0x7f7   : > { %v6156_v11 = vpop.permute.xlu1 %6155  ;;  %v6202_v40 = vpop.permute.xlu0 %6201 }
 0x7f8   : > { %v6212_v27 = vmax.f32 %v6196_v18, %v6202_v40  ;;  %v6165_v24 = vmax.f32 %v6145_v19, %v6156_v11  ;;  %v6206_v47 = vpop.permute.xlu2 %6205 }
 0x7fa   : > { %6296 = vrot.lane.b32.xlu1 %v6212_v27, %s8190_s24  ;;  %7989 = vmatmul.msk.f32.gmra.mxu2 %vm6215_vm2, %v6212_v27  ;;  %v6181_v0 = vmax.f32 %v6165_v24, %v6172_v30 }
 0x7ff   : > { %v6204_v20 = vpop.permute.xlu1 %6203  ;;  %v6188_v50 = vpop.permute.xlu0 %6187 }
 0x800   : > { %v6197_v1 = vmax.f32 %v6181_v0, %v6188_v50 }
 0x802   : > { %v6213_v13 = vmax.f32 %v6197_v1, %v6204_v20  ;;  %6368 = vrot.lane.b32.xlu1 %v6211_v31, %s8191_s25 }
 0x804   : > { %6298 = vrot.lane.b32.xlu2 %v6213_v13, %s8190_s24  ;;  %7990 = vmatmul.msk.f32.gmra.mxu2 %vm6215_vm2, %v6213_v13 }
 0x807   : > { %v6174_v16 = vpop.permute.xlu0 %6173  ;;  %v6190_v38 = vpop.permute.xlu1 %6189 }
 0x808   : > { %v6182_v56 = vmax.f32 %v6166_v59, %v6174_v16 }
 0x80a   : > { %v6198_v6 = vmax.f32 %v6182_v56, %v6190_v38  ;;  %6442 = vrot.lane.b32.xlu1 %v6211_v31, %s8192_s26 }
 0x80c   : > { %v6214_v33 = vmax.f32 %v6198_v6, %v6206_v47  ;;  %6370 = vrot.lane.b32.xlu2 %v6212_v27, %s8191_s25 }
 0x80e   : > { %6300 = vrot.lane.b32.xlu0 %v6214_v33, %s8190_s24  ;;  %7991 = vmatmul.msk.f32.gmra.mxu2 %vm6215_vm2, %v6214_v33 }
 0x812   : > { %6446 = vrot.lane.b32.xlu1 %v6213_v13, %s8192_s26 }
 0x814   : > { %6374 = vrot.lane.b32.xlu2 %v6214_v33, %s8191_s25 }
 0x816   : > { %6372 = vrot.lane.b32.xlu0 %v6213_v13, %s8191_s25 }
 0x81a   : > { %6600 = vrot.lane.b32.xlu1 %v13453_v60, %s8183_s6 }
 0x81c   : > { %6448 = vrot.lane.b32.xlu2 %v6214_v33, %s8192_s26 }
 0x81e   : > { %6444 = vrot.lane.b32.xlu0 %v6212_v27, %s8192_s26 }
 0x822   : > { %6586 = vrot.lane.b32.xlu1 %v13483_v9, %s8184_s8 }
 0x824   : > { %6616 = vrot.lane.b32.xlu2 %v13453_v60, %s8185_s9 }
 0x826   : > { %6584 = vrot.lane.b32.xlu0 %v13453_v60, %s8184_s8 }
 0x82a   : > { %6634 = vrot.lane.b32.xlu1 %v13483_v9, %s8182_s30 }
 0x82c   : > { %6602 = vrot.lane.b32.xlu2 %v13483_v9, %s8183_s6 }
 0x82e   : > { %6632 = vrot.lane.b32.xlu0 %v13453_v60, %s8182_s30 }
 0x832   : > { %6620 = vrot.lane.b32.xlu1 %v13487_v48, %s8185_s9 }
 0x834   : > { %6588 = vrot.lane.b32.xlu2 %v13487_v48, %s8184_s8 }
 0x836   : > { %6618 = vrot.lane.b32.xlu0 %v13483_v9, %s8185_s9 }
 0x83a   : > { %6606 = vrot.lane.b32.xlu1 %v13535_v4, %s8183_s6 }
 0x83c   : > { %6636 = vrot.lane.b32.xlu2 %v13487_v48, %s8182_s30 }
 0x83e   : > { %6604 = vrot.lane.b32.xlu0 %v13487_v48, %s8183_s6 }
 0x844   : > { %6622 = vrot.lane.b32.xlu2 %v13535_v4, %s8185_s9 }
 0x846   : > { %6590 = vrot.lane.b32.xlu0 %v13535_v4, %s8184_s8 }
 0x84e   : > { %6638 = vrot.lane.b32.xlu0 %v13535_v4, %s8182_s30  ;;  %s8068_s30 = smul.u32 96, %s13809_s29 }
 0x850   : > { %s13620_s9 = scalar_lea.vmem %s13680_s7, %s8068_s30 }
 0x85e   : > { %v6299_v41 = vpop.permute.xlu2 %6298 }
 0x860   : > { %v6295_v22 = vpop.permute.xlu0 %6294 }
 0x861   : > { %7999 = vmatmul.msk.f32.vlgmr.msrb.gmra.mxu0 %vm6215_vm2, %v6295_v22 }
 0x866   : > { %v6371_v3 = vpop.permute.xlu2 %6370 }
 0x86c   : > { %v6297_v62 = vpop.permute.xlu1 %6296 }
 0x86d   : > { %8000 = vmatmul.msk.f32.gmra.mxu0 %vm6215_vm2, %v6297_v62 }
 0x86e   : > { %v6375_v54 = vpop.permute.xlu2 %6374 }
 0x871   : > { %v6248_v44 = vpop.f32.mrf.mxu2 }
 0x874   : > { %v6369_v5 = vpop.permute.xlu1 %6368 }
 0x875   : > { %8001 = vmatmul.msk.f32.gmra.mxu0 %vm6215_vm2, %v6299_v41  ;;  %8012 = vmatmul.msk.f32.vlgmr.msrb.gmra.mxu2 %vm6215_vm2, %v6369_v5 }
 0x876   : > { %v13560_v39 = vpop.permute.xlu2 %6448 }
 0x87c   : > { %v13554_v43 = vpop.permute.xlu1 %6442 }
 0x87d   : > { %8013 = vmatmul.msk.f32.gmra.mxu2 %vm6215_vm2, %v6371_v3  ;;  %v6251_v19 = vpop.f32.mrf.mxu2 }
 0x87e   : > { %v6617_v34 = vpop.permute.xlu2 %6616 }
 0x880   : > { %v6301_v7 = vpop.permute.xlu0 %6300 }
 0x881   : > { %8002 = vmatmul.msk.f32.gmra.mxu0 %vm6215_vm2, %v6301_v7 }
 0x884   : > { %v13557_v45 = vpop.permute.xlu1 %6446 }
 0x886   : > { %v6603_v8 = vpop.permute.xlu2 %6602 }
 0x887   : > { %v6254_v14 = vpop.f32.mrf.mxu2 }
 0x888   : > { %v6373_v63 = vpop.permute.xlu0 %6372 }
 0x889   : > { %8014 = vmatmul.msk.f32.gmra.mxu2 %vm6215_vm2, %v6373_v63 }
 0x88c   : > { %v6601_v51 = vpop.permute.xlu1 %6600 }
 0x88e   : > { %v6589_v2 = vpop.permute.xlu2 %6588 }
 0x88f   : > { %v6598_v18 = vmax.f32 %v13487_v48, %v6589_v2 }
 0x890   : > { %v13562_v37 = vpop.permute.xlu0 %6444 }
 0x891   : > { %v6257_v15 = vpop.f32.mrf.mxu2  ;;  %8015 = vmatmul.msk.f32.gmra.mxu2 %vm6215_vm2, %v6375_v54 }
 0x892   : > { %7992 = vmatpush.msk.msrb.mxu1 %vm465_vm0, %v6257_v15 }
 0x894   : > { %6280 = vmatpush.msrb.mxu1 %v6254_v14  ;;  %v6587_v32 = vpop.permute.xlu1 %6586 }
 0x895   : > { %v6597_v31 = vmax.f32 %v13483_v9, %v6587_v32 }
 0x896   : > { %6281 = vmatpush.msrb.mxu1 %v6251_v19  ;;  %v6637_v24 = vpop.permute.xlu2 %6636 }
 0x898   : > { %v6585_v10 = vpop.permute.xlu0 %6584  ;;  %6282 = vmatpush.msrb.mxu1 %v6248_v44 }
 0x899   : > { %v6596_v55 = vmax.f32 %v13453_v60, %v6585_v10  ;;  %7993 = vmatmul.msk.f32.vlgmr.msrb.gmra.mxu1 %vm6215_vm2, %v12700_v28  ;;  %v6613_v60 = vmax.f32 %v6597_v31, %v6603_v8 }
 0x89b   : > { %v6612_v29 = vmax.f32 %v6596_v55, %v6601_v51 }
 0x89c   : > { %v6635_v21 = vpop.permute.xlu1 %6634 }
 0x89d   : > { %v6628_v36 = vmax.f32 %v6612_v29, %v6617_v34 }
 0x89e   : > { %v6623_v13 = vpop.permute.xlu2 %6622 }
 0x8a0   : > { %v6633_v26 = vpop.permute.xlu0 %6632 }
 0x8a1   : > { %v6644_v46 = vmax.f32 %v6628_v36, %v6633_v26  ;;  %7994 = vmatmul.msk.f32.gmra.mxu1 %vm6215_vm2, %v12718_v58 }
 0x8a3   : > { %6718 = vrot.lane.b32.xlu1 %v6644_v46, %s8190_s24  ;;  %8038 = vmatmul.msk.f32.vlgmr.msra.gmra.mxu0 %vm6215_vm2, %v6644_v46 }
 0x8a4   : > { %v6621_v11 = vpop.permute.xlu1 %6620 }
 0x8a8   : > { %v6619_v49 = vpop.permute.xlu0 %6618 }
 0x8a9   : > { %v6629_v23 = vmax.f32 %v6613_v60, %v6619_v49 }
 0x8ab   : > { %v6645_v30 = vmax.f32 %v6629_v23, %v6635_v21 }
 0x8ac   : > { %v6607_v1 = vpop.permute.xlu1 %6606 }
 0x8ad   : > { %6720 = vrot.lane.b32.xlu2 %v6645_v30, %s8190_s24  ;;  %8039 = vmatmul.msk.f32.gmra.mxu0 %vm6215_vm2, %v6645_v30 }
 0x8b0   : > { %v6605_v40 = vpop.permute.xlu0 %6604 }
 0x8b1   : > { %v6614_v27 = vmax.f32 %v6598_v18, %v6605_v40 }
 0x8b3   : > { %v6630_v9 = vmax.f32 %v6614_v27, %v6621_v11 }
 0x8b5   : > { %v6646_v0 = vmax.f32 %v6630_v9, %v6637_v24 }
 0x8b7   : > { %6722 = vrot.lane.b32.xlu0 %v6646_v0, %s8190_s24  ;;  %8040 = vmatmul.msk.f32.gmra.mxu0 %vm6215_vm2, %v6646_v0 }
 0x8b8   : > { %v6591_v20 = vpop.permute.xlu0 %6590 }
 0x8b9   : > { %v6599_v50 = vmax.f32 %v13535_v4, %v6591_v20 }
 0x8bb   : > { %v6615_v57 = vmax.f32 %v6599_v50, %v6607_v1 }
 0x8bd   : > { %v6631_v59 = vmax.f32 %v6615_v57, %v6623_v13 }
 0x8c0   : > { %v6639_v16 = vpop.permute.xlu0 %6638 }
 0x8c1   : > { %v6647_v56 = vmax.f32 %v6631_v59, %v6639_v16 }
 0x8c3   : > { %6724 = vrot.lane.b32.xlu1 %v6647_v56, %s8190_s24  ;;  %8041 = vmatmul.msk.f32.gmra.mxu0 %vm6215_vm2, %v6647_v56 }
 0x8de   : > { %v6327_v48 = vpop.f32.mrf.mxu0 }
 0x8ea   : > { %v6330_v38 = vpop.f32.mrf.mxu0 }
 0x8f2   : > { %v6333_v6 = vpop.f32.mrf.mxu0 }
 0x8f8   : > { %v6401_v47 = vpop.f32.mrf.mxu2 }
 0x8fe   : > { %v6336_v33 = vpop.f32.mrf.mxu0 }
 0x8ff   : > { %8003 = vmatpush.msk.msrb.mxu3 %vm465_vm0, %v6336_v33 }
 0x900   : > { %v6404_v17 = vpop.f32.mrf.mxu2 }
 0x901   : > { %6355 = vmatpush.msrb.mxu3 %v6333_v6 }
 0x903   : > { %6356 = vmatpush.msrb.mxu3 %v6330_v38 }
 0x905   : > { %6357 = vmatpush.msrb.mxu3 %v6327_v48 }
 0x906   : > { %8004 = vmatmul.msk.f32.vlgmr.msrb.gmra.mxu3 %vm6215_vm2, %v12700_v28 }
 0x907   : > { %8021 = vmatpush.msk.msra.mxu3 %vm465_vm0, %v13244_v53  ;;  %v6721_v12 = vpop.permute.xlu2 %6720 }
 0x909   : > { %8022 = vmatpush.msk.msra.mxu3 %vm12302_vm5, %v13790_v42 }
 0x90b   : > { %8023 = vmatpush.msk.msra.mxu3 %vm12326_vm6, %v13790_v42 }
 0x90c   : > { %v6407_v61 = vpop.f32.mrf.mxu2 }
 0x90d   : > { %8024 = vmatpush.msk.msra.mxu3 %vm12336_vm7, %v13790_v42 }
 0x90e   : > { %8005 = vmatmul.msk.f32.gmra.mxu3 %vm6215_vm2, %v12718_v58 }
 0x914   : > { %v6410_v52 = vpop.f32.mrf.mxu2 }
 0x915   : > { %8016 = vmatpush.msk.msra.mxu1 %vm465_vm0, %v6410_v52 }
 0x916   : > { %8025 = vmatmul.msk.f32.vlgmr.msra.gmra.mxu3 %vm6215_vm2, %v13554_v43  ;;  %v6284_v54 = vpop.f32.mrf.mxu1 }
 0x917   : > { %6429 = vmatpush.msra.mxu1 %v6407_v61  ;;  %6291 = vst.msk [vmem:[%s13620_s9] sm:$0xff] %vm6290_vm3, %v6284_v54 }
 0x919   : > { %6430 = vmatpush.msra.mxu1 %v6404_v17 }
 0x91b   : > { %6431 = vmatpush.msra.mxu1 %v6401_v47 }
 0x91c   : > { %8017 = vmatmul.msk.f32.vlgmr.msra.gmra.mxu1 %vm6215_vm2, %v12700_v28 }
 0x91e   : > { %8026 = vmatmul.msk.f32.gmra.mxu3 %vm6215_vm2, %v13562_v37  ;;  %v6287_v25 = vpop.f32.mrf.mxu1 }
 0x91f   : > { %6293 = vst.msk [vmem:[%s13620_s9 + $0x8] sm:$0x3f] %vm6292_vm11, %v6287_v25 }
 0x920   : > { %v6677_v4 = vpop.f32.mrf.mxu0 }
 0x924   : > { %8018 = vmatmul.msk.f32.gmra.mxu1 %vm6215_vm2, %v12718_v58 }
 0x926   : > { %8027 = vmatmul.msk.f32.gmra.mxu3 %vm6215_vm2, %v13557_v45 }
 0x92a   : > { %v6680_v22 = vpop.f32.mrf.mxu0 }
 0x92e   : > { %8028 = vmatmul.msk.f32.gmra.mxu3 %vm6215_vm2, %v13560_v39 }
 0x934   : > { %v6683_v62 = vpop.f32.mrf.mxu0 }
 0x940   : > { %v6686_v41 = vpop.f32.mrf.mxu0 }
 0x941   : > { %8042 = vmatpush.msk.msra.mxu2 %vm465_vm0, %v6686_v41 }
 0x943   : > { %6705 = vmatpush.msra.mxu2 %v6683_v62 }
 0x945   : > { %6706 = vmatpush.msra.mxu2 %v6680_v22 }
 0x947   : > { %6707 = vmatpush.msra.mxu2 %v6677_v4 }
 0x948   : > { %8043 = vmatmul.msk.f32.vlgmr.msra.gmra.mxu2 %vm6215_vm2, %v12700_v28 }
 0x950   : > { %8044 = vmatmul.msk.f32.gmra.mxu2 %vm6215_vm2, %v12718_v58 }
 0x989   : > { %v6359_v5 = vpop.f32.mrf.mxu3 }
 0x98a   : > { %8006 = vst.msk [vmem:[%s13620_s9 + $0x10] sm:$0xff] %vm6290_vm3, %v6359_v5 }
 0x991   : > { %v6362_v3 = vpop.f32.mrf.mxu3 }
 0x992   : > { %8007 = vst.msk [vmem:[%s13620_s9 + $0x18] sm:$0x3f] %vm6292_vm11, %v6362_v3 }
 0x999   : > { %v6475_v44 = vpop.f32.mrf.mxu3  ;;  %v6433_v35 = vpop.f32.mrf.mxu1 }
 0x99a   : > { %8019 = vst.msk [vmem:[%s13620_s9 + $0x20] sm:$0xff] %vm6290_vm3, %v6433_v35 }
 0x9a1   : > { %v6478_v43 = vpop.f32.mrf.mxu3  ;;  %v6436_v45 = vpop.f32.mrf.mxu1 }
 0x9a2   : > { %8020 = vst.msk [vmem:[%s13620_s9 + $0x28] sm:$0x3f] %vm6292_vm11, %v6436_v45 }
 0x9a9   : > { %v6481_v7 = vpop.f32.mrf.mxu3 }
 0x9b1   : > { %v6484_v19 = vpop.f32.mrf.mxu3 }
 0x9b2   : > { %8029 = vmatpush.msk.msrb.mxu1 %vm465_vm0, %v6484_v19 }
 0x9b4   : > { %6503 = vmatpush.msrb.mxu1 %v6481_v7 }
 0x9b6   : > { %6504 = vmatpush.msrb.mxu1 %v6478_v43 }
 0x9b8   : > { %6505 = vmatpush.msrb.mxu1 %v6475_v44 }
 0x9b9   : > { %8030 = vmatmul.msk.f32.vlgmr.msrb.gmra.mxu1 %vm6215_vm2, %v12700_v28 }
 0x9ba   : > { %8047 = vmatpush.msk.msra.mxu1 %vm465_vm0, %v13244_v53  ;;  %v6719_v53 = vpop.permute.xlu1 %6718 }
 0x9bc   : > { %8048 = vmatpush.msk.msra.mxu1 %vm12302_vm5, %v13790_v42 }
 0x9be   : > { %8049 = vmatpush.msk.msra.mxu1 %vm12326_vm6, %v13790_v42 }
 0x9c0   : > { %8050 = vmatpush.msk.msra.mxu1 %vm12336_vm7, %v13790_v42  ;;  %v6723_v42 = vpop.permute.xlu0 %6722 }
 0x9c1   : > { %8031 = vmatmul.msk.f32.gmra.mxu1 %vm6215_vm2, %v12718_v58 }
 0x9c2   : > { %v6725_v63 = vpop.permute.xlu1 %6724 }
 0x9c9   : > { %8051 = vmatmul.msk.f32.vlgmr.msra.gmra.mxu1 %vm6215_vm2, %v6719_v53 }
 0x9cb   : > { %v6709_v51 = vpop.f32.mrf.mxu2 }
 0x9cc   : > { %8045 = vst.msk [vmem:[%s13620_s9 + $0x40] sm:$0xff] %vm6290_vm3, %v6709_v51 }
 0x9d1   : > { %8052 = vmatmul.msk.f32.gmra.mxu1 %vm6215_vm2, %v6721_v12 }
 0x9d3   : > { %v6712_v55 = vpop.f32.mrf.mxu2 }
 0x9d4   : > { %8046 = vst.msk [vmem:[%s13620_s9 + $0x48] sm:$0x3f] %vm6292_vm11, %v6712_v55 }
 0x9d9   : > { %8053 = vmatmul.msk.f32.gmra.mxu1 %vm6215_vm2, %v6723_v42 }
 0x9e1   : > { %8054 = vmatmul.msk.f32.gmra.mxu1 %vm6215_vm2, %v6725_v63 }
 0xa36   : > { %v6507_v14 = vpop.f32.mrf.mxu1 }
 0xa37   : > { %8032 = vst.msk [vmem:[%s13620_s9 + $0x30] sm:$0xff] %vm6290_vm3, %v6507_v14 }
 0xa3e   : > { %v6510_v39 = vpop.f32.mrf.mxu1 }
 0xa3f   : > { %8033 = vst.msk [vmem:[%s13620_s9 + $0x38] sm:$0x3f] %vm6292_vm11, %v6510_v39 }
 0xa46   : > { %v6751_v37 = vpop.f32.mrf.mxu1 }
 0xa4e   : > { %v6754_v15 = vpop.f32.mrf.mxu1 }
 0xa56   : > { %v6757_v34 = vpop.f32.mrf.mxu1 }
 0xa5e   : > { %v6760_v10 = vpop.f32.mrf.mxu1 }
 0xa5f   : > { %8055 = vmatpush.msk.msrb.mxu3 %vm465_vm0, %v6760_v10 }
 0xa61   : > { %6779 = vmatpush.msrb.mxu3 %v6757_v34 }
 0xa63   : > { %6780 = vmatpush.msrb.mxu3 %v6754_v15 }
 0xa65   : > { %6781 = vmatpush.msrb.mxu3 %v6751_v37 }
 0xa66   : > { %8056 = vmatmul.msk.f32.vlgmr.msrb.gmra.mxu3 %vm6215_vm2, %v12700_v28 }
 0xa6e   : > { %8057 = vmatmul.msk.f32.gmra.mxu3 %vm6215_vm2, %v12718_v58 }
 0xae9   : > { %v6783_v29 = vpop.f32.mrf.mxu3 }
 0xaea   : > { %8058 = vst.msk [vmem:[%s13620_s9 + $0x50] sm:$0xff] %vm6290_vm3, %v6783_v29 }
 0xaf1   : > { %v6786_v32 = vpop.f32.mrf.mxu3 }
 0xaf2   : > { %8059 = vst.msk [vmem:[%s13620_s9 + $0x58] sm:$0x3f] %vm6292_vm11, %v6786_v32 }
 0xaf3 PF: > { %s21_s28 = sadd.s32 1, %s8179_s28  }
 0xaf4   : > { %p18_p4 = scmp.ge.s32.totalorder %s21_s28, 4  }
 0xaf6   :  { %20 = sbr.rel (!%p18_p4) target bundleno = 4 (0x4), region = 103 }

</bundles_post_ra>
